<compile_context>
chip_gen: v6e
topology: v6e:2x2x1
jax: 0.10.0
libtpu: 0.0.40
codegen_flags: <defaults>
</compile_context>

<pallas_src>
import functools

import jax
import jax.numpy as jnp
from jax.experimental import pallas as pl
from jax.experimental.pallas import tpu as pltpu


_PADL = 8   # sublane-aligned left padding for the depthwise halo scratch


# ----------------------------------------------------------------------------
# Kernel 1: fused stem — (im2col patches) @ W + bias + SiLU, written NHWC
# ----------------------------------------------------------------------------
def _stem_kernel(p_ref, w_ref, b_ref, o_ref, *, Ho, Wo):
    K = p_ref.shape[-1]
    C = o_ref.shape[-1]
    p = p_ref[...].reshape(Ho * Wo, K)
    y = jnp.dot(p.astype(jnp.bfloat16), w_ref[...].astype(jnp.bfloat16),
                preferred_element_type=jnp.float32) + b_ref[...]
    y = y * jax.nn.sigmoid(y)                                    # SiLU in f32
    o_ref[...] = y.reshape(1, Ho, Wo, C).astype(o_ref.dtype)


def stem_conv(patches, w, b, Ho, Wo):
    N, HW, K = patches.shape
    C = w.shape[-1]
    return pl.pallas_call(
        functools.partial(_stem_kernel, Ho=Ho, Wo=Wo),
        out_shape=jax.ShapeDtypeStruct((N, Ho, Wo, C), jnp.float32),
        grid=(N,),
        in_specs=[
            pl.BlockSpec((1, HW, K), lambda n: (n, 0, 0)),
            pl.BlockSpec((K, C), lambda n: (0, 0)),
            pl.BlockSpec((1, C), lambda n: (0, 0)),
        ],
        out_specs=pl.BlockSpec((1, Ho, Wo, C), lambda n: (n, 0, 0, 0)),
        compiler_params=pltpu.CompilerParams(dimension_semantics=("parallel",)),
    )(patches, w, b.reshape(1, C))


# ----------------------------------------------------------------------------
# Kernel 2: fully-fused MBConv block (one launch per batch element).
#   expand 1x1 + SiLU -> depthwise 3x3 + SiLU -> GAP -> SE FC1(SiLU)/FC2(sigmoid)
#   -> channel scale -> project 1x1 (+ residual)
# ----------------------------------------------------------------------------
def _mbconv_kernel(x_ref, ew_ref, eb_ref, dw_ref, db_ref,
                   sw1_ref, sb1_ref, sw2_ref, sb2_ref,
                   pw_ref, pb_ref, o_ref, hpad_ref,
                   *, H, W, residual):
    Cin = x_ref.shape[-1]
    Ce = ew_ref.shape[-1]
    Cout = o_ref.shape[-1]
    HW = H * W

    x2 = x_ref[...].reshape(HW, Cin)                             # (HW, Cin) f32

    # ---- expand 1x1 conv + folded-BN bias + SiLU (bf16 MXU, f32 accumulate)
    y = jnp.dot(x2.astype(jnp.bfloat16), ew_ref[...].astype(jnp.bfloat16),
                preferred_element_type=jnp.float32) + eb_ref[...]
    y = y * jax.nn.sigmoid(y)

    # ---- depthwise 3x3 (stride 1, pad 1) + bias + SiLU; halo kept in VMEM.
    # Scratch rows 0 / H+1 and the columns just outside [_PADL, _PADL+W) are
    # zero.  The activation is stored at a sublane-aligned offset (_PADL = 8),
    # so the store is aligned; the 9 taps use static offset reads only.
    hpad_ref[...] = jnp.zeros_like(hpad_ref)
    hpad_ref[1:H + 1, _PADL:_PADL + W, :] = y.reshape(H, W, Ce)

    w9 = dw_ref[...]                                             # (9, Ce)
    acc = jnp.zeros((H, W, Ce), jnp.float32)
    for ky in range(3):                                          # static unrolled taps
        for kx in range(3):
            c0 = _PADL + kx - 1
            tap = hpad_ref[ky:ky + H, c0:c0 + W, :]
            acc = acc + tap * w9[ky * 3 + kx].reshape(1, 1, Ce)
    acc = acc + db_ref[...].reshape(1, 1, Ce)
    acc = acc * jax.nn.sigmoid(acc)
    dw2 = acc.reshape(HW, Ce)

    # ---- squeeze-excite: GAP -> FC1 (SiLU) -> FC2 (sigmoid) -> channel scale
    s = jnp.mean(dw2, axis=0, keepdims=True)                     # (1, Ce)
    s = jnp.dot(s.astype(jnp.bfloat16), sw1_ref[...].astype(jnp.bfloat16),
                preferred_element_type=jnp.float32) + sb1_ref[...]
    s = s * jax.nn.sigmoid(s)
    s = jnp.dot(s.astype(jnp.bfloat16), sw2_ref[...].astype(jnp.bfloat16),
                preferred_element_type=jnp.float32) + sb2_ref[...]
    s = jax.nn.sigmoid(s)
    scaled = dw2 * s                                             # broadcast over rows

    # ---- project 1x1 conv + folded-BN bias (linear) [+ residual]
    out = jnp.dot(scaled.astype(jnp.bfloat16), pw_ref[...].astype(jnp.bfloat16),
                  preferred_element_type=jnp.float32) + pb_ref[...]
    if residual:
        out = out + x2
    o_ref[...] = out.reshape(1, H, W, Cout).astype(o_ref.dtype)


def mbconv_block(p, x, residual):
    N, H, W, Cin = x.shape
    Ce = p["expand_w"].shape[-1]
    Cse = p["se_w1"].shape[-1]
    Cout = p["proj_w"].shape[-1]
    kernel = functools.partial(_mbconv_kernel, H=H, W=W, residual=residual)
    return pl.pallas_call(
        kernel,
        out_shape=jax.ShapeDtypeStruct((N, H, W, Cout), jnp.float32),
        grid=(N,),
        in_specs=[
            pl.BlockSpec((1, H, W, Cin), lambda n: (n, 0, 0, 0)),
            pl.BlockSpec((Cin, Ce), lambda n: (0, 0)),
            pl.BlockSpec((1, Ce), lambda n: (0, 0)),
            pl.BlockSpec((9, Ce), lambda n: (0, 0)),
            pl.BlockSpec((1, Ce), lambda n: (0, 0)),
            pl.BlockSpec((Ce, Cse), lambda n: (0, 0)),
            pl.BlockSpec((1, Cse), lambda n: (0, 0)),
            pl.BlockSpec((Cse, Ce), lambda n: (0, 0)),
            pl.BlockSpec((1, Ce), lambda n: (0, 0)),
            pl.BlockSpec((Ce, Cout), lambda n: (0, 0)),
            pl.BlockSpec((1, Cout), lambda n: (0, 0)),
        ],
        out_specs=pl.BlockSpec((1, H, W, Cout), lambda n: (n, 0, 0, 0)),
        scratch_shapes=[pltpu.VMEM((H + 2, W + 2 * _PADL, Ce), jnp.float32)],
        compiler_params=pltpu.CompilerParams(dimension_semantics=("parallel",)),
    )(x,
      p["expand_w"], p["expand_b"].reshape(1, Ce),
      p["dw_w"], p["dw_b"].reshape(1, Ce),
      p["se_w1"], p["se_b1"].reshape(1, Cse),
      p["se_w2"], p["se_b2"].reshape(1, Ce),
      p["proj_w"], p["proj_b"].reshape(1, Cout))


# ----------------------------------------------------------------------------
# Kernel 3: fused head conv + SiLU + global-average-pool + classifier
# ----------------------------------------------------------------------------
def _head_kernel(x_ref, hw_ref, hb_ref, fw_ref, fb_ref, o_ref, *, H, W):
    C = x_ref.shape[-1]
    x = x_ref[...].reshape(H * W, C)
    y = jnp.dot(x.astype(jnp.bfloat16), hw_ref[...].astype(jnp.bfloat16),
                preferred_element_type=jnp.float32) + hb_ref[...]
    y = y * jax.nn.sigmoid(y)
    feat = jnp.mean(y, axis=0, keepdims=True)                    # GAP -> (1, C_head)
    logits = jnp.dot(feat.astype(jnp.bfloat16), fw_ref[...].astype(jnp.bfloat16),
                     preferred_element_type=jnp.float32) + fb_ref[...]
    o_ref[...] = logits.reshape(1, 1, -1).astype(o_ref.dtype)


def head_pool_fc(x, hw, hb, fw, fb):
    N, H, W, C = x.shape
    Ch = hw.shape[-1]
    Ncls = fw.shape[-1]
    out = pl.pallas_call(
        functools.partial(_head_kernel, H=H, W=W),
        out_shape=jax.ShapeDtypeStruct((N, 1, Ncls), jnp.float32),
        grid=(N,),
        in_specs=[
            pl.BlockSpec((1, H, W, C), lambda n: (n, 0, 0, 0)),
            pl.BlockSpec((C, Ch), lambda n: (0, 0)),
            pl.BlockSpec((1, Ch), lambda n: (0, 0)),
            pl.BlockSpec((Ch, Ncls), lambda n: (0, 0)),
            pl.BlockSpec((1, Ncls), lambda n: (0, 0)),
        ],
        out_specs=pl.BlockSpec((1, 1, Ncls), lambda n: (n, 0, 0)),
        compiler_params=pltpu.CompilerParams(dimension_semantics=("parallel",)),
    )(x, hw, hb.reshape(1, Ch), fw, fb.reshape(1, Ncls))
    return out.reshape(N, Ncls)


# ----------------------------------------------------------------------------
# Glue: im2col for the 3x3 stride-2 stem conv.  Kept in XLA on purpose: the raw
# input is ~28 KB with Cin=3 (hopelessly lane-sparse), so an in-kernel strided
# gather buys nothing; the conv compute itself runs in the Pallas stem kernel.
# ----------------------------------------------------------------------------
def extract_patches_3x3_s2(x):
    N, H, W, C = x.shape
    Ho, Wo = H // 2, W // 2
    xp = jnp.pad(x, ((0, 0), (1, 1), (1, 1), (0, 0)))
    patches = []
    for dy in range(3):
        for dx in range(3):
            patches.append(xp[:, dy::2, dx::2, :][:, :Ho, :Wo, :])
    return jnp.concatenate(patches, axis=-1)     # (N, Ho, Wo, 9*C)


# ----------------------------------------------------------------------------
# Parameter init (deterministic; BatchNorm folded to scale/bias: eval mode).
# Channel counts chosen so the expanded/depthwise/head activations are 128 lanes.
# ----------------------------------------------------------------------------
def _bn_fold(key, cout, eps=1e-5):
    k1, k2, k3, k4 = jax.random.split(key, 4)
    gamma = 1.0 + 0.1 * jax.random.normal(k1, (cout,))
    beta = 0.1 * jax.random.normal(k2, (cout,))
    mean = 0.1 * jax.random.normal(k3, (cout,))
    var = 1.0 + 0.1 * jax.random.uniform(k4, (cout,))
    scale = gamma / jnp.sqrt(var + eps)
    bias = beta - mean * scale
    return scale.astype(jnp.float32), bias.astype(jnp.float32)


def init_params(key, num_classes=10):
    cin, c_stem, c_out2, c_head, exp = 3, 32, 64, 128, 4   # Ce = 32*4 = 128 (lane-dense)
    keys = iter(jax.random.split(key, 40))

    def nrm(k, shape, fan_in):
        return (jax.random.normal(k, shape) / jnp.sqrt(fan_in)).astype(jnp.float32)

    params = {}
    # stem: 3x3 stride-2 conv (3 -> 32), folded BN, SiLU
    w = nrm(next(keys), (3, 3, cin, c_stem), 9 * cin)
    sc, bi = _bn_fold(next(keys), c_stem)
    params["stem"] = dict(w=(w * sc).reshape(9 * cin, c_stem).astype(jnp.float32), b=bi)

    def make_block(cin_b, cout_b):
        ce = cin_b * exp
        cse = max(1, cin_b // 4)
        blk = {}
        w = nrm(next(keys), (cin_b, ce), cin_b)
        sc, bi = _bn_fold(next(keys), ce)
        blk["expand_w"], blk["expand_b"] = (w * sc).astype(jnp.float32), bi
        w = nrm(next(keys), (3, 3, ce), 9)
        sc, bi = _bn_fold(next(keys), ce)
        blk["dw_w"], blk["dw_b"] = (w * sc).reshape(9, ce).astype(jnp.float32), bi
        blk["se_w1"] = nrm(next(keys), (ce, cse), ce)
        blk["se_b1"] = jnp.zeros((cse,), jnp.float32)
        blk["se_w2"] = nrm(next(keys), (cse, ce), cse)
        blk["se_b2"] = jnp.zeros((ce,), jnp.float32)
        w = nrm(next(keys), (ce, cout_b), ce)
        sc, bi = _bn_fold(next(keys), cout_b)
        blk["proj_w"], blk["proj_b"] = (w * sc).astype(jnp.float32), bi
        return blk

    params["block1"] = make_block(c_stem, c_stem)     # residual MBConv
    params["block2"] = make_block(c_stem, c_out2)     # no residual (channel change)
    w = nrm(next(keys), (c_out2, c_head), c_out2)
    sc, bi = _bn_fold(next(keys), c_head)
    params["head"] = dict(w=(w * sc).astype(jnp.float32), b=bi)
    params["fc"] = dict(w=nrm(next(keys), (c_head, num_classes), c_head),
                        b=jnp.zeros((num_classes,), jnp.float32))
    return params


# ----------------------------------------------------------------------------
# Forward pass: 4 Pallas launches (stem, block1, block2, head).
# ----------------------------------------------------------------------------
def efficientnet_forward(params, x_nchw):
    x = jnp.transpose(x_nchw, (0, 2, 3, 1)).astype(jnp.float32)   # NCHW -> NHWC
    N = x.shape[0]
    patches = extract_patches_3x3_s2(x)
    _, Ho, Wo, K = patches.shape
    x = stem_conv(patches.reshape(N, Ho * Wo, K),
                  params["stem"]["w"], params["stem"]["b"], Ho, Wo)
    x = mbconv_block(params["block1"], x, residual=True)
    x = mbconv_block(params["block2"], x, residual=False)
    return head_pool_fc(x, params["head"]["w"], params["head"]["b"],
                        params["fc"]["w"], params["fc"]["b"])


# TODO(synk): pretrained timm weights cannot be loaded here; weights are synthetic and
# the architecture is a reduced EfficientNet variant (3x3 stride-1 depthwise only).

if __name__ == "__main__":
    key = jax.random.PRNGKey(0)
    kp, kx = jax.random.split(key)
    num_classes = 10
    params = init_params(kp, num_classes=num_classes)
    x = jax.random.normal(kx, (2, 3, 32, 32), jnp.float32)   # NCHW, like PyTorch
    fwd = jax.jit(efficientnet_forward)
    logits = fwd(params, x)
    jax.block_until_ready(logits)
    assert logits.shape == (2, num_classes), logits.shape
    assert bool(jnp.all(jnp.isfinite(logits)))
    print("KERNEL_OK")
</pallas_src>

<mosaic_0001>
module attributes {stable_mosaic.version = 11 : i64} {
  func.func @_stem_kernel(%arg0: i32, %arg1: memref<1x256x27xf32, #tpu.memory_space<vmem>>, %arg2: memref<27x32xf32, #tpu.memory_space<vmem>>, %arg3: memref<1x32xf32, #tpu.memory_space<vmem>>, %arg4: memref<1x16x16x32xf32, #tpu.memory_space<vmem>>) attributes {dimension_semantics = [#tpu.dimension_semantics<parallel>], iteration_bounds = array<i64: 2>, scalar_prefetch = 0 : i64, scratch_operands = 0 : i64, tpu.core_type = #tpu.core_type<tc>, window_params = [{transform_indices = @transform_0, window_bounds = array<i64: 1, 256, 27>}, {pipeline_mode = #tpu.pipeline_mode<synchronous>, transform_indices = @transform_1, window_bounds = array<i64: 27, 32>}, {pipeline_mode = #tpu.pipeline_mode<synchronous>, transform_indices = @transform_2, window_bounds = array<i64: 1, 32>}, {transform_indices = @transform_3, window_bounds = array<i64: 1, 16, 16, 32>}]} {
    %c0 = arith.constant 0 : index
    %c0_0 = arith.constant 0 : index
    %c0_1 = arith.constant 0 : index
    %0 = vector.load %arg1[%c0, %c0_0, %c0_1] : memref<1x256x27xf32, #tpu.memory_space<vmem>>, vector<1x256x27xf32>
    %1 = vector.shape_cast %0 : vector<1x256x27xf32> to vector<256x27xf32>
    %2 = arith.truncf %1 : vector<256x27xf32> to vector<256x27xbf16>
    %c0_2 = arith.constant 0 : index
    %c0_3 = arith.constant 0 : index
    %3 = vector.load %arg2[%c0_2, %c0_3] : memref<27x32xf32, #tpu.memory_space<vmem>>, vector<27x32xf32>
    %4 = arith.truncf %3 : vector<27x32xf32> to vector<27x32xbf16>
    %cst = arith.constant dense<0.000000e+00> : vector<256x32xf32>
    %5 = tpu.matmul %2, %4, %cst {dimension_numbers = #tpu.dot_dimension_numbers<[1], [0], [0], [1], [0, 0, 1, 1], [], []>} : vector<256x27xbf16>, vector<27x32xbf16>, vector<256x32xf32> -> vector<256x32xf32>
    %c0_4 = arith.constant 0 : index
    %c0_5 = arith.constant 0 : index
    %6 = vector.load %arg3[%c0_4, %c0_5] : memref<1x32xf32, #tpu.memory_space<vmem>>, vector<1x32xf32>
    %7 = vector.broadcast %6 : vector<1x32xf32> to vector<256x32xf32>
    %8 = arith.addf %5, %7 : vector<256x32xf32>
    %9 = arith.negf %8 : vector<256x32xf32>
    %10 = math.exp %9 : vector<256x32xf32>
    %cst_6 = arith.constant 1.000000e+00 : f32
    %11 = vector.broadcast %cst_6 : f32 to vector<256x32xf32>
    %12 = arith.addf %11, %10 : vector<256x32xf32>
    %13 = arith.divf %11, %12 : vector<256x32xf32>
    %14 = arith.mulf %8, %13 : vector<256x32xf32>
    %15 = vector.shape_cast %14 : vector<256x32xf32> to vector<1x16x16x32xf32>
    %c0_7 = arith.constant 0 : index
    %c0_8 = arith.constant 0 : index
    %c0_9 = arith.constant 0 : index
    %c0_10 = arith.constant 0 : index
    %16 = vector.load %arg4[%c0_7, %c0_8, %c0_9, %c0_10] : memref<1x16x16x32xf32, #tpu.memory_space<vmem>>, vector<1x16x16x32xf32>
    tpu.vector_store %arg4[%c0_7, %c0_8, %c0_9, %c0_10], %15 {strides = array<i32>} : memref<1x16x16x32xf32, #tpu.memory_space<vmem>>, vector<1x16x16x32xf32>,
    return
  }
  func.func @transform_0(%arg0: i32) -> (i32, i32, i32) {
    %c0_i32 = arith.constant 0 : i32
    %c0_i32_0 = arith.constant 0 : i32
    %c0_i32_1 = arith.constant 0 : i32
    return %arg0, %c0_i32, %c0_i32_0 : i32, i32, i32
  }
  func.func @transform_1(%arg0: i32) -> (i32, i32) {
    %c0_i32 = arith.constant 0 : i32
    %c0_i32_0 = arith.constant 0 : i32
    %c0_i32_1 = arith.constant 0 : i32
    return %c0_i32, %c0_i32_0 : i32, i32
  }
  func.func @transform_2(%arg0: i32) -> (i32, i32) {
    %c0_i32 = arith.constant 0 : i32
    %c0_i32_0 = arith.constant 0 : i32
    %c0_i32_1 = arith.constant 0 : i32
    return %c0_i32, %c0_i32_0 : i32, i32
  }
  func.func @transform_3(%arg0: i32) -> (i32, i32, i32, i32) {
    %c0_i32 = arith.constant 0 : i32
    %c0_i32_0 = arith.constant 0 : i32
    %c0_i32_1 = arith.constant 0 : i32
    %c0_i32_2 = arith.constant 0 : i32
    return %arg0, %c0_i32, %c0_i32_0, %c0_i32_1 : i32, i32, i32, i32
  }
}

module attributes {stable_mosaic.version = 11 : i64} {
  func.func @_mbconv_kernel(%arg0: i32, %arg1: memref<1x16x16x32xf32, #tpu.memory_space<vmem>>, %arg2: memref<32x128xf32, #tpu.memory_space<vmem>>, %arg3: memref<1x128xf32, #tpu.memory_space<vmem>>, %arg4: memref<9x128xf32, #tpu.memory_space<vmem>>, %arg5: memref<1x128xf32, #tpu.memory_space<vmem>>, %arg6: memref<128x8xf32, #tpu.memory_space<vmem>>, %arg7: memref<1x8xf32, #tpu.memory_space<vmem>>, %arg8: memref<8x128xf32, #tpu.memory_space<vmem>>, %arg9: memref<1x128xf32, #tpu.memory_space<vmem>>, %arg10: memref<128x32xf32, #tpu.memory_space<vmem>>, %arg11: memref<1x32xf32, #tpu.memory_space<vmem>>, %arg12: memref<1x16x16x32xf32, #tpu.memory_space<vmem>>, %arg13: memref<18x32x128xf32, #tpu.memory_space<vmem>>) attributes {dimension_semantics = [#tpu.dimension_semantics<parallel>], iteration_bounds = array<i64: 2>, scalar_prefetch = 0 : i64, scratch_operands = 1 : i64, tpu.core_type = #tpu.core_type<tc>, window_params = [{transform_indices = @transform_0, window_bounds = array<i64: 1, 16, 16, 32>}, {pipeline_mode = #tpu.pipeline_mode<synchronous>, transform_indices = @transform_1, window_bounds = array<i64: 32, 128>}, {pipeline_mode = #tpu.pipeline_mode<synchronous>, transform_indices = @transform_2, window_bounds = array<i64: 1, 128>}, {pipeline_mode = #tpu.pipeline_mode<synchronous>, transform_indices = @transform_3, window_bounds = array<i64: 9, 128>}, {pipeline_mode = #tpu.pipeline_mode<synchronous>, transform_indices = @transform_4, window_bounds = array<i64: 1, 128>}, {pipeline_mode = #tpu.pipeline_mode<synchronous>, transform_indices = @transform_5, window_bounds = array<i64: 128, 8>}, {pipeline_mode = #tpu.pipeline_mode<synchronous>, transform_indices = @transform_6, window_bounds = array<i64: 1, 8>}, {pipeline_mode = #tpu.pipeline_mode<synchronous>, transform_indices = @transform_7, window_bounds = array<i64: 8, 128>}, {pipeline_mode = #tpu.pipeline_mode<synchronous>, transform_indices = @transform_8, window_bounds = array<i64: 1, 128>}, {pipeline_mode = #tpu.pipeline_mode<synchronous>, transform_indices = @transform_9, window_bounds = array<i64: 128, 32>}, {pipeline_mode = #tpu.pipeline_mode<synchronous>, transform_indices = @transform_10, window_bounds = array<i64: 1, 32>}, {transform_indices = @transform_11, window_bounds = array<i64: 1, 16, 16, 32>}]} {
    %c0 = arith.constant 0 : index
    %c0_0 = arith.constant 0 : index
    %c0_1 = arith.constant 0 : index
    %c0_2 = arith.constant 0 : index
    %0 = vector.load %arg1[%c0, %c0_0, %c0_1, %c0_2] : memref<1x16x16x32xf32, #tpu.memory_space<vmem>>, vector<1x16x16x32xf32>
    %1 = vector.shape_cast %0 : vector<1x16x16x32xf32> to vector<256x32xf32>
    %2 = arith.truncf %1 : vector<256x32xf32> to vector<256x32xbf16>
    %c0_3 = arith.constant 0 : index
    %c0_4 = arith.constant 0 : index
    %3 = vector.load %arg2[%c0_3, %c0_4] : memref<32x128xf32, #tpu.memory_space<vmem>>, vector<32x128xf32>
    %4 = arith.truncf %3 : vector<32x128xf32> to vector<32x128xbf16>
    %cst = arith.constant dense<0.000000e+00> : vector<256x128xf32>
    %5 = tpu.matmul %2, %4, %cst {dimension_numbers = #tpu.dot_dimension_numbers<[1], [0], [0], [1], [0, 0, 1, 1], [], []>} : vector<256x32xbf16>, vector<32x128xbf16>, vector<256x128xf32> -> vector<256x128xf32>
    %c0_5 = arith.constant 0 : index
    %c0_6 = arith.constant 0 : index
    %6 = vector.load %arg3[%c0_5, %c0_6] : memref<1x128xf32, #tpu.memory_space<vmem>>, vector<1x128xf32>
    %7 = vector.broadcast %6 : vector<1x128xf32> to vector<256x128xf32>
    %8 = arith.addf %5, %7 : vector<256x128xf32>
    %9 = arith.negf %8 : vector<256x128xf32>
    %10 = math.exp %9 : vector<256x128xf32>
    %cst_7 = arith.constant 1.000000e+00 : f32
    %11 = vector.broadcast %cst_7 : f32 to vector<256x128xf32>
    %12 = arith.addf %11, %10 : vector<256x128xf32>
    %13 = arith.divf %11, %12 : vector<256x128xf32>
    %14 = arith.mulf %8, %13 : vector<256x128xf32>
    %cst_8 = arith.constant 0.000000e+00 : f32
    %15 = vector.broadcast %cst_8 : f32 to vector<18x32x128xf32>
    %c0_9 = arith.constant 0 : index
    %c0_10 = arith.constant 0 : index
    %c0_11 = arith.constant 0 : index
    %16 = vector.load %arg13[%c0_9, %c0_10, %c0_11] : memref<18x32x128xf32, #tpu.memory_space<vmem>>, vector<18x32x128xf32>
    tpu.vector_store %arg13[%c0_9, %c0_10, %c0_11], %15 {strides = array<i32>} : memref<18x32x128xf32, #tpu.memory_space<vmem>>, vector<18x32x128xf32>,
    %17 = vector.shape_cast %14 : vector<256x128xf32> to vector<16x16x128xf32>
    %c1 = arith.constant 1 : index
    %c8 = arith.constant 8 : index
    %c0_12 = arith.constant 0 : index
    %18 = vector.load %arg13[%c1, %c8, %c0_12] : memref<18x32x128xf32, #tpu.memory_space<vmem>>, vector<16x16x128xf32>
    tpu.vector_store %arg13[%c1, %c8, %c0_12], %17 {strides = array<i32>} : memref<18x32x128xf32, #tpu.memory_space<vmem>>, vector<16x16x128xf32>,
    %c0_13 = arith.constant 0 : index
    %c0_14 = arith.constant 0 : index
    %19 = vector.load %arg4[%c0_13, %c0_14] : memref<9x128xf32, #tpu.memory_space<vmem>>, vector<9x128xf32>
    %cst_15 = arith.constant 0.000000e+00 : f32
    %20 = vector.broadcast %cst_15 : f32 to vector<16x16x128xf32>
    %c0_16 = arith.constant 0 : index
    %c7 = arith.constant 7 : index
    %c0_17 = arith.constant 0 : index
    %21 = vector.load %arg13[%c0_16, %c7, %c0_17] : memref<18x32x128xf32, #tpu.memory_space<vmem>>, vector<16x16x128xf32>
    %22 = vector.extract_strided_slice %19 {offsets = [0, 0], sizes = [1, 128], strides = [1, 1]} : vector<9x128xf32> to vector<1x128xf32>
    %23 = vector.shape_cast %22 : vector<1x128xf32> to vector<128xf32>
    %24 = vector.shape_cast %23 : vector<128xf32> to vector<1x1x128xf32>
    %25 = vector.broadcast %24 : vector<1x1x128xf32> to vector<16x16x128xf32>
    %26 = arith.mulf %21, %25 : vector<16x16x128xf32>
    %27 = arith.addf %20, %26 : vector<16x16x128xf32>
    %c0_18 = arith.constant 0 : index
    %c8_19 = arith.constant 8 : index
    %c0_20 = arith.constant 0 : index
    %28 = vector.load %arg13[%c0_18, %c8_19, %c0_20] : memref<18x32x128xf32, #tpu.memory_space<vmem>>, vector<16x16x128xf32>
    %29 = vector.extract_strided_slice %19 {offsets = [1, 0], sizes = [1, 128], strides = [1, 1]} : vector<9x128xf32> to vector<1x128xf32>
    %30 = vector.shape_cast %29 : vector<1x128xf32> to vector<128xf32>
    %31 = vector.shape_cast %30 : vector<128xf32> to vector<1x1x128xf32>
    %32 = vector.broadcast %31 : vector<1x1x128xf32> to vector<16x16x128xf32>
    %33 = arith.mulf %28, %32 : vector<16x16x128xf32>
    %34 = arith.addf %27, %33 : vector<16x16x128xf32>
    %c0_21 = arith.constant 0 : index
    %c9 = arith.constant 9 : index
    %c0_22 = arith.constant 0 : index
    %35 = vector.load %arg13[%c0_21, %c9, %c0_22] : memref<18x32x128xf32, #tpu.memory_space<vmem>>, vector<16x16x128xf32>
    %36 = vector.extract_strided_slice %19 {offsets = [2, 0], sizes = [1, 128], strides = [1, 1]} : vector<9x128xf32> to vector<1x128xf32>
    %37 = vector.shape_cast %36 : vector<1x128xf32> to vector<128xf32>
    %38 = vector.shape_cast %37 : vector<128xf32> to vector<1x1x128xf32>
    %39 = vector.broadcast %38 : vector<1x1x128xf32> to vector<16x16x128xf32>
    %40 = arith.mulf %35, %39 : vector<16x16x128xf32>
    %41 = arith.addf %34, %40 : vector<16x16x128xf32>
    %c1_23 = arith.constant 1 : index
    %c7_24 = arith.constant 7 : index
    %c0_25 = arith.constant 0 : index
    %42 = vector.load %arg13[%c1_23, %c7_24, %c0_25] : memref<18x32x128xf32, #tpu.memory_space<vmem>>, vector<16x16x128xf32>
    %43 = vector.extract_strided_slice %19 {offsets = [3, 0], sizes = [1, 128], strides = [1, 1]} : vector<9x128xf32> to vector<1x128xf32>
    %44 = vector.shape_cast %43 : vector<1x128xf32> to vector<128xf32>
    %45 = vector.shape_cast %44 : vector<128xf32> to vector<1x1x128xf32>
    %46 = vector.broadcast %45 : vector<1x1x128xf32> to vector<16x16x128xf32>
    %47 = arith.mulf %42, %46 : vector<16x16x128xf32>
    %48 = arith.addf %41, %47 : vector<16x16x128xf32>
    %c1_26 = arith.constant 1 : index
    %c8_27 = arith.constant 8 : index
    %c0_28 = arith.constant 0 : index
    %49 = vector.load %arg13[%c1_26, %c8_27, %c0_28] : memref<18x32x128xf32, #tpu.memory_space<vmem>>, vector<16x16x128xf32>
    %50 = vector.extract_strided_slice %19 {offsets = [4, 0], sizes = [1, 128], strides = [1, 1]} : vector<9x128xf32> to vector<1x128xf32>
    %51 = vector.shape_cast %50 : vector<1x128xf32> to vector<128xf32>
    %52 = vector.shape_cast %51 : vector<128xf32> to vector<1x1x128xf32>
    %53 = vector.broadcast %52 : vector<1x1x128xf32> to vector<16x16x128xf32>
    %54 = arith.mulf %49, %53 : vector<16x16x128xf32>
    %55 = arith.addf %48, %54 : vector<16x16x128xf32>
    %c1_29 = arith.constant 1 : index
    %c9_30 = arith.constant 9 : index
    %c0_31 = arith.constant 0 : index
    %56 = vector.load %arg13[%c1_29, %c9_30, %c0_31] : memref<18x32x128xf32, #tpu.memory_space<vmem>>, vector<16x16x128xf32>
    %57 = vector.extract_strided_slice %19 {offsets = [5, 0], sizes = [1, 128], strides = [1, 1]} : vector<9x128xf32> to vector<1x128xf32>
    %58 = vector.shape_cast %57 : vector<1x128xf32> to vector<128xf32>
    %59 = vector.shape_cast %58 : vector<128xf32> to vector<1x1x128xf32>
    %60 = vector.broadcast %59 : vector<1x1x128xf32> to vector<16x16x128xf32>
    %61 = arith.mulf %56, %60 : vector<16x16x128xf32>
    %62 = arith.addf %55, %61 : vector<16x16x128xf32>
    %c2 = arith.constant 2 : index
    %c7_32 = arith.constant 7 : index
    %c0_33 = arith.constant 0 : index
    %63 = vector.load %arg13[%c2, %c7_32, %c0_33] : memref<18x32x128xf32, #tpu.memory_space<vmem>>, vector<16x16x128xf32>
    %64 = vector.extract_strided_slice %19 {offsets = [6, 0], sizes = [1, 128], strides = [1, 1]} : vector<9x128xf32> to vector<1x128xf32>
    %65 = vector.shape_cast %64 : vector<1x128xf32> to vector<128xf32>
    %66 = vector.shape_cast %65 : vector<128xf32> to vector<1x1x128xf32>
    %67 = vector.broadcast %66 : vector<1x1x128xf32> to vector<16x16x128xf32>
    %68 = arith.mulf %63, %67 : vector<16x16x128xf32>
    %69 = arith.addf %62, %68 : vector<16x16x128xf32>
    %c2_34 = arith.constant 2 : index
    %c8_35 = arith.constant 8 : index
    %c0_36 = arith.constant 0 : index
    %70 = vector.load %arg13[%c2_34, %c8_35, %c0_36] : memref<18x32x128xf32, #tpu.memory_space<vmem>>, vector<16x16x128xf32>
    %71 = vector.extract_strided_slice %19 {offsets = [7, 0], sizes = [1, 128], strides = [1, 1]} : vector<9x128xf32> to vector<1x128xf32>
    %72 = vector.shape_cast %71 : vector<1x128xf32> to vector<128xf32>
    %73 = vector.shape_cast %72 : vector<128xf32> to vector<1x1x128xf32>
    %74 = vector.broadcast %73 : vector<1x1x128xf32> to vector<16x16x128xf32>
    %75 = arith.mulf %70, %74 : vector<16x16x128xf32>
    %76 = arith.addf %69, %75 : vector<16x16x128xf32>
    %c2_37 = arith.constant 2 : index
    %c9_38 = arith.constant 9 : index
    %c0_39 = arith.constant 0 : index
    %77 = vector.load %arg13[%c2_37, %c9_38, %c0_39] : memref<18x32x128xf32, #tpu.memory_space<vmem>>, vector<16x16x128xf32>
    %78 = vector.extract_strided_slice %19 {offsets = [8, 0], sizes = [1, 128], strides = [1, 1]} : vector<9x128xf32> to vector<1x128xf32>
    %79 = vector.shape_cast %78 : vector<1x128xf32> to vector<128xf32>
    %80 = vector.shape_cast %79 : vector<128xf32> to vector<1x1x128xf32>
    %81 = vector.broadcast %80 : vector<1x1x128xf32> to vector<16x16x128xf32>
    %82 = arith.mulf %77, %81 : vector<16x16x128xf32>
    %83 = arith.addf %76, %82 : vector<16x16x128xf32>
    %c0_40 = arith.constant 0 : index
    %c0_41 = arith.constant 0 : index
    %84 = vector.load %arg5[%c0_40, %c0_41] : memref<1x128xf32, #tpu.memory_space<vmem>>, vector<1x128xf32>
    %85 = vector.shape_cast %84 : vector<1x128xf32> to vector<1x1x128xf32>
    %86 = vector.broadcast %85 : vector<1x1x128xf32> to vector<16x16x128xf32>
    %87 = arith.addf %83, %86 : vector<16x16x128xf32>
    %88 = arith.negf %87 : vector<16x16x128xf32>
    %89 = math.exp %88 : vector<16x16x128xf32>
    %cst_42 = arith.constant 1.000000e+00 : f32
    %90 = vector.broadcast %cst_42 : f32 to vector<16x16x128xf32>
    %91 = arith.addf %90, %89 : vector<16x16x128xf32>
    %92 = arith.divf %90, %91 : vector<16x16x128xf32>
    %93 = arith.mulf %87, %92 : vector<16x16x128xf32>
    %94 = vector.shape_cast %93 : vector<16x16x128xf32> to vector<256x128xf32>
    %cst_43 = arith.constant dense<0.000000e+00> : vector<128xf32>
    %95 = vector.multi_reduction <add>, %94, %cst_43 [0] : vector<256x128xf32> to vector<128xf32>
    %96 = vector.shape_cast %95 : vector<128xf32> to vector<1x128xf32>
    %cst_44 = arith.constant 2.560000e+02 : f32
    %97 = vector.broadcast %cst_44 : f32 to vector<1x128xf32>
    %98 = arith.divf %96, %97 : vector<1x128xf32>
    %99 = arith.truncf %98 : vector<1x128xf32> to vector<1x128xbf16>
    %c0_45 = arith.constant 0 : index
    %c0_46 = arith.constant 0 : index
    %100 = vector.load %arg6[%c0_45, %c0_46] : memref<128x8xf32, #tpu.memory_space<vmem>>, vector<128x8xf32>
    %101 = arith.truncf %100 : vector<128x8xf32> to vector<128x8xbf16>
    %cst_47 = arith.constant dense<0.000000e+00> : vector<1x8xf32>
    %102 = tpu.matmul %99, %101, %cst_47 {dimension_numbers = #tpu.dot_dimension_numbers<[1], [0], [0], [1], [0, 0, 1, 1], [], []>} : vector<1x128xbf16>, vector<128x8xbf16>, vector<1x8xf32> -> vector<1x8xf32>
    %c0_48 = arith.constant 0 : index
    %c0_49 = arith.constant 0 : index
    %103 = vector.load %arg7[%c0_48, %c0_49] : memref<1x8xf32, #tpu.memory_space<vmem>>, vector<1x8xf32>
    %104 = arith.addf %102, %103 : vector<1x8xf32>
    %105 = arith.negf %104 : vector<1x8xf32>
    %106 = math.exp %105 : vector<1x8xf32>
    %cst_50 = arith.constant 1.000000e+00 : f32
    %107 = vector.broadcast %cst_50 : f32 to vector<1x8xf32>
    %108 = arith.addf %107, %106 : vector<1x8xf32>
    %109 = arith.divf %107, %108 : vector<1x8xf32>
    %110 = arith.mulf %104, %109 : vector<1x8xf32>
    %111 = arith.truncf %110 : vector<1x8xf32> to vector<1x8xbf16>
    %c0_51 = arith.constant 0 : index
    %c0_52 = arith.constant 0 : index
    %112 = vector.load %arg8[%c0_51, %c0_52] : memref<8x128xf32, #tpu.memory_space<vmem>>, vector<8x128xf32>
    %113 = arith.truncf %112 : vector<8x128xf32> to vector<8x128xbf16>
    %cst_53 = arith.constant dense<0.000000e+00> : vector<1x128xf32>
    %114 = tpu.matmul %111, %113, %cst_53 {dimension_numbers = #tpu.dot_dimension_numbers<[1], [0], [0], [1], [0, 0, 1, 1], [], []>} : vector<1x8xbf16>, vector<8x128xbf16>, vector<1x128xf32> -> vector<1x128xf32>
    %c0_54 = arith.constant 0 : index
    %c0_55 = arith.constant 0 : index
    %115 = vector.load %arg9[%c0_54, %c0_55] : memref<1x128xf32, #tpu.memory_space<vmem>>, vector<1x128xf32>
    %116 = arith.addf %114, %115 : vector<1x128xf32>
    %117 = arith.negf %116 : vector<1x128xf32>
    %118 = math.exp %117 : vector<1x128xf32>
    %cst_56 = arith.constant 1.000000e+00 : f32
    %119 = vector.broadcast %cst_56 : f32 to vector<1x128xf32>
    %120 = arith.addf %119, %118 : vector<1x128xf32>
    %121 = arith.divf %119, %120 : vector<1x128xf32>
    %122 = vector.broadcast %121 : vector<1x128xf32> to vector<256x128xf32>
    %123 = arith.mulf %94, %122 : vector<256x128xf32>
    %124 = arith.truncf %123 : vector<256x128xf32> to vector<256x128xbf16>
    %c0_57 = arith.constant 0 : index
    %c0_58 = arith.constant 0 : index
    %125 = vector.load %arg10[%c0_57, %c0_58] : memref<128x32xf32, #tpu.memory_space<vmem>>, vector<128x32xf32>
    %126 = arith.truncf %125 : vector<128x32xf32> to vector<128x32xbf16>
    %cst_59 = arith.constant dense<0.000000e+00> : vector<256x32xf32>
    %127 = tpu.matmul %124, %126, %cst_59 {dimension_numbers = #tpu.dot_dimension_numbers<[1], [0], [0], [1], [0, 0, 1, 1], [], []>} : vector<256x128xbf16>, vector<128x32xbf16>, vector<256x32xf32> -> vector<256x32xf32>
    %c0_60 = arith.constant 0 : index
    %c0_61 = arith.constant 0 : index
    %128 = vector.load %arg11[%c0_60, %c0_61] : memref<1x32xf32, #tpu.memory_space<vmem>>, vector<1x32xf32>
    %129 = vector.broadcast %128 : vector<1x32xf32> to vector<256x32xf32>
    %130 = arith.addf %127, %129 : vector<256x32xf32>
    %131 = arith.addf %130, %1 : vector<256x32xf32>
    %132 = vector.shape_cast %131 : vector<256x32xf32> to vector<1x16x16x32xf32>
    %c0_62 = arith.constant 0 : index
    %c0_63 = arith.constant 0 : index
    %c0_64 = arith.constant 0 : index
    %c0_65 = arith.constant 0 : index
    %133 = vector.load %arg12[%c0_62, %c0_63, %c0_64, %c0_65] : memref<1x16x16x32xf32, #tpu.memory_space<vmem>>, vector<1x16x16x32xf32>
    tpu.vector_store %arg12[%c0_62, %c0_63, %c0_64, %c0_65], %132 {strides = array<i32>} : memref<1x16x16x32xf32, #tpu.memory_space<vmem>>, vector<1x16x16x32xf32>,
    return
  }
  func.func @transform_0(%arg0: i32) -> (i32, i32, i32, i32) {
    %c0_i32 = arith.constant 0 : i32
    %c0_i32_0 = arith.constant 0 : i32
    %c0_i32_1 = arith.constant 0 : i32
    %c0_i32_2 = arith.constant 0 : i32
    return %arg0, %c0_i32, %c0_i32_0, %c0_i32_1 : i32, i32, i32, i32
  }
  func.func @transform_1(%arg0: i32) -> (i32, i32) {
    %c0_i32 = arith.constant 0 : i32
    %c0_i32_0 = arith.constant 0 : i32
    %c0_i32_1 = arith.constant 0 : i32
    return %c0_i32, %c0_i32_0 : i32, i32
  }
  func.func @transform_2(%arg0: i32) -> (i32, i32) {
    %c0_i32 = arith.constant 0 : i32
    %c0_i32_0 = arith.constant 0 : i32
    %c0_i32_1 = arith.constant 0 : i32
    return %c0_i32, %c0_i32_0 : i32, i32
  }
  func.func @transform_3(%arg0: i32) -> (i32, i32) {
    %c0_i32 = arith.constant 0 : i32
    %c0_i32_0 = arith.constant 0 : i32
    %c0_i32_1 = arith.constant 0 : i32
    return %c0_i32, %c0_i32_0 : i32, i32
  }
  func.func @transform_4(%arg0: i32) -> (i32, i32) {
    %c0_i32 = arith.constant 0 : i32
    %c0_i32_0 = arith.constant 0 : i32
    %c0_i32_1 = arith.constant 0 : i32
    return %c0_i32, %c0_i32_0 : i32, i32
  }
  func.func @transform_5(%arg0: i32) -> (i32, i32) {
    %c0_i32 = arith.constant 0 : i32
    %c0_i32_0 = arith.constant 0 : i32
    %c0_i32_1 = arith.constant 0 : i32
    return %c0_i32, %c0_i32_0 : i32, i32
  }
  func.func @transform_6(%arg0: i32) -> (i32, i32) {
    %c0_i32 = arith.constant 0 : i32
    %c0_i32_0 = arith.constant 0 : i32
    %c0_i32_1 = arith.constant 0 : i32
    return %c0_i32, %c0_i32_0 : i32, i32
  }
  func.func @transform_7(%arg0: i32) -> (i32, i32) {
    %c0_i32 = arith.constant 0 : i32
    %c0_i32_0 = arith.constant 0 : i32
    %c0_i32_1 = arith.constant 0 : i32
    return %c0_i32, %c0_i32_0 : i32, i32
  }
  func.func @transform_8(%arg0: i32) -> (i32, i32) {
    %c0_i32 = arith.constant 0 : i32
    %c0_i32_0 = arith.constant 0 : i32
    %c0_i32_1 = arith.constant 0 : i32
    return %c0_i32, %c0_i32_0 : i32, i32
  }
  func.func @transform_9(%arg0: i32) -> (i32, i32) {
    %c0_i32 = arith.constant 0 : i32
    %c0_i32_0 = arith.constant 0 : i32
    %c0_i32_1 = arith.constant 0 : i32
    return %c0_i32, %c0_i32_0 : i32, i32
  }
  func.func @transform_10(%arg0: i32) -> (i32, i32) {
    %c0_i32 = arith.constant 0 : i32
    %c0_i32_0 = arith.constant 0 : i32
    %c0_i32_1 = arith.constant 0 : i32
    return %c0_i32, %c0_i32_0 : i32, i32
  }
  func.func @transform_11(%arg0: i32) -> (i32, i32, i32, i32) {
    %c0_i32 = arith.constant 0 : i32
    %c0_i32_0 = arith.constant 0 : i32
    %c0_i32_1 = arith.constant 0 : i32
    %c0_i32_2 = arith.constant 0 : i32
    return %arg0, %c0_i32, %c0_i32_0, %c0_i32_1 : i32, i32, i32, i32
  }
}

module attributes {stable_mosaic.version = 11 : i64} {
  func.func @_mbconv_kernel(%arg0: i32, %arg1: memref<1x16x16x32xf32, #tpu.memory_space<vmem>>, %arg2: memref<32x128xf32, #tpu.memory_space<vmem>>, %arg3: memref<1x128xf32, #tpu.memory_space<vmem>>, %arg4: memref<9x128xf32, #tpu.memory_space<vmem>>, %arg5: memref<1x128xf32, #tpu.memory_space<vmem>>, %arg6: memref<128x8xf32, #tpu.memory_space<vmem>>, %arg7: memref<1x8xf32, #tpu.memory_space<vmem>>, %arg8: memref<8x128xf32, #tpu.memory_space<vmem>>, %arg9: memref<1x128xf32, #tpu.memory_space<vmem>>, %arg10: memref<128x64xf32, #tpu.memory_space<vmem>>, %arg11: memref<1x64xf32, #tpu.memory_space<vmem>>, %arg12: memref<1x16x16x64xf32, #tpu.memory_space<vmem>>, %arg13: memref<18x32x128xf32, #tpu.memory_space<vmem>>) attributes {dimension_semantics = [#tpu.dimension_semantics<parallel>], iteration_bounds = array<i64: 2>, scalar_prefetch = 0 : i64, scratch_operands = 1 : i64, tpu.core_type = #tpu.core_type<tc>, window_params = [{transform_indices = @transform_0, window_bounds = array<i64: 1, 16, 16, 32>}, {pipeline_mode = #tpu.pipeline_mode<synchronous>, transform_indices = @transform_1, window_bounds = array<i64: 32, 128>}, {pipeline_mode = #tpu.pipeline_mode<synchronous>, transform_indices = @transform_2, window_bounds = array<i64: 1, 128>}, {pipeline_mode = #tpu.pipeline_mode<synchronous>, transform_indices = @transform_3, window_bounds = array<i64: 9, 128>}, {pipeline_mode = #tpu.pipeline_mode<synchronous>, transform_indices = @transform_4, window_bounds = array<i64: 1, 128>}, {pipeline_mode = #tpu.pipeline_mode<synchronous>, transform_indices = @transform_5, window_bounds = array<i64: 128, 8>}, {pipeline_mode = #tpu.pipeline_mode<synchronous>, transform_indices = @transform_6, window_bounds = array<i64: 1, 8>}, {pipeline_mode = #tpu.pipeline_mode<synchronous>, transform_indices = @transform_7, window_bounds = array<i64: 8, 128>}, {pipeline_mode = #tpu.pipeline_mode<synchronous>, transform_indices = @transform_8, window_bounds = array<i64: 1, 128>}, {pipeline_mode = #tpu.pipeline_mode<synchronous>, transform_indices = @transform_9, window_bounds = array<i64: 128, 64>}, {pipeline_mode = #tpu.pipeline_mode<synchronous>, transform_indices = @transform_10, window_bounds = array<i64: 1, 64>}, {transform_indices = @transform_11, window_bounds = array<i64: 1, 16, 16, 64>}]} {
    %c0 = arith.constant 0 : index
    %c0_0 = arith.constant 0 : index
    %c0_1 = arith.constant 0 : index
    %c0_2 = arith.constant 0 : index
    %0 = vector.load %arg1[%c0, %c0_0, %c0_1, %c0_2] : memref<1x16x16x32xf32, #tpu.memory_space<vmem>>, vector<1x16x16x32xf32>
    %1 = vector.shape_cast %0 : vector<1x16x16x32xf32> to vector<256x32xf32>
    %2 = arith.truncf %1 : vector<256x32xf32> to vector<256x32xbf16>
    %c0_3 = arith.constant 0 : index
    %c0_4 = arith.constant 0 : index
    %3 = vector.load %arg2[%c0_3, %c0_4] : memref<32x128xf32, #tpu.memory_space<vmem>>, vector<32x128xf32>
    %4 = arith.truncf %3 : vector<32x128xf32> to vector<32x128xbf16>
    %cst = arith.constant dense<0.000000e+00> : vector<256x128xf32>
    %5 = tpu.matmul %2, %4, %cst {dimension_numbers = #tpu.dot_dimension_numbers<[1], [0], [0], [1], [0, 0, 1, 1], [], []>} : vector<256x32xbf16>, vector<32x128xbf16>, vector<256x128xf32> -> vector<256x128xf32>
    %c0_5 = arith.constant 0 : index
    %c0_6 = arith.constant 0 : index
    %6 = vector.load %arg3[%c0_5, %c0_6] : memref<1x128xf32, #tpu.memory_space<vmem>>, vector<1x128xf32>
    %7 = vector.broadcast %6 : vector<1x128xf32> to vector<256x128xf32>
    %8 = arith.addf %5, %7 : vector<256x128xf32>
    %9 = arith.negf %8 : vector<256x128xf32>
    %10 = math.exp %9 : vector<256x128xf32>
    %cst_7 = arith.constant 1.000000e+00 : f32
    %11 = vector.broadcast %cst_7 : f32 to vector<256x128xf32>
    %12 = arith.addf %11, %10 : vector<256x128xf32>
    %13 = arith.divf %11, %12 : vector<256x128xf32>
    %14 = arith.mulf %8, %13 : vector<256x128xf32>
    %cst_8 = arith.constant 0.000000e+00 : f32
    %15 = vector.broadcast %cst_8 : f32 to vector<18x32x128xf32>
    %c0_9 = arith.constant 0 : index
    %c0_10 = arith.constant 0 : index
    %c0_11 = arith.constant 0 : index
    %16 = vector.load %arg13[%c0_9, %c0_10, %c0_11] : memref<18x32x128xf32, #tpu.memory_space<vmem>>, vector<18x32x128xf32>
    tpu.vector_store %arg13[%c0_9, %c0_10, %c0_11], %15 {strides = array<i32>} : memref<18x32x128xf32, #tpu.memory_space<vmem>>, vector<18x32x128xf32>,
    %17 = vector.shape_cast %14 : vector<256x128xf32> to vector<16x16x128xf32>
    %c1 = arith.constant 1 : index
    %c8 = arith.constant 8 : index
    %c0_12 = arith.constant 0 : index
    %18 = vector.load %arg13[%c1, %c8, %c0_12] : memref<18x32x128xf32, #tpu.memory_space<vmem>>, vector<16x16x128xf32>
    tpu.vector_store %arg13[%c1, %c8, %c0_12], %17 {strides = array<i32>} : memref<18x32x128xf32, #tpu.memory_space<vmem>>, vector<16x16x128xf32>,
    %c0_13 = arith.constant 0 : index
    %c0_14 = arith.constant 0 : index
    %19 = vector.load %arg4[%c0_13, %c0_14] : memref<9x128xf32, #tpu.memory_space<vmem>>, vector<9x128xf32>
    %cst_15 = arith.constant 0.000000e+00 : f32
    %20 = vector.broadcast %cst_15 : f32 to vector<16x16x128xf32>
    %c0_16 = arith.constant 0 : index
    %c7 = arith.constant 7 : index
    %c0_17 = arith.constant 0 : index
    %21 = vector.load %arg13[%c0_16, %c7, %c0_17] : memref<18x32x128xf32, #tpu.memory_space<vmem>>, vector<16x16x128xf32>
    %22 = vector.extract_strided_slice %19 {offsets = [0, 0], sizes = [1, 128], strides = [1, 1]} : vector<9x128xf32> to vector<1x128xf32>
    %23 = vector.shape_cast %22 : vector<1x128xf32> to vector<128xf32>
    %24 = vector.shape_cast %23 : vector<128xf32> to vector<1x1x128xf32>
    %25 = vector.broadcast %24 : vector<1x1x128xf32> to vector<16x16x128xf32>
    %26 = arith.mulf %21, %25 : vector<16x16x128xf32>
    %27 = arith.addf %20, %26 : vector<16x16x128xf32>
    %c0_18 = arith.constant 0 : index
    %c8_19 = arith.constant 8 : index
    %c0_20 = arith.constant 0 : index
    %28 = vector.load %arg13[%c0_18, %c8_19, %c0_20] : memref<18x32x128xf32, #tpu.memory_space<vmem>>, vector<16x16x128xf32>
    %29 = vector.extract_strided_slice %19 {offsets = [1, 0], sizes = [1, 128], strides = [1, 1]} : vector<9x128xf32> to vector<1x128xf32>
    %30 = vector.shape_cast %29 : vector<1x128xf32> to vector<128xf32>
    %31 = vector.shape_cast %30 : vector<128xf32> to vector<1x1x128xf32>
    %32 = vector.broadcast %31 : vector<1x1x128xf32> to vector<16x16x128xf32>
    %33 = arith.mulf %28, %32 : vector<16x16x128xf32>
    %34 = arith.addf %27, %33 : vector<16x16x128xf32>
    %c0_21 = arith.constant 0 : index
    %c9 = arith.constant 9 : index
    %c0_22 = arith.constant 0 : index
    %35 = vector.load %arg13[%c0_21, %c9, %c0_22] : memref<18x32x128xf32, #tpu.memory_space<vmem>>, vector<16x16x128xf32>
    %36 = vector.extract_strided_slice %19 {offsets = [2, 0], sizes = [1, 128], strides = [1, 1]} : vector<9x128xf32> to vector<1x128xf32>
    %37 = vector.shape_cast %36 : vector<1x128xf32> to vector<128xf32>
    %38 = vector.shape_cast %37 : vector<128xf32> to vector<1x1x128xf32>
    %39 = vector.broadcast %38 : vector<1x1x128xf32> to vector<16x16x128xf32>
    %40 = arith.mulf %35, %39 : vector<16x16x128xf32>
    %41 = arith.addf %34, %40 : vector<16x16x128xf32>
    %c1_23 = arith.constant 1 : index
    %c7_24 = arith.constant 7 : index
    %c0_25 = arith.constant 0 : index
    %42 = vector.load %arg13[%c1_23, %c7_24, %c0_25] : memref<18x32x128xf32, #tpu.memory_space<vmem>>, vector<16x16x128xf32>
    %43 = vector.extract_strided_slice %19 {offsets = [3, 0], sizes = [1, 128], strides = [1, 1]} : vector<9x128xf32> to vector<1x128xf32>
    %44 = vector.shape_cast %43 : vector<1x128xf32> to vector<128xf32>
    %45 = vector.shape_cast %44 : vector<128xf32> to vector<1x1x128xf32>
    %46 = vector.broadcast %45 : vector<1x1x128xf32> to vector<16x16x128xf32>
    %47 = arith.mulf %42, %46 : vector<16x16x128xf32>
    %48 = arith.addf %41, %47 : vector<16x16x128xf32>
    %c1_26 = arith.constant 1 : index
    %c8_27 = arith.constant 8 : index
    %c0_28 = arith.constant 0 : index
    %49 = vector.load %arg13[%c1_26, %c8_27, %c0_28] : memref<18x32x128xf32, #tpu.memory_space<vmem>>, vector<16x16x128xf32>
    %50 = vector.extract_strided_slice %19 {offsets = [4, 0], sizes = [1, 128], strides = [1, 1]} : vector<9x128xf32> to vector<1x128xf32>
    %51 = vector.shape_cast %50 : vector<1x128xf32> to vector<128xf32>
    %52 = vector.shape_cast %51 : vector<128xf32> to vector<1x1x128xf32>
    %53 = vector.broadcast %52 : vector<1x1x128xf32> to vector<16x16x128xf32>
    %54 = arith.mulf %49, %53 : vector<16x16x128xf32>
    %55 = arith.addf %48, %54 : vector<16x16x128xf32>
    %c1_29 = arith.constant 1 : index
    %c9_30 = arith.constant 9 : index
    %c0_31 = arith.constant 0 : index
    %56 = vector.load %arg13[%c1_29, %c9_30, %c0_31] : memref<18x32x128xf32, #tpu.memory_space<vmem>>, vector<16x16x128xf32>
    %57 = vector.extract_strided_slice %19 {offsets = [5, 0], sizes = [1, 128], strides = [1, 1]} : vector<9x128xf32> to vector<1x128xf32>
    %58 = vector.shape_cast %57 : vector<1x128xf32> to vector<128xf32>
    %59 = vector.shape_cast %58 : vector<128xf32> to vector<1x1x128xf32>
    %60 = vector.broadcast %59 : vector<1x1x128xf32> to vector<16x16x128xf32>
    %61 = arith.mulf %56, %60 : vector<16x16x128xf32>
    %62 = arith.addf %55, %61 : vector<16x16x128xf32>
    %c2 = arith.constant 2 : index
    %c7_32 = arith.constant 7 : index
    %c0_33 = arith.constant 0 : index
    %63 = vector.load %arg13[%c2, %c7_32, %c0_33] : memref<18x32x128xf32, #tpu.memory_space<vmem>>, vector<16x16x128xf32>
    %64 = vector.extract_strided_slice %19 {offsets = [6, 0], sizes = [1, 128], strides = [1, 1]} : vector<9x128xf32> to vector<1x128xf32>
    %65 = vector.shape_cast %64 : vector<1x128xf32> to vector<128xf32>
    %66 = vector.shape_cast %65 : vector<128xf32> to vector<1x1x128xf32>
    %67 = vector.broadcast %66 : vector<1x1x128xf32> to vector<16x16x128xf32>
    %68 = arith.mulf %63, %67 : vector<16x16x128xf32>
    %69 = arith.addf %62, %68 : vector<16x16x128xf32>
    %c2_34 = arith.constant 2 : index
    %c8_35 = arith.constant 8 : index
    %c0_36 = arith.constant 0 : index
    %70 = vector.load %arg13[%c2_34, %c8_35, %c0_36] : memref<18x32x128xf32, #tpu.memory_space<vmem>>, vector<16x16x128xf32>
    %71 = vector.extract_strided_slice %19 {offsets = [7, 0], sizes = [1, 128], strides = [1, 1]} : vector<9x128xf32> to vector<1x128xf32>
    %72 = vector.shape_cast %71 : vector<1x128xf32> to vector<128xf32>
    %73 = vector.shape_cast %72 : vector<128xf32> to vector<1x1x128xf32>
    %74 = vector.broadcast %73 : vector<1x1x128xf32> to vector<16x16x128xf32>
    %75 = arith.mulf %70, %74 : vector<16x16x128xf32>
    %76 = arith.addf %69, %75 : vector<16x16x128xf32>
    %c2_37 = arith.constant 2 : index
    %c9_38 = arith.constant 9 : index
    %c0_39 = arith.constant 0 : index
    %77 = vector.load %arg13[%c2_37, %c9_38, %c0_39] : memref<18x32x128xf32, #tpu.memory_space<vmem>>, vector<16x16x128xf32>
    %78 = vector.extract_strided_slice %19 {offsets = [8, 0], sizes = [1, 128], strides = [1, 1]} : vector<9x128xf32> to vector<1x128xf32>
    %79 = vector.shape_cast %78 : vector<1x128xf32> to vector<128xf32>
    %80 = vector.shape_cast %79 : vector<128xf32> to vector<1x1x128xf32>
    %81 = vector.broadcast %80 : vector<1x1x128xf32> to vector<16x16x128xf32>
    %82 = arith.mulf %77, %81 : vector<16x16x128xf32>
    %83 = arith.addf %76, %82 : vector<16x16x128xf32>
    %c0_40 = arith.constant 0 : index
    %c0_41 = arith.constant 0 : index
    %84 = vector.load %arg5[%c0_40, %c0_41] : memref<1x128xf32, #tpu.memory_space<vmem>>, vector<1x128xf32>
    %85 = vector.shape_cast %84 : vector<1x128xf32> to vector<1x1x128xf32>
    %86 = vector.broadcast %85 : vector<1x1x128xf32> to vector<16x16x128xf32>
    %87 = arith.addf %83, %86 : vector<16x16x128xf32>
    %88 = arith.negf %87 : vector<16x16x128xf32>
    %89 = math.exp %88 : vector<16x16x128xf32>
    %cst_42 = arith.constant 1.000000e+00 : f32
    %90 = vector.broadcast %cst_42 : f32 to vector<16x16x128xf32>
    %91 = arith.addf %90, %89 : vector<16x16x128xf32>
    %92 = arith.divf %90, %91 : vector<16x16x128xf32>
    %93 = arith.mulf %87, %92 : vector<16x16x128xf32>
    %94 = vector.shape_cast %93 : vector<16x16x128xf32> to vector<256x128xf32>
    %cst_43 = arith.constant dense<0.000000e+00> : vector<128xf32>
    %95 = vector.multi_reduction <add>, %94, %cst_43 [0] : vector<256x128xf32> to vector<128xf32>
    %96 = vector.shape_cast %95 : vector<128xf32> to vector<1x128xf32>
    %cst_44 = arith.constant 2.560000e+02 : f32
    %97 = vector.broadcast %cst_44 : f32 to vector<1x128xf32>
    %98 = arith.divf %96, %97 : vector<1x128xf32>
    %99 = arith.truncf %98 : vector<1x128xf32> to vector<1x128xbf16>
    %c0_45 = arith.constant 0 : index
    %c0_46 = arith.constant 0 : index
    %100 = vector.load %arg6[%c0_45, %c0_46] : memref<128x8xf32, #tpu.memory_space<vmem>>, vector<128x8xf32>
    %101 = arith.truncf %100 : vector<128x8xf32> to vector<128x8xbf16>
    %cst_47 = arith.constant dense<0.000000e+00> : vector<1x8xf32>
    %102 = tpu.matmul %99, %101, %cst_47 {dimension_numbers = #tpu.dot_dimension_numbers<[1], [0], [0], [1], [0, 0, 1, 1], [], []>} : vector<1x128xbf16>, vector<128x8xbf16>, vector<1x8xf32> -> vector<1x8xf32>
    %c0_48 = arith.constant 0 : index
    %c0_49 = arith.constant 0 : index
    %103 = vector.load %arg7[%c0_48, %c0_49] : memref<1x8xf32, #tpu.memory_space<vmem>>, vector<1x8xf32>
    %104 = arith.addf %102, %103 : vector<1x8xf32>
    %105 = arith.negf %104 : vector<1x8xf32>
    %106 = math.exp %105 : vector<1x8xf32>
    %cst_50 = arith.constant 1.000000e+00 : f32
    %107 = vector.broadcast %cst_50 : f32 to vector<1x8xf32>
    %108 = arith.addf %107, %106 : vector<1x8xf32>
    %109 = arith.divf %107, %108 : vector<1x8xf32>
    %110 = arith.mulf %104, %109 : vector<1x8xf32>
    %111 = arith.truncf %110 : vector<1x8xf32> to vector<1x8xbf16>
    %c0_51 = arith.constant 0 : index
    %c0_52 = arith.constant 0 : index
    %112 = vector.load %arg8[%c0_51, %c0_52] : memref<8x128xf32, #tpu.memory_space<vmem>>, vector<8x128xf32>
    %113 = arith.truncf %112 : vector<8x128xf32> to vector<8x128xbf16>
    %cst_53 = arith.constant dense<0.000000e+00> : vector<1x128xf32>
    %114 = tpu.matmul %111, %113, %cst_53 {dimension_numbers = #tpu.dot_dimension_numbers<[1], [0], [0], [1], [0, 0, 1, 1], [], []>} : vector<1x8xbf16>, vector<8x128xbf16>, vector<1x128xf32> -> vector<1x128xf32>
    %c0_54 = arith.constant 0 : index
    %c0_55 = arith.constant 0 : index
    %115 = vector.load %arg9[%c0_54, %c0_55] : memref<1x128xf32, #tpu.memory_space<vmem>>, vector<1x128xf32>
    %116 = arith.addf %114, %115 : vector<1x128xf32>
    %117 = arith.negf %116 : vector<1x128xf32>
    %118 = math.exp %117 : vector<1x128xf32>
    %cst_56 = arith.constant 1.000000e+00 : f32
    %119 = vector.broadcast %cst_56 : f32 to vector<1x128xf32>
    %120 = arith.addf %119, %118 : vector<1x128xf32>
    %121 = arith.divf %119, %120 : vector<1x128xf32>
    %122 = vector.broadcast %121 : vector<1x128xf32> to vector<256x128xf32>
    %123 = arith.mulf %94, %122 : vector<256x128xf32>
    %124 = arith.truncf %123 : vector<256x128xf32> to vector<256x128xbf16>
    %c0_57 = arith.constant 0 : index
    %c0_58 = arith.constant 0 : index
    %125 = vector.load %arg10[%c0_57, %c0_58] : memref<128x64xf32, #tpu.memory_space<vmem>>, vector<128x64xf32>
    %126 = arith.truncf %125 : vector<128x64xf32> to vector<128x64xbf16>
    %cst_59 = arith.constant dense<0.000000e+00> : vector<256x64xf32>
    %127 = tpu.matmul %124, %126, %cst_59 {dimension_numbers = #tpu.dot_dimension_numbers<[1], [0], [0], [1], [0, 0, 1, 1], [], []>} : vector<256x128xbf16>, vector<128x64xbf16>, vector<256x64xf32> -> vector<256x64xf32>
    %c0_60 = arith.constant 0 : index
    %c0_61 = arith.constant 0 : index
    %128 = vector.load %arg11[%c0_60, %c0_61] : memref<1x64xf32, #tpu.memory_space<vmem>>, vector<1x64xf32>
    %129 = vector.broadcast %128 : vector<1x64xf32> to vector<256x64xf32>
    %130 = arith.addf %127, %129 : vector<256x64xf32>
    %131 = vector.shape_cast %130 : vector<256x64xf32> to vector<1x16x16x64xf32>
    %c0_62 = arith.constant 0 : index
    %c0_63 = arith.constant 0 : index
    %c0_64 = arith.constant 0 : index
    %c0_65 = arith.constant 0 : index
    %132 = vector.load %arg12[%c0_62, %c0_63, %c0_64, %c0_65] : memref<1x16x16x64xf32, #tpu.memory_space<vmem>>, vector<1x16x16x64xf32>
    tpu.vector_store %arg12[%c0_62, %c0_63, %c0_64, %c0_65], %131 {strides = array<i32>} : memref<1x16x16x64xf32, #tpu.memory_space<vmem>>, vector<1x16x16x64xf32>,
    return
  }
  func.func @transform_0(%arg0: i32) -> (i32, i32, i32, i32) {
    %c0_i32 = arith.constant 0 : i32
    %c0_i32_0 = arith.constant 0 : i32
    %c0_i32_1 = arith.constant 0 : i32
    %c0_i32_2 = arith.constant 0 : i32
    return %arg0, %c0_i32, %c0_i32_0, %c0_i32_1 : i32, i32, i32, i32
  }
  func.func @transform_1(%arg0: i32) -> (i32, i32) {
    %c0_i32 = arith.constant 0 : i32
    %c0_i32_0 = arith.constant 0 : i32
    %c0_i32_1 = arith.constant 0 : i32
    return %c0_i32, %c0_i32_0 : i32, i32
  }
  func.func @transform_2(%arg0: i32) -> (i32, i32) {
    %c0_i32 = arith.constant 0 : i32
    %c0_i32_0 = arith.constant 0 : i32
    %c0_i32_1 = arith.constant 0 : i32
    return %c0_i32, %c0_i32_0 : i32, i32
  }
  func.func @transform_3(%arg0: i32) -> (i32, i32) {
    %c0_i32 = arith.constant 0 : i32
    %c0_i32_0 = arith.constant 0 : i32
    %c0_i32_1 = arith.constant 0 : i32
    return %c0_i32, %c0_i32_0 : i32, i32
  }
  func.func @transform_4(%arg0: i32) -> (i32, i32) {
    %c0_i32 = arith.constant 0 : i32
    %c0_i32_0 = arith.constant 0 : i32
    %c0_i32_1 = arith.constant 0 : i32
    return %c0_i32, %c0_i32_0 : i32, i32
  }
  func.func @transform_5(%arg0: i32) -> (i32, i32) {
    %c0_i32 = arith.constant 0 : i32
    %c0_i32_0 = arith.constant 0 : i32
    %c0_i32_1 = arith.constant 0 : i32
    return %c0_i32, %c0_i32_0 : i32, i32
  }
  func.func @transform_6(%arg0: i32) -> (i32, i32) {
    %c0_i32 = arith.constant 0 : i32
    %c0_i32_0 = arith.constant 0 : i32
    %c0_i32_1 = arith.constant 0 : i32
    return %c0_i32, %c0_i32_0 : i32, i32
  }
  func.func @transform_7(%arg0: i32) -> (i32, i32) {
    %c0_i32 = arith.constant 0 : i32
    %c0_i32_0 = arith.constant 0 : i32
    %c0_i32_1 = arith.constant 0 : i32
    return %c0_i32, %c0_i32_0 : i32, i32
  }
  func.func @transform_8(%arg0: i32) -> (i32, i32) {
    %c0_i32 = arith.constant 0 : i32
    %c0_i32_0 = arith.constant 0 : i32
    %c0_i32_1 = arith.constant 0 : i32
    return %c0_i32, %c0_i32_0 : i32, i32
  }
  func.func @transform_9(%arg0: i32) -> (i32, i32) {
    %c0_i32 = arith.constant 0 : i32
    %c0_i32_0 = arith.constant 0 : i32
    %c0_i32_1 = arith.constant 0 : i32
    return %c0_i32, %c0_i32_0 : i32, i32
  }
  func.func @transform_10(%arg0: i32) -> (i32, i32) {
    %c0_i32 = arith.constant 0 : i32
    %c0_i32_0 = arith.constant 0 : i32
    %c0_i32_1 = arith.constant 0 : i32
    return %c0_i32, %c0_i32_0 : i32, i32
  }
  func.func @transform_11(%arg0: i32) -> (i32, i32, i32, i32) {
    %c0_i32 = arith.constant 0 : i32
    %c0_i32_0 = arith.constant 0 : i32
    %c0_i32_1 = arith.constant 0 : i32
    %c0_i32_2 = arith.constant 0 : i32
    return %arg0, %c0_i32, %c0_i32_0, %c0_i32_1 : i32, i32, i32, i32
  }
}

module attributes {stable_mosaic.version = 11 : i64} {
  func.func @_head_kernel(%arg0: i32, %arg1: memref<1x16x16x64xf32, #tpu.memory_space<vmem>>, %arg2: memref<64x128xf32, #tpu.memory_space<vmem>>, %arg3: memref<1x128xf32, #tpu.memory_space<vmem>>, %arg4: memref<128x10xf32, #tpu.memory_space<vmem>>, %arg5: memref<1x10xf32, #tpu.memory_space<vmem>>, %arg6: memref<1x1x10xf32, #tpu.memory_space<vmem>>) attributes {dimension_semantics = [#tpu.dimension_semantics<parallel>], iteration_bounds = array<i64: 2>, scalar_prefetch = 0 : i64, scratch_operands = 0 : i64, tpu.core_type = #tpu.core_type<tc>, window_params = [{transform_indices = @transform_0, window_bounds = array<i64: 1, 16, 16, 64>}, {pipeline_mode = #tpu.pipeline_mode<synchronous>, transform_indices = @transform_1, window_bounds = array<i64: 64, 128>}, {pipeline_mode = #tpu.pipeline_mode<synchronous>, transform_indices = @transform_2, window_bounds = array<i64: 1, 128>}, {pipeline_mode = #tpu.pipeline_mode<synchronous>, transform_indices = @transform_3, window_bounds = array<i64: 128, 10>}, {pipeline_mode = #tpu.pipeline_mode<synchronous>, transform_indices = @transform_4, window_bounds = array<i64: 1, 10>}, {transform_indices = @transform_5, window_bounds = array<i64: 1, 1, 10>}]} {
    %c0 = arith.constant 0 : index
    %c0_0 = arith.constant 0 : index
    %c0_1 = arith.constant 0 : index
    %c0_2 = arith.constant 0 : index
    %0 = vector.load %arg1[%c0, %c0_0, %c0_1, %c0_2] : memref<1x16x16x64xf32, #tpu.memory_space<vmem>>, vector<1x16x16x64xf32>
    %1 = vector.shape_cast %0 : vector<1x16x16x64xf32> to vector<256x64xf32>
    %2 = arith.truncf %1 : vector<256x64xf32> to vector<256x64xbf16>
    %c0_3 = arith.constant 0 : index
    %c0_4 = arith.constant 0 : index
    %3 = vector.load %arg2[%c0_3, %c0_4] : memref<64x128xf32, #tpu.memory_space<vmem>>, vector<64x128xf32>
    %4 = arith.truncf %3 : vector<64x128xf32> to vector<64x128xbf16>
    %cst = arith.constant dense<0.000000e+00> : vector<256x128xf32>
    %5 = tpu.matmul %2, %4, %cst {dimension_numbers = #tpu.dot_dimension_numbers<[1], [0], [0], [1], [0, 0, 1, 1], [], []>} : vector<256x64xbf16>, vector<64x128xbf16>, vector<256x128xf32> -> vector<256x128xf32>
    %c0_5 = arith.constant 0 : index
    %c0_6 = arith.constant 0 : index
    %6 = vector.load %arg3[%c0_5, %c0_6] : memref<1x128xf32, #tpu.memory_space<vmem>>, vector<1x128xf32>
    %7 = vector.broadcast %6 : vector<1x128xf32> to vector<256x128xf32>
    %8 = arith.addf %5, %7 : vector<256x128xf32>
    %9 = arith.negf %8 : vector<256x128xf32>
    %10 = math.exp %9 : vector<256x128xf32>
    %cst_7 = arith.constant 1.000000e+00 : f32
    %11 = vector.broadcast %cst_7 : f32 to vector<256x128xf32>
    %12 = arith.addf %11, %10 : vector<256x128xf32>
    %13 = arith.divf %11, %12 : vector<256x128xf32>
    %14 = arith.mulf %8, %13 : vector<256x128xf32>
    %cst_8 = arith.constant dense<0.000000e+00> : vector<128xf32>
    %15 = vector.multi_reduction <add>, %14, %cst_8 [0] : vector<256x128xf32> to vector<128xf32>
    %16 = vector.shape_cast %15 : vector<128xf32> to vector<1x128xf32>
    %cst_9 = arith.constant 2.560000e+02 : f32
    %17 = vector.broadcast %cst_9 : f32 to vector<1x128xf32>
    %18 = arith.divf %16, %17 : vector<1x128xf32>
    %19 = arith.truncf %18 : vector<1x128xf32> to vector<1x128xbf16>
    %c0_10 = arith.constant 0 : index
    %c0_11 = arith.constant 0 : index
    %20 = vector.load %arg4[%c0_10, %c0_11] : memref<128x10xf32, #tpu.memory_space<vmem>>, vector<128x10xf32>
    %21 = arith.truncf %20 : vector<128x10xf32> to vector<128x10xbf16>
    %cst_12 = arith.constant dense<0.000000e+00> : vector<1x10xf32>
    %22 = tpu.matmul %19, %21, %cst_12 {dimension_numbers = #tpu.dot_dimension_numbers<[1], [0], [0], [1], [0, 0, 1, 1], [], []>} : vector<1x128xbf16>, vector<128x10xbf16>, vector<1x10xf32> -> vector<1x10xf32>
    %c0_13 = arith.constant 0 : index
    %c0_14 = arith.constant 0 : index
    %23 = vector.load %arg5[%c0_13, %c0_14] : memref<1x10xf32, #tpu.memory_space<vmem>>, vector<1x10xf32>
    %24 = arith.addf %22, %23 : vector<1x10xf32>
    %25 = vector.shape_cast %24 : vector<1x10xf32> to vector<1x1x10xf32>
    %c0_15 = arith.constant 0 : index
    %c0_16 = arith.constant 0 : index
    %c0_17 = arith.constant 0 : index
    %26 = vector.load %arg6[%c0_15, %c0_16, %c0_17] : memref<1x1x10xf32, #tpu.memory_space<vmem>>, vector<1x1x10xf32>
    tpu.vector_store %arg6[%c0_15, %c0_16, %c0_17], %25 {strides = array<i32>} : memref<1x1x10xf32, #tpu.memory_space<vmem>>, vector<1x1x10xf32>,
    return
  }
  func.func @transform_0(%arg0: i32) -> (i32, i32, i32, i32) {
    %c0_i32 = arith.constant 0 : i32
    %c0_i32_0 = arith.constant 0 : i32
    %c0_i32_1 = arith.constant 0 : i32
    %c0_i32_2 = arith.constant 0 : i32
    return %arg0, %c0_i32, %c0_i32_0, %c0_i32_1 : i32, i32, i32, i32
  }
  func.func @transform_1(%arg0: i32) -> (i32, i32) {
    %c0_i32 = arith.constant 0 : i32
    %c0_i32_0 = arith.constant 0 : i32
    %c0_i32_1 = arith.constant 0 : i32
    return %c0_i32, %c0_i32_0 : i32, i32
  }
  func.func @transform_2(%arg0: i32) -> (i32, i32) {
    %c0_i32 = arith.constant 0 : i32
    %c0_i32_0 = arith.constant 0 : i32
    %c0_i32_1 = arith.constant 0 : i32
    return %c0_i32, %c0_i32_0 : i32, i32
  }
  func.func @transform_3(%arg0: i32) -> (i32, i32) {
    %c0_i32 = arith.constant 0 : i32
    %c0_i32_0 = arith.constant 0 : i32
    %c0_i32_1 = arith.constant 0 : i32
    return %c0_i32, %c0_i32_0 : i32, i32
  }
  func.func @transform_4(%arg0: i32) -> (i32, i32) {
    %c0_i32 = arith.constant 0 : i32
    %c0_i32_0 = arith.constant 0 : i32
    %c0_i32_1 = arith.constant 0 : i32
    return %c0_i32, %c0_i32_0 : i32, i32
  }
  func.func @transform_5(%arg0: i32) -> (i32, i32, i32) {
    %c0_i32 = arith.constant 0 : i32
    %c0_i32_0 = arith.constant 0 : i32
    %c0_i32_1 = arith.constant 0 : i32
    return %arg0, %c0_i32, %c0_i32_0 : i32, i32, i32
  }
}

</mosaic_0001>

<bundles_post_ra>
// kernel: efficientnet_forward.4
= control target key start
LH: loop header
LB: loop body
LE: loop exit
PB: predicated region body
PF: predicated region fallthrough
CT: control target
= control target key end

     0   :  { %s1048_s12 = smov 0   ;;  %s1365_s0 = inlined_call_operand.vmem [shape: f32[2,256,27], index: 0, kind: input, shape index: {}]   ;;  %s1366_s1 = inlined_call_operand.vmem [shape: f32[27,32], index: 1, kind: input, shape index: {}]   ;;  %s1367_s2 = inlined_call_operand.vmem [shape: f32[1,32], index: 2, kind: input, shape index: {}]   ;;  %s1368_s3 = inlined_call_operand.vmem [shape: f32[2,16,16,32], index: 3, kind: output, shape index: {}]  }
   0x1 LB: > { %s762_s13 = sadd.s32 4294967295, %s1025_s12   ;;  %p766_p0 = scmp.ge.s32.totalorder %s1025_s12, 1  ;;  %s1025_s12 = sphi %s1048_s12, %s13_s12  }
   0x2   : > { %p137_p1 = scmp.lt.s32.totalorder %s1025_s12, 3 }
   0x4   : > { %p138_p2 = pnand %p766_p0, %p137_p1 }
   0x5   : > { %p161_p3 = scmp.lt.s32.totalorder (!%p138_p2), %s762_s13, 1 }
   0x6   : > { %141 = sbr.rel (%p138_p2) target bundleno = 301 (0x12d), region = 32 }
   0xb   : > { %v222_v0 = vld [vmem:[%s1366_s1 + $0x10] sm:$0xff]  ;;  %v223_v1 = vld [vmem:[%s1366_s1 + $0x18] sm:$0x7]  ;;  %vm282_vm0 = vcmask 1044480   ;;  %vm283_vm1 = vcmask 1045504   ;;  %v1027_v3 = vmov 65535  }
   0xc   : > { %v225_v2 = vpack.c.bf16 %v223_v1, %v222_v0  ;;  %v284_v4 = vsel %vm282_vm0, 4294967295, %v1027_v3  ;;  %v220_v5 = vld [vmem:[%s1366_s1] sm:$0xff]  ;;  %v221_v6 = vld [vmem:[%s1366_s1 + $0x8] sm:$0xff]  ;;  %s1370_s13 = smov (!%p161_p3, %s762_s13), 1  ;;  %vm233_vm2 = vcmask 220160   ;;  %vm674_vm3 = vcmask 261120  }
   0xd   : > { %v285_v7 = vsel %vm283_vm1, %v284_v4, 0  ;;  %v224_v9 = vpack.c.bf16 %v221_v6, %v220_v5  ;;  %s822_s22 = sshll.u32 %s1370_s13, 8  ;;  %v1129_v58 = vld [vmem:[%s1367_s2] ss:$0 sm:$0xff] }
   0xe   : > { %v287_v8 = vand.u32 %v285_v7, %v225_v2  ;;  %s1076_s25 = scalar_lea.vmem %s1365_s0, %s822_s22  ;;  %s1216_s30 = scalar_lea.vmem %s1368_s3, %s822_s22 }
   0xf   : > { %v172_v10 = vld [vmem:[%s1076_s25] sm:$0xff]  ;;  %v173_v11 = vld [vmem:[%s1076_s25 + $0x8] sm:$0xff]  ;;  %v174_v15 = vld [vmem:[%s1076_s25 + $0x10] sm:$0xff] }
  0x10   : > { %842 = vmatprep.subr.bf16.mxu0 %v287_v8  ;;  %878 = vmatprep.subr.bf16.mxu1 %v287_v8  ;;  %v188_v12 = vld [vmem:[%s1076_s25 + $0x80] sm:$0xff]  ;;  %v204_v13 = vpack.c.bf16 %v173_v11, %v172_v10  ;;  %v189_v14 = vld [vmem:[%s1076_s25 + $0x88] sm:$0xff]  ;;  %v175_v16 = vld [vmem:[%s1076_s25 + $0x18] sm:$0xff] }
  0x11   : > { %843 = vmatpush3.bf16.msra.mxu0 %v287_v8  ;;  %880 = vmatpush3.bf16.msra.mxu1 %v287_v8  ;;  %v212_v17 = vpack.c.bf16 %v189_v14, %v188_v12  ;;  %v205_v18 = vpack.c.bf16 %v175_v16, %v174_v15  ;;  %v190_v19 = vld [vmem:[%s1076_s25 + $0x90] sm:$0xff]  ;;  %v191_v20 = vld [vmem:[%s1076_s25 + $0x98] sm:$0xff]  ;;  %v176_v21 = vld [vmem:[%s1076_s25 + $0x20] sm:$0xff] }
  0x12   : > { %844 = vmatprep.subr.bf16.mxu0 %v224_v9  ;;  %879 = vmatprep.subr.bf16.mxu1 %v224_v9  ;;  %v213_v22 = vpack.c.bf16 %v191_v20, %v190_v19  ;;  %v177_v23 = vld [vmem:[%s1076_s25 + $0x28] sm:$0xff]  ;;  %v192_v24 = vld [vmem:[%s1076_s25 + $0xa0] sm:$0xff]  ;;  %v178_v28 = vld [vmem:[%s1076_s25 + $0x30] sm:$0xff] }
  0x13   : > { %v193_v25 = vld [vmem:[%s1076_s25 + $0xa8] sm:$0xff]  ;;  %846 = vmatprep.mubr.msk.bf16.mxu0 %vm233_vm2, %v204_v13  ;;  %862 = vmatprep.mubr.msk.bf16.mxu1 %vm233_vm2, %v212_v17  ;;  %v206_v26 = vpack.c.bf16 %v177_v23, %v176_v21  ;;  %v179_v29 = vld [vmem:[%s1076_s25 + $0x38] sm:$0xff]  ;;  %v194_v30 = vld [vmem:[%s1076_s25 + $0xb0] sm:$0xff] }
  0x14   : > { %v214_v27 = vpack.c.bf16 %v193_v25, %v192_v24  ;;  %v195_v31 = vld [vmem:[%s1076_s25 + $0xb8] sm:$0xff]  ;;  %v180_v32 = vld [vmem:[%s1076_s25 + $0x40] sm:$0xff]  ;;  %v181_v33 = vld [vmem:[%s1076_s25 + $0x48] sm:$0xff]  ;;  %v207_v36 = vpack.c.bf16 %v179_v29, %v178_v28 }
  0x15   : > { %845 = vmatpush3.bf16.msra.mxu0 %v224_v9  ;;  %881 = vmatpush3.bf16.msra.mxu1 %v224_v9  ;;  %v196_v34 = vld [vmem:[%s1076_s25 + $0xc0] sm:$0xff]  ;;  %v197_v35 = vld [vmem:[%s1076_s25 + $0xc8] sm:$0xff]  ;;  %v215_v37 = vpack.c.bf16 %v195_v31, %v194_v30  ;;  %v208_v38 = vpack.c.bf16 %v181_v33, %v180_v32  ;;  %v182_v40 = vld [vmem:[%s1076_s25 + $0x50] sm:$0xff] }
  0x16   : > { %v216_v39 = vpack.c.bf16 %v197_v35, %v196_v34  ;;  %v183_v41 = vld [vmem:[%s1076_s25 + $0x58] sm:$0xff]  ;;  %v198_v42 = vld [vmem:[%s1076_s25 + $0xd0] sm:$0xff]  ;;  %v184_v44 = vld [vmem:[%s1076_s25 + $0x60] sm:$0xff] }
  0x17   : > { %v199_v43 = vld [vmem:[%s1076_s25 + $0xd8] sm:$0xff]  ;;  %v185_v45 = vld [vmem:[%s1076_s25 + $0x68] sm:$0xff]  ;;  %v200_v46 = vld [vmem:[%s1076_s25 + $0xe0] sm:$0xff]  ;;  %v209_v48 = vpack.c.bf16 %v183_v41, %v182_v40 }
  0x18   : > { %847 = vmatmul.mubr.msk.bf16.vlgmr.msra.gmra.mxu0 %vm233_vm2, %v205_v18  ;;  %863 = vmatmul.mubr.msk.bf16.vlgmr.msra.gmra.mxu1 %vm233_vm2, %v213_v22  ;;  %v201_v47 = vld [vmem:[%s1076_s25 + $0xe8] sm:$0xff]  ;;  %v217_v49 = vpack.c.bf16 %v199_v43, %v198_v42  ;;  %v210_v50 = vpack.c.bf16 %v185_v45, %v184_v44  ;;  %v186_v52 = vld [vmem:[%s1076_s25 + $0x70] sm:$0xff]  ;;  %v187_v53 = vld [vmem:[%s1076_s25 + $0x78] sm:$0xff] }
  0x19   : > { %850 = vmatprep.mubr.msk.bf16.mxu0 %vm233_vm2, %v206_v26  ;;  %866 = vmatprep.mubr.msk.bf16.mxu1 %vm233_vm2, %v214_v27  ;;  %v218_v51 = vpack.c.bf16 %v201_v47, %v200_v46  ;;  %v202_v54 = vld [vmem:[%s1076_s25 + $0xf0] sm:$0xff]  ;;  %v203_v55 = vld [vmem:[%s1076_s25 + $0xf8] sm:$0xff]  ;;  %v211_v56 = vpack.c.bf16 %v187_v53, %v186_v52 }
  0x1a   : > { %v219_v57 = vpack.c.bf16 %v203_v55, %v202_v54 }
  0x20   : > { %851 = vmatmul.mubr.msk.bf16.gmra.mxu0 %vm233_vm2, %v207_v36  ;;  %867 = vmatmul.mubr.msk.bf16.gmra.mxu1 %vm233_vm2, %v215_v37 }
  0x21   : > { %854 = vmatprep.mubr.msk.bf16.mxu0 %vm233_vm2, %v208_v38  ;;  %870 = vmatprep.mubr.msk.bf16.mxu1 %vm233_vm2, %v216_v39 }
  0x28   : > { %855 = vmatmul.mubr.msk.bf16.gmra.mxu0 %vm233_vm2, %v209_v48  ;;  %871 = vmatmul.mubr.msk.bf16.gmra.mxu1 %vm233_vm2, %v217_v49 }
  0x29   : > { %858 = vmatprep.mubr.msk.bf16.mxu0 %vm233_vm2, %v210_v50  ;;  %874 = vmatprep.mubr.msk.bf16.mxu1 %vm233_vm2, %v218_v51 }
  0x30   : > { %859 = vmatmul.mubr.msk.bf16.gmra.mxu0 %vm233_vm2, %v211_v56  ;;  %875 = vmatmul.mubr.msk.bf16.gmra.mxu1 %vm233_vm2, %v219_v57 }
  0xd8   : > { %v848_v59 = vpop.f32.mrf.mxu0  ;;  %v864_v60 = vpop.f32.mrf.mxu1 }
  0xd9   : > { %v1132_v61 = vadd.f32 %v848_v59, %v1129_v58  ;;  %v1135_v62 = vadd.f32 %v864_v60, %v1129_v58 }
  0xda   : > { %v323_v63 = vpop.f32.mrf.mxu0  ;;  %v387_v0 = vpop.f32.mrf.mxu1 }
  0xdb   : > { %v790_v1 = vmul.f32 -1.442695, %v1132_v61  ;;  %v806_v2 = vmul.f32 -1.442695, %v1135_v62  ;;  %v1140_v3 = vadd.f32 %v1129_v58, %v323_v63  ;;  %v1143_v4 = vadd.f32 %v1129_v58, %v387_v0 }
  0xdc   : > { %v849_v5 = vpop.f32.mrf.mxu0  ;;  %v865_v6 = vpop.f32.mrf.mxu1 }
  0xdd   : > { %891 = vpow2.f32 %v790_v1  ;;  %v788_v7 = vmul.f32 -1.442695, %v1140_v3  ;;  %v804_v8 = vmul.f32 -1.442695, %v1143_v4  ;;  %v1148_v9 = vadd.f32 %v849_v5, %v1129_v58 }
  0xde   : > { %893 = vpow2.f32 %v806_v2  ;;  %v1151_v10 = vadd.f32 %v865_v6, %v1129_v58  ;;  %v326_v11 = vpop.f32.mrf.mxu0  ;;  %v390_v12 = vpop.f32.mrf.mxu1 }
  0xdf   : > { %895 = vpow2.f32 %v788_v7  ;;  %v791_v13 = vmul.f32 -1.442695, %v1148_v9  ;;  %v1155_v14 = vadd.f32 %v1129_v58, %v326_v11  ;;  %v1158_v15 = vadd.f32 %v1129_v58, %v390_v12 }
  0xe0   : > { %897 = vpow2.f32 %v804_v8  ;;  %v807_v16 = vmul.f32 -1.442695, %v1151_v10  ;;  %v852_v17 = vpop.f32.mrf.mxu0  ;;  %v868_v18 = vpop.f32.mrf.mxu1 }
  0xe1   : > { %899 = vpow2.f32 %v791_v13  ;;  %v789_v19 = vmul.f32 -1.442695, %v1155_v14  ;;  %v805_v20 = vmul.f32 -1.442695, %v1158_v15  ;;  %v1164_v21 = vadd.f32 %v852_v17, %v1129_v58 }
  0xe2   : > { %901 = vpow2.f32 %v807_v16  ;;  %v1167_v22 = vadd.f32 %v868_v18, %v1129_v58  ;;  %v339_v23 = vpop.f32.mrf.mxu0  ;;  %v403_v24 = vpop.f32.mrf.mxu1 }
  0xe3   : > { %903 = vpow2.f32 %v789_v19  ;;  %v794_v25 = vmul.f32 -1.442695, %v1164_v21  ;;  %v1171_v26 = vadd.f32 %v1129_v58, %v339_v23  ;;  %v1174_v27 = vadd.f32 %v1129_v58, %v403_v24 }
  0xe4   : > { %905 = vpow2.f32 %v805_v20  ;;  %v810_v28 = vmul.f32 -1.442695, %v1167_v22  ;;  %v853_v29 = vpop.f32.mrf.mxu0  ;;  %v869_v30 = vpop.f32.mrf.mxu1 }
  0xe5   : > { %907 = vpow2.f32 %v794_v25  ;;  %v792_v31 = vmul.f32 -1.442695, %v1171_v26  ;;  %v808_v32 = vmul.f32 -1.442695, %v1174_v27  ;;  %v1180_v33 = vadd.f32 %v853_v29, %v1129_v58 }
  0xe6   : > { %909 = vpow2.f32 %v810_v28  ;;  %v1183_v34 = vadd.f32 %v869_v30, %v1129_v58  ;;  %v342_v35 = vpop.f32.mrf.mxu0  ;;  %v406_v36 = vpop.f32.mrf.mxu1 }
  0xe7   : > { %911 = vpow2.f32 %v792_v31  ;;  %v795_v37 = vmul.f32 -1.442695, %v1180_v33  ;;  %v1187_v38 = vadd.f32 %v1129_v58, %v342_v35  ;;  %v1190_v39 = vadd.f32 %v1129_v58, %v406_v36 }
  0xe8   : > { %913 = vpow2.f32 %v808_v32  ;;  %v811_v40 = vmul.f32 -1.442695, %v1183_v34  ;;  %v856_v41 = vpop.f32.mrf.mxu0  ;;  %v872_v42 = vpop.f32.mrf.mxu1 }
  0xe9   : > { %915 = vpow2.f32 %v795_v37  ;;  %v793_v43 = vmul.f32 -1.442695, %v1187_v38  ;;  %v809_v44 = vmul.f32 -1.442695, %v1190_v39  ;;  %v1196_v20 = vadd.f32 %v856_v41, %v1129_v58 }
  0xea   : > { %v892_v45 = vpop.eup %891  ;;  %917 = vpow2.f32 %v811_v40  ;;  %v355_v46 = vpop.f32.mrf.mxu0  ;;  %v1199_v28 = vadd.f32 %v872_v42, %v1129_v58 }
  0xeb   : > { %v419_v47 = vpop.f32.mrf.mxu1  ;;  %v894_v48 = vpop.eup %893  ;;  %v548_v49 = vadd.f32 1.0, %v892_v45  ;;  %919 = vpow2.f32 %v793_v43  ;;  %v1202_v31 = vadd.f32 %v1129_v58, %v355_v46  ;;  %v798_v42 = vmul.f32 -1.442695, %v1196_v20 }
  0xec   : > { %v896_v50 = vpop.eup %895  ;;  %v564_v51 = vadd.f32 1.0, %v894_v48  ;;  %921 = vpow2.f32 %v809_v44  ;;  %v857_v52 = vpop.f32.mrf.mxu0  ;;  %v1205_v36 = vadd.f32 %v1129_v58, %v419_v47  ;;  %v814_v47 = vmul.f32 -1.442695, %v1199_v28 }
  0xed   : > { %v898_v53 = vpop.eup %897  ;;  %923 = vrcp.f32 %v548_v49  ;;  %v546_v54 = vadd.f32 1.0, %v896_v50  ;;  %v873_v55 = vpop.f32.mrf.mxu1  ;;  %v1209_v43 = vadd.f32 %v857_v52, %v1129_v58 }
  0xee   : > { %v900_v56 = vpop.eup %899  ;;  %925 = vrcp.f32 %v564_v51  ;;  %v562_v57 = vadd.f32 1.0, %v898_v53  ;;  %v358_v1 = vpop.f32.mrf.mxu0  ;;  %v1220_v48 = vadd.f32 %v873_v55, %v1129_v58  ;;  %v796_v51 = vmul.f32 -1.442695, %v1202_v31 }
  0xef   : > { %v902_v59 = vpop.eup %901  ;;  %927 = vrcp.f32 %v546_v54  ;;  %v549_v60 = vadd.f32 1.0, %v900_v56  ;;  %v422_v6 = vpop.f32.mrf.mxu1  ;;  %v1225_v52 = vadd.f32 %v1129_v58, %v358_v1  ;;  %v812_v56 = vmul.f32 -1.442695, %v1205_v36 }
  0xf0   : > { %v904_v63 = vpop.eup %903  ;;  %929 = vrcp.f32 %v562_v57  ;;  %v565_v0 = vadd.f32 1.0, %v902_v59  ;;  %v860_v17 = vpop.f32.mrf.mxu0  ;;  %v1230_v57 = vadd.f32 %v1129_v58, %v422_v6 }
  0xf1   : > { %v906_v2 = vpop.eup %905  ;;  %931 = vrcp.f32 %v549_v60  ;;  %v547_v5 = vadd.f32 1.0, %v904_v63  ;;  %v876_v23 = vpop.f32.mrf.mxu1  ;;  %v799_v60 = vmul.f32 -1.442695, %v1209_v43  ;;  %v1237_v63 = vadd.f32 %v860_v17, %v1129_v58 }
  0xf2   : > { %v908_v7 = vpop.eup %907  ;;  %933 = vrcp.f32 %v565_v0  ;;  %v563_v8 = vadd.f32 1.0, %v906_v2  ;;  %v371_v37 = vpop.f32.mrf.mxu0  ;;  %v815_v2 = vmul.f32 -1.442695, %v1220_v48 }
  0xf3   : > { %v910_v11 = vpop.eup %909  ;;  %935 = vrcp.f32 %v547_v5  ;;  %v552_v12 = vadd.f32 1.0, %v908_v7  ;;  %v435_v44 = vpop.f32.mrf.mxu1  ;;  %v1244_v5 = vadd.f32 %v876_v23, %v1129_v58  ;;  %v797_v7 = vmul.f32 -1.442695, %v1225_v52 }
  0xf4   : > { %v912_v13 = vpop.eup %911  ;;  %937 = vrcp.f32 %v563_v8  ;;  %v568_v16 = vadd.f32 1.0, %v910_v11  ;;  %v861_v55 = vpop.f32.mrf.mxu0  ;;  %v1251_v8 = vadd.f32 %v1129_v58, %v371_v37 }
  0xf5   : > { %v914_v18 = vpop.eup %913  ;;  %939 = vrcp.f32 %v552_v12  ;;  %v550_v19 = vadd.f32 1.0, %v912_v13  ;;  %v813_v12 = vmul.f32 -1.442695, %v1230_v57  ;;  %v1258_v13 = vadd.f32 %v1129_v58, %v435_v44 }
  0xf6   : > { %v916_v24 = vpop.eup %915  ;;  %941 = vrcp.f32 %v568_v16  ;;  %v566_v25 = vadd.f32 1.0, %v914_v18  ;;  %v802_v18 = vmul.f32 -1.442695, %v1237_v63 }
  0xf7   : > { %v918_v29 = vpop.eup %917  ;;  %943 = vrcp.f32 %v550_v19  ;;  %v553_v30 = vadd.f32 1.0, %v916_v24  ;;  %v1265_v19 = vadd.f32 %v861_v55, %v1129_v58 }
  0xf8   : > { %v920_v32 = vpop.eup %919  ;;  %945 = vrcp.f32 %v566_v25  ;;  %v569_v35 = vadd.f32 1.0, %v918_v29  ;;  %v818_v25 = vmul.f32 -1.442695, %v1244_v5 }
  0xf9   : > { %v922_v40 = vpop.eup %921  ;;  %947 = vrcp.f32 %v553_v30  ;;  %v551_v41 = vadd.f32 1.0, %v920_v32  ;;  %v800_v32 = vmul.f32 -1.442695, %v1251_v8  ;;  %v803_v44 = vmul.f32 -1.442695, %v1265_v19 }
  0xfa   : > { %v924_v45 = vpop.eup %923  ;;  %949 = vrcp.f32 %v569_v35  ;;  %v567_v46 = vadd.f32 1.0, %v922_v40  ;;  %v816_v40 = vmul.f32 -1.442695, %v1258_v13 }
  0xfb   : > { %v926_v49 = vpop.eup %925  ;;  %v644_v50 = vmul.f32 %v924_v45, %v1132_v61  ;;  %951 = vrcp.f32 %v551_v41 }
  0xfc   : > { %v928_v53 = vpop.eup %927  ;;  %v660_v54 = vmul.f32 %v926_v49, %v1135_v62  ;;  %953 = vrcp.f32 %v567_v46  ;;  %v877_v62 = vpop.f32.mrf.mxu1 }
  0xfd   : > { %v930_v59 = vpop.eup %929  ;;  %677 = vst.msk [vmem:[%s1216_s30 + $0x10] sm:$0xff] %vm674_vm3, %v644_v50  ;;  %v642_v61 = vmul.f32 %v928_v53, %v1140_v3  ;;  %955 = vpow2.f32 %v798_v42  ;;  %v1272_v29 = vadd.f32 %v877_v62, %v1129_v58 }
  0xfe   : > { %v932_v0 = vpop.eup %931  ;;  %693 = vst.msk [vmem:[%s1216_s30 + $0x90] sm:$0xff] %vm674_vm3, %v660_v54  ;;  %v658_v1 = vmul.f32 %v930_v59, %v1143_v4  ;;  %957 = vpow2.f32 %v814_v47 }
  0xff   : > { %v934_v3 = vpop.eup %933  ;;  %675 = vst.msk [vmem:[%s1216_s30] sm:$0xff] %vm674_vm3, %v642_v61  ;;  %v645_v6 = vmul.f32 %v932_v0, %v1148_v9  ;;  %959 = vpow2.f32 %v796_v51  ;;  %v374_v9 = vpop.f32.mrf.mxu0  ;;  %v819_v46 = vmul.f32 -1.442695, %v1272_v29 }
 0x100   : > { %v936_v4 = vpop.eup %935  ;;  %691 = vst.msk [vmem:[%s1216_s30 + $0x80] sm:$0xff] %vm674_vm3, %v658_v1  ;;  %v661_v11 = vmul.f32 %v934_v3, %v1151_v10  ;;  %961 = vpow2.f32 %v812_v56  ;;  %v438_v10 = vpop.f32.mrf.mxu1  ;;  %v1279_v35 = vadd.f32 %v1129_v58, %v374_v9 }
 0x101   : > { %v938_v16 = vpop.eup %937  ;;  %678 = vst.msk [vmem:[%s1216_s30 + $0x18] sm:$0xff] %vm674_vm3, %v645_v6  ;;  %v643_v17 = vmul.f32 %v936_v4, %v1155_v14  ;;  %963 = vpow2.f32 %v799_v60  ;;  %v1286_v41 = vadd.f32 %v1129_v58, %v438_v10 }
 0x102   : > { %v940_v23 = vpop.eup %939  ;;  %694 = vst.msk [vmem:[%s1216_s30 + $0x98] sm:$0xff] %vm674_vm3, %v661_v11  ;;  %v659_v24 = vmul.f32 %v938_v16, %v1158_v15  ;;  %965 = vpow2.f32 %v815_v2 }
 0x103   : > { %v942_v14 = vpop.eup %941  ;;  %676 = vst.msk [vmem:[%s1216_s30 + $0x8] sm:$0xff] %vm674_vm3, %v643_v17  ;;  %v648_v30 = vmul.f32 %v940_v23, %v1164_v21  ;;  %967 = vpow2.f32 %v797_v7 }
 0x104   : > { %v944_v15 = vpop.eup %943  ;;  %692 = vst.msk [vmem:[%s1216_s30 + $0x88] sm:$0xff] %vm674_vm3, %v659_v24  ;;  %v664_v37 = vmul.f32 %v942_v14, %v1167_v22  ;;  %969 = vpow2.f32 %v813_v12 }
 0x105   : > { %v946_v21 = vpop.eup %945  ;;  %681 = vst.msk [vmem:[%s1216_s30 + $0x30] sm:$0xff] %vm674_vm3, %v648_v30  ;;  %v646_v42 = vmul.f32 %v944_v15, %v1171_v26  ;;  %971 = vpow2.f32 %v802_v18  ;;  %v801_v26 = vmul.f32 -1.442695, %v1279_v35 }
 0x106   : > { %v948_v45 = vpop.eup %947  ;;  %697 = vst.msk [vmem:[%s1216_s30 + $0xb0] sm:$0xff] %vm674_vm3, %v664_v37  ;;  %v662_v22 = vmul.f32 %v946_v21, %v1174_v27  ;;  %973 = vpow2.f32 %v818_v25  ;;  %v817_v27 = vmul.f32 -1.442695, %v1286_v41 }
 0x107   : > { %v950_v58 = vpop.eup %949  ;;  %679 = vst.msk [vmem:[%s1216_s30 + $0x20] sm:$0xff] %vm674_vm3, %v646_v42  ;;  %v649_v47 = vmul.f32 %v948_v45, %v1180_v33  ;;  %975 = vpow2.f32 %v800_v32 }
 0x108   : > { %v952_v49 = vpop.eup %951  ;;  %695 = vst.msk [vmem:[%s1216_s30 + $0xa0] sm:$0xff] %vm674_vm3, %v662_v22  ;;  %v665_v50 = vmul.f32 %v950_v58, %v1183_v34  ;;  %977 = vpow2.f32 %v816_v40 }
 0x109   : > { %v954_v51 = vpop.eup %953  ;;  %682 = vst.msk [vmem:[%s1216_s30 + $0x38] sm:$0xff] %vm674_vm3, %v649_v47  ;;  %v647_v53 = vmul.f32 %v952_v49, %v1187_v38  ;;  %979 = vpow2.f32 %v803_v44 }
 0x10a   : > { %v956_v33 = vpop.eup %955  ;;  %698 = vst.msk [vmem:[%s1216_s30 + $0xb8] sm:$0xff] %vm674_vm3, %v665_v50  ;;  %v663_v54 = vmul.f32 %v954_v51, %v1190_v39  ;;  %981 = vpow2.f32 %v819_v46 }
 0x10b   : > { %v958_v56 = vpop.eup %957  ;;  %680 = vst.msk [vmem:[%s1216_s30 + $0x28] sm:$0xff] %vm674_vm3, %v647_v53  ;;  %v556_v34 = vadd.f32 1.0, %v956_v33  ;;  %983 = vpow2.f32 %v801_v26 }
 0x10c   : > { %v960_v55 = vpop.eup %959  ;;  %696 = vst.msk [vmem:[%s1216_s30 + $0xa8] sm:$0xff] %vm674_vm3, %v663_v54  ;;  %v572_v59 = vadd.f32 1.0, %v958_v56  ;;  %985 = vpow2.f32 %v817_v27 }
 0x10d   : > { %v962_v61 = vpop.eup %961  ;;  %987 = vrcp.f32 %v556_v34  ;;  %v554_v38 = vadd.f32 1.0, %v960_v55 }
 0x10e   : > { %v964_v60 = vpop.eup %963  ;;  %989 = vrcp.f32 %v572_v59  ;;  %v570_v62 = vadd.f32 1.0, %v962_v61 }
 0x10f   : > { %v966_v0 = vpop.eup %965  ;;  %991 = vrcp.f32 %v554_v38  ;;  %v557_v39 = vadd.f32 1.0, %v964_v60 }
 0x110   : > { %v968_v1 = vpop.eup %967  ;;  %993 = vrcp.f32 %v570_v62  ;;  %v573_v2 = vadd.f32 1.0, %v966_v0 }
 0x111   : > { %v970_v3 = vpop.eup %969  ;;  %995 = vrcp.f32 %v557_v39  ;;  %v555_v6 = vadd.f32 1.0, %v968_v1 }
 0x112   : > { %v972_v7 = vpop.eup %971  ;;  %997 = vrcp.f32 %v573_v2  ;;  %v571_v4 = vadd.f32 1.0, %v970_v3 }
 0x113   : > { %v974_v11 = vpop.eup %973  ;;  %999 = vrcp.f32 %v555_v6  ;;  %v560_v12 = vadd.f32 1.0, %v972_v7 }
 0x114   : > { %v976_v9 = vpop.eup %975  ;;  %1001 = vrcp.f32 %v571_v4  ;;  %v576_v16 = vadd.f32 1.0, %v974_v11 }
 0x115   : > { %v978_v17 = vpop.eup %977  ;;  %1003 = vrcp.f32 %v560_v12  ;;  %v558_v18 = vadd.f32 1.0, %v976_v9 }
 0x116   : > { %v980_v10 = vpop.eup %979  ;;  %1005 = vrcp.f32 %v576_v16  ;;  %v574_v23 = vadd.f32 1.0, %v978_v17 }
 0x117   : > { %v982_v24 = vpop.eup %981  ;;  %1007 = vrcp.f32 %v558_v18  ;;  %v561_v25 = vadd.f32 1.0, %v980_v10 }
 0x118   : > { %v984_v14 = vpop.eup %983  ;;  %1009 = vrcp.f32 %v574_v23  ;;  %v577_v30 = vadd.f32 1.0, %v982_v24 }
 0x119   : > { %v986_v32 = vpop.eup %985  ;;  %1011 = vrcp.f32 %v561_v25  ;;  %v559_v15 = vadd.f32 1.0, %v984_v14 }
 0x11a   : > { %v988_v37 = vpop.eup %987  ;;  %1013 = vrcp.f32 %v577_v30  ;;  %v575_v40 = vadd.f32 1.0, %v986_v32 }
 0x11b   : > { %v990_v21 = vpop.eup %989  ;;  %v652_v42 = vmul.f32 %v988_v37, %v1196_v20  ;;  %1015 = vrcp.f32 %v559_v15 }
 0x11c   : > { %v992_v44 = vpop.eup %991  ;;  %v668_v45 = vmul.f32 %v990_v21, %v1199_v28  ;;  %1017 = vrcp.f32 %v575_v40 }
 0x11d   : > { %v994_v22 = vpop.eup %993  ;;  %685 = vst.msk [vmem:[%s1216_s30 + $0x50] sm:$0xff] %vm674_vm3, %v652_v42  ;;  %v650_v46 = vmul.f32 %v992_v44, %v1202_v31 }
 0x11e   : > { %v996_v58 = vpop.eup %995  ;;  %701 = vst.msk [vmem:[%s1216_s30 + $0xd0] sm:$0xff] %vm674_vm3, %v668_v45  ;;  %v666_v47 = vmul.f32 %v994_v22, %v1205_v36 }
 0x11f   : > { %v998_v26 = vpop.eup %997  ;;  %683 = vst.msk [vmem:[%s1216_s30 + $0x40] sm:$0xff] %vm674_vm3, %v650_v46  ;;  %v653_v20 = vmul.f32 %v996_v58, %v1209_v43 }
 0x120   : > { %v1000_v28 = vpop.eup %999  ;;  %699 = vst.msk [vmem:[%s1216_s30 + $0xc0] sm:$0xff] %vm674_vm3, %v666_v47  ;;  %v669_v49 = vmul.f32 %v998_v26, %v1220_v48 }
 0x121   : > { %v1002_v50 = vpop.eup %1001  ;;  %686 = vst.msk [vmem:[%s1216_s30 + $0x58] sm:$0xff] %vm674_vm3, %v653_v20  ;;  %v651_v31 = vmul.f32 %v1000_v28, %v1225_v52 }
 0x122   : > { %v1004_v27 = vpop.eup %1003  ;;  %702 = vst.msk [vmem:[%s1216_s30 + $0xd8] sm:$0xff] %vm674_vm3, %v669_v49  ;;  %v667_v36 = vmul.f32 %v1002_v50, %v1230_v57 }
 0x123   : > { %v1006_v51 = vpop.eup %1005  ;;  %684 = vst.msk [vmem:[%s1216_s30 + $0x48] sm:$0xff] %vm674_vm3, %v651_v31  ;;  %v656_v43 = vmul.f32 %v1004_v27, %v1237_v63 }
 0x124   : > { %v1008_v53 = vpop.eup %1007  ;;  %700 = vst.msk [vmem:[%s1216_s30 + $0xc8] sm:$0xff] %vm674_vm3, %v667_v36  ;;  %v672_v48 = vmul.f32 %v1006_v51, %v1244_v5 }
 0x125   : > { %v1010_v52 = vpop.eup %1009  ;;  %689 = vst.msk [vmem:[%s1216_s30 + $0x70] sm:$0xff] %vm674_vm3, %v656_v43  ;;  %v654_v33 = vmul.f32 %v1008_v53, %v1251_v8 }
 0x126   : > { %v1012_v57 = vpop.eup %1011  ;;  %705 = vst.msk [vmem:[%s1216_s30 + $0xf0] sm:$0xff] %vm674_vm3, %v672_v48  ;;  %v670_v54 = vmul.f32 %v1010_v52, %v1258_v13 }
 0x127   : > { %v1014_v63 = vpop.eup %1013  ;;  %687 = vst.msk [vmem:[%s1216_s30 + $0x60] sm:$0xff] %vm674_vm3, %v654_v33  ;;  %v657_v56 = vmul.f32 %v1012_v57, %v1265_v19 }
 0x128   : > { %v1016_v34 = vpop.eup %1015  ;;  %703 = vst.msk [vmem:[%s1216_s30 + $0xe0] sm:$0xff] %vm674_vm3, %v670_v54  ;;  %v673_v5 = vmul.f32 %v1014_v63, %v1272_v29 }
 0x129   : > { %v1018_v55 = vpop.eup %1017  ;;  %690 = vst.msk [vmem:[%s1216_s30 + $0x78] sm:$0xff] %vm674_vm3, %v657_v56  ;;  %v655_v8 = vmul.f32 %v1016_v34, %v1279_v35 }
 0x12a   : > { %706 = vst.msk [vmem:[%s1216_s30 + $0xf8] sm:$0xff] %vm674_vm3, %v673_v5  ;;  %v671_v59 = vmul.f32 %v1018_v55, %v1286_v41 }
 0x12b   : > { %688 = vst.msk [vmem:[%s1216_s30 + $0x68] sm:$0xff] %vm674_vm3, %v655_v8 }
 0x12c   : > { %704 = vst.msk [vmem:[%s1216_s30 + $0xe8] sm:$0xff] %vm674_vm3, %v671_v59 }
 0x12d PF: > { %s13_s12 = sadd.s32 1, %s1025_s12  }
 0x12e   : > { %p10_p4 = scmp.ge.s32.totalorder %s13_s12, 4  }
 0x130   :  { %12 = sbr.rel (!%p10_p4) target bundleno = 1 (0x1), region = 62 }

// kernel: efficientnet_forward.7
= control target key start
LH: loop header
LB: loop body
LE: loop exit
PB: predicated region body
PF: predicated region fallthrough
CT: control target
= control target key end

     0   :  { %10 = vsyncpa [#allocation3], 0  ;;  %s1700_s0 = inlined_call_operand.vmem [shape: f32[2,16,16,64], index: 0, kind: input, shape index: {}]   ;;  %s1701_s1 = inlined_call_operand.vmem [shape: f32[64,128], index: 1, kind: input, shape index: {}]   ;;  %s1702_s2 = inlined_call_operand.vmem [shape: f32[1,128], index: 2, kind: input, shape index: {}]   ;;  %s1703_s3 = inlined_call_operand.vmem [shape: f32[128,10], index: 3, kind: input, shape index: {}]   ;;  %s1704_s4 = inlined_call_operand.vmem [shape: f32[1,10], index: 4, kind: input, shape index: {}]   ;;  %s1705_s5 = inlined_call_operand.hbm [shape: f32[2,1,10], index: 5, kind: output, shape index: {}]  }
   0x1   :  { %12 = vsyncpa [#allocation3 + $0x1], 0  ;;  %s1311_s18 = smov 0   ;;  %s1313_s19 = smov 0  }
   0x2   :  { %s1315_s20 = smov 0   ;;  %s1317_s21 = smov 0  }
   0x3 LB: > { %s1332_s22 = sadd.s32 4294967295, %s1276_s21   ;;  %s899_s23 = sadd.s32 4294967294, %s1276_s21   ;;  %s1276_s21 = sphi %s1317_s21, %s1711_s21   ;;  %s1272_s20 = sphi %s1315_s20, %s1710_s20   ;;  %s1268_s19 = sphi %s1313_s19, %s1709_s19   ;;  %s1264_s18 = sphi %s1311_s18, %s1708_s18  }
   0x4   : > { %s1336_s24 = sadd.s32 1, %s1276_s21   ;;  %s135_s25 = sadd.s32 1, %s1272_s20 }
   0x5   : > { %s132_s26 = ssub.s32 %s1276_s21, %s1336_s24  ;;  %p145_p0 = scmp.ne.s32.totalorder %s1272_s20, %s1268_s19 }
   0x6   : > { %p133_p1 = scmp.eq.s32.totalorder %s132_s26, 0  ;;  %p146_p2 = scmp.eq.s32.totalorder %s1332_s22, 1 }
   0x7   : > { %p151_p3 = scmp.ne.s32.totalorder %s1268_s19, %s1264_s18  ;;  %p152_p4 = scmp.eq.s32.totalorder %s899_s23, 1 }
   0x8   : > { %s1347_s27 = scalar_select %p133_p1, %s1272_s20, %s135_s25  }
   0x9   : > { %p1349_p5 = por %p146_p2, %p145_p0  ;;  %p1353_p6 = por %p152_p4, %p151_p3 }
   0xa   : > { %p902_p7 = scmp.ge.s32.totalorder %s1276_s21, 1  ;;  %p190_p8 = scmp.lt.s32.totalorder %s1276_s21, 3 }
   0xc   : > { %p191_p9 = pnand %p902_p7, %p190_p8 }
   0xd   : > { %p217_p10 = scmp.lt.s32.totalorder (!%p191_p9), %s1332_s22, 1  ;;  %s215_s12 = sand.u32 (!%p191_p9), 1, %s1268_s19  }
   0xe   : > { %194 = sbr.rel (%p191_p9) target bundleno = 563 (0x233), region = 40  ;;  %s954_s15 = sshll.u32 (!%p191_p9), %s1332_s22, 4 }
   0xf   : > { %s216_s16 = scalar_lea.vmem (!%p191_p9), [#allocation2], %s215_s12  ;;  %s1659_s26 = scalar_lea.hbm (!%p191_p9), %s1705_s5, %s954_s15 }
  0x10   : > { %s832_s30 = scalar_lea.sflag (!%p191_p9), [#allocation3], %s215_s12  ;;  %s1280_s6 = smov (!%p191_p9), [#allocation2]  }
  0x13   : > { %v277_v0 = vld [vmem:[%s1701_s1 + $0x30] sm:$0xff]  ;;  %v278_v1 = vld [vmem:[%s1701_s1 + $0x38] sm:$0xff]  ;;  %v275_v2 = vld [vmem:[%s1701_s1 + $0x20] sm:$0xff]  ;;  %s218_s17 = scalar_select %p217_p10, %s1332_s22, 1  ;;  %vm290_vm0 = vcmask 523264   ;;  %v1278_v63 = vmov 0.0  }
  0x14   : > { %v282_v3 = vpack.c.bf16 %v278_v1, %v277_v0  ;;  %v276_v4 = vld [vmem:[%s1701_s1 + $0x28] sm:$0xff]  ;;  %v273_v6 = vld [vmem:[%s1701_s1 + $0x10] sm:$0xff]  ;;  %v274_v7 = vld [vmem:[%s1701_s1 + $0x18] sm:$0xff]  ;;  %1027 = vmatprep.subr.bf16.mxu1 %v1278_v63  ;;  %vm1279_vm1 = vmmov 0   ;;  %vm829_vm2 = vcmask 73728  }
  0x15   : > { %v281_v5 = vpack.c.bf16 %v276_v4, %v275_v2  ;;  %s957_s23 = sshll.u32 %s218_s17, 8  ;;  %v280_v8 = vpack.c.bf16 %v274_v7, %v273_v6  ;;  %v271_v9 = vld [vmem:[%s1701_s1] sm:$0xff]  ;;  %v272_v10 = vld [vmem:[%s1701_s1 + $0x8] sm:$0xff]  ;;  %v778_v60 = vld [vmem:[%s1703_s3 + $0x70] sm:$0xff]  ;;  %1043 = vmatprep.mubr.msk.bf16.mxu1 %vm1279_vm1, %v1278_v63  ;;  %s844_s17 = sshll.u32 %s216_s16, 4  ;;  %s1661_s17 = int_to_ptr.vmem [resolvable:$true] %s844_s17 }
  0x16   : > { %987 = vmatprep.subr.bf16.mxu0 %v282_v3  ;;  %s1385_s7 = scalar_lea.vmem %s1700_s0, %s957_s23  ;;  %v279_v14 = vpack.c.bf16 %v272_v10, %v271_v9  ;;  %v779_v61 = vld [vmem:[%s1703_s3 + $0x78] sm:$0xff]  ;;  %v776_v0 = vld [vmem:[%s1703_s3 + $0x60] sm:$0xff]  ;;  %v777_v1 = vld [vmem:[%s1703_s3 + $0x68] sm:$0xff]  ;;  %s1216_s22 = scalar_lea.vmem %s1661_s17, 16 }
  0x17   : > { %988 = vmatpush3.bf16.msra.mxu0 %v282_v3  ;;  %v223_v11 = vld [vmem:[%s1385_s7] sm:$0xff]  ;;  %v224_v12 = vld [vmem:[%s1385_s7 + $0x8] sm:$0xff]  ;;  %v225_v15 = vld [vmem:[%s1385_s7 + $0x10] sm:$0xff]  ;;  %v787_v62 = vpack.c.bf16 %v779_v61, %v778_v60  ;;  %v786_v2 = vpack.c.bf16 %v777_v1, %v776_v0  ;;  %p1217_p11 = scmp.ne.s32.totalorder %s1661_s17, %s1216_s22 }
  0x18   : > { %989 = vmatprep.subr.bf16.mxu0 %v281_v5  ;;  %v255_v13 = vpack.c.bf16 %v224_v12, %v223_v11  ;;  %v226_v16 = vld [vmem:[%s1385_s7 + $0x18] sm:$0xff]  ;;  %v227_v17 = vld [vmem:[%s1385_s7 + $0x20] sm:$0xff]  ;;  %v228_v18 = vld [vmem:[%s1385_s7 + $0x28] sm:$0xff] }
  0x19   : > { %v256_v19 = vpack.c.bf16 %v226_v16, %v225_v15  ;;  %v257_v20 = vpack.c.bf16 %v228_v18, %v227_v17  ;;  %v229_v21 = vld [vmem:[%s1385_s7 + $0x30] sm:$0xff]  ;;  %v230_v22 = vld [vmem:[%s1385_s7 + $0x38] sm:$0xff]  ;;  %v231_v23 = vld [vmem:[%s1385_s7 + $0x40] sm:$0xff]  ;;  %1028 = vmatpush3.bf16.msra.mxu1 %v787_v62  ;;  %p1218_p12 = pnand %p1217_p11, %p1349_p5 }
  0x1a   : > { %995 = vmatprep.mubr.msk.bf16.mxu0 %vm290_vm0, %v255_v13  ;;  %v232_v24 = vld [vmem:[%s1385_s7 + $0x48] sm:$0xff]  ;;  %v258_v25 = vpack.c.bf16 %v230_v22, %v229_v21  ;;  %v233_v27 = vld [vmem:[%s1385_s7 + $0x50] sm:$0xff]  ;;  %v234_v28 = vld [vmem:[%s1385_s7 + $0x58] sm:$0xff]  ;;  %1029 = vmatprep.subr.bf16.mxu1 %v1278_v63 }
  0x1b   : > { %990 = vmatpush3.bf16.msra.mxu0 %v281_v5  ;;  %v259_v26 = vpack.c.bf16 %v232_v24, %v231_v23  ;;  %v235_v29 = vld [vmem:[%s1385_s7 + $0x60] sm:$0xff]  ;;  %v236_v30 = vld [vmem:[%s1385_s7 + $0x68] sm:$0xff]  ;;  %v260_v31 = vpack.c.bf16 %v234_v28, %v233_v27  ;;  %v237_v33 = vld [vmem:[%s1385_s7 + $0x70] sm:$0xff]  ;;  %p1219_p13 = pneg %p1218_p12 }
  0x1c   : > { %991 = vmatprep.subr.bf16.mxu0 %v280_v8  ;;  %v261_v32 = vpack.c.bf16 %v236_v30, %v235_v29  ;;  %v238_v34 = vld [vmem:[%s1385_s7 + $0x78] sm:$0xff]  ;;  %v239_v35 = vld [vmem:[%s1385_s7 + $0x80] sm:$0xff]  ;;  %v240_v36 = vld [vmem:[%s1385_s7 + $0x88] sm:$0xff] }
  0x1d   : > { %v262_v37 = vpack.c.bf16 %v238_v34, %v237_v33  ;;  %v263_v38 = vpack.c.bf16 %v240_v36, %v239_v35  ;;  %v241_v39 = vld [vmem:[%s1385_s7 + $0x90] sm:$0xff]  ;;  %v242_v40 = vld [vmem:[%s1385_s7 + $0x98] sm:$0xff]  ;;  %v243_v41 = vld [vmem:[%s1385_s7 + $0xa0] sm:$0xff]  ;;  %1030 = vmatpush3.bf16.msra.mxu1 %v786_v2 }
  0x1e   : > { %v244_v42 = vld [vmem:[%s1385_s7 + $0xa8] sm:$0xff]  ;;  %v264_v43 = vpack.c.bf16 %v242_v40, %v241_v39  ;;  %v245_v45 = vld [vmem:[%s1385_s7 + $0xb0] sm:$0xff]  ;;  %v246_v46 = vld [vmem:[%s1385_s7 + $0xb8] sm:$0xff]  ;;  %1031 = vmatprep.subr.bf16.mxu1 %v1278_v63 }
  0x1f   : > { %992 = vmatpush3.bf16.msra.mxu0 %v280_v8  ;;  %v265_v44 = vpack.c.bf16 %v244_v42, %v243_v41  ;;  %v247_v47 = vld [vmem:[%s1385_s7 + $0xc0] sm:$0xff]  ;;  %v248_v48 = vld [vmem:[%s1385_s7 + $0xc8] sm:$0xff]  ;;  %v266_v49 = vpack.c.bf16 %v246_v46, %v245_v45  ;;  %v249_v51 = vld [vmem:[%s1385_s7 + $0xd0] sm:$0xff] }
  0x20   : > { %993 = vmatprep.subr.bf16.mxu0 %v279_v14  ;;  %v267_v50 = vpack.c.bf16 %v248_v48, %v247_v47  ;;  %v250_v52 = vld [vmem:[%s1385_s7 + $0xd8] sm:$0xff]  ;;  %v251_v53 = vld [vmem:[%s1385_s7 + $0xe0] sm:$0xff]  ;;  %v252_v54 = vld [vmem:[%s1385_s7 + $0xe8] sm:$0xff] }
  0x21   : > { %v268_v55 = vpack.c.bf16 %v250_v52, %v249_v51  ;;  %v269_v56 = vpack.c.bf16 %v252_v54, %v251_v53  ;;  %v253_v57 = vld [vmem:[%s1385_s7 + $0xf0] sm:$0xff]  ;;  %v254_v58 = vld [vmem:[%s1385_s7 + $0xf8] sm:$0xff]  ;;  %v772_v6 = vld [vmem:[%s1703_s3 + $0x40] sm:$0xff]  ;;  %s1220_s7 = sshll.u32 %s1280_s6, 4  ;;  %s1221_s7 = int_to_ptr.vmem [resolvable:$false] %s1220_s7 }
  0x22   : > { %v270_v59 = vpack.c.bf16 %v254_v58, %v253_v57  ;;  %v774_v3 = vld [vmem:[%s1703_s3 + $0x50] sm:$0xff]  ;;  %v775_v4 = vld [vmem:[%s1703_s3 + $0x58] sm:$0xff]  ;;  %v773_v7 = vld [vmem:[%s1703_s3 + $0x48] sm:$0xff]  ;;  %s1222_s8 = scalar_lea.vmem %s1221_s7, 32  ;;  %p1223_p0 = scmp.lt.s32.totalorder %s1661_s17, %s1221_s7 }
  0x23   : > { %994 = vmatpush3.bf16.msra.mxu0 %v279_v14  ;;  %v785_v5 = vpack.c.bf16 %v775_v4, %v774_v3  ;;  %v784_v8 = vpack.c.bf16 %v773_v7, %v772_v6  ;;  %v770_v9 = vld [vmem:[%s1703_s3 + $0x30] sm:$0xff]  ;;  %v771_v10 = vld [vmem:[%s1703_s3 + $0x38] sm:$0xff]  ;;  %v768_v12 = vld [vmem:[%s1703_s3 + $0x20] sm:$0xff]  ;;  %p1224_p1 = scmp.lt.s32.totalorder %s1222_s8, %s1216_s22 }
  0x24   : > { %v783_v11 = vpack.c.bf16 %v771_v10, %v770_v9  ;;  %v769_v13 = vld [vmem:[%s1703_s3 + $0x28] sm:$0xff]  ;;  %v766_v15 = vld [vmem:[%s1703_s3 + $0x10] sm:$0xff]  ;;  %v767_v16 = vld [vmem:[%s1703_s3 + $0x18] sm:$0xff] }
  0x25   : > { %1032 = vmatpush3.bf16.msra.mxu1 %v785_v5  ;;  %v782_v14 = vpack.c.bf16 %v769_v13, %v768_v12  ;;  %v781_v17 = vpack.c.bf16 %v767_v16, %v766_v15  ;;  %v764_v18 = vld [vmem:[%s1703_s3] sm:$0xff]  ;;  %p1225_p2 = por %p1224_p1, %p1223_p0 }
  0x26   : > { %996 = vmatmul.mubr.msk.bf16.vlgmr.msra.gmra.mxu0 %vm290_vm0, %v256_v19  ;;  %1033 = vmatprep.subr.bf16.mxu1 %v1278_v63  ;;  %v765_v19 = vld [vmem:[%s1703_s3 + $0x8] sm:$0xff]  ;;  %v1489_v21 = vld [vmem:[%s1702_s2] ss:$0 sm:$0xff] }
  0x27   : > { %999 = vmatprep.mubr.msk.bf16.mxu0 %vm290_vm0, %v257_v20  ;;  %v780_v20 = vpack.c.bf16 %v765_v19, %v764_v18  ;;  %p1226_p3 = pnand %p1225_p2, %p1219_p13 }
  0x29   : > { %1034 = vmatpush3.bf16.msra.mxu1 %v784_v8 }
  0x2a   : > { %1035 = vmatprep.subr.bf16.mxu1 %v1278_v63 }
  0x2d   : > { %1036 = vmatpush3.bf16.msra.mxu1 %v783_v11 }
  0x2e   : > { %1000 = vmatmul.mubr.msk.bf16.gmra.mxu0 %vm290_vm0, %v258_v25  ;;  %1037 = vmatprep.subr.bf16.mxu1 %v1278_v63 }
  0x2f   : > { %1003 = vmatprep.mubr.msk.bf16.mxu0 %vm290_vm0, %v259_v26 }
  0x31   : > { %1038 = vmatpush3.bf16.msra.mxu1 %v782_v14 }
  0x32   : > { %1039 = vmatprep.subr.bf16.mxu1 %v1278_v63 }
  0x35   : > { %1040 = vmatpush3.bf16.msra.mxu1 %v781_v17 }
  0x36   : > { %1004 = vmatmul.mubr.msk.bf16.gmra.mxu0 %vm290_vm0, %v260_v31  ;;  %1041 = vmatprep.subr.bf16.mxu1 %v1278_v63 }
  0x37   : > { %1007 = vmatprep.mubr.msk.bf16.mxu0 %vm290_vm0, %v261_v32 }
  0x39   : > { %1042 = vmatpush3.bf16.msra.mxu1 %v780_v20 }
  0x3e   : > { %1008 = vmatmul.mubr.msk.bf16.gmra.mxu0 %vm290_vm0, %v262_v37 }
  0x3f   : > { %1011 = vmatprep.mubr.msk.bf16.mxu0 %vm290_vm0, %v263_v38 }
  0x46   : > { %1012 = vmatmul.mubr.msk.bf16.gmra.mxu0 %vm290_vm0, %v264_v43 }
  0x47   : > { %1015 = vmatprep.mubr.msk.bf16.mxu0 %vm290_vm0, %v265_v44 }
  0x4e   : > { %1016 = vmatmul.mubr.msk.bf16.gmra.mxu0 %vm290_vm0, %v266_v49 }
  0x4f   : > { %1019 = vmatprep.mubr.msk.bf16.mxu0 %vm290_vm0, %v267_v50 }
  0x56   : > { %1020 = vmatmul.mubr.msk.bf16.gmra.mxu0 %vm290_vm0, %v268_v55 }
  0x57   : > { %1023 = vmatprep.mubr.msk.bf16.mxu0 %vm290_vm0, %v269_v56 }
  0x5e   : > { %1024 = vmatmul.mubr.msk.bf16.gmra.mxu0 %vm290_vm0, %v270_v59 }
  0xe6   : > { %v997_v22 = vpop.f32.mrf.mxu0 }
  0xe7   : > { %v1492_v23 = vadd.f32 %v997_v22, %v1489_v21 }
  0xe8   : > { %v373_v24 = vpop.f32.mrf.mxu0 }
  0xe9   : > { %v924_v25 = vmul.f32 -1.442695, %v1492_v23  ;;  %v1496_v26 = vadd.f32 %v1489_v21, %v373_v24 }
  0xea   : > { %v998_v27 = vpop.f32.mrf.mxu0 }
  0xeb   : > { %1088 = vpow2.f32 %v924_v25  ;;  %v922_v28 = vmul.f32 -1.442695, %v1496_v26  ;;  %v1500_v29 = vadd.f32 %v998_v27, %v1489_v21 }
  0xec   : > { %v376_v30 = vpop.f32.mrf.mxu0 }
  0xed   : > { %1090 = vpow2.f32 %v922_v28  ;;  %v925_v31 = vmul.f32 -1.442695, %v1500_v29  ;;  %v1504_v32 = vadd.f32 %v1489_v21, %v376_v30 }
  0xee   : > { %v1001_v33 = vpop.f32.mrf.mxu0 }
  0xef   : > { %1092 = vpow2.f32 %v925_v31  ;;  %v923_v34 = vmul.f32 -1.442695, %v1504_v32  ;;  %v1508_v35 = vadd.f32 %v1001_v33, %v1489_v21 }
  0xf0   : > { %v389_v36 = vpop.f32.mrf.mxu0 }
  0xf1   : > { %1094 = vpow2.f32 %v923_v34  ;;  %v928_v37 = vmul.f32 -1.442695, %v1508_v35  ;;  %v1512_v38 = vadd.f32 %v1489_v21, %v389_v36 }
  0xf2   : > { %v1002_v39 = vpop.f32.mrf.mxu0 }
  0xf3   : > { %1096 = vpow2.f32 %v928_v37  ;;  %v926_v40 = vmul.f32 -1.442695, %v1512_v38  ;;  %v1516_v41 = vadd.f32 %v1002_v39, %v1489_v21 }
  0xf4   : > { %v392_v42 = vpop.f32.mrf.mxu0 }
  0xf5   : > { %1098 = vpow2.f32 %v926_v40  ;;  %v929_v43 = vmul.f32 -1.442695, %v1516_v41  ;;  %v1520_v44 = vadd.f32 %v1489_v21, %v392_v42 }
  0xf6   : > { %v1005_v45 = vpop.f32.mrf.mxu0 }
  0xf7   : > { %1100 = vpow2.f32 %v929_v43  ;;  %v927_v46 = vmul.f32 -1.442695, %v1520_v44  ;;  %v1524_v47 = vadd.f32 %v1005_v45, %v1489_v21 }
  0xf8   : > { %v1089_v48 = vpop.eup %1088  ;;  %v405_v49 = vpop.f32.mrf.mxu0 }
  0xf9   : > { %v598_v50 = vadd.f32 1.0, %v1089_v48  ;;  %1102 = vpow2.f32 %v927_v46  ;;  %v932_v51 = vmul.f32 -1.442695, %v1524_v47  ;;  %v1528_v52 = vadd.f32 %v1489_v21, %v405_v49 }
  0xfa   : > { %v1091_v53 = vpop.eup %1090  ;;  %v1006_v54 = vpop.f32.mrf.mxu0 }
  0xfb   : > { %1104 = vrcp.f32 %v598_v50  ;;  %v596_v55 = vadd.f32 1.0, %v1091_v53  ;;  %v930_v56 = vmul.f32 -1.442695, %v1528_v52  ;;  %v1532_v57 = vadd.f32 %v1006_v54, %v1489_v21 }
  0xfc   : > { %v1093_v58 = vpop.eup %1092  ;;  %1106 = vpow2.f32 %v932_v51  ;;  %v408_v59 = vpop.f32.mrf.mxu0 }
  0xfd   : > { %1108 = vrcp.f32 %v596_v55  ;;  %v599_v60 = vadd.f32 1.0, %v1093_v58  ;;  %v933_v61 = vmul.f32 -1.442695, %v1532_v57  ;;  %v1536_v62 = vadd.f32 %v1489_v21, %v408_v59 }
  0xfe   : > { %v1095_v63 = vpop.eup %1094  ;;  %1110 = vpow2.f32 %v930_v56  ;;  %v1009_v0 = vpop.f32.mrf.mxu0 }
  0xff   : > { %1112 = vrcp.f32 %v599_v60  ;;  %v597_v1 = vadd.f32 1.0, %v1095_v63  ;;  %v931_v2 = vmul.f32 -1.442695, %v1536_v62  ;;  %v1540_v3 = vadd.f32 %v1009_v0, %v1489_v21 }
 0x100   : > { %v1097_v4 = vpop.eup %1096  ;;  %1114 = vpow2.f32 %v933_v61  ;;  %v421_v5 = vpop.f32.mrf.mxu0 }
 0x101   : > { %1116 = vrcp.f32 %v597_v1  ;;  %v602_v6 = vadd.f32 1.0, %v1097_v4  ;;  %v936_v7 = vmul.f32 -1.442695, %v1540_v3  ;;  %v1544_v8 = vadd.f32 %v1489_v21, %v421_v5 }
 0x102   : > { %v1099_v9 = vpop.eup %1098  ;;  %1118 = vpow2.f32 %v931_v2  ;;  %v1010_v10 = vpop.f32.mrf.mxu0 }
 0x103   : > { %1120 = vrcp.f32 %v602_v6  ;;  %v600_v11 = vadd.f32 1.0, %v1099_v9  ;;  %v934_v12 = vmul.f32 -1.442695, %v1544_v8  ;;  %v1548_v13 = vadd.f32 %v1010_v10, %v1489_v21 }
 0x104   : > { %v1101_v14 = vpop.eup %1100  ;;  %1122 = vpow2.f32 %v936_v7  ;;  %v424_v15 = vpop.f32.mrf.mxu0 }
 0x105   : > { %1124 = vrcp.f32 %v600_v11  ;;  %v603_v16 = vadd.f32 1.0, %v1101_v14  ;;  %v937_v17 = vmul.f32 -1.442695, %v1548_v13  ;;  %v1552_v18 = vadd.f32 %v1489_v21, %v424_v15 }
 0x106   : > { %v1103_v19 = vpop.eup %1102  ;;  %1126 = vpow2.f32 %v934_v12  ;;  %v1013_v20 = vpop.f32.mrf.mxu0 }
 0x107   : > { %1128 = vrcp.f32 %v603_v16  ;;  %v601_v22 = vadd.f32 1.0, %v1103_v19  ;;  %v935_v24 = vmul.f32 -1.442695, %v1552_v18  ;;  %v1556_v25 = vadd.f32 %v1013_v20, %v1489_v21 }
 0x108   : > { %v1105_v27 = vpop.eup %1104  ;;  %1130 = vpow2.f32 %v937_v17  ;;  %v437_v28 = vpop.f32.mrf.mxu0 }
 0x109   : > { %v1107_v30 = vpop.eup %1106  ;;  %1132 = vrcp.f32 %v601_v22  ;;  %v940_v31 = vmul.f32 -1.442695, %v1556_v25  ;;  %v1560_v33 = vadd.f32 %v1489_v21, %v437_v28  ;;  %v694_v2 = vmul.f32 %v1105_v27, %v1492_v23 }
 0x10a   : > { %v1109_v34 = vpop.eup %1108  ;;  %1134 = vpow2.f32 %v935_v24  ;;  %v1014_v36 = vpop.f32.mrf.mxu0  ;;  %v606_v43 = vadd.f32 1.0, %v1107_v30 }
 0x10b   : > { %v1111_v37 = vpop.eup %1110  ;;  %1136 = vpow2.f32 %v940_v31  ;;  %v938_v39 = vmul.f32 -1.442695, %v1560_v33  ;;  %v1564_v40 = vadd.f32 %v1014_v36, %v1489_v21  ;;  %v692_v53 = vmul.f32 %v1109_v34, %v1496_v26 }
 0x10c   : > { %v1113_v42 = vpop.eup %1112  ;;  %v604_v45 = vadd.f32 1.0, %v1111_v37  ;;  %v440_v46 = vpop.f32.mrf.mxu0 }
 0x10d   : > { %v1115_v48 = vpop.eup %1114  ;;  %1138 = vpow2.f32 %v938_v39  ;;  %v941_v49 = vmul.f32 -1.442695, %v1564_v40  ;;  %v1568_v50 = vadd.f32 %v1489_v21, %v440_v46  ;;  %v695_v9 = vmul.f32 %v1113_v42, %v1500_v29 }
 0x10e   : > { %v1117_v51 = vpop.eup %1116  ;;  %1140 = vrcp.f32 %v604_v45  ;;  %v607_v54 = vadd.f32 1.0, %v1115_v48  ;;  %v1017_v55 = vpop.f32.mrf.mxu0 }
 0x10f   : > { %v1119_v56 = vpop.eup %1118  ;;  %v693_v58 = vmul.f32 %v1117_v51, %v1504_v32  ;;  %1142 = vpow2.f32 %v941_v49  ;;  %v939_v59 = vmul.f32 -1.442695, %v1568_v50  ;;  %v1574_v60 = vadd.f32 %v1017_v55, %v1489_v21 }
 0x110   : > { %v1121_v61 = vpop.eup %1120  ;;  %1144 = vrcp.f32 %v606_v43  ;;  %v605_v63 = vadd.f32 1.0, %v1119_v56  ;;  %v453_v0 = vpop.f32.mrf.mxu0 }
 0x111   : > { %v1123_v1 = vpop.eup %1122  ;;  %v724_v26 = vadd.f32 %v693_v58, %v692_v53  ;;  %1146 = vpow2.f32 %v939_v59  ;;  %v944_v4 = vmul.f32 -1.442695, %v1574_v60  ;;  %v1579_v32 = vadd.f32 %v1489_v21, %v453_v0 }
 0x112   : > { %v1125_v5 = vpop.eup %1124  ;;  %1148 = vrcp.f32 %v605_v63  ;;  %v1018_v6 = vpop.f32.mrf.mxu0  ;;  %v610_v14 = vadd.f32 1.0, %v1123_v1  ;;  %v698_v27 = vmul.f32 %v1121_v61, %v1508_v35 }
 0x113   : > { %v1127_v7 = vpop.eup %1126  ;;  %v725_v10 = vadd.f32 %v724_v26, %v694_v2  ;;  %1150 = vrcp.f32 %v607_v54  ;;  %v1583_v11 = vadd.f32 %v1018_v6, %v1489_v21  ;;  %v696_v23 = vmul.f32 %v1125_v5, %v1512_v38 }
 0x114   : > { %v1129_v12 = vpop.eup %1128  ;;  %v608_v15 = vadd.f32 1.0, %v1127_v7  ;;  %v942_v16 = vmul.f32 -1.442695, %v1579_v32  ;;  %v456_v17 = vpop.f32.mrf.mxu0  ;;  %1152 = vpow2.f32 %v944_v4 }
 0x115   : > { %v1131_v19 = vpop.eup %1130  ;;  %v726_v20 = vadd.f32 %v725_v10, %v695_v9  ;;  %v945_v22 = vmul.f32 -1.442695, %v1583_v11  ;;  %v1589_v29 = vadd.f32 %v1489_v21, %v456_v17 }
 0x116   : > { %v1133_v24 = vpop.eup %1132  ;;  %1154 = vrcp.f32 %v608_v15  ;;  %v1021_v28 = vpop.f32.mrf.mxu0  ;;  %v611_v34 = vadd.f32 1.0, %v1131_v19 }
 0x117   : > { %v1135_v30 = vpop.eup %1134  ;;  %v727_v38 = vadd.f32 %v726_v20, %v696_v23  ;;  %v697_v31 = vmul.f32 %v1133_v24, %v1520_v44  ;;  %1156 = vpow2.f32 %v942_v16  ;;  %v943_v39 = vmul.f32 -1.442695, %v1589_v29 }
 0x118   : > { %v1137_v36 = vpop.eup %1136  ;;  %1158 = vrcp.f32 %v610_v14  ;;  %v609_v37 = vadd.f32 1.0, %v1135_v30  ;;  %v1595_v42 = vadd.f32 %v1021_v28, %v1489_v21  ;;  %v469_v43 = vpop.f32.mrf.mxu0  ;;  %v699_v44 = vmul.f32 %v1129_v12, %v1516_v41 }
 0x119   : > { %v728_v45 = vadd.f32 %v727_v38, %v697_v31  ;;  %v614_v46 = vadd.f32 1.0, %v1137_v36  ;;  %1160 = vpow2.f32 %v945_v22  ;;  %v1598_v35 = vadd.f32 %v1489_v21, %v469_v43 }
 0x11a   : > { %v1139_v48 = vpop.eup %1138  ;;  %1162 = vrcp.f32 %v609_v37  ;;  %v1022_v49 = vpop.f32.mrf.mxu0  ;;  %v948_v55 = vmul.f32 -1.442695, %v1595_v42 }
 0x11b   : > { %v1141_v51 = vpop.eup %1140  ;;  %v729_v53 = vadd.f32 %v728_v45, %v698_v27  ;;  %1164 = vrcp.f32 %v611_v34  ;;  %v612_v54 = vadd.f32 1.0, %v1139_v48  ;;  %v946_v58 = vmul.f32 -1.442695, %v1598_v35 }
 0x11c   : > { %v1143_v56 = vpop.eup %1142  ;;  %1166 = vpow2.f32 %v943_v39  ;;  %v1604_v59 = vadd.f32 %v1022_v49, %v1489_v21  ;;  %v472_v61 = vpop.f32.mrf.mxu0  ;;  %v700_v0 = vmul.f32 %v1141_v51, %v1528_v52 }
 0x11d   : > { %v1145_v63 = vpop.eup %1144  ;;  %v730_v41 = vadd.f32 %v729_v53, %v699_v44  ;;  %1168 = vrcp.f32 %v614_v46  ;;  %v1608_v1 = vadd.f32 %v1489_v21, %v472_v61  ;;  %v615_v7 = vadd.f32 1.0, %v1143_v56 }
 0x11e   : > { %v1147_v2 = vpop.eup %1146  ;;  %1170 = vrcp.f32 %v612_v54  ;;  %v949_v26 = vmul.f32 -1.442695, %v1604_v59  ;;  %v1025_v4 = vpop.f32.mrf.mxu0  ;;  %v702_v17 = vmul.f32 %v1145_v63, %v1524_v47 }
 0x11f   : > { %v1149_v5 = vpop.eup %1148  ;;  %v731_v6 = vadd.f32 %v730_v41, %v700_v0  ;;  %v613_v9 = vadd.f32 1.0, %v1147_v2  ;;  %1172 = vpow2.f32 %v948_v55  ;;  %v947_v52 = vmul.f32 -1.442695, %v1608_v1 }
 0x120   : > { %v1151_v10 = vpop.eup %1150  ;;  %v701_v12 = vmul.f32 %v1149_v5, %v1536_v62  ;;  %1174 = vpow2.f32 %v946_v58  ;;  %v1614_v23 = vadd.f32 %v1025_v4, %v1489_v21  ;;  %v485_v14 = vpop.f32.mrf.mxu0 }
 0x121   : > { %1176 = vrcp.f32 %v613_v9  ;;  %v1617_v15 = vadd.f32 %v1489_v21, %v485_v14  ;;  %v1153_v16 = vpop.eup %1152  ;;  %v703_v28 = vmul.f32 %v1151_v10, %v1532_v57 }
 0x122   : > { %v732_v19 = vadd.f32 %v731_v6, %v701_v12  ;;  %1178 = vpow2.f32 %v949_v26  ;;  %v1026_v20 = vpop.f32.mrf.mxu0  ;;  %v952_v38 = vmul.f32 -1.442695, %v1614_v23  ;;  %v618_v48 = vadd.f32 1.0, %v1153_v16 }
 0x123   : > { %v1155_v22 = vpop.eup %1154  ;;  %1180 = vrcp.f32 %v615_v7  ;;  %v950_v62 = vmul.f32 -1.442695, %v1617_v15  ;;  %v1622_v24 = vadd.f32 %v1026_v20, %v1489_v21 }
 0x124   : > { %v1157_v27 = vpop.eup %1156  ;;  %v733_v30 = vadd.f32 %v732_v19, %v702_v17  ;;  %1182 = vpow2.f32 %v947_v52  ;;  %v488_v31 = vpop.f32.mrf.mxu0  ;;  %v704_v43 = vmul.f32 %v1155_v22, %v1544_v8 }
 0x125   : > { %v1159_v34 = vpop.eup %1158  ;;  %v616_v47 = vadd.f32 1.0, %v1157_v27  ;;  %v953_v36 = vmul.f32 -1.442695, %v1622_v24  ;;  %v1628_v37 = vadd.f32 %v1489_v21, %v488_v31  ;;  %1184 = vpow2.f32 %v950_v62 }
 0x126   : > { %v1161_v39 = vpop.eup %1160  ;;  %v734_v45 = vadd.f32 %v733_v30, %v703_v28  ;;  %v706_v54 = vmul.f32 %v1159_v34, %v1540_v3 }
 0x127   : > { %v1163_v46 = vpop.eup %1162  ;;  %1186 = vrcp.f32 %v616_v47  ;;  %v951_v57 = vmul.f32 -1.442695, %v1628_v37  ;;  %v619_v56 = vadd.f32 1.0, %v1161_v39 }
 0x128   : > { %v1165_v44 = vpop.eup %1164  ;;  %v735_v49 = vadd.f32 %v734_v45, %v704_v43  ;;  %v705_v51 = vmul.f32 %v1163_v46, %v1552_v18  ;;  %1188 = vpow2.f32 %v952_v38 }
 0x129   : > { %v1167_v53 = vpop.eup %1166  ;;  %1190 = vpow2.f32 %v953_v36  ;;  %v707_v63 = vmul.f32 %v1165_v44, %v1548_v13 }
 0x12a   : > { %v1169_v21 = vpop.eup %1168  ;;  %v736_v55 = vadd.f32 %v735_v49, %v705_v51  ;;  %v617_v8 = vadd.f32 1.0, %v1167_v53  ;;  %1192 = vpow2.f32 %v951_v57 }
 0x12b   : > { %v1171_v58 = vpop.eup %1170  ;;  %1194 = vrcp.f32 %v618_v48  ;;  %v710_v12 = vmul.f32 %v1169_v21, %v1556_v25 }
 0x12c   : > { %v1173_v61 = vpop.eup %1172  ;;  %v737_v0 = vadd.f32 %v736_v55, %v706_v54  ;;  %1196 = vrcp.f32 %v617_v8  ;;  %v708_v18 = vmul.f32 %v1171_v58, %v1560_v33 }
 0x12d   : > { %v1175_v41 = vpop.eup %1174  ;;  %1198 = vrcp.f32 %v619_v56  ;;  %v622_v6 = vadd.f32 1.0, %v1173_v61 }
 0x12e   : > { %v1177_v2 = vpop.eup %1176  ;;  %v738_v26 = vadd.f32 %v737_v0, %v707_v63  ;;  %v620_v3 = vadd.f32 1.0, %v1175_v41 }
 0x12f   : > { %v1179_v4 = vpop.eup %1178  ;;  %v709_v5 = vmul.f32 %v1177_v2, %v1568_v50 }
 0x130   : > { %v1181_v7 = vpop.eup %1180  ;;  %v739_v9 = vadd.f32 %v738_v26, %v708_v18  ;;  %1200 = vrcp.f32 %v620_v3  ;;  %v623_v52 = vadd.f32 1.0, %v1179_v4 }
 0x131   : > { %v1183_v10 = vpop.eup %1182  ;;  %1202 = vrcp.f32 %v622_v6  ;;  %v711_v33 = vmul.f32 %v1181_v7, %v1564_v40 }
 0x132   : > { %v740_v13 = vadd.f32 %v739_v9, %v709_v5  ;;  %v621_v14 = vadd.f32 1.0, %v1183_v10  ;;  %v1185_v16 = vpop.eup %1184 }
 0x133   : > { %v624_v20 = vadd.f32 1.0, %v1185_v16 }
 0x134   : > { %v1187_v17 = vpop.eup %1186  ;;  %v741_v19 = vadd.f32 %v740_v13, %v710_v12  ;;  %1204 = vrcp.f32 %v621_v14 }
 0x135   : > { %v1189_v22 = vpop.eup %1188  ;;  %v712_v62 = vmul.f32 %v1187_v17, %v1579_v32  ;;  %1206 = vrcp.f32 %v623_v52 }
 0x136   : > { %v1191_v50 = vpop.eup %1190  ;;  %v742_v27 = vadd.f32 %v741_v19, %v711_v33  ;;  %v626_v38 = vadd.f32 1.0, %v1189_v22  ;;  %1208 = vrcp.f32 %v624_v20 }
 0x137   : > { %v1193_v28 = vpop.eup %1192  ;;  %v627_v36 = vadd.f32 1.0, %v1191_v50 }
 0x138   : > { %v1195_v30 = vpop.eup %1194  ;;  %v743_v25 = vadd.f32 %v742_v27, %v712_v62  ;;  %v625_v31 = vadd.f32 1.0, %v1193_v28 }
 0x139   : > { %v1197_v34 = vpop.eup %1196  ;;  %v714_v39 = vmul.f32 %v1195_v30, %v1574_v60 }
 0x13a   : > { %v713_v47 = vmul.f32 %v1197_v34, %v1589_v29  ;;  %1210 = vrcp.f32 %v625_v31  ;;  %v1199_v40 = vpop.eup %1198 }
 0x13b   : > { %1212 = vrcp.f32 %v626_v38  ;;  %v715_v32 = vmul.f32 %v1199_v40, %v1583_v11 }
 0x13c   : > { %v744_v43 = vadd.f32 %v743_v25, %v713_v47  ;;  %1214 = vrcp.f32 %v627_v36 }
 0x13d   : > { %v1201_v45 = vpop.eup %1200 }
 0x13e   : > { %v745_v46 = vadd.f32 %v744_v43, %v714_v39  ;;  %v1203_v48 = vpop.eup %1202  ;;  %v716_v57 = vmul.f32 %v1201_v45, %v1598_v35 }
 0x13f   : > { %v718_v54 = vmul.f32 %v1203_v48, %v1595_v42 }
 0x140   : > { %v746_v44 = vadd.f32 %v745_v46, %v715_v32 }
 0x141   : > { %v1205_v49 = vpop.eup %1204 }
 0x142   : > { %v747_v51 = vadd.f32 %v746_v44, %v716_v57  ;;  %v717_v29 = vmul.f32 %v1205_v49, %v1608_v1  ;;  %v1207_v53 = vpop.eup %1206 }
 0x143   : > { %v1209_v60 = vpop.eup %1208  ;;  %v719_v55 = vmul.f32 %v1207_v53, %v1604_v59 }
 0x144   : > { %v748_v21 = vadd.f32 %v747_v51, %v717_v29  ;;  %v720_v11 = vmul.f32 %v1209_v60, %v1617_v15 }
 0x146   : > { %v749_v56 = vadd.f32 %v748_v21, %v718_v54 }
 0x147   : > { %v1211_v8 = vpop.eup %1210 }
 0x148   : > { %v750_v58 = vadd.f32 %v749_v56, %v719_v55  ;;  %v721_v61 = vmul.f32 %v1211_v8, %v1628_v37  ;;  %v1213_v35 = vpop.eup %1212 }
 0x149   : > { %v1215_v0 = vpop.eup %1214  ;;  %v722_v1 = vmul.f32 %v1213_v35, %v1614_v23  ;;  %v788_v23 = vld [vmem:[%s1704_s4] sm:$0x1] }
 0x14a   : > { %v751_v63 = vadd.f32 %v750_v58, %v720_v11  ;;  %v723_v42 = vmul.f32 %v1215_v0, %v1622_v24 }
 0x14c   : > { %v752_v41 = vadd.f32 %v751_v63, %v721_v61 }
 0x14e   : > { %v753_v2 = vadd.f32 %v752_v41, %v722_v1 }
 0x150   : > { %v754_v18 = vadd.f32 %v753_v2, %v723_v42 }
 0x152   : > { %v755_v59 = vrot.slane %v754_v18, 4 }
 0x154   : > { %v756_v26 = vadd.f32 %v755_v59, %v754_v18 }
 0x156   : > { %v757_v3 = vrot.slane %v756_v26, 2 }
 0x158   : > { %v758_v4 = vadd.f32 %v757_v3, %v756_v26 }
 0x15a   : > { %v759_v15 = vrot.slane %v758_v4, 1 }
 0x15c   : > { %v760_v5 = vadd.f32 %v759_v15, %v758_v4 }
 0x15e   : > { %v762_v6 = vmul.f32 0.00390625, %v760_v5 }
 0x160   : > { %v763_v37 = vpack.c.bf16 %v762_v6, %v762_v6 }
 0x162   : > { %1044 = vmatmul.mubr.bf16.vlgmr.msra.gmra.mxu1 %v763_v37 }
 0x222   : > { %v823_v24 = vpop.f32.mrf.mxu1 }
 0x223   : > { %v824_v7 = vadd.f32 %v823_v24, %v788_v23 }
 0x224   : > { %v1045_v9 = vpop.f32.mrf.mxu1 }
 0x225   : > { %830 = vst.msk [vmem:[%s216_s16] sm:$0x1] %vm829_vm2, %v824_v7 }
 0x226   : > { %v826_v10 = vpop.f32.mrf.mxu1 }
 0x227   : > { %1229 = shalt.err (!%p1226_p3)
}
 0x228   : > { %s1230_s9 = scalar_lea.hbm %s1659_s26, 16  ;;  %s1234_s12 = scalar_lea.hbm %s1705_s5, 32 }
 0x229   : > { %p1231_p4 = scmp.ne.s32.totalorder %s1659_s26, %s1230_s9  ;;  %p1235_p9 = scmp.lt.s32.totalorder %s1659_s26, %s1705_s5 }
 0x22a   : > { %p1236_p10 = scmp.lt.s32.totalorder %s1234_s12, %s1230_s9 }
 0x22b   : > { %p1232_p7 = pnand %p1231_p4, %p1349_p5 }
 0x22c   : > { %p1237_p11 = por %p1236_p10, %p1235_p9 }
 0x22d   : > { %p1233_p8 = pneg %p1232_p7 }
 0x22f   : > { %p1238_p12 = pnand %p1237_p11, %p1233_p8 }
 0x231   : > { %1241 = shalt.err (!%p1238_p12)
}
 0x232   : > { %1047 = dma.vmem_to_hbm [thread:$0]  (%p1349_p5), %s1661_s17, 16, %s1659_s26, %s832_s30   ;;  %v1046_v12 = vpop.f32.mrf.mxu1 }
 0x233 PF: > { %p1053_p13 = scmp.ge.s32.totalorder %s1276_s21, 2  ;;  %s856_s15 = sand.u32 1, %s1264_s18  }
 0x234   : > { %s857_s16 = scalar_lea.sflag [#allocation3], %s856_s15 }
 0x235   : > { %p1050_p0 = pnand %p1053_p13, %p1353_p6 }
 0x237   : > { %p1051_p1 = pneg %p1050_p0 }
 0x239   : > { %1259 = dma.done.wait (%p1051_p1), %s857_s16, 16  }
 0x23a   : > { %1261 = vsyncadd (%p1051_p1), %s857_s16, 4294967280  ;;  %p15_p2 = scmp.ge.s32.totalorder %s1336_s24, 4   ;;  %s1708_s18 = smov %s1268_s19 }
 0x23b   : > { %s1709_s19 = smov %s1272_s20  ;;  %s1710_s20 = smov %s1347_s27 }
 0x23c   : > { %s1711_s21 = smov %s1336_s24  ;;  %17 = sbr.rel (!%p15_p2) target bundleno = 3 (0x3), region = 75 }
 0x241   :  { %861 = vsyncpa [#allocation3], 1 }
 0x242   :  { %863 = vsyncpa [#allocation3 + $0x1], 1 }

// kernel: efficientnet_forward.5
= control target key start
LH: loop header
LB: loop body
LE: loop exit
PB: predicated region body
PF: predicated region fallthrough
CT: control target
= control target key end

     0   :  { %s3331_s17 = smov 0   ;;  %s5001_s0 = inlined_call_operand.vmem [shape: f32[2,16,16,32], index: 0, kind: input, shape index: {}]   ;;  %s5002_s1 = inlined_call_operand.vmem [shape: f32[32,128], index: 1, kind: input, shape index: {}]   ;;  %s5003_s2 = inlined_call_operand.vmem [shape: f32[1,128], index: 2, kind: input, shape index: {}]   ;;  %s5004_s3 = inlined_call_operand.vmem [shape: f32[9,128], index: 3, kind: input, shape index: {}]   ;;  %s5005_s4 = inlined_call_operand.vmem [shape: f32[1,128], index: 4, kind: input, shape index: {}]   ;;  %s5006_s5 = inlined_call_operand.vmem [shape: f32[128,8], index: 5, kind: input, shape index: {}]   ;;  %s5007_s6 = inlined_call_operand.vmem [shape: f32[1,8], index: 6, kind: input, shape index: {}]   ;;  %s5008_s7 = inlined_call_operand.vmem [shape: f32[8,128], index: 7, kind: input, shape index: {}]   ;;  %s5009_s8 = inlined_call_operand.vmem [shape: f32[1,128], index: 8, kind: input, shape index: {}]   ;;  %s5010_s9 = inlined_call_operand.vmem [shape: f32[128,32], index: 9, kind: input, shape index: {}]   ;;  %s5011_s10 = inlined_call_operand.vmem [shape: f32[1,32], index: 10, kind: input, shape index: {}]   ;;  %s5012_s11 = inlined_call_operand.vmem [shape: f32[2,16,16,32], index: 11, kind: output, shape index: {}]  }
   0x1 LB: > { %s2687_s18 = sadd.s32 4294967295, %s3267_s17   ;;  %p2691_p0 = scmp.ge.s32.totalorder %s3267_s17, 1  ;;  %s3267_s17 = sphi %s3331_s17, %s21_s17  }
   0x2   : > { %p337_p1 = scmp.lt.s32.totalorder %s3267_s17, 3 }
   0x4   : > { %p338_p2 = pnand %p2691_p0, %p337_p1 }
   0x6   : > { %341 = sbr.rel (%p338_p2) target bundleno = 1263 (0x4ef), region = 64 }
   0xb   : > { %v438_v0 = vld [vmem:[%s5002_s1 + $0x10] sm:$0xff]  ;;  %v439_v1 = vld [vmem:[%s5002_s1 + $0x18] sm:$0xff]  ;;  %v436_v2 = vld [vmem:[%s5002_s1] sm:$0xff]  ;;  %p377_p3 = scmp.lt.s32.totalorder %s2687_s18, 1  ;;  %vm449_vm0 = vcmask 261120   ;;  %v3269_v54 = vmov 0.0  }
   0xc   : > { %v441_v3 = vpack.c.bf16 %v439_v1, %v438_v0  ;;  %v437_v4 = vld [vmem:[%s5002_s1 + $0x8] sm:$0xff]  ;;  %891 = vst [vmem:[#allocation2 + $0x40] sm:$0xff] %v3269_v54  ;;  %883 = vst [vmem:[#allocation2] sm:$0xff] %v3269_v54  ;;  %v3412_v55 = vld [vmem:[%s5003_s2] ss:$0 sm:$0xff]  ;;  %vm3270_vm1 = vmmov 0  }
   0xd   : > { %v440_v5 = vpack.c.bf16 %v437_v4, %v436_v2  ;;  %s5151_s18 = smov (!%p377_p3, %s2687_s18), 1  ;;  %884 = vst [vmem:[#allocation2 + $0x8] sm:$0xff] %v3269_v54  ;;  %885 = vst [vmem:[#allocation2 + $0x10] sm:$0xff] %v3269_v54  ;;  %vm2274_vm2 = vcmask 1043456   ;;  %vm2270_vm3 = vcmask 64512  }
   0xe   : > { %2840 = vmatprep.subr.bf16.mxu1 %v441_v3  ;;  %s2785_s27 = sshll.u32 %s5151_s18, 8  ;;  %886 = vst [vmem:[#allocation2 + $0x18] sm:$0xff] %v3269_v54  ;;  %887 = vst [vmem:[#allocation2 + $0x20] sm:$0xff] %v3269_v54 }
   0xf   : > { %2841 = vmatpush3.bf16.msra.mxu1 %v441_v3  ;;  %s3359_s30 = scalar_lea.vmem %s5001_s0, %s2785_s27  ;;  %890 = vst [vmem:[#allocation2 + $0x38] sm:$0xff] %v3269_v54  ;;  %894 = vst [vmem:[#allocation2 + $0x58] sm:$0xff] %v3269_v54  ;;  %s4869_s28 = scalar_lea.vmem %s5012_s11, %s2785_s27 }
  0x10   : > { %2842 = vmatprep.subr.bf16.mxu1 %v440_v5  ;;  %v388_v6 = vld [vmem:[%s3359_s30] sm:$0xff]  ;;  %v389_v7 = vld [vmem:[%s3359_s30 + $0x8] sm:$0xff]  ;;  %v390_v8 = vld [vmem:[%s3359_s30 + $0x10] sm:$0xff]  ;;  %895 = vst [vmem:[#allocation2 + $0x60] sm:$0xff] %v3269_v54 }
  0x11   : > { %v420_v9 = vpack.c.bf16 %v389_v7, %v388_v6  ;;  %v391_v10 = vld [vmem:[%s3359_s30 + $0x18] sm:$0xff]  ;;  %v392_v11 = vld [vmem:[%s3359_s30 + $0x20] sm:$0xff]  ;;  %v393_v12 = vld [vmem:[%s3359_s30 + $0x28] sm:$0xff]  ;;  %898 = vst [vmem:[#allocation2 + $0x78] sm:$0xff] %v3269_v54 }
  0x12   : > { %v421_v13 = vpack.c.bf16 %v391_v10, %v390_v8  ;;  %v422_v14 = vpack.c.bf16 %v393_v12, %v392_v11  ;;  %v394_v15 = vld [vmem:[%s3359_s30 + $0x30] sm:$0xff]  ;;  %v395_v16 = vld [vmem:[%s3359_s30 + $0x38] sm:$0xff]  ;;  %v396_v17 = vld [vmem:[%s3359_s30 + $0x40] sm:$0xff]  ;;  %899 = vst [vmem:[#allocation2 + $0x80] sm:$0xff] %v3269_v54 }
  0x13   : > { %2843 = vmatpush3.bf16.msra.mxu1 %v440_v5  ;;  %2844 = vmatprep.mubr.msk.bf16.mxu1 %vm449_vm0, %v420_v9  ;;  %v397_v18 = vld [vmem:[%s3359_s30 + $0x48] sm:$0xff]  ;;  %v423_v19 = vpack.c.bf16 %v395_v16, %v394_v15  ;;  %v398_v21 = vld [vmem:[%s3359_s30 + $0x50] sm:$0xff]  ;;  %v399_v22 = vld [vmem:[%s3359_s30 + $0x58] sm:$0xff]  ;;  %902 = vst [vmem:[#allocation2 + $0x98] sm:$0xff] %v3269_v54 }
  0x14   : > { %v424_v20 = vpack.c.bf16 %v397_v18, %v396_v17  ;;  %v400_v23 = vld [vmem:[%s3359_s30 + $0x60] sm:$0xff]  ;;  %v401_v24 = vld [vmem:[%s3359_s30 + $0x68] sm:$0xff]  ;;  %v425_v25 = vpack.c.bf16 %v399_v22, %v398_v21  ;;  %v402_v27 = vld [vmem:[%s3359_s30 + $0x70] sm:$0xff]  ;;  %903 = vst [vmem:[#allocation2 + $0xa0] sm:$0xff] %v3269_v54  ;;  %2876 = vmatprep.subr.bf16.mxu1 %v3269_v54 }
  0x15   : > { %v426_v26 = vpack.c.bf16 %v401_v24, %v400_v23  ;;  %v403_v28 = vld [vmem:[%s3359_s30 + $0x78] sm:$0xff]  ;;  %v404_v29 = vld [vmem:[%s3359_s30 + $0x80] sm:$0xff]  ;;  %v405_v30 = vld [vmem:[%s3359_s30 + $0x88] sm:$0xff]  ;;  %906 = vst [vmem:[#allocation2 + $0xb8] sm:$0xff] %v3269_v54 }
  0x16   : > { %2845 = vmatmul.mubr.msk.bf16.vlgmr.msra.gmra.mxu1 %vm449_vm0, %v421_v13  ;;  %v427_v31 = vpack.c.bf16 %v403_v28, %v402_v27  ;;  %v428_v32 = vpack.c.bf16 %v405_v30, %v404_v29  ;;  %v406_v33 = vld [vmem:[%s3359_s30 + $0x90] sm:$0xff]  ;;  %v407_v34 = vld [vmem:[%s3359_s30 + $0x98] sm:$0xff]  ;;  %v408_v35 = vld [vmem:[%s3359_s30 + $0xa0] sm:$0xff]  ;;  %907 = vst [vmem:[#allocation2 + $0xc0] sm:$0xff] %v3269_v54  ;;  %v1022_v29 = vlaneseq }
  0x17   : > { %2848 = vmatprep.mubr.msk.bf16.mxu1 %vm449_vm0, %v422_v14  ;;  %v409_v36 = vld [vmem:[%s3359_s30 + $0xa8] sm:$0xff]  ;;  %v429_v37 = vpack.c.bf16 %v407_v34, %v406_v33  ;;  %v410_v39 = vld [vmem:[%s3359_s30 + $0xb0] sm:$0xff]  ;;  %v411_v40 = vld [vmem:[%s3359_s30 + $0xb8] sm:$0xff]  ;;  %910 = vst [vmem:[#allocation2 + $0xd8] sm:$0xff] %v3269_v54 }
  0x18   : > { %v430_v38 = vpack.c.bf16 %v409_v36, %v408_v35  ;;  %v412_v41 = vld [vmem:[%s3359_s30 + $0xc0] sm:$0xff]  ;;  %v413_v42 = vld [vmem:[%s3359_s30 + $0xc8] sm:$0xff]  ;;  %v431_v43 = vpack.c.bf16 %v411_v40, %v410_v39  ;;  %v414_v45 = vld [vmem:[%s3359_s30 + $0xd0] sm:$0xff]  ;;  %911 = vst [vmem:[#allocation2 + $0xe0] sm:$0xff] %v3269_v54 }
  0x19   : > { %v432_v44 = vpack.c.bf16 %v413_v42, %v412_v41  ;;  %v415_v46 = vld [vmem:[%s3359_s30 + $0xd8] sm:$0xff]  ;;  %v416_v47 = vld [vmem:[%s3359_s30 + $0xe0] sm:$0xff]  ;;  %v417_v48 = vld [vmem:[%s3359_s30 + $0xe8] sm:$0xff]  ;;  %914 = vst [vmem:[#allocation2 + $0xf8] sm:$0xff] %v3269_v54 }
  0x1a   : > { %v433_v49 = vpack.c.bf16 %v415_v46, %v414_v45  ;;  %v434_v50 = vpack.c.bf16 %v417_v48, %v416_v47  ;;  %v418_v51 = vld [vmem:[%s3359_s30 + $0xf0] sm:$0xff]  ;;  %v419_v52 = vld [vmem:[%s3359_s30 + $0xf8] sm:$0xff]  ;;  %915 = vst [vmem:[#allocation2 + $0x100] sm:$0xff] %v3269_v54  ;;  %918 = vst [vmem:[#allocation2 + $0x118] sm:$0xff] %v3269_v54 }
  0x1b   : > { %v435_v53 = vpack.c.bf16 %v419_v52, %v418_v51  ;;  %919 = vst [vmem:[#allocation2 + $0x120] sm:$0xff] %v3269_v54  ;;  %922 = vst [vmem:[#allocation2 + $0x138] sm:$0xff] %v3269_v54 }
  0x1c   : > { %923 = vst [vmem:[#allocation2 + $0x140] sm:$0xff] %v3269_v54  ;;  %926 = vst [vmem:[#allocation2 + $0x158] sm:$0xff] %v3269_v54 }
  0x1d   : > { %927 = vst [vmem:[#allocation2 + $0x160] sm:$0xff] %v3269_v54  ;;  %930 = vst [vmem:[#allocation2 + $0x178] sm:$0xff] %v3269_v54 }
  0x1e   : > { %2849 = vmatmul.mubr.msk.bf16.gmra.mxu1 %vm449_vm0, %v423_v19  ;;  %931 = vst [vmem:[#allocation2 + $0x180] sm:$0xff] %v3269_v54  ;;  %934 = vst [vmem:[#allocation2 + $0x198] sm:$0xff] %v3269_v54 }
  0x1f   : > { %2852 = vmatprep.mubr.msk.bf16.mxu1 %vm449_vm0, %v424_v20  ;;  %935 = vst [vmem:[#allocation2 + $0x1a0] sm:$0xff] %v3269_v54  ;;  %938 = vst [vmem:[#allocation2 + $0x1b8] sm:$0xff] %v3269_v54 }
  0x20   : > { %939 = vst [vmem:[#allocation2 + $0x1c0] sm:$0xff] %v3269_v54  ;;  %942 = vst [vmem:[#allocation2 + $0x1d8] sm:$0xff] %v3269_v54 }
  0x21   : > { %943 = vst [vmem:[#allocation2 + $0x1e0] sm:$0xff] %v3269_v54  ;;  %946 = vst [vmem:[#allocation2 + $0x1f8] sm:$0xff] %v3269_v54 }
  0x22   : > { %947 = vst [vmem:[#allocation2 + $0x200] sm:$0xff] %v3269_v54  ;;  %950 = vst [vmem:[#allocation2 + $0x218] sm:$0xff] %v3269_v54 }
  0x23   : > { %951 = vst [vmem:[#allocation2 + $0x220] sm:$0xff] %v3269_v54  ;;  %952 = vst [vmem:[#allocation2 + $0x228] sm:$0xff] %v3269_v54 }
  0x24   : > { %953 = vst [vmem:[#allocation2 + $0x230] sm:$0xff] %v3269_v54  ;;  %954 = vst [vmem:[#allocation2 + $0x238] sm:$0xff] %v3269_v54 }
  0x26   : > { %2853 = vmatmul.mubr.msk.bf16.gmra.mxu1 %vm449_vm0, %v425_v25 }
  0x27   : > { %2856 = vmatprep.mubr.msk.bf16.mxu1 %vm449_vm0, %v426_v26 }
  0x2e   : > { %2857 = vmatmul.mubr.msk.bf16.gmra.mxu1 %vm449_vm0, %v427_v31 }
  0x2f   : > { %2860 = vmatprep.mubr.msk.bf16.mxu1 %vm449_vm0, %v428_v32 }
  0x36   : > { %2861 = vmatmul.mubr.msk.bf16.gmra.mxu1 %vm449_vm0, %v429_v37 }
  0x37   : > { %2864 = vmatprep.mubr.msk.bf16.mxu1 %vm449_vm0, %v430_v38  ;;  %v3461_v38 = vshrl.u32 %v1022_v29, 7 }
  0x39   : > { %5055 = vst [vmem:[#allocation3_spill] sm:$0xff] %v3461_v38  ;;  %v1124_v46 = vsub.s32 1, %v3461_v38  ;;  %v1224_v51 = vsub.s32 2, %v3461_v38 }
  0x3e   : > { %2865 = vmatmul.mubr.msk.bf16.gmra.mxu1 %vm449_vm0, %v431_v43  ;;  %v5013_v43 = vsub.s32 0, %v3461_v38 }
  0x3f   : > { %2868 = vmatprep.mubr.msk.bf16.mxu1 %vm449_vm0, %v432_v44 }
  0x46   : > { %2869 = vmatmul.mubr.msk.bf16.gmra.mxu1 %vm449_vm0, %v433_v49  ;;  %v988_v49 = vld [vmem:[%s5004_s3] sm:$0xff] }
  0x47   : > { %2872 = vmatprep.mubr.msk.bf16.mxu1 %vm449_vm0, %v434_v50  ;;  %v3475_v50 = vrot.slane %v988_v49, %v5013_v43 }
  0x4e   : > { %2873 = vmatmul.mubr.msk.bf16.gmra.mxu1 %vm449_vm0, %v435_v53  ;;  %v990_v53 = vld [vmem:[#allocation2 + $0x7] sm:$0xff] }
  0xd6   : > { %v2846_v56 = vpop.f32.mrf.mxu1 }
  0xd7   : > { %v3415_v57 = vadd.f32 %v2846_v56, %v3412_v55  ;;  %v3481_v56 = vrot.slane %v988_v49, %v1124_v46 }
  0xd8   : > { %v532_v58 = vpop.f32.mrf.mxu1 }
  0xd9   : > { %v2715_v59 = vmul.f32 -1.442695, %v3415_v57  ;;  %v3419_v60 = vadd.f32 %v3412_v55, %v532_v58  ;;  %5056 = vst [vmem:[#allocation4_spill] sm:$0xff] %v3481_v56 }
  0xda   : > { %v2847_v61 = vpop.f32.mrf.mxu1 }
  0xdb   : > { %2960 = vpow2.f32 %v2715_v59  ;;  %v2713_v62 = vmul.f32 -1.442695, %v3419_v60  ;;  %v3423_v63 = vadd.f32 %v2847_v61, %v3412_v55  ;;  %v991_v61 = vld [vmem:[#allocation2 + $0xf] sm:$0xff] }
  0xdc   : > { %v535_v0 = vpop.f32.mrf.mxu1 }
  0xdd   : > { %2962 = vpow2.f32 %v2713_v62  ;;  %v2716_v1 = vmul.f32 -1.442695, %v3423_v63  ;;  %v3427_v2 = vadd.f32 %v3412_v55, %v535_v0 }
  0xde   : > { %v2850_v3 = vpop.f32.mrf.mxu1 }
  0xdf   : > { %2964 = vpow2.f32 %v2716_v1  ;;  %v2714_v4 = vmul.f32 -1.442695, %v3427_v2  ;;  %v3431_v5 = vadd.f32 %v2850_v3, %v3412_v55  ;;  %v1026_v1 = vmul.f32 %v3475_v50, %v990_v53 }
  0xe0   : > { %v548_v6 = vpop.f32.mrf.mxu1  ;;  %v1126_v3 = vmul.f32 0.0, %v3481_v56 }
  0xe1   : > { %2966 = vpow2.f32 %v2714_v4  ;;  %v2719_v7 = vmul.f32 -1.442695, %v3431_v5  ;;  %v3435_v8 = vadd.f32 %v3412_v55, %v548_v6  ;;  %v3489_v4 = vrot.slane %v988_v49, %v1224_v51  ;;  %v1190_v6 = vld [vmem:[#allocation2 + $0x9] sm:$0xff] }
  0xe2   : > { %v2851_v9 = vpop.f32.mrf.mxu1 }
  0xe3   : > { %2968 = vpow2.f32 %v2719_v7  ;;  %v2717_v10 = vmul.f32 -1.442695, %v3435_v8  ;;  %v3439_v11 = vadd.f32 %v2851_v9, %v3412_v55  ;;  %5057 = vst [vmem:[#allocation5_spill] sm:$0xff] %v3489_v4 }
  0xe4   : > { %v551_v12 = vpop.f32.mrf.mxu1 }
  0xe5   : > { %2970 = vpow2.f32 %v2717_v10  ;;  %v2720_v13 = vmul.f32 -1.442695, %v3439_v11  ;;  %v3443_v14 = vadd.f32 %v3412_v55, %v551_v12 }
  0xe6   : > { %v2854_v15 = vpop.f32.mrf.mxu1 }
  0xe7   : > { %2972 = vpow2.f32 %v2720_v13  ;;  %v3446_v17 = vadd.f32 %v2854_v15, %v3412_v55  ;;  %v2718_v21 = vmul.f32 -1.442695, %v3443_v14  ;;  %v1324_v13 = vsub.s32 3, %v3461_v38 }
  0xe8   : > { %v2961_v16 = vpop.eup %2960  ;;  %v564_v18 = vpop.f32.mrf.mxu1  ;;  %v1424_v15 = vsub.s32 4, %v3461_v38 }
  0xe9   : > { %v757_v19 = vadd.f32 1.0, %v2961_v16  ;;  %v3450_v22 = vadd.f32 %v3412_v55, %v564_v18  ;;  %v2723_v26 = vmul.f32 -1.442695, %v3446_v17  ;;  %v1725_v16 = vsub.s32 7, %v3461_v38  ;;  %v1191_v18 = vld [vmem:[#allocation2 + $0x11] sm:$0xff] }
  0xea   : > { %v2963_v20 = vpop.eup %2962  ;;  %v2855_v23 = vpop.f32.mrf.mxu1 }
  0xeb   : > { %2974 = vrcp.f32 %v757_v19  ;;  %v755_v24 = vadd.f32 1.0, %v2963_v20  ;;  %v3454_v27 = vadd.f32 %v2855_v23, %v3412_v55  ;;  %v2721_v32 = vmul.f32 -1.442695, %v3450_v22 }
  0xec   : > { %v2965_v25 = vpop.eup %2964  ;;  %v567_v28 = vpop.f32.mrf.mxu1  ;;  %v1625_v20 = vsub.s32 6, %v3461_v38  ;;  %v1226_v23 = vmul.f32 %v3489_v4, %v1190_v6 }
  0xed   : > { %2976 = vrcp.f32 %v755_v24  ;;  %v758_v30 = vadd.f32 1.0, %v2965_v25  ;;  %v3458_v33 = vadd.f32 %v3412_v55, %v567_v28  ;;  %v2724_v37 = vmul.f32 -1.442695, %v3454_v27 }
  0xee   : > { %v2967_v31 = vpop.eup %2966  ;;  %2978 = vpow2.f32 %v2718_v21  ;;  %v2858_v34 = vpop.f32.mrf.mxu1  ;;  %v1158_v21 = vadd.f32 %v1126_v3, %v1026_v1 }
  0xef   : > { %2980 = vrcp.f32 %v758_v30  ;;  %v756_v35 = vadd.f32 1.0, %v2967_v31  ;;  %v3464_v40 = vadd.f32 %v2858_v34, %v3412_v55  ;;  %v2722_v42 = vmul.f32 -1.442695, %v3458_v33 }
  0xf0   : > { %v2969_v36 = vpop.eup %2968  ;;  %2982 = vpow2.f32 %v2723_v26  ;;  %v580_v58 = vpop.f32.mrf.mxu1  ;;  %v1524_v26 = vsub.s32 5, %v3461_v38  ;;  %v1227_v31 = vmul.f32 %v3489_v4, %v1191_v18  ;;  %v2200_v38 = vld [vmem:[%s5006_s5 + $0x30] sm:$0xff] }
  0xf1   : > { %2984 = vrcp.f32 %v756_v35  ;;  %v761_v39 = vadd.f32 1.0, %v2969_v36  ;;  %v2727_v48 = vmul.f32 -1.442695, %v3464_v40  ;;  %v3492_v7 = vadd.f32 %v3412_v55, %v580_v58 }
  0xf2   : > { %v2971_v41 = vpop.eup %2970  ;;  %2986 = vpow2.f32 %v2721_v32  ;;  %v2859_v24 = vpop.f32.mrf.mxu1  ;;  %v3512_v36 = vrot.slane %v988_v49, %v1424_v15  ;;  %v3524_v51 = vrot.slane %v988_v49, %v1524_v26 }
  0xf3   : > { %2988 = vrcp.f32 %v761_v39  ;;  %v759_v44 = vadd.f32 1.0, %v2971_v41  ;;  %v2725_v28 = vmul.f32 -1.442695, %v3492_v7  ;;  %v3517_v39 = vadd.f32 %v2859_v24, %v3412_v55 }
  0xf4   : > { %v2973_v45 = vpop.eup %2972  ;;  %2990 = vpow2.f32 %v2724_v37  ;;  %v3514_v37 = vrot.slane %v988_v49, %v1725_v16  ;;  %v583_v46 = vpop.f32.mrf.mxu1 }
  0xf5   : > { %2992 = vrcp.f32 %v759_v44  ;;  %v762_v47 = vadd.f32 1.0, %v2973_v45  ;;  %v3521_v44 = vrot.slane %v988_v49, %v1625_v20  ;;  %v1258_v45 = vadd.f32 %v1226_v23, %v1158_v21 }
  0xf6   : > { %2994 = vpow2.f32 %v2722_v42  ;;  %v3519_v42 = vrot.slane %v988_v49, %v1324_v13  ;;  %v3536_v49 = vmul.f32 -1.442695, %v3517_v39 }
  0xf7   : > { %2996 = vrcp.f32 %v762_v47 }
  0xf8   : > { %v2975_v52 = vpop.eup %2974  ;;  %2998 = vpow2.f32 %v2727_v48 }
  0xf9   : > { %v3479_v54 = vmul.f32 %v2975_v52, %v3415_v57  ;;  %3000 = vpow2.f32 %v2725_v28 }
  0xfa   : > { %v2977_v59 = vpop.eup %2976 }
  0xfb   : > { %v2979_v62 = vpop.eup %2978  ;;  %958 = vst [vmem:[#allocation2 + $0x48] sm:$0xff] %v3479_v54  ;;  %v3485_v0 = vmul.f32 %v2977_v59, %v3419_v60  ;;  %v1027_v60 = vmul.f32 %v3475_v50, %v991_v61  ;;  %v1428_v18 = vmul.f32 %v3512_v36, %v3479_v54 }
  0xfc   : > { %v2981_v57 = vpop.eup %2980  ;;  %v760_v34 = vadd.f32 1.0, %v2979_v62 }
  0xfd   : > { %v2983_v9 = vpop.eup %2982  ;;  %956 = vst [vmem:[#allocation2 + $0x28] sm:$0xff] %v3485_v0  ;;  %v3496_v10 = vmul.f32 %v2981_v57, %v3423_v63  ;;  %v1159_v30 = vadd.f32 %v1126_v3, %v1027_v60  ;;  %v1426_v6 = vmul.f32 %v3512_v36, %v3485_v0  ;;  %v1128_v13 = vmul.f32 %v3481_v56, %v3485_v0 }
  0xfe   : > { %v2985_v12 = vpop.eup %2984  ;;  %3002 = vrcp.f32 %v760_v34 }
  0xff   : > { %v2987_v19 = vpop.eup %2986  ;;  %959 = vst [vmem:[#allocation2 + $0x50] sm:$0xff] %v3496_v10  ;;  %v852_v63 = vmul.f32 %v2985_v12, %v3427_v2  ;;  %v765_v2 = vadd.f32 1.0, %v2983_v9  ;;  %v1259_v61 = vadd.f32 %v1227_v31, %v1159_v30  ;;  %v1130_v12 = vmul.f32 %v3481_v56, %v3479_v54 }
 0x100   : > { %v2989_v25 = vpop.eup %2988 }
 0x101   : > { %v2991_v29 = vpop.eup %2990  ;;  %957 = vst [vmem:[#allocation2 + $0x30] sm:$0xff] %v852_v63  ;;  %v3510_v32 = vmul.f32 %v2989_v25, %v3431_v5  ;;  %v763_v5 = vadd.f32 1.0, %v2987_v19  ;;  %3004 = vrcp.f32 %v765_v2  ;;  %v1129_v20 = vmul.f32 %v3481_v56, %v852_v63 }
 0x102   : > { %v2993_v35 = vpop.eup %2992  ;;  %v766_v53 = vadd.f32 1.0, %v2991_v29  ;;  %v994_v58 = vld [vmem:[#allocation2 + $0x47] sm:$0xff]  ;;  %v1427_v29 = vmul.f32 %v3512_v36, %v852_v63 }
 0x103   : > { %v2995_v41 = vpop.eup %2994  ;;  %962 = vst [vmem:[#allocation2 + $0x88] sm:$0xff] %v3510_v32  ;;  %v3527_v52 = vmul.f32 %v2993_v35, %v3435_v8  ;;  %v3539_v8 = vadd.f32 %v3412_v55, %v583_v46  ;;  %3006 = vrcp.f32 %v763_v5  ;;  %v1030_v60 = vmul.f32 %v3475_v50, %v994_v58 }
 0x104   : > { %v2997_v47 = vpop.eup %2996  ;;  %v992_v48 = vld [vmem:[#allocation2 + $0x27] sm:$0xff]  ;;  %3008 = vrcp.f32 %v766_v53  ;;  %v1328_v34 = vmul.f32 %v3519_v42, %v994_v58 }
 0x105   : > { %v1326_v59 = vmul.f32 %v3519_v42, %v992_v48  ;;  %v3531_v62 = vmul.f32 %v2997_v47, %v3439_v11  ;;  %v2999_v1 = vpop.eup %2998  ;;  %v1028_v3 = vmul.f32 %v3475_v50, %v992_v48  ;;  %960 = vst [vmem:[#allocation2 + $0x68] sm:$0xff] %v3527_v52  ;;  %v764_v11 = vadd.f32 1.0, %v2995_v41  ;;  %v2862_v41 = vpop.f32.mrf.mxu1 }
 0x106   : > { %v3543_v9 = vld [vmem:[#allocation2 + $0x49] sm:$0xff]  ;;  %v769_v21 = vadd.f32 1.0, %v2999_v1  ;;  %v1162_v31 = vadd.f32 %v1130_v12, %v1030_v60  ;;  %v1727_v48 = vmul.f32 %v3514_v37, %v3479_v54  ;;  %v1430_v60 = vmul.f32 %v3512_v36, %v3527_v52 }
 0x107   : > { %v1358_v57 = vadd.f32 %v1326_v59, %v1258_v45  ;;  %963 = vst [vmem:[#allocation2 + $0x90] sm:$0xff] %v3531_v62  ;;  %v1160_v23 = vadd.f32 %v1128_v13, %v1028_v3  ;;  %v1230_v24 = vmul.f32 %v3489_v4, %v3543_v9  ;;  %3010 = vrcp.f32 %v764_v11  ;;  %v995_v63 = vld [vmem:[#allocation2 + $0x4f] sm:$0xff]  ;;  %v596_v12 = vpop.f32.mrf.mxu1  ;;  %v3001_v13 = vpop.eup %3000 }
 0x108   : > { %v993_v15 = vld [vmem:[#allocation2 + $0x2f] sm:$0xff]  ;;  %v1627_v45 = vmul.f32 %v3521_v44, %v994_v58  ;;  %3012 = vrcp.f32 %v769_v21 }
 0x109   : > { %v1192_v16 = vld [vmem:[#allocation2 + $0x29] sm:$0xff]  ;;  %v1458_v19 = vadd.f32 %v1426_v6, %v1358_v57  ;;  %v1029_v25 = vmul.f32 %v3475_v50, %v993_v15  ;;  %v1193_v28 = vld [vmem:[#allocation2 + $0x31] sm:$0xff]  ;;  %v1327_v0 = vmul.f32 %v3519_v42, %v993_v15  ;;  %v1262_v53 = vadd.f32 %v1230_v24, %v1162_v31 }
 0x10a   : > { %v1228_v26 = vmul.f32 %v3489_v4, %v1192_v16  ;;  %v1526_v30 = vmul.f32 %v3524_v51, %v1192_v16  ;;  %v1229_v59 = vmul.f32 %v3489_v4, %v1193_v28  ;;  %v1527_v57 = vmul.f32 %v3524_v51, %v1193_v28 }
 0x10b   : > { %v1161_v35 = vadd.f32 %v1129_v20, %v1029_v25  ;;  %v1359_v5 = vadd.f32 %v1327_v0, %v1259_v61  ;;  %v1528_v61 = vmul.f32 %v3524_v51, %v3543_v9  ;;  %v1628_v15 = vmul.f32 %v3521_v44, %v995_v63  ;;  %v3003_v21 = vpop.eup %3002 }
 0x10c   : > { %v1260_v2 = vadd.f32 %v1228_v26, %v1160_v23  ;;  %v1558_v46 = vadd.f32 %v1526_v30, %v1458_v19  ;;  %v3563_v47 = vld [vmem:[#allocation2 + $0x67] sm:$0xff]  ;;  %v1329_v23 = vmul.f32 %v3519_v42, %v995_v63  ;;  %v3582_v26 = vadd.f32 %v2862_v41, %v3412_v55 }
 0x10d   : > { %v1459_v3 = vadd.f32 %v1427_v29, %v1359_v5  ;;  %v1330_v58 = vmul.f32 %v3519_v42, %v3563_v47  ;;  %v1261_v11 = vadd.f32 %v1229_v59, %v1161_v35  ;;  %v1629_v25 = vmul.f32 %v3521_v44, %v3563_v47 }
 0x10e   : > { %v1360_v1 = vadd.f32 %v1328_v34, %v1260_v2  ;;  %v1659_v6 = vadd.f32 %v1627_v45, %v1558_v46  ;;  %v3005_v28 = vpop.eup %3004  ;;  %v3589_v30 = vadd.f32 %v3412_v55, %v596_v12  ;;  %v1729_v2 = vmul.f32 %v3514_v37, %v3527_v52 }
 0x10f   : > { %v1559_v16 = vadd.f32 %v1527_v57, %v1459_v3  ;;  %v1362_v20 = vadd.f32 %v1330_v58, %v1262_v53  ;;  %v1361_v34 = vadd.f32 %v1329_v23, %v1261_v11  ;;  %v2726_v41 = vmul.f32 -1.442695, %v3539_v8 }
 0x110   : > { %v1460_v54 = vadd.f32 %v1428_v18, %v1360_v1  ;;  %v3576_v19 = vadd.f32 %v1727_v48, %v1659_v6  ;;  %v1728_v18 = vmul.f32 %v3514_v37, %v3496_v10  ;;  %v3007_v31 = vpop.eup %3006  ;;  %v1429_v46 = vmul.f32 %v3512_v36, %v3496_v10  ;;  %v998_v6 = vld [vmem:[#allocation2 + $0x87] sm:$0xff] }
 0x111   : > { %v1660_v0 = vadd.f32 %v1628_v15, %v1559_v16  ;;  %v3586_v29 = vadd.f32 %v1430_v60, %v1362_v20  ;;  %v3009_v45 = vpop.eup %3008  ;;  %v2731_v53 = vmul.f32 -1.442695, %v3582_v26  ;;  %v1031_v59 = vmul.f32 %v3475_v50, %v995_v63  ;;  %v1195_v63 = vld [vmem:[#allocation2 + $0x51] sm:$0xff] }
 0x112   : > { %v1560_v24 = vadd.f32 %v1528_v61, %v1460_v54  ;;  %v3601_v1 = vmul.f32 %v3003_v21, %v3443_v14  ;;  %3014 = vpow2.f32 %v3536_v49  ;;  %v2729_v3 = vmul.f32 -1.442695, %v3589_v30  ;;  %v3641_v21 = vld [vmem:[#allocation2 + $0x8f] sm:$0xff] }
 0x113   : > { %v1760_v5 = vadd.f32 %v1728_v18, %v1660_v0  ;;  %v1461_v58 = vadd.f32 %v1429_v46, %v1361_v34  ;;  %v3606_v61 = vmul.f32 %v3005_v28, %v3446_v17  ;;  %v3609_v11 = vmul.f32 %v3007_v31, %v3450_v22  ;;  %v3623_v17 = vld [vmem:[%s5004_s3 + $0x8] ss:$0 sm:$0xff]  ;;  %v3653_v28 = vld [vmem:[#allocation2 + $0x89] sm:$0xff]  ;;  %v3657_v34 = vld [vmem:[#allocation2 + $0x91] sm:$0xff] }
 0x114   : > { %v1661_v35 = vadd.f32 %v1629_v25, %v1560_v24  ;;  %v3011_v57 = vpop.eup %3010  ;;  %v3612_v60 = vmul.f32 %v3009_v45, %v3454_v27  ;;  %v1131_v14 = vmul.f32 %v3481_v56, %v3496_v10  ;;  %961 = vst [vmem:[#allocation2 + $0x70] sm:$0xff] %v3601_v1  ;;  %3016 = vpow2.f32 %v2726_v41  ;;  %v3667_v41 = vld [vmem:[%s5005_s4] ss:$0 sm:$0xff] }
 0x115   : > { %v3013_v49 = vpop.eup %3012  ;;  %966 = vst [vmem:[#allocation2 + $0xc8] sm:$0xff] %v3606_v61  ;;  %964 = vst [vmem:[#allocation2 + $0xa8] sm:$0xff] %v3609_v11  ;;  %3018 = vpow2.f32 %v2731_v53  ;;  %v1034_v27 = vmul.f32 %v3475_v50, %v998_v6  ;;  %v1134_v10 = vmul.f32 %v3481_v56, %v3510_v32  ;;  %v3630_v54 = vmul.f32 %v3512_v36, %v3510_v32 }
 0x116   : > { %v3596_v48 = vadd.f32 %v1729_v2, %v1661_v35  ;;  %967 = vst [vmem:[#allocation2 + $0xd0] sm:$0xff] %v3612_v60  ;;  %v1163_v22 = vadd.f32 %v1131_v14, %v1031_v59  ;;  %3020 = vpow2.f32 %v2729_v3  ;;  %v3634_v12 = vmul.f32 %v3514_v37, %v3510_v32 }
 0x117   : > { %v1032_v15 = vmul.f32 %v3475_v50, %v3563_v47  ;;  %v1231_v16 = vmul.f32 %v3489_v4, %v1195_v63  ;;  %v1132_v20 = vmul.f32 %v3481_v56, %v3527_v52  ;;  %v3644_v23 = vmul.f32 %v3011_v57, %v3458_v33 }
 0x118   : > { %v3647_v24 = vmul.f32 %v3013_v49, %v3464_v40  ;;  %v1529_v25 = vmul.f32 %v3524_v51, %v1195_v63  ;;  %v1827_v32 = vmul.f32 %v3623_v17, %v3543_v9  ;;  %v1828_v47 = vmul.f32 %v3623_v17, %v1195_v63 }
 0x119   : > { %v767_v18 = vadd.f32 1.0, %v3001_v13  ;;  %v1263_v0 = vadd.f32 %v1231_v16, %v1163_v22  ;;  %v1166_v52 = vadd.f32 %v1134_v10, %v1034_v27  ;;  %v1332_v31 = vmul.f32 %v3519_v42, %v998_v6  ;;  %965 = vst [vmem:[#allocation2 + $0xb0] sm:$0xff] %v3644_v23 }
 0x11a   : > { %v1631_v33 = vmul.f32 %v3521_v44, %v998_v6  ;;  %970 = vst [vmem:[#allocation2 + $0x108] sm:$0xff] %v3647_v24  ;;  %v1859_v40 = vadd.f32 %v1827_v32, %v3576_v19  ;;  %v1164_v9 = vadd.f32 %v1132_v20, %v1032_v15  ;;  %v1035_v35 = vmul.f32 %v3475_v50, %v3641_v21 }
 0x11b   : > { %v997_v2 = vld [vmem:[#allocation2 + $0x6f] sm:$0xff]  ;;  %v1561_v45 = vadd.f32 %v1529_v25, %v1461_v58  ;;  %v1135_v46 = vmul.f32 %v3481_v56, %v3531_v62  ;;  %v1234_v53 = vmul.f32 %v3489_v4, %v3653_v28  ;;  %v1860_v3 = vadd.f32 %v1828_v47, %v1760_v5 }
 0x11c   : > { %v1196_v13 = vld [vmem:[#allocation2 + $0x69] sm:$0xff]  ;;  %v1331_v59 = vmul.f32 %v3519_v42, %v997_v2  ;;  %v1235_v57 = vmul.f32 %v3489_v4, %v3657_v34  ;;  %v1197_v6 = vld [vmem:[#allocation2 + $0x71] sm:$0xff]  ;;  %v1630_v14 = vmul.f32 %v3521_v44, %v997_v2  ;;  %v1033_v49 = vmul.f32 %v3475_v50, %v997_v2 }
 0x11d   : > { %v1232_v19 = vmul.f32 %v3489_v4, %v1196_v13  ;;  %v1530_v58 = vmul.f32 %v3524_v51, %v1196_v13  ;;  %v1431_v27 = vmul.f32 %v3512_v36, %v3601_v1  ;;  %v3683_v15 = vadd.f32 %v3667_v41, %v1859_v40  ;;  %v3766_v43 = vld [vmem:[#allocation2 + $0xcf] sm:$0xff] }
 0x11e   : > { %v1363_v22 = vadd.f32 %v1331_v59, %v1263_v0  ;;  %v1662_v16 = vadd.f32 %v1630_v14, %v1561_v45  ;;  %v1730_v20 = vmul.f32 %v3514_v37, %v3601_v1  ;;  %v1133_v25 = vmul.f32 %v3481_v56, %v3601_v1 }
 0x11f   : > { %v1264_v63 = vadd.f32 %v1232_v19, %v1164_v9  ;;  %v3015_v10 = vpop.eup %3014  ;;  %v1562_v5 = vadd.f32 %v1530_v58, %v3586_v29  ;;  %v1531_v0 = vmul.f32 %v3524_v51, %v1197_v6  ;;  %v3694_v2 = vadd.f32 %v3667_v41, %v1860_v3  ;;  %v1000_v29 = vld [vmem:[#allocation2 + $0xa7] sm:$0xff] }
 0x120   : > { %v1463_v47 = vadd.f32 %v1431_v27, %v1363_v22  ;;  %v1167_v40 = vadd.f32 %v1135_v46, %v1035_v35  ;;  %v1762_v59 = vadd.f32 %v1730_v20, %v1662_v16  ;;  %v1266_v58 = vadd.f32 %v1234_v53, %v1166_v52 }
 0x121   : > { %v1364_v32 = vadd.f32 %v1332_v31, %v1264_v63  ;;  %v3691_v9 = vpop.eup %3016  ;;  %v1663_v19 = vadd.f32 %v1631_v33, %v1562_v5  ;;  %v1632_v14 = vmul.f32 %v3521_v44, %v3641_v21  ;;  %v1165_v1 = vadd.f32 %v1133_v25, %v1033_v49 }
 0x122   : > { %v3696_v45 = vpop.eup %3018  ;;  %v1563_v31 = vadd.f32 %v1531_v0, %v1463_v47  ;;  %v2747_v22 = vmul.f32 -1.442695, %v3683_v15  ;;  %v1532_v3 = vmul.f32 %v3524_v51, %v3653_v28  ;;  %v1732_v33 = vmul.f32 %v3514_v37, %v3531_v62 }
 0x123   : > { %v3700_v63 = vpop.eup %3020  ;;  %v1763_v35 = vadd.f32 %v3634_v12, %v1663_v19  ;;  %v1233_v46 = vmul.f32 %v3489_v4, %v1197_v6  ;;  %v1334_v53 = vmul.f32 %v3519_v42, %v1000_v29  ;;  %v1464_v49 = vadd.f32 %v3630_v54, %v1364_v32 }
 0x124   : > { %v1664_v52 = vadd.f32 %v1632_v14, %v1563_v31  ;;  %v2748_v27 = vmul.f32 -1.442695, %v3694_v2  ;;  %v1333_v5 = vmul.f32 %v3519_v42, %v3641_v21  ;;  %v1434_v16 = vmul.f32 %v3512_v36, %v3609_v11 }
 0x125   : > { %3022 = vrcp.f32 %v767_v18  ;;  %v1265_v20 = vadd.f32 %v1233_v46, %v1165_v1  ;;  %v1366_v47 = vadd.f32 %v1334_v53, %v1266_v58  ;;  %v1564_v12 = vadd.f32 %v1532_v3, %v1464_v49 }
 0x126   : > { %v1764_v25 = vadd.f32 %v1732_v33, %v1664_v52  ;;  %v1433_v0 = vmul.f32 %v3512_v36, %v3531_v62  ;;  %v1829_v19 = vmul.f32 %v3623_v17, %v1196_v13  ;;  %v1633_v54 = vmul.f32 %v3521_v44, %v1000_v29  ;;  %v3732_v33 = vld [vmem:[#allocation2 + $0xc7] sm:$0xff] }
 0x127   : > { %v770_v32 = vadd.f32 1.0, %v3015_v10  ;;  %3024 = vpow2.f32 %v2747_v22  ;;  %v1267_v14 = vadd.f32 %v1235_v57, %v1167_v40  ;;  %v1466_v31 = vadd.f32 %v1434_v16, %v1366_v47  ;;  %v1001_v40 = vld [vmem:[#allocation2 + $0xaf] sm:$0xff] }
 0x128   : > { %v1733_v21 = vmul.f32 %v3514_v37, %v3609_v11  ;;  %3026 = vpow2.f32 %v2748_v27  ;;  %v1830_v18 = vmul.f32 %v3623_v17, %v1197_v6  ;;  %v1861_v58 = vadd.f32 %v1829_v19, %v3596_v48  ;;  %v3730_v22 = vld [vmem:[#allocation2 + $0xa9] sm:$0xff]  ;;  %v3755_v27 = vld [vmem:[#allocation2 + $0xb1] sm:$0xff] }
 0x129   : > { %v1665_v1 = vadd.f32 %v1633_v54, %v1564_v12  ;;  %v1533_v62 = vmul.f32 %v3524_v51, %v3657_v34  ;;  %v1831_v13 = vmul.f32 %v3623_v17, %v3653_v28  ;;  %v1832_v10 = vmul.f32 %v3623_v17, %v3657_v34 }
 0x12a   : > { %v1365_v57 = vadd.f32 %v1333_v5, %v1265_v20  ;;  %v1862_v3 = vadd.f32 %v1830_v18, %v1762_v59  ;;  %v1036_v6 = vmul.f32 %v3475_v50, %v1000_v29  ;;  %3028 = vrcp.f32 %v770_v32 }
 0x12b   : > { %v3735_v48 = vadd.f32 %v1733_v21, %v1665_v1  ;;  %v1735_v46 = vmul.f32 %v3514_v37, %v3606_v61  ;;  %v1136_v28 = vmul.f32 %v3481_v56, %v3609_v11  ;;  %v1137_v34 = vmul.f32 %v3481_v56, %v3644_v23 }
 0x12c   : > { %v1435_v52 = vmul.f32 %v3512_v36, %v3644_v23  ;;  %v3746_v59 = vadd.f32 %v3667_v41, %v1861_v58  ;;  %v1037_v29 = vmul.f32 %v3475_v50, %v1001_v40  ;;  %v1236_v53 = vmul.f32 %v3489_v4, %v3730_v22 }
 0x12d   : > { %v1734_v49 = vmul.f32 %v3514_v37, %v3644_v23  ;;  %v1635_v11 = vmul.f32 %v3521_v44, %v3732_v33  ;;  %v1335_v5 = vmul.f32 %v3519_v42, %v1001_v40  ;;  %v1465_v16 = vadd.f32 %v1433_v0, %v1365_v57 }
 0x12e   : > { %v1534_v20 = vmul.f32 %v3524_v51, %v3730_v22  ;;  %v1863_v47 = vadd.f32 %v1831_v13, %v1763_v35  ;;  %v3761_v12 = vadd.f32 %v3667_v41, %v1862_v3  ;;  %v1168_v19 = vadd.f32 %v1136_v28, %v1036_v6 }
 0x12f   : > { %v1169_v54 = vadd.f32 %v1137_v34, %v1037_v29  ;;  %v1367_v32 = vadd.f32 %v1335_v5, %v1267_v14  ;;  %v1565_v21 = vadd.f32 %v1533_v62, %v1465_v16  ;;  %v1634_v18 = vmul.f32 %v3521_v44, %v1001_v40  ;;  %v2863_v16 = vpop.f32.mrf.mxu1 }
 0x130   : > { %v1566_v23 = vadd.f32 %v1534_v20, %v1466_v31  ;;  %v1864_v58 = vadd.f32 %v1832_v10, %v1764_v25  ;;  %v1336_v1 = vmul.f32 %v3519_v42, %v3732_v33  ;;  %v1237_v0 = vmul.f32 %v3489_v4, %v3755_v27 }
 0x131   : > { %v1268_v35 = vadd.f32 %v1236_v53, %v1168_v19  ;;  %v1467_v57 = vadd.f32 %v1435_v52, %v1367_v32  ;;  %v1535_v3 = vmul.f32 %v3524_v51, %v3755_v27  ;;  %v1666_v14 = vadd.f32 %v1634_v18, %v1565_v21  ;;  %v1202_v32 = vld [vmem:[#allocation2 + $0xc9] sm:$0xff] }
 0x132   : > { %v3023_v13 = vpop.eup %3022  ;;  %v1667_v62 = vadd.f32 %v1635_v11, %v1566_v23  ;;  %v3773_v31 = vadd.f32 %v3667_v41, %v1863_v47  ;;  %v2749_v25 = vmul.f32 -1.442695, %v3746_v59  ;;  %v2750_v10 = vmul.f32 -1.442695, %v3761_v12 }
 0x133   : > { %v1269_v40 = vadd.f32 %v1237_v0, %v1169_v54  ;;  %v1636_v6 = vmul.f32 %v3521_v44, %v3766_v43  ;;  %v1567_v28 = vadd.f32 %v1535_v3, %v1467_v57  ;;  %v3779_v34 = vadd.f32 %v1734_v49, %v1666_v14  ;;  %v599_v57 = vpop.f32.mrf.mxu1 }
 0x134   : > { %v3781_v52 = vadd.f32 %v1735_v46, %v1667_v62  ;;  %v3025_v29 = vpop.eup %3024  ;;  %v1337_v53 = vmul.f32 %v3519_v42, %v3766_v43  ;;  %v1368_v11 = vadd.f32 %v1336_v1, %v1268_v35  ;;  %v3786_v5 = vmul.f32 %v3023_v13, %v3492_v7 }
 0x135   : > { %v3027_v20 = vpop.eup %3026  ;;  %v3789_v47 = vadd.f32 %v3667_v41, %v1864_v58  ;;  %v1736_v19 = vmul.f32 %v3514_v37, %v3612_v60  ;;  %v1668_v49 = vadd.f32 %v1636_v6, %v1567_v28  ;;  %3030 = vpow2.f32 %v2749_v25 }
 0x136   : > { %v2751_v46 = vmul.f32 -1.442695, %v3773_v31  ;;  %v1436_v54 = vmul.f32 %v3512_v36, %v3606_v61  ;;  %v1369_v21 = vadd.f32 %v1337_v53, %v1269_v40  ;;  %968 = vst [vmem:[#allocation2 + $0xe8] sm:$0xff] %v3786_v5  ;;  %v2026_v23 = vadd.f32 1.0, %v3025_v29 }
 0x137   : > { %v3029_v7 = vpop.eup %3028  ;;  %3032 = vpow2.f32 %v2750_v10  ;;  %v3797_v18 = vadd.f32 %v1736_v19, %v1668_v49  ;;  %v3800_v58 = vadd.f32 %v2863_v16, %v3412_v55  ;;  %v2027_v1 = vadd.f32 1.0, %v3027_v20  ;;  %v2866_v19 = vpop.f32.mrf.mxu1 }
 0x138   : > { %v1038_v0 = vmul.f32 %v3475_v50, %v3732_v33  ;;  %v1437_v35 = vmul.f32 %v3512_v36, %v3612_v60  ;;  %v1468_v13 = vadd.f32 %v1436_v54, %v1368_v11  ;;  %v2752_v3 = vmul.f32 -1.442695, %v3789_v47 }
 0x139   : > { %v1138_v14 = vmul.f32 %v3481_v56, %v3606_v61  ;;  %v1238_v62 = vmul.f32 %v3489_v4, %v1202_v32  ;;  %v768_v25 = vadd.f32 1.0, %v3691_v9  ;;  %3034 = vpow2.f32 %v2751_v46 }
 0x13a   : > { %v1536_v10 = vmul.f32 %v3524_v51, %v1202_v32  ;;  %v3813_v40 = vmul.f32 %v3029_v7, %v3517_v39  ;;  %v3815_v33 = vadd.f32 %v1437_v35, %v1369_v21  ;;  %3036 = vrcp.f32 %v2026_v23  ;;  %v612_v35 = vpop.f32.mrf.mxu1 }
 0x13b   : > { %v3818_v6 = vadd.f32 %v3412_v55, %v599_v57  ;;  %3038 = vrcp.f32 %v2027_v1  ;;  %v1170_v28 = vadd.f32 %v1138_v14, %v1038_v0  ;;  %v773_v61 = vadd.f32 1.0, %v3696_v45 }
 0x13c   : > { %v1568_v29 = vadd.f32 %v1536_v10, %v1468_v13  ;;  %971 = vst [vmem:[#allocation2 + $0x110] sm:$0xff] %v3813_v40  ;;  %3040 = vpow2.f32 %v2752_v3  ;;  %v771_v53 = vadd.f32 1.0, %v3700_v63  ;;  %v2732_v39 = vmul.f32 -1.442695, %v3800_v58 }
 0x13d   : > { %v3822_v9 = vld [vmem:[#allocation2 + $0xe7] sm:$0xff]  ;;  %v1270_v11 = vadd.f32 %v1238_v62, %v1170_v28  ;;  %3042 = vrcp.f32 %v768_v25  ;;  %v1833_v49 = vmul.f32 %v3623_v17, %v3730_v22  ;;  %v1438_v45 = vmul.f32 %v3512_v36, %v3786_v5 }
 0x13e   : > { %v1338_v16 = vmul.f32 %v3519_v42, %v3822_v9  ;;  %v1637_v20 = vmul.f32 %v3521_v44, %v3822_v9  ;;  %v2730_v46 = vmul.f32 -1.442695, %v3818_v6  ;;  %v1737_v21 = vmul.f32 %v3514_v37, %v3786_v5  ;;  %v1006_v28 = vld [vmem:[#allocation2 + $0x107] sm:$0xff] }
 0x13f   : > { %3044 = vrcp.f32 %v773_v61  ;;  %v1834_v7 = vmul.f32 %v3623_v17, %v3755_v27  ;;  %v1865_v23 = vadd.f32 %v1833_v49, %v3735_v48  ;;  %v1835_v1 = vmul.f32 %v3623_v17, %v1202_v32 }
 0x140   : > { %v1370_v63 = vadd.f32 %v1338_v16, %v1270_v11  ;;  %v1669_v54 = vadd.f32 %v1637_v20, %v1568_v29  ;;  %3046 = vrcp.f32 %v771_v53  ;;  %v1039_v57 = vmul.f32 %v3475_v50, %v3766_v43  ;;  %v1203_v43 = vld [vmem:[#allocation2 + $0xd1] sm:$0xff] }
 0x141   : > { %3048 = vpow2.f32 %v2732_v39  ;;  %v1866_v3 = vadd.f32 %v1834_v7, %v3779_v34  ;;  %v3849_v27 = vadd.f32 %v2866_v19, %v3412_v55  ;;  %v1867_v14 = vadd.f32 %v1835_v1, %v3781_v52 }
 0x142   : > { %v3841_v22 = vadd.f32 %v1438_v45, %v1370_v63  ;;  %v3843_v0 = vadd.f32 %v1737_v21, %v1669_v54  ;;  %v3031_v13 = vpop.eup %3030  ;;  %3050 = vpow2.f32 %v2730_v46  ;;  %v1139_v32 = vmul.f32 %v3481_v56, %v3612_v60  ;;  %v2867_v63 = vpop.f32.mrf.mxu1  ;;  %v2208_v54 = vld [vmem:[%s5006_s5 + $0x70] sm:$0xff] }
 0x143   : > { %v3855_v62 = vadd.f32 %v3667_v41, %v1865_v23  ;;  %v3858_v25 = vadd.f32 %v3412_v55, %v612_v35  ;;  %v2028_v10 = vadd.f32 1.0, %v3031_v13  ;;  %v3861_v53 = vadd.f32 %v3667_v41, %v1866_v3 }
 0x144   : > { %v3033_v48 = vpop.eup %3032  ;;  %v1171_v61 = vadd.f32 %v1139_v32, %v1039_v57  ;;  %v3864_v52 = vmul.f32 -1.442695, %v3849_v27  ;;  %v3867_v60 = vadd.f32 %v3667_v41, %v1867_v14  ;;  %v1142_v55 = vmul.f32 %v3481_v56, %v3647_v24 }
 0x145   : > { %5058 = vst [vmem:[#allocation6_spill] sm:$0xff] %v3855_v62  ;;  %5059 = vst [vmem:[#allocation7_spill] sm:$0xff] %v3858_v25  ;;  %v2029_v29 = vadd.f32 1.0, %v3033_v48  ;;  %v3873_v11 = vmul.f32 %v3512_v36, %v3647_v24  ;;  %v3877_v16 = vmul.f32 %v3514_v37, %v3647_v24  ;;  %v1239_v19 = vmul.f32 %v3489_v4, %v1203_v43  ;;  %v2209_v24 = vld [vmem:[%s5006_s5 + $0x78] sm:$0xff] }
 0x146   : > { %v3035_v34 = vpop.eup %3034  ;;  %5060 = vst [vmem:[#allocation8_spill] sm:$0xff] %v3861_v53  ;;  %5061 = vst [vmem:[#allocation9_spill] sm:$0xff] %v3867_v60  ;;  %v2753_v49 = vmul.f32 -1.442695, %v3855_v62  ;;  %v1042_v45 = vmul.f32 %v3475_v50, %v1006_v28  ;;  %v3883_v46 = vmul.f32 -1.442695, %v3858_v25  ;;  %3052 = vrcp.f32 %v2028_v10 }
 0x147   : > { %v3037_v39 = vpop.eup %3036  ;;  %v2030_v7 = vadd.f32 1.0, %v3035_v34  ;;  %v3892_v23 = vmul.f32 %v3524_v51, %v1203_v43  ;;  %v1836_v1 = vmul.f32 %v3623_v17, %v1203_v43  ;;  %3054 = vrcp.f32 %v2029_v29  ;;  %v2206_v43 = vld [vmem:[%s5006_s5 + $0x60] sm:$0xff] }
 0x148   : > { %v3039_v20 = vpop.eup %3038  ;;  %v3896_v13 = vmul.f32 %v3037_v39, %v3683_v15  ;;  %v3898_v57 = vadd.f32 %v1239_v19, %v1171_v61  ;;  %v2754_v3 = vmul.f32 -1.442695, %v3861_v53  ;;  %v2755_v14 = vmul.f32 -1.442695, %v3867_v60  ;;  %v2207_v15 = vld [vmem:[%s5006_s5 + $0x68] sm:$0xff]  ;;  %v615_v39 = vpop.f32.mrf.mxu1 }
 0x149   : > { %v3041_v21 = vpop.eup %3040  ;;  %v1868_v48 = vadd.f32 %v1836_v1, %v3797_v18  ;;  %v2217_v10 = vpack.c.bf16 %v2209_v24, %v2208_v54  ;;  %v3913_v61 = vmul.f32 %v3039_v20, %v3694_v2  ;;  %3056 = vpow2.f32 %v2753_v49  ;;  %v3933_v20 = vld [vmem:[%s5003_s2] ss:$0 sm:$0xff] }
 0x14a   : > { %v3043_v35 = vpop.eup %3042  ;;  %5062 = vst [vmem:[#allocation10_spill] sm:$0xff] %v3896_v13  ;;  %v2031_v29 = vadd.f32 1.0, %v3041_v21  ;;  %v3915_v18 = vadd.f32 %v1142_v55, %v1042_v45  ;;  %3058 = vrcp.f32 %v2030_v7  ;;  %v3918_v19 = vmul.f32 %v3519_v42, %v1006_v28  ;;  %v2204_v45 = vld [vmem:[%s5006_s5 + $0x50] sm:$0xff] }
 0x14b   : > { %v3904_v32 = vmul.f32 %v3043_v35, %v3539_v8  ;;  %5063 = vst [vmem:[#allocation11_spill] sm:$0xff] %v3913_v61  ;;  %v3921_v54 = vmul.f32 %v3521_v44, %v1006_v28  ;;  %2877 = vmatpush3.bf16.msra.mxu1 %v2217_v10  ;;  %3060 = vpow2.f32 %v2754_v3  ;;  %v3936_v49 = vadd.f32 %v3933_v20, %v2867_v63  ;;  %v3938_v28 = vld [vmem:[#allocation2 + $0x40] sm:$0xff] }
 0x14c   : > { %v3045_v34 = vpop.eup %3044  ;;  %5065 = vst [vmem:[#allocation13_spill] sm:$0xff] %v3938_v28  ;;  %2878 = vmatprep.subr.bf16.mxu1 %v3938_v28  ;;  %v3948_v7 = vadd.f32 %v3667_v41, %v1868_v48  ;;  %3062 = vpow2.f32 %v2755_v14  ;;  %v3952_v1 = vadd.f32 %v3933_v20, %v615_v39  ;;  %v3956_v35 = vadd.f32 %v3913_v61, %v3896_v13  ;;  %v2202_v39 = vld [vmem:[%s5006_s5 + $0x40] sm:$0xff] }
 0x14d   : > { %v3047_v8 = vpop.eup %3046  ;;  %969 = vst [vmem:[#allocation2 + $0xf0] sm:$0xff] %v3904_v32  ;;  %v3925_v24 = vmul.f32 %v3045_v34, %v3582_v26  ;;  %5064 = vst [vmem:[#allocation12_spill] sm:$0xff] %v3936_v49  ;;  %v2216_v26 = vpack.c.bf16 %v2207_v15, %v2206_v43  ;;  %3064 = vrcp.f32 %v2031_v29  ;;  %v1140_v3 = vmul.f32 %v3481_v56, %v3786_v5  ;;  %v2870_v43 = vpop.f32.mrf.mxu1 }
 0x14e   : > { %v3049_v2 = vpop.eup %3048  ;;  %v3928_v55 = vmul.f32 %v3047_v8, %v3589_v30  ;;  %v2205_v30 = vld [vmem:[%s5006_s5 + $0x58] sm:$0xff]  ;;  %5066 = vst [vmem:[#allocation14_spill] sm:$0xff] %v3948_v7  ;;  %5067 = vst [vmem:[#allocation15_spill] sm:$0xff] %v3952_v1  ;;  %v3963_v48 = vmul.f32 %v3481_v56, %v3813_v40  ;;  %v3967_v14 = vmul.f32 %v3512_v36, %v3813_v40  ;;  %3066 = vpow2.f32 %v3864_v52  ;;  %v2203_v52 = vld [vmem:[%s5006_s5 + $0x48] sm:$0xff] }
 0x14f   : > { %v3051_v21 = vpop.eup %3050  ;;  %974 = vst [vmem:[#allocation2 + $0x148] sm:$0xff] %v3925_v24  ;;  %v774_v63 = vadd.f32 1.0, %v3049_v2  ;;  %2879 = vmatpush3.bf16.msra.mxu1 %v2216_v26  ;;  %v2215_v15 = vpack.c.bf16 %v2205_v30, %v2204_v45  ;;  %v1040_v34 = vmul.f32 %v3475_v50, %v3822_v9  ;;  %v3974_v5 = vmul.f32 %v3514_v37, %v3813_v40 }
 0x150   : > { %972 = vst [vmem:[#allocation2 + $0x128] sm:$0xff] %v3928_v55  ;;  %v772_v10 = vadd.f32 1.0, %v3051_v21  ;;  %v2736_v29 = vmul.f32 -1.442695, %v3936_v49  ;;  %2880 = vmatprep.subr.bf16.mxu1 %v3938_v28  ;;  %v2756_v8 = vmul.f32 -1.442695, %v3948_v7  ;;  %v1141_v2 = vmul.f32 %v3481_v56, %v3904_v32  ;;  %2892 = vmatprep.mubr.msk.bf16.mxu1 %vm3270_vm1, %v3938_v28 }
 0x151   : > { %3068 = vrcp.f32 %v774_v63  ;;  %v2734_v9 = vmul.f32 -1.442695, %v3952_v1  ;;  %v1569_v45 = vadd.f32 %v3892_v23, %v3815_v33  ;;  %v3994_v30 = vadd.f32 %v3933_v20, %v2870_v43 }
 0x152   : > { %3070 = vrcp.f32 %v772_v10  ;;  %v2214_v61 = vpack.c.bf16 %v2203_v52, %v2202_v39  ;;  %v1172_v33 = vadd.f32 %v1140_v3, %v1040_v34  ;;  %v1007_v3 = vld [vmem:[#allocation2 + $0x10f] sm:$0xff]  ;;  %v1439_v7 = vmul.f32 %v3512_v36, %v3904_v32 }
 0x153   : > { %3072 = vpow2.f32 %v3883_v46  ;;  %2881 = vmatpush3.bf16.msra.mxu1 %v2215_v15  ;;  %v3053_v13 = vpop.eup %3052  ;;  %v2201_v15 = vld [vmem:[%s5006_s5 + $0x38] sm:$0xff]  ;;  %v1738_v62 = vmul.f32 %v3514_v37, %v3904_v32 }
 0x154   : > { %v1005_v40 = vld [vmem:[#allocation2 + $0xef] sm:$0xff]  ;;  %3074 = vpow2.f32 %v2736_v29  ;;  %2882 = vmatprep.subr.bf16.mxu1 %v3938_v28  ;;  %v3055_v39 = vpop.eup %3054 }
 0x155   : > { %v3988_v26 = vld [vmem:[#allocation2 + $0xe9] sm:$0xff]  ;;  %v1041_v21 = vmul.f32 %v3475_v50, %v1005_v40  ;;  %v1339_v10 = vmul.f32 %v3519_v42, %v1005_v40  ;;  %v4002_v23 = vld [vmem:[#allocation2 + $0xf1] sm:$0xff]  ;;  %v1638_v43 = vmul.f32 %v3521_v44, %v1005_v40  ;;  %3076 = vpow2.f32 %v2734_v9 }
 0x156   : > { %v1240_v63 = vmul.f32 %v3489_v4, %v3988_v26  ;;  %v1538_v46 = vmul.f32 %v3524_v51, %v3988_v26  ;;  %v4017_v29 = vld [vmem:[#allocation2 + $0x109] sm:$0xff]  ;;  %v3057_v1 = vpop.eup %3056  ;;  %v1241_v49 = vmul.f32 %v3489_v4, %v4002_v23  ;;  %v2213_v9 = vpack.c.bf16 %v2201_v15, %v2200_v38 }
 0x157   : > { %v1173_v34 = vadd.f32 %v1141_v2, %v1041_v21  ;;  %v1371_v52 = vadd.f32 %v1339_v10, %v3898_v57  ;;  %v1670_v53 = vadd.f32 %v1638_v43, %v1569_v45  ;;  %v1539_v57 = vmul.f32 %v3524_v51, %v4002_v23  ;;  %v628_v21 = vpop.f32.mrf.mxu1  ;;  %2883 = vmatpush3.bf16.msra.mxu1 %v2214_v61  ;;  %v4026_v10 = vpop.eup %3058  ;;  %v2199_v38 = vld [vmem:[%s5006_s5 + $0x28] sm:$0xff] }
 0x158   : > { %v1272_v40 = vadd.f32 %v1240_v63, %v1172_v33  ;;  %v1570_v60 = vadd.f32 %v1538_v46, %v3841_v22  ;;  %v4029_v63 = vmul.f32 %v3053_v13, %v3746_v59  ;;  %v1043_v22 = vmul.f32 %v3475_v50, %v1007_v3  ;;  %2884 = vmatprep.subr.bf16.mxu1 %v3938_v28  ;;  %v3061_v61 = vpop.eup %3060 }
 0x159   : > { %v1471_v2 = vadd.f32 %v1439_v7, %v1371_v52  ;;  %v1770_v45 = vadd.f32 %v1738_v62, %v1670_v53  ;;  %v2198_v7 = vld [vmem:[%s5006_s5 + $0x20] sm:$0xff]  ;;  %v1242_v59 = vmul.f32 %v3489_v4, %v4017_v29  ;;  %v1640_v13 = vmul.f32 %v3521_v44, %v1007_v3 }
 0x15a   : > { %5068 = vst [vmem:[#allocation16_spill] sm:$0xff] %v4029_v63  ;;  %v1671_v32 = vadd.f32 %v3921_v54, %v1570_v60  ;;  %v1273_v33 = vadd.f32 %v1241_v49, %v1173_v34  ;;  %v4043_v60 = vpop.eup %3062  ;;  %3078 = vpow2.f32 %v2756_v8  ;;  %v1372_v62 = vadd.f32 %v3918_v19, %v1272_v40  ;;  %v4047_v54 = vld [vmem:[#allocation2 + $0x127] sm:$0xff] }
 0x15b   : > { %v1571_v46 = vadd.f32 %v1539_v57, %v1471_v2  ;;  %v4050_v43 = vadd.f32 %v3933_v20, %v628_v21  ;;  %v4052_v15 = vpop.eup %3064  ;;  %v1341_v52 = vmul.f32 %v3519_v42, %v1007_v3  ;;  %v4056_v49 = vmul.f32 -1.442695, %v3994_v30  ;;  %2885 = vmatpush3.bf16.msra.mxu1 %v2213_v9  ;;  %v2196_v3 = vld [vmem:[%s5006_s5 + $0x10] sm:$0xff] }
 0x15c   : > { %v1771_v53 = vadd.f32 %v3877_v16, %v1671_v32  ;;  %v2212_v34 = vpack.c.bf16 %v2199_v38, %v2198_v7  ;;  %v3067_v8 = vpop.eup %3066  ;;  %v4059_v19 = vmul.f32 %v3055_v39, %v3761_v12  ;;  %v2155_v16 = vadd.f32 %v3956_v35, %v4029_v63  ;;  %2886 = vmatprep.subr.bf16.mxu1 %v3938_v28  ;;  %v2197_v12 = vld [vmem:[%s5006_s5 + $0x18] sm:$0xff] }
 0x15d   : > { %v1672_v25 = vadd.f32 %v1640_v13, %v1571_v46  ;;  %v4064_v40 = vadd.f32 %v3963_v48, %v1043_v22  ;;  %v1540_v2 = vmul.f32 %v3524_v51, %v4017_v29  ;;  %v1274_v57 = vadd.f32 %v1242_v59, %v3915_v18 }
 0x15e   : > { %5069 = vst [vmem:[#allocation17_spill] sm:$0xff] %v4059_v19  ;;  %v3069_v39 = vpop.eup %3068  ;;  %v1373_v35 = vadd.f32 %v1341_v52, %v1273_v33  ;;  %v1342_v21 = vmul.f32 %v3519_v42, %v4047_v54  ;;  %v2032_v22 = vadd.f32 1.0, %v3057_v1  ;;  %v1837_v32 = vmul.f32 %v3623_v17, %v3988_v26 }
 0x15f   : > { %v1772_v48 = vadd.f32 %v3974_v5, %v1672_v25  ;;  %v3071_v9 = vpop.eup %3070  ;;  %v1442_v7 = vmul.f32 %v3512_v36, %v3928_v55  ;;  %v1472_v38 = vadd.f32 %v3873_v11, %v1372_v62  ;;  %v1838_v18 = vmul.f32 %v3623_v17, %v4002_v23  ;;  %2887 = vmatpush3.bf16.msra.mxu1 %v2212_v34  ;;  %v1207_v5 = vld [vmem:[#allocation2 + $0x111] sm:$0xff]  ;;  %v2194_v11 = vld [vmem:[%s5006_s5] sm:$0xff]  ;;  %v2195_v23 = vld [vmem:[%s5006_s5 + $0x8] sm:$0xff] }
 0x160   : > { %v3073_v13 = vpop.eup %3072  ;;  %v1374_v59 = vadd.f32 %v1342_v21, %v1274_v57  ;;  %v777_v33 = vadd.f32 1.0, %v3067_v8  ;;  %v2211_v25 = vpack.c.bf16 %v2197_v12, %v2196_v3  ;;  %v1869_v46 = vadd.f32 %v1837_v32, %v3843_v0  ;;  %2888 = vmatprep.subr.bf16.mxu1 %v3938_v28  ;;  %v2871_v21 = vpop.f32.mrf.mxu1 }
 0x161   : > { %v1572_v1 = vadd.f32 %v1540_v2, %v1472_v38  ;;  %v1641_v26 = vmul.f32 %v3521_v44, %v4047_v54  ;;  %v4090_v52 = vmul.f32 %v3069_v39, %v3800_v58  ;;  %v3075_v62 = vpop.eup %3074  ;;  %v1870_v34 = vadd.f32 %v1838_v18, %v1770_v45 }
 0x162   : > { %v4099_v0 = vadd.f32 %v1442_v7, %v1374_v59  ;;  %v4102_v8 = vmul.f32 %v3071_v9, %v3818_v6  ;;  %v4105_v58 = vadd.f32 %v3967_v14, %v1373_v35  ;;  %v3077_v2 = vpop.eup %3076  ;;  %v2033_v3 = vadd.f32 1.0, %v3061_v61 }
 0x163   : > { %v1839_v12 = vmul.f32 %v3623_v17, %v4017_v29  ;;  %v1673_v39 = vadd.f32 %v1641_v26, %v1572_v1  ;;  %v1741_v57 = vmul.f32 %v3514_v37, %v3928_v55  ;;  %975 = vst [vmem:[#allocation2 + $0x150] sm:$0xff] %v4090_v52  ;;  %v2156_v45 = vadd.f32 %v2155_v16, %v4059_v19  ;;  %v4143_v1 = vpop.f32.mrf.mxu1 }
 0x164   : > { %3080 = vrcp.f32 %v2032_v22  ;;  %v1840_v6 = vmul.f32 %v3623_v17, %v1207_v5  ;;  %973 = vst [vmem:[#allocation2 + $0x130] sm:$0xff] %v4102_v8  ;;  %2889 = vmatpush3.bf16.msra.mxu1 %v2211_v25  ;;  %v2210_v14 = vpack.c.bf16 %v2195_v23, %v2194_v11  ;;  %v4116_v61 = vadd.f32 %v3667_v41, %v1869_v46  ;;  %v4141_v46 = vld [vmem:[#allocation2 + $0x147] sm:$0xff] }
 0x165   : > { %v1871_v35 = vadd.f32 %v1839_v12, %v1771_v53  ;;  %v4118_v29 = vadd.f32 %v1741_v57, %v1673_v39  ;;  %3082 = vrcp.f32 %v777_v33  ;;  %2890 = vmatprep.subr.bf16.mxu1 %v3938_v28  ;;  %v4122_v9 = vadd.f32 %v3667_v41, %v1870_v34  ;;  %v2874_v39 = vpop.f32.mrf.mxu1 }
 0x166   : > { %v775_v16 = vadd.f32 1.0, %v3073_v13  ;;  %v778_v22 = vadd.f32 1.0, %v3075_v62  ;;  %v776_v17 = vadd.f32 1.0, %v3077_v2  ;;  %3084 = vrcp.f32 %v2033_v3 }
 0x167   : > { %v1243_v32 = vmul.f32 %v3489_v4, %v1207_v5  ;;  %v1872_v7 = vadd.f32 %v1840_v6, %v1772_v48  ;;  %v2737_v53 = vmul.f32 -1.442695, %v4050_v43  ;;  %v4126_v38 = vpop.eup %3078  ;;  %v4130_v18 = vmul.f32 %v4026_v10, %v3773_v31 }
 0x168   : > { %v1541_v59 = vmul.f32 %v3524_v51, %v1207_v5  ;;  %3086 = vrcp.f32 %v775_v16  ;;  %v4134_v33 = vadd.f32 %v3933_v20, %v2871_v21  ;;  %2891 = vmatpush3.bf16.msra.mxu1 %v2210_v14  ;;  %v4138_v25 = vadd.f32 %v3667_v41, %v1871_v35 }
 0x169   : > { %5070 = vst [vmem:[#allocation18_spill] sm:$0xff] %v4130_v18  ;;  %v1275_v13 = vadd.f32 %v1243_v32, %v4064_v40  ;;  %v2757_v48 = vmul.f32 -1.442695, %v4116_v61  ;;  %3088 = vrcp.f32 %v778_v22  ;;  %2896 = vmatprep.subr.bf16.mxu1 %v3938_v28  ;;  %v4147_v31 = vadd.f32 %v2156_v45, %v4130_v18 }
 0x16a   : > { %5071 = vst [vmem:[#allocation19_spill] sm:$0xff] %v4138_v25  ;;  %v2758_v10 = vmul.f32 -1.442695, %v4122_v9  ;;  %v1044_v40 = vmul.f32 %v3475_v50, %v4047_v54  ;;  %3090 = vrcp.f32 %v776_v17  ;;  %v4153_v5 = vadd.f32 %v3667_v41, %v1872_v7  ;;  %v1011_v45 = vld [vmem:[#allocation2 + $0x14f] sm:$0xff] }
 0x16b   : > { %v1444_v26 = vmul.f32 %v3512_v36, %v3925_v24  ;;  %v1743_v11 = vmul.f32 %v3514_v37, %v3925_v24  ;;  %v1009_v23 = vld [vmem:[#allocation2 + $0x12f] sm:$0xff]  ;;  %3092 = vpow2.f32 %v4056_v49  ;;  %v1344_v34 = vmul.f32 %v3519_v42, %v4141_v46 }
 0x16c   : > { %5072 = vst [vmem:[#allocation20_spill] sm:$0xff] %v4153_v5  ;;  %v4159_v62 = vld [vmem:[#allocation2 + $0x129] sm:$0xff]  ;;  %v1643_v54 = vmul.f32 %v3521_v44, %v4141_v46  ;;  %v1144_v41 = vmul.f32 %v3481_v56, %v3928_v55  ;;  %v4168_v2 = vld [vmem:[#allocation2 + $0x131] sm:$0xff]  ;;  %3094 = vpow2.f32 %v2737_v53  ;;  %v2759_v3 = vmul.f32 -1.442695, %v4138_v25 }
 0x16d   : > { %3096 = vpow2.f32 %v2757_v48  ;;  %v1045_v12 = vmul.f32 %v3475_v50, %v1009_v23  ;;  %v1145_v49 = vmul.f32 %v3481_v56, %v4102_v8  ;;  %v1244_v6 = vmul.f32 %v3489_v4, %v4159_v62 }
 0x16e   : > { %3098 = vpow2.f32 %v2758_v10  ;;  %v1176_v57 = vadd.f32 %v1144_v41, %v1044_v40  ;;  %v1343_v55 = vmul.f32 %v3519_v42, %v1009_v23  ;;  %v2760_v14 = vmul.f32 -1.442695, %v4153_v5  ;;  %v644_v41 = vpop.f32.mrf.mxu1 }
 0x16f   : > { %v1177_v35 = vadd.f32 %v1145_v49, %v1045_v12  ;;  %v1245_v21 = vmul.f32 %v3489_v4, %v4168_v2  ;;  %v1542_v16 = vmul.f32 %v3524_v51, %v4159_v62  ;;  %v1443_v32 = vmul.f32 %v3512_v36, %v4102_v8 }
 0x170   : > { %v1276_v22 = vadd.f32 %v1244_v6, %v1176_v57  ;;  %v1375_v17 = vadd.f32 %v1343_v55, %v1275_v13  ;;  %v1573_v7 = vadd.f32 %v1541_v59, %v4105_v58  ;;  %3100 = vpow2.f32 %v2759_v3 }
 0x171   : > { %v3081_v53 = vpop.eup %3080  ;;  %v1345_v48 = vmul.f32 %v3519_v42, %v1011_v45  ;;  %v1277_v10 = vadd.f32 %v1245_v21, %v1177_v35  ;;  %v1574_v40 = vadd.f32 %v1542_v16, %v4099_v0  ;;  %v1543_v57 = vmul.f32 %v3524_v51, %v4168_v2 }
 0x172   : > { %v3083_v12 = vpop.eup %3082  ;;  %v1376_v49 = vadd.f32 %v1344_v34, %v1276_v22  ;;  %v1475_v18 = vadd.f32 %v1443_v32, %v1375_v17  ;;  %v1642_v13 = vmul.f32 %v3521_v44, %v1009_v23  ;;  %v1445_v6 = vmul.f32 %v3512_v36, %v4090_v52 }
 0x173   : > { %v1377_v58 = vadd.f32 %v1345_v48, %v1277_v10  ;;  %v1675_v59 = vadd.f32 %v1643_v54, %v1574_v40  ;;  %v1742_v3 = vmul.f32 %v3514_v37, %v4102_v8  ;;  %v3085_v55 = vpop.eup %3084  ;;  %3102 = vpow2.f32 %v2760_v14  ;;  %v2875_v54 = vpop.f32.mrf.mxu1  ;;  %v5075_v40 = vld [vmem:[#allocation7_spill] sm:$0xff] }
 0x174   : > { %v1644_v0 = vmul.f32 %v3521_v44, %v1011_v45  ;;  %v1575_v35 = vadd.f32 %v1543_v57, %v1475_v18  ;;  %v1674_v34 = vadd.f32 %v1642_v13, %v1573_v7  ;;  %v4198_v22 = vmul.f32 %v3083_v12, %v3849_v27  ;;  %v1210_v13 = vld [vmem:[#allocation2 + $0x149] sm:$0xff] }
 0x175   : > { %v3087_v21 = vpop.eup %3086  ;;  %v4195_v16 = vadd.f32 %v1743_v11, %v1675_v59  ;;  %v4200_v23 = vadd.f32 %v1444_v26, %v1376_v49  ;;  %v4202_v17 = vadd.f32 %v1445_v6, %v1377_v58  ;;  %v4206_v8 = vmul.f32 %v4052_v15, %v3789_v47  ;;  %v647_v59 = vpop.f32.mrf.mxu1 }
 0x176   : > { %5073 = vst [vmem:[#allocation21_spill] sm:$0xff] %v4198_v22  ;;  %v3089_v32 = vpop.eup %3088  ;;  %v1744_v18 = vmul.f32 %v3514_v37, %v4090_v52  ;;  %v1676_v14 = vadd.f32 %v1644_v0, %v1575_v35  ;;  %v4210_v7 = vadd.f32 %v1742_v3, %v1674_v34  ;;  %978 = vst [vmem:[#allocation2 + $0x188] sm:$0xff] %v4198_v22  ;;  %v2034_v47 = vadd.f32 1.0, %v4043_v60  ;;  %v5076_v60 = vld [vmem:[#allocation12_spill] sm:$0xff]  ;;  %v5078_v0 = vld [vmem:[#allocation6_spill] sm:$0xff] }
 0x177   : > { %5074 = vst [vmem:[#allocation22_spill] sm:$0xff] %v4206_v8  ;;  %v3091_v11 = vpop.eup %3090  ;;  %v4215_v27 = vadd.f32 %v3933_v20, %v4143_v1  ;;  %v4218_v26 = vadd.f32 %v3933_v20, %v2874_v39  ;;  %v2035_v15 = vadd.f32 1.0, %v4126_v38  ;;  %v4225_v12 = vmul.f32 %v3087_v21, %v5075_v40  ;;  %v4231_v1 = vld [vmem:[%s5004_s3 + $0x8] ss:$0 sm:$0xff]  ;;  %v5077_v38 = vld [vmem:[#allocation15_spill] sm:$0xff] }
 0x178   : > { %v3093_v48 = vpop.eup %3092  ;;  %v4222_v10 = vadd.f32 %v1744_v18, %v1676_v14  ;;  %v1047_v57 = vmul.f32 %v3475_v50, %v1011_v45  ;;  %v1841_v39 = vmul.f32 %v4231_v1, %v4159_v62  ;;  %v4236_v6 = vmul.f32 %v3089_v32, %v5076_v60  ;;  %v1211_v14 = vld [vmem:[#allocation2 + $0x151] sm:$0xff] }
 0x179   : > { %v3095_v49 = vpop.eup %3094  ;;  %v4239_v58 = vmul.f32 %v3091_v11, %v5077_v38  ;;  %v4242_v35 = vmul.f32 %v3081_v53, %v5078_v0  ;;  %v2158_v45 = vadd.f32 %v4147_v31, %v4206_v8  ;;  %v1046_v34 = vmul.f32 %v3475_v50, %v4141_v46  ;;  %976 = vst [vmem:[#allocation2 + $0x168] sm:$0xff] %v4225_v12 }
 0x17a   : > { %v3097_v3 = vpop.eup %3096  ;;  %v2740_v62 = vmul.f32 -1.442695, %v4134_v33  ;;  %v1147_v32 = vmul.f32 %v3481_v56, %v4090_v52  ;;  %v1873_v18 = vadd.f32 %v1841_v39, %v4118_v29  ;;  %979 = vst [vmem:[#allocation2 + $0x190] sm:$0xff] %v4236_v6  ;;  %v4256_v53 = vadd.f32 %v3933_v20, %v644_v41  ;;  %v5080_v29 = vld [vmem:[#allocation8_spill] sm:$0xff] }
 0x17b   : > { %5079 = vst [vmem:[#allocation7_spill] sm:$0xff] %v4242_v35  ;;  %v3099_v21 = vpop.eup %3098  ;;  %977 = vst [vmem:[#allocation2 + $0x170] sm:$0xff] %v4239_v58  ;;  %v4259_v31 = vadd.f32 %v3933_v20, %v2875_v54  ;;  %3104 = vrcp.f32 %v2034_v47  ;;  %v1146_v46 = vmul.f32 %v3481_v56, %v3925_v24  ;;  %v1246_v11 = vmul.f32 %v3489_v4, %v1210_v13 }
 0x17c   : > { %v4265_v52 = vadd.f32 %v3933_v20, %v647_v59  ;;  %3106 = vrcp.f32 %v2035_v15  ;;  %v4268_v40 = vmul.f32 %v3085_v55, %v5080_v29  ;;  %v1179_v39 = vadd.f32 %v1147_v32, %v1047_v57  ;;  %v4278_v20 = vld [vmem:[%s5005_s4] ss:$0 sm:$0xff] }
 0x17d   : > { %v781_v41 = vadd.f32 1.0, %v3093_v48  ;;  %v3101_v60 = vpop.eup %3100  ;;  %v4271_v54 = vadd.f32 %v2158_v45, %v4242_v35  ;;  %v2036_v47 = vadd.f32 1.0, %v3097_v3  ;;  %v1178_v38 = vadd.f32 %v1146_v46, %v1046_v34  ;;  %5082 = vst [vmem:[#allocation15_spill] sm:$0xff] %v4278_v20 }
 0x17e   : > { %5081 = vst [vmem:[#allocation12_spill] sm:$0xff] %v4268_v40  ;;  %3108 = vpow2.f32 %v2740_v62  ;;  %v2037_v24 = vadd.f32 1.0, %v3099_v21  ;;  %v1247_v0 = vmul.f32 %v3489_v4, %v1211_v14  ;;  %v1544_v8 = vmul.f32 %v3524_v51, %v1210_v13 }
 0x17f   : > { %v4281_v55 = vadd.f32 %v4278_v20, %v1873_v18  ;;  %v1278_v48 = vadd.f32 %v1246_v11, %v1178_v38  ;;  %v1545_v15 = vmul.f32 %v3524_v51, %v1211_v14  ;;  %v1843_v57 = vmul.f32 %v4231_v1, %v1210_v13 }
 0x180   : > { %v4285_v59 = vadd.f32 1.0, %v3095_v49  ;;  %v3103_v3 = vpop.eup %3102  ;;  %v1279_v45 = vadd.f32 %v1247_v0, %v1179_v39  ;;  %v1844_v34 = vmul.f32 %v4231_v1, %v1211_v14  ;;  %v1012_v62 = vld [vmem:[#allocation2 + $0x167] sm:$0xff]  ;;  %v1576_v21 = vadd.f32 %v1544_v8, %v4200_v23 }
 0x181   : > { %5083 = vst [vmem:[#allocation6_spill] sm:$0xff] %v4281_v55  ;;  %3110 = vrcp.f32 %v781_v41  ;;  %v4289_v32 = vadd.f32 1.0, %v3101_v60  ;;  %v1875_v18 = vadd.f32 %v1843_v57, %v4195_v16  ;;  %v1346_v46 = vmul.f32 %v3519_v42, %v1012_v62  ;;  %v4316_v57 = vld [vmem:[#allocation2 + $0x187] sm:$0xff] }
 0x182   : > { %3112 = vrcp.f32 %v2036_v47  ;;  %v1842_v49 = vmul.f32 %v4231_v1, %v4168_v2  ;;  %v2761_v13 = vmul.f32 -1.442695, %v4281_v55  ;;  %v1645_v11 = vmul.f32 %v3521_v44, %v1012_v62  ;;  %v1013_v60 = vld [vmem:[#allocation2 + $0x16f] sm:$0xff] }
 0x183   : > { %3114 = vrcp.f32 %v2037_v24  ;;  %v4297_v14 = vadd.f32 1.0, %v3103_v3  ;;  %v1048_v23 = vmul.f32 %v3475_v50, %v1012_v62  ;;  %v1378_v8 = vadd.f32 %v1346_v46, %v1278_v48  ;;  %v4308_v47 = vld [vmem:[#allocation2 + $0x169] sm:$0xff] }
 0x184   : > { %v1446_v29 = vmul.f32 %v3512_v36, %v4225_v12  ;;  %v1448_v16 = vmul.f32 %v3512_v36, %v4198_v22  ;;  %v1747_v39 = vmul.f32 %v3514_v37, %v4198_v22  ;;  %v1677_v41 = vadd.f32 %v1645_v11, %v1576_v21  ;;  %v1213_v21 = vld [vmem:[#allocation2 + $0x171] sm:$0xff] }
 0x185   : > { %v1745_v2 = vmul.f32 %v3514_v37, %v4225_v12  ;;  %v1874_v38 = vadd.f32 %v1842_v49, %v4210_v7  ;;  %v4312_v24 = vadd.f32 %v4278_v20, %v1875_v18  ;;  %v1148_v0 = vmul.f32 %v3481_v56, %v4225_v12 }
 0x186   : > { %v1478_v48 = vadd.f32 %v1446_v29, %v1378_v8  ;;  %3116 = vpow2.f32 %v2761_v13  ;;  %v1149_v62 = vmul.f32 %v3481_v56, %v4239_v58  ;;  %v1577_v46 = vadd.f32 %v1545_v15, %v4202_v17  ;;  %v4328_v13 = vld [vmem:[#allocation2 + $0x18f] sm:$0xff] }
 0x187   : > { %5084 = vst [vmem:[#allocation8_spill] sm:$0xff] %v4312_v24  ;;  %v4318_v3 = vadd.f32 %v1745_v2, %v1677_v41  ;;  %v1180_v11 = vadd.f32 %v1148_v0, %v1048_v23  ;;  %v1049_v7 = vmul.f32 %v3475_v50, %v1013_v60  ;;  %v1248_v18 = vmul.f32 %v3489_v4, %v4308_v47 }
 0x188   : > { %v1447_v12 = vmul.f32 %v3512_v36, %v4239_v58  ;;  %v3105_v49 = vpop.eup %3104  ;;  %v1347_v8 = vmul.f32 %v3519_v42, %v1013_v60  ;;  %v1546_v29 = vmul.f32 %v3524_v51, %v4308_v47  ;;  %v1646_v41 = vmul.f32 %v3521_v44, %v1013_v60 }
 0x189   : > { %v1746_v17 = vmul.f32 %v3514_v37, %v4239_v58  ;;  %v4336_v15 = vpop.eup %3106  ;;  %v1348_v23 = vmul.f32 %v3519_v42, %v4316_v57  ;;  %v1181_v2 = vadd.f32 %v1149_v62, %v1049_v7  ;;  %v1249_v0 = vmul.f32 %v3489_v4, %v1213_v21 }
 0x18a   : > { %v1280_v35 = vadd.f32 %v1248_v18, %v1180_v11  ;;  %v1647_v63 = vmul.f32 %v3521_v44, %v4316_v57  ;;  %v1379_v55 = vadd.f32 %v1347_v8, %v1279_v45  ;;  %v1578_v28 = vadd.f32 %v1546_v29, %v1478_v48 }
 0x18b   : > { %v3109_v19 = vpop.eup %3108  ;;  %v1678_v5 = vadd.f32 %v1646_v41, %v1577_v46  ;;  %v4344_v60 = vadd.f32 %v4278_v20, %v1874_v38  ;;  %v1349_v58 = vmul.f32 %v3519_v42, %v4328_v13  ;;  %v1281_v56 = vadd.f32 %v1249_v0, %v1181_v2 }
 0x18c   : > { %v1380_v22 = vadd.f32 %v1348_v23, %v1280_v35  ;;  %v1479_v25 = vadd.f32 %v1447_v12, %v1379_v55  ;;  %v1547_v62 = vmul.f32 %v3524_v51, %v1213_v21  ;;  %v1679_v7 = vadd.f32 %v1647_v63, %v1578_v28 }
 0x18d   : > { %5085 = vst [vmem:[#allocation23_spill] sm:$0xff] %v4344_v60  ;;  %v1778_v11 = vadd.f32 %v1746_v17, %v1678_v5  ;;  %v1876_v4 = vadd.f32 %v1844_v34, %v4222_v10  ;;  %v1449_v45 = vmul.f32 %v3512_v36, %v4236_v6  ;;  %v1381_v48 = vadd.f32 %v1349_v58, %v1281_v56  ;;  %v4374_v34 = vld [vmem:[#allocation2 + $0x189] sm:$0xff] }
 0x18e   : > { %v3111_v18 = vpop.eup %3110  ;;  %v782_v46 = vadd.f32 1.0, %v3109_v19  ;;  %v1648_v8 = vmul.f32 %v3521_v44, %v4328_v13  ;;  %v1579_v29 = vadd.f32 %v1547_v62, %v1479_v25  ;;  %v1779_v41 = vadd.f32 %v1747_v39, %v1679_v7  ;;  %v5089_v7 = vld [vmem:[#allocation14_spill] sm:$0xff] }
 0x18f   : > { %v3113_v38 = vpop.eup %3112  ;;  %v4355_v35 = vmul.f32 %v3111_v18, %v3994_v30  ;;  %3118 = vrcp.f32 %v4289_v32  ;;  %v2763_v28 = vmul.f32 -1.442695, %v4312_v24  ;;  %v4359_v63 = vadd.f32 %v1448_v16, %v1380_v22 }
 0x190   : > { %v3115_v55 = vpop.eup %3114  ;;  %v4361_v5 = vadd.f32 %v1449_v45, %v1381_v48  ;;  %3120 = vrcp.f32 %v4297_v14  ;;  %v2762_v56 = vmul.f32 -1.442695, %v4344_v60  ;;  %v1748_v19 = vmul.f32 %v3514_v37, %v4236_v6 }
 0x191   : > { %v1680_v25 = vadd.f32 %v1648_v8, %v1579_v29  ;;  %982 = vst [vmem:[#allocation2 + $0x1c8] sm:$0xff] %v4355_v35  ;;  %3122 = vrcp.f32 %v4285_v59  ;;  %v2738_v30 = vmul.f32 -1.442695, %v4215_v27  ;;  %v2743_v10 = vmul.f32 -1.442695, %v4218_v26  ;;  %v4380_v59 = vld [vmem:[#allocation2 + $0x191] sm:$0xff] }
 0x192   : > { %v4372_v22 = vadd.f32 %v4278_v20, %v1876_v4  ;;  %v1845_v14 = vmul.f32 %v4231_v1, %v4308_v47  ;;  %3124 = vrcp.f32 %v782_v46  ;;  %v2160_v39 = vadd.f32 %v4271_v54, %v4268_v40  ;;  %v5087_v47 = vld [vmem:[#allocation9_spill] sm:$0xff] }
 0x193   : > { %v1780_v32 = vadd.f32 %v1748_v19, %v1680_v25  ;;  %v3117_v16 = vpop.eup %3116  ;;  %3126 = vpow2.f32 %v2763_v28  ;;  %v1846_v12 = vmul.f32 %v4231_v1, %v1213_v21  ;;  %v2741_v17 = vmul.f32 -1.442695, %v4256_v53 }
 0x194   : > { %5086 = vst [vmem:[#allocation24_spill] sm:$0xff] %v4372_v22  ;;  %3128 = vpow2.f32 %v2762_v56  ;;  %v1877_v4 = vadd.f32 %v1845_v14, %v4318_v3  ;;  %v2744_v23 = vmul.f32 -1.442695, %v4259_v31  ;;  %v2742_v2 = vmul.f32 -1.442695, %v4265_v52 }
 0x195   : > { %v4388_v0 = vmul.f32 %v3105_v49, %v5087_v47  ;;  %v1847_v54 = vmul.f32 %v4231_v1, %v4374_v34  ;;  %v1878_v58 = vadd.f32 %v1846_v12, %v1778_v11  ;;  %3130 = vpow2.f32 %v2738_v30 }
 0x196   : > { %v2764_v62 = vmul.f32 -1.442695, %v4372_v22  ;;  %v1848_v21 = vmul.f32 %v4231_v1, %v4380_v59  ;;  %3132 = vpow2.f32 %v2743_v10  ;;  %v4398_v18 = vmul.f32 %v4336_v15, %v5089_v7  ;;  %v5099_v7 = vld [vmem:[#allocation21_spill] sm:$0xff] }
 0x197   : > { %5088 = vst [vmem:[#allocation9_spill] sm:$0xff] %v4388_v0  ;;  %v2161_v3 = vadd.f32 %v2160_v39, %v4388_v0  ;;  %v1879_v45 = vadd.f32 %v1847_v54, %v1779_v41  ;;  %3134 = vpow2.f32 %v2741_v17  ;;  %v2040_v49 = vadd.f32 1.0, %v3117_v16 }
 0x198   : > { %5090 = vst [vmem:[#allocation14_spill] sm:$0xff] %v4398_v18  ;;  %v4401_v48 = vadd.f32 %v4278_v20, %v1877_v4  ;;  %3136 = vpow2.f32 %v2744_v23  ;;  %v1880_v11 = vadd.f32 %v1848_v21, %v1780_v32  ;;  %v4404_v46 = vadd.f32 %v4278_v20, %v1878_v58  ;;  %v5097_v21 = vld [vmem:[#allocation19_spill] sm:$0xff] }
 0x199   : > { %3138 = vpow2.f32 %v2742_v2  ;;  %v2162_v8 = vadd.f32 %v2161_v3, %v4398_v18  ;;  %v4408_v29 = vadd.f32 %v4278_v20, %v1879_v45  ;;  %v4411_v41 = vmul.f32 %v3113_v38, %v4116_v61  ;;  %v5100_v45 = vld [vmem:[#allocation4_spill] sm:$0xff] }
 0x19a   : > { %5091 = vst [vmem:[#allocation25_spill] sm:$0xff] %v4401_v48  ;;  %5092 = vst [vmem:[#allocation26_spill] sm:$0xff] %v4404_v46  ;;  %3140 = vpow2.f32 %v2764_v62  ;;  %v2765_v28 = vmul.f32 -1.442695, %v4401_v48  ;;  %v4415_v56 = vadd.f32 %v4278_v20, %v1880_v11  ;;  %v2766_v25 = vmul.f32 -1.442695, %v4404_v46 }
 0x19b   : > { %5093 = vst [vmem:[#allocation27_spill] sm:$0xff] %v4408_v29  ;;  %5094 = vst [vmem:[#allocation28_spill] sm:$0xff] %v4411_v41  ;;  %3142 = vrcp.f32 %v2040_v49  ;;  %v4419_v32 = vmul.f32 %v3115_v55, %v4122_v9  ;;  %v2767_v61 = vmul.f32 -1.442695, %v4408_v29  ;;  %v2163_v16 = vadd.f32 %v2162_v8, %v4411_v41 }
 0x19c   : > { %v3119_v15 = vpop.eup %3118  ;;  %5095 = vst [vmem:[#allocation29_spill] sm:$0xff] %v4415_v56  ;;  %3144 = vpow2.f32 %v2765_v28  ;;  %v2768_v12 = vmul.f32 -1.442695, %v4415_v56  ;;  %v1051_v54 = vmul.f32 %v3475_v50, %v4328_v13  ;;  %v1150_v49 = vmul.f32 %v5100_v45, %v5099_v7 }
 0x19d   : > { %v3121_v19 = vpop.eup %3120  ;;  %5096 = vst [vmem:[#allocation30_spill] sm:$0xff] %v4419_v32  ;;  %3146 = vpow2.f32 %v2766_v25  ;;  %v2164_v23 = vadd.f32 %v2163_v16, %v4419_v32  ;;  %v4438_v3 = vmul.f32 %v3119_v15, %v5097_v21  ;;  %v1151_v28 = vmul.f32 %v5100_v45, %v4236_v6  ;;  %v5102_v16 = vld [vmem:[#allocation20_spill] sm:$0xff] }
 0x19e   : > { %v3123_v30 = vpop.eup %3122  ;;  %3148 = vpow2.f32 %v2767_v61 }
 0x19f   : > { %v3125_v10 = vpop.eup %3124  ;;  %v4422_v14 = vmul.f32 %v3123_v30, %v4050_v43  ;;  %3150 = vpow2.f32 %v2768_v12  ;;  %5098 = vst [vmem:[#allocation19_spill] sm:$0xff] %v4438_v3  ;;  %v1621_v30 = vld [vmem:[#allocation2 + $0x227] sm:$0xff]  ;;  %v2165_v61 = vadd.f32 %v2164_v23, %v4438_v3  ;;  %v4448_v12 = vmul.f32 %v3121_v19, %v5102_v16 }
 0x1a0   : > { %v3127_v38 = vpop.eup %3126  ;;  %v4427_v39 = vmul.f32 %v3125_v10, %v4134_v33  ;;  %v1050_v33 = vmul.f32 %v3475_v50, %v4316_v57  ;;  %v5101_v57 = vld [vmem:[#allocation5_spill] sm:$0xff]  ;;  %v1183_v6 = vadd.f32 %v1151_v28, %v1051_v54  ;;  %v5107_v54 = vld [vmem:[#allocation6_spill] sm:$0xff] }
 0x1a1   : > { %v3129_v17 = vpop.eup %3128  ;;  %980 = vst [vmem:[#allocation2 + $0x1a8] sm:$0xff] %v4422_v14  ;;  %v1250_v25 = vmul.f32 %v5101_v57, %v4374_v34  ;;  %v1622_v10 = vld [vmem:[#allocation2 + $0x22f] sm:$0xff]  ;;  %v2042_v15 = vadd.f32 1.0, %v3127_v38  ;;  %5103 = vst [vmem:[#allocation21_spill] sm:$0xff] %v4448_v12  ;;  %v1251_v23 = vmul.f32 %v5101_v57, %v4380_v59 }
 0x1a2   : > { %v3131_v9 = vpop.eup %3130  ;;  %983 = vst [vmem:[#allocation2 + $0x1d0] sm:$0xff] %v4427_v39  ;;  %v5104_v38 = vld [vmem:[#allocation13_spill] sm:$0xff]  ;;  %v4517_v3 = vmul.f32 %v3512_v36, %v4427_v39  ;;  %v4521_v32 = vmul.f32 %v3514_v37, %v4427_v39 }
 0x1a3   : > { %v3133_v43 = vpop.eup %3132  ;;  %v780_v55 = vadd.f32 1.0, %v3131_v9  ;;  %v1821_v9 = vld [vmem:[#allocation2 + $0x229] sm:$0xff]  ;;  %v4458_v19 = vmul.f32 %v5104_v38, %v3514_v37 }
 0x1a4   : > { %v3135_v4 = vpop.eup %3134  ;;  %v785_v2 = vadd.f32 1.0, %v3133_v43  ;;  %v1822_v43 = vld [vmem:[#allocation2 + $0x231] sm:$0xff] }
 0x1a5   : > { %v3137_v47 = vpop.eup %3136  ;;  %3152 = vrcp.f32 %v780_v55  ;;  %v783_v58 = vadd.f32 1.0, %v3135_v4  ;;  %v2041_v4 = vadd.f32 1.0, %v3129_v17  ;;  %v4463_v17 = vmul.f32 %v4231_v1, %v1821_v9 }
 0x1a6   : > { %v3139_v62 = vpop.eup %3138  ;;  %3154 = vrcp.f32 %v785_v2  ;;  %v786_v11 = vadd.f32 1.0, %v3137_v47  ;;  %v1182_v2 = vadd.f32 %v1150_v49, %v1050_v33  ;;  %v1018_v47 = vld [vmem:[#allocation2 + $0x1c7] sm:$0xff]  ;;  %v4466_v33 = vmul.f32 %v4231_v1, %v1822_v43 }
 0x1a7   : > { %v3141_v8 = vpop.eup %3140  ;;  %3156 = vrcp.f32 %v783_v58  ;;  %v784_v13 = vadd.f32 1.0, %v3139_v62  ;;  %v4451_v58 = vmul.f32 %v3521_v44, %v1621_v30  ;;  %v4454_v62 = vmul.f32 %v3521_v44, %v1622_v10  ;;  %5105 = vst [vmem:[#allocation4_spill] sm:$0xff] %v4463_v17 }
 0x1a8   : > { %3158 = vrcp.f32 %v786_v11  ;;  %v3143_v55 = vpop.eup %3142  ;;  %v2043_v21 = vadd.f32 1.0, %v3141_v8  ;;  %v1282_v7 = vadd.f32 %v1250_v25, %v1182_v2  ;;  %5106 = vst [vmem:[#allocation5_spill] sm:$0xff] %v4466_v33  ;;  %v2166_v11 = vadd.f32 %v2165_v61, %v4448_v12  ;;  %v1016_v10 = vld [vmem:[#allocation2 + $0x1a7] sm:$0xff] }
 0x1a9   : > { %3160 = vrcp.f32 %v784_v13  ;;  %v4469_v49 = vmul.f32 %v3143_v55, %v5107_v54  ;;  %v1054_v8 = vmul.f32 %v3475_v50, %v1018_v47  ;;  %v3145_v28 = vpop.eup %3144  ;;  %v4473_v13 = vadd.f32 %v1251_v23, %v1183_v6  ;;  %v1019_v43 = vld [vmem:[#allocation2 + $0x1cf] sm:$0xff] }
 0x1aa   : > { %3162 = vrcp.f32 %v2042_v15  ;;  %v1548_v25 = vmul.f32 %v3524_v51, %v4374_v34  ;;  %v1549_v30 = vmul.f32 %v3524_v51, %v4380_v59  ;;  %v3147_v16 = vpop.eup %3146  ;;  %v1154_v15 = vmul.f32 %v5100_v45, %v4355_v35  ;;  %v1218_v23 = vld [vmem:[#allocation2 + $0x1c9] sm:$0xff] }
 0x1ab   : > { %5108 = vst [vmem:[#allocation20_spill] sm:$0xff] %v4469_v49  ;;  %3164 = vrcp.f32 %v2041_v4  ;;  %v4483_v61 = vmul.f32 %v3512_v36, %v4355_v35  ;;  %v4487_v9 = vmul.f32 %v3514_v37, %v4355_v35  ;;  %v4490_v34 = vmul.f32 %v3519_v42, %v1018_v47  ;;  %v3149_v2 = vpop.eup %3148 }
 0x1ac   : > { %3166 = vrcp.f32 %v2043_v21  ;;  %v4493_v59 = vmul.f32 %v3521_v44, %v1018_v47  ;;  %v1580_v55 = vadd.f32 %v1548_v25, %v4359_v63  ;;  %v4497_v4 = vadd.f32 %v1549_v30, %v4361_v5  ;;  %v3151_v54 = vpop.eup %3150 }
 0x1ad   : > { %v4500_v6 = vadd.f32 %v2166_v11, %v4469_v49  ;;  %v2044_v21 = vadd.f32 1.0, %v3145_v28  ;;  %v1186_v38 = vadd.f32 %v1154_v15, %v1054_v8  ;;  %v1350_v35 = vmul.f32 %v3519_v42, %v1016_v10  ;;  %v1219_v15 = vld [vmem:[#allocation2 + $0x1d1] sm:$0xff] }
 0x1ae   : > { %v2045_v12 = vadd.f32 1.0, %v3147_v16  ;;  %v1152_v47 = vmul.f32 %v5100_v45, %v4422_v14  ;;  %v1450_v63 = vmul.f32 %v3512_v36, %v4422_v14  ;;  %v1055_v5 = vmul.f32 %v3475_v50, %v1019_v43 }
 0x1af   : > { %5109 = vst [vmem:[#allocation13_spill] sm:$0xff] %v4500_v6  ;;  %v1052_v30 = vmul.f32 %v3475_v50, %v1016_v10  ;;  %v1649_v11 = vmul.f32 %v3521_v44, %v1016_v10  ;;  %v1749_v8 = vmul.f32 %v3514_v37, %v4422_v14  ;;  %v1155_v28 = vmul.f32 %v5100_v45, %v4427_v39 }
 0x1b0   : > { %v1254_v49 = vmul.f32 %v5101_v57, %v1218_v23  ;;  %3168 = vrcp.f32 %v2044_v21  ;;  %v1382_v14 = vadd.f32 %v1350_v35, %v1282_v7  ;;  %v4526_v46 = vadd.f32 1.0, %v3149_v2 }
 0x1b1   : > { %v1681_v18 = vadd.f32 %v1649_v11, %v1580_v55  ;;  %3170 = vrcp.f32 %v2045_v12  ;;  %v1187_v56 = vadd.f32 %v1155_v28, %v1055_v5  ;;  %v1184_v22 = vadd.f32 %v1152_v47, %v1052_v30 }
 0x1b2   : > { %v3153_v25 = vpop.eup %3152  ;;  %5110 = vst [vmem:[#allocation6_spill] sm:$0xff] %v4526_v46  ;;  %v1255_v39 = vmul.f32 %v5101_v57, %v1219_v15  ;;  %v4533_v55 = vadd.f32 %v1254_v49, %v1186_v38  ;;  %v4539_v12 = vmul.f32 %v3524_v51, %v1219_v15  ;;  %v4543_v21 = vmul.f32 %v3521_v44, %v1019_v43 }
 0x1b3   : > { %v3155_v16 = vpop.eup %3154  ;;  %v876_v10 = vmul.f32 %v3153_v25, %v4215_v27  ;;  %v4530_v27 = vmul.f32 %v3519_v42, %v1019_v43  ;;  %v1781_v2 = vadd.f32 %v1749_v8, %v1681_v18  ;;  %v4546_v35 = vmul.f32 %v4231_v1, %v1218_v23 }
 0x1b4   : > { %v3157_v41 = vpop.eup %3156  ;;  %v881_v0 = vmul.f32 %v3155_v16, %v4218_v26  ;;  %v4536_v26 = vmul.f32 %v3524_v51, %v1218_v23  ;;  %v4553_v49 = vmul.f32 %v4231_v1, %v1219_v15 }
 0x1b5   : > { %v3159_v40 = vpop.eup %3158  ;;  %981 = vst [vmem:[#allocation2 + $0x1b0] sm:$0xff] %v876_v10  ;;  %v879_v29 = vmul.f32 %v3157_v41, %v4256_v53  ;;  %v1482_v41 = vadd.f32 %v1450_v63, %v1382_v14  ;;  %v1153_v38 = vmul.f32 %v5100_v45, %v876_v10  ;;  %v1750_v43 = vmul.f32 %v3514_v37, %v876_v10 }
 0x1b6   : > { %v3161_v48 = vpop.eup %3160  ;;  %986 = vst [vmem:[#allocation2 + $0x208] sm:$0xff] %v881_v0  ;;  %v882_v7 = vmul.f32 %v3159_v40, %v4259_v31  ;;  %v4550_v40 = vadd.f32 %v1255_v39, %v1187_v56  ;;  %5112 = vst [vmem:[#allocation32_spill] sm:$0xff] %v4553_v49  ;;  %v4563_v23 = vmul.f32 %v3512_v36, %v881_v0 }
 0x1b7   : > { %984 = vst [vmem:[#allocation2 + $0x1e8] sm:$0xff] %v879_v29  ;;  %v880_v53 = vmul.f32 %v3161_v48, %v4265_v52  ;;  %v4548_v31 = vpop.eup %3162  ;;  %v4556_v52 = vadd.f32 1.0, %v3151_v54  ;;  %v1451_v48 = vmul.f32 %v3512_v36, %v876_v10  ;;  %v4566_v56 = vmul.f32 %v3514_v37, %v881_v0 }
 0x1b8   : > { %987 = vst [vmem:[#allocation2 + $0x210] sm:$0xff] %v882_v7  ;;  %5111 = vst [vmem:[#allocation31_spill] sm:$0xff] %v4548_v31  ;;  %v4558_v18 = vpop.eup %3164  ;;  %v1156_v63 = vmul.f32 %v5100_v45, %v879_v29  ;;  %v1454_v5 = vmul.f32 %v3512_v36, %v879_v29  ;;  %v4573_v54 = vmul.f32 %v3514_v37, %v879_v29 }
 0x1b9   : > { %985 = vst [vmem:[#allocation2 + $0x1f0] sm:$0xff] %v880_v53  ;;  %5113 = vst [vmem:[#allocation33_spill] sm:$0xff] %v4556_v52  ;;  %v4568_v47 = vpop.eup %3166  ;;  %v4576_v25 = vmul.f32 %v3512_v36, %v882_v7  ;;  %v1157_v28 = vmul.f32 %v5100_v45, %v880_v53  ;;  %v1455_v0 = vmul.f32 %v3512_v36, %v880_v53 }
 0x1ba   : > { %5114 = vst [vmem:[#allocation34_spill] sm:$0xff] %v4558_v18  ;;  %5115 = vst [vmem:[#allocation35_spill] sm:$0xff] %v4568_v47  ;;  %v4581_v16 = vmul.f32 %v3514_v37, %v880_v53  ;;  %v4584_v15 = vmul.f32 %v3514_v37, %v882_v7 }
 0x1bc   : > { %v1017_v30 = vld [vmem:[#allocation2 + $0x1af] sm:$0xff] }
 0x1bd   : > { %v1216_v11 = vld [vmem:[#allocation2 + $0x1a9] sm:$0xff]  ;;  %v1217_v8 = vld [vmem:[#allocation2 + $0x1b1] sm:$0xff]  ;;  %v1053_v10 = vmul.f32 %v3475_v50, %v1017_v30  ;;  %v1351_v39 = vmul.f32 %v3519_v42, %v1017_v30  ;;  %v1650_v36 = vmul.f32 %v3521_v44, %v1017_v30  ;;  %v4600_v17 = vpop.eup %3168 }
 0x1be   : > { %v1252_v29 = vmul.f32 %v5101_v57, %v1216_v11  ;;  %v1253_v14 = vmul.f32 %v5101_v57, %v1217_v8  ;;  %v1320_v47 = vld [vmem:[#allocation2 + $0x207] sm:$0xff]  ;;  %v1550_v31 = vmul.f32 %v3524_v51, %v1216_v11  ;;  %v1551_v45 = vmul.f32 %v3524_v51, %v1217_v8 }
 0x1bf   : > { %v1849_v53 = vmul.f32 %v4231_v1, %v1216_v11  ;;  %v1020_v24 = vld [vmem:[#allocation2 + $0x1e7] sm:$0xff]  ;;  %v1185_v37 = vadd.f32 %v1153_v38, %v1053_v10  ;;  %v1383_v6 = vadd.f32 %v1351_v39, %v4473_v13  ;;  %v1850_v18 = vmul.f32 %v4231_v1, %v1217_v8  ;;  %v4604_v10 = vpop.eup %3170  ;;  %v1321_v39 = vld [vmem:[#allocation2 + $0x20f] sm:$0xff] }
 0x1c0   : > { %v1284_v7 = vadd.f32 %v1252_v29, %v1184_v22  ;;  %v1582_v60 = vadd.f32 %v1550_v31, %v1482_v41  ;;  %v1682_v52 = vadd.f32 %v1650_v36, %v4497_v4  ;;  %v1356_v46 = vmul.f32 %v3519_v42, %v1320_v47  ;;  %v1021_v20 = vld [vmem:[#allocation2 + $0x1ef] sm:$0xff] }
 0x1c1   : > { %v4597_v33 = vadd.f32 %v1849_v53, %v1781_v2  ;;  %v1285_v30 = vadd.f32 %v1253_v14, %v1185_v37  ;;  %v1483_v49 = vadd.f32 %v1451_v48, %v1383_v6  ;;  %v1056_v22 = vmul.f32 %v3475_v50, %v1020_v24  ;;  %v1220_v38 = vld [vmem:[#allocation2 + $0x1e9] sm:$0xff]  ;;  %v1221_v13 = vld [vmem:[#allocation2 + $0x1f1] sm:$0xff] }
 0x1c2   : > { %v1384_v11 = vadd.f32 %v4490_v34, %v1284_v7  ;;  %v1683_v41 = vadd.f32 %v4493_v59, %v1582_v60  ;;  %v1782_v4 = vadd.f32 %v1750_v43, %v1682_v52  ;;  %v1354_v2 = vmul.f32 %v3519_v42, %v1020_v24 }
 0x1c3   : > { %v1653_v31 = vmul.f32 %v3521_v44, %v1020_v24  ;;  %v1385_v8 = vadd.f32 %v4530_v27, %v1285_v30  ;;  %v1583_v29 = vadd.f32 %v1551_v45, %v1483_v49  ;;  %v1188_v14 = vadd.f32 %v1156_v63, %v1056_v22  ;;  %v1520_v27 = vld [vmem:[#allocation2 + $0x209] sm:$0xff]  ;;  %v1521_v49 = vld [vmem:[#allocation2 + $0x211] sm:$0xff] }
 0x1c4   : > { %v1057_v34 = vmul.f32 %v3475_v50, %v1021_v20  ;;  %v1882_v6 = vadd.f32 %v1850_v18, %v1782_v4  ;;  %v1386_v48 = vadd.f32 %v1354_v2, %v4533_v55  ;;  %v1256_v36 = vmul.f32 %v5101_v57, %v1220_v38 }
 0x1c5   : > { %v1257_v53 = vmul.f32 %v5101_v57, %v1221_v13  ;;  %v1355_v60 = vmul.f32 %v3519_v42, %v1021_v20  ;;  %v1554_v59 = vmul.f32 %v3524_v51, %v1220_v38  ;;  %v1654_v24 = vmul.f32 %v3521_v44, %v1021_v20 }
 0x1c6   : > { %v1189_v52 = vadd.f32 %v1157_v28, %v1057_v34  ;;  %v1288_v43 = vadd.f32 %v1256_v36, %v1188_v14  ;;  %v1357_v63 = vmul.f32 %v3519_v42, %v1321_v39  ;;  %v1484_v50 = vadd.f32 %v4483_v61, %v1384_v11 }
 0x1c7   : > { %v1485_v55 = vadd.f32 %v4517_v3, %v1385_v8  ;;  %v1387_v45 = vadd.f32 %v1355_v60, %v4550_v40  ;;  %v1486_v57 = vadd.f32 %v1454_v5, %v1386_v48  ;;  %v1555_v37 = vmul.f32 %v3524_v51, %v1221_v13  ;;  %v5117_v60 = vld [vmem:[#allocation4_spill] sm:$0xff] }
 0x1c8   : > { %v1289_v18 = vadd.f32 %v1257_v53, %v1189_v52  ;;  %v1388_v7 = vadd.f32 %v1356_v46, %v1288_v43  ;;  %v1556_v30 = vmul.f32 %v3524_v51, %v1520_v27  ;;  %v1557_v20 = vmul.f32 %v3524_v51, %v1521_v49 }
 0x1c9   : > { %v1584_v28 = vadd.f32 %v4536_v26, %v1484_v50  ;;  %v1487_v4 = vadd.f32 %v1455_v0, %v1387_v45  ;;  %v1585_v42 = vadd.f32 %v4539_v12, %v1485_v55  ;;  %v1586_v61 = vadd.f32 %v1554_v59, %v1486_v57  ;;  %v5122_v57 = vld [vmem:[#allocation23_spill] sm:$0xff] }
 0x1ca   : > { %v1389_v22 = vadd.f32 %v1357_v63, %v1289_v18  ;;  %v1488_v3 = vadd.f32 %v4563_v23, %v1388_v7  ;;  %v1655_v11 = vmul.f32 %v3521_v44, %v1320_v47  ;;  %v1656_v40 = vmul.f32 %v3521_v44, %v1321_v39  ;;  %v5116_v39 = vld [vmem:[#allocation32_spill] sm:$0xff]  ;;  %v5121_v63 = vld [vmem:[#allocation33_spill] sm:$0xff] }
 0x1cb   : > { %v1684_v5 = vadd.f32 %v4543_v21, %v1583_v29  ;;  %v1587_v2 = vadd.f32 %v1555_v37, %v1487_v4  ;;  %v1685_v8 = vadd.f32 %v1653_v31, %v1584_v28  ;;  %v1686_v51 = vadd.f32 %v1654_v24, %v1585_v42  ;;  %v5123_v37 = vld [vmem:[#allocation34_spill] sm:$0xff] }
 0x1cc   : > { %v1489_v46 = vadd.f32 %v4576_v25, %v1389_v22  ;;  %v1588_v14 = vadd.f32 %v1556_v30, %v1488_v3  ;;  %v1687_v26 = vadd.f32 %v1655_v11, %v1586_v61  ;;  %v1783_v0 = vadd.f32 %v4487_v9, %v1683_v41  ;;  %v5124_v61 = vld [vmem:[#allocation13_spill] sm:$0xff] }
 0x1cd   : > { %v1784_v12 = vadd.f32 %v4521_v32, %v1684_v5  ;;  %v1688_v48 = vadd.f32 %v1656_v40, %v1587_v2  ;;  %v1785_v23 = vadd.f32 %v4573_v54, %v1685_v8  ;;  %v1786_v47 = vadd.f32 %v4581_v16, %v1686_v51  ;;  %v5125_v40 = vld [vmem:[#allocation8_spill] sm:$0xff]  ;;  %v5126_v5 = vld [vmem:[#allocation31_spill] sm:$0xff] }
 0x1ce   : > { %v1589_v34 = vadd.f32 %v1557_v20, %v1489_v46  ;;  %v1689_v44 = vadd.f32 %v4451_v58, %v1588_v14  ;;  %v1787_v21 = vadd.f32 %v4566_v56, %v1687_v26  ;;  %v1853_v25 = vmul.f32 %v4231_v1, %v1220_v38  ;;  %v5127_v51 = vld [vmem:[#allocation24_spill] sm:$0xff]  ;;  %v5128_v14 = vld [vmem:[#allocation35_spill] sm:$0xff] }
 0x1cf   : > { %v1854_v31 = vmul.f32 %v4231_v1, %v1221_v13  ;;  %v1788_v9 = vadd.f32 %v4584_v15, %v1688_v48  ;;  %v1855_v32 = vmul.f32 %v4231_v1, %v1520_v27  ;;  %v1856_v41 = vmul.f32 %v4231_v1, %v1521_v49  ;;  %v5118_v15 = vld [vmem:[#allocation15_spill] sm:$0xff]  ;;  %v5119_v27 = vld [vmem:[#allocation6_spill] sm:$0xff]  ;;  %v5120_v49 = vld [vmem:[#allocation5_spill] sm:$0xff] }
 0x1d0   : > { %v1690_v29 = vadd.f32 %v4454_v62, %v1589_v34  ;;  %v1789_v54 = vadd.f32 %v4458_v19, %v1689_v44  ;;  %v1883_v16 = vadd.f32 %v4546_v35, %v1783_v0  ;;  %v1884_v58 = vadd.f32 %v5116_v39, %v1784_v12  ;;  %v5129_v34 = vld [vmem:[#allocation25_spill] sm:$0xff] }
 0x1d1   : > { %v1885_v36 = vadd.f32 %v1853_v25, %v1785_v23  ;;  %v1886_v38 = vadd.f32 %v1854_v31, %v1786_v47  ;;  %v1887_v53 = vadd.f32 %v1855_v32, %v1787_v21  ;;  %v1888_v13 = vadd.f32 %v1856_v41, %v1788_v9  ;;  %v5130_v9 = vld [vmem:[#allocation26_spill] sm:$0xff] }
 0x1d2   : > { %v1790_v56 = vadd.f32 %v4458_v19, %v1690_v29  ;;  %v1889_v62 = vadd.f32 %v5117_v60, %v1789_v54  ;;  %v4650_v59 = vadd.f32 %v5118_v15, %v4597_v33  ;;  %v4653_v1 = vadd.f32 %v5118_v15, %v1882_v6 }
 0x1d3   : > { %v4656_v24 = vadd.f32 %v5118_v15, %v1883_v16  ;;  %v4659_v35 = vadd.f32 %v5118_v15, %v1884_v58  ;;  %v4662_v19 = vadd.f32 %v5118_v15, %v1885_v36  ;;  %v4665_v52 = vadd.f32 %v5118_v15, %v1886_v38 }
 0x1d4   : > { %3172 = vrcp.f32 %v5119_v27  ;;  %v1890_v33 = vadd.f32 %v5120_v49, %v1790_v56  ;;  %v4670_v43 = vadd.f32 %v5118_v15, %v1887_v53  ;;  %v2769_v6 = vmul.f32 -1.442695, %v4650_v59 }
 0x1d5   : > { %3174 = vrcp.f32 %v5121_v63  ;;  %v4675_v50 = vadd.f32 %v5118_v15, %v1888_v13  ;;  %v2770_v55 = vmul.f32 -1.442695, %v4653_v1  ;;  %v2771_v18 = vmul.f32 -1.442695, %v4656_v24 }
 0x1d6   : > { %v2772_v45 = vmul.f32 -1.442695, %v4659_v35  ;;  %v4682_v7 = vmul.f32 %v5123_v37, %v5122_v57  ;;  %v4685_v30 = vadd.f32 %v5118_v15, %v1889_v62  ;;  %3176 = vpow2.f32 %v2769_v6  ;;  %v5131_v62 = vld [vmem:[#allocation27_spill] sm:$0xff] }
 0x1d7   : > { %v2773_v20 = vmul.f32 -1.442695, %v4662_v19  ;;  %3178 = vpow2.f32 %v2770_v55  ;;  %v2774_v28 = vmul.f32 -1.442695, %v4665_v52  ;;  %v4690_v22 = vadd.f32 %v5118_v15, %v1890_v33  ;;  %v5132_v33 = vld [vmem:[#allocation29_spill] sm:$0xff] }
 0x1d8   : > { %3180 = vpow2.f32 %v2771_v18  ;;  %v2775_v4 = vmul.f32 -1.442695, %v4670_v43  ;;  %v2776_v42 = vmul.f32 -1.442695, %v4675_v50  ;;  %v2168_v3 = vadd.f32 %v5124_v61, %v4682_v7 }
 0x1d9   : > { %3182 = vpow2.f32 %v2772_v45  ;;  %v2777_v11 = vmul.f32 -1.442695, %v4685_v30  ;;  %v4699_v46 = vmul.f32 %v5126_v5, %v5125_v40  ;;  %v2778_v2 = vmul.f32 -1.442695, %v4690_v22 }
 0x1da   : > { %3184 = vpow2.f32 %v2773_v20  ;;  %v4705_v26 = vmul.f32 %v5128_v14, %v5127_v51  ;;  %v4709_v48 = vmul.f32 %v4600_v17, %v5129_v34  ;;  %v4714_v32 = vmul.f32 %v4604_v10, %v5130_v9 }
 0x1db   : > { %3186 = vpow2.f32 %v2774_v28  ;;  %v2169_v8 = vadd.f32 %v2168_v3, %v4699_v46 }
 0x1dc   : > { %3188 = vpow2.f32 %v2775_v4 }
 0x1dd   : > { %3190 = vpow2.f32 %v2776_v42  ;;  %v2170_v23 = vadd.f32 %v2169_v8, %v4705_v26 }
 0x1de   : > { %3192 = vpow2.f32 %v2777_v11 }
 0x1df   : > { %3194 = vpow2.f32 %v2778_v2  ;;  %v2171_v54 = vadd.f32 %v2170_v23, %v4709_v48 }
 0x1e1   : > { %v3173_v0 = vpop.eup %3172  ;;  %v2172_v53 = vadd.f32 %v2171_v54, %v4714_v32 }
 0x1e2   : > { %v3175_v12 = vpop.eup %3174  ;;  %v4719_v15 = vmul.f32 %v3173_v0, %v5131_v62 }
 0x1e3   : > { %v3177_v47 = vpop.eup %3176  ;;  %v4722_v6 = vmul.f32 %v3175_v12, %v5132_v33 }
 0x1e4   : > { %v3179_v44 = vpop.eup %3178  ;;  %v2048_v21 = vadd.f32 1.0, %v3177_v47  ;;  %v2173_v63 = vadd.f32 %v2172_v53, %v4719_v15 }
 0x1e5   : > { %v3181_v25 = vpop.eup %3180  ;;  %v2049_v31 = vadd.f32 1.0, %v3179_v44 }
 0x1e6   : > { %v3183_v29 = vpop.eup %3182  ;;  %v2050_v41 = vadd.f32 1.0, %v3181_v25  ;;  %3196 = vrcp.f32 %v2048_v21  ;;  %v2174_v18 = vadd.f32 %v2173_v63, %v4722_v6  ;;  %v2390_v63 = vld [vmem:[%s5010_s9 + $0x70] sm:$0xff] }
 0x1e7   : > { %v3185_v16 = vpop.eup %3184  ;;  %v2051_v39 = vadd.f32 1.0, %v3183_v29  ;;  %3198 = vrcp.f32 %v2049_v31 }
 0x1e8   : > { %v3187_v17 = vpop.eup %3186  ;;  %v2052_v58 = vadd.f32 1.0, %v3185_v16  ;;  %3200 = vrcp.f32 %v2050_v41  ;;  %v3228_v16 = vld [vmem:[#allocation2 + $0x40] sm:$0xff] }
 0x1e9   : > { %v3189_v36 = vpop.eup %3188  ;;  %v2053_v56 = vadd.f32 1.0, %v3187_v17  ;;  %3202 = vrcp.f32 %v2051_v39 }
 0x1ea   : > { %v3191_v38 = vpop.eup %3190  ;;  %3204 = vrcp.f32 %v2052_v58  ;;  %v2054_v10 = vadd.f32 1.0, %v3189_v36  ;;  %v2218_v58 = vld [vmem:[%s5007_s6] sm:$0x1] }
 0x1eb   : > { %v3193_v13 = vpop.eup %3192  ;;  %v2055_v60 = vadd.f32 1.0, %v3191_v38  ;;  %3206 = vrcp.f32 %v2053_v56 }
 0x1ec   : > { %v3195_v27 = vpop.eup %3194  ;;  %v2056_v49 = vadd.f32 1.0, %v3193_v13  ;;  %3208 = vrcp.f32 %v2054_v10 }
 0x1ed   : > { %v2057_v55 = vadd.f32 1.0, %v3195_v27  ;;  %3210 = vrcp.f32 %v2055_v60 }
 0x1ee   : > { %3212 = vrcp.f32 %v2056_v49 }
 0x1ef   : > { %3214 = vrcp.f32 %v2057_v55  ;;  %v2391_v55 = vld [vmem:[%s5010_s9 + $0x78] sm:$0xff] }
 0x1f3   : > { %v3197_v45 = vpop.eup %3196 }
 0x1f4   : > { %v3199_v57 = vpop.eup %3198  ;;  %v4727_v37 = vmul.f32 %v3197_v45, %v4650_v59  ;;  %v2388_v45 = vld [vmem:[%s5010_s9 + $0x60] sm:$0xff] }
 0x1f5   : > { %v3201_v20 = vpop.eup %3200  ;;  %v4730_v28 = vmul.f32 %v3199_v57, %v4653_v1  ;;  %v2389_v57 = vld [vmem:[%s5010_s9 + $0x68] sm:$0xff] }
 0x1f6   : > { %v3203_v4 = vpop.eup %3202  ;;  %v2175_v42 = vadd.f32 %v2174_v18, %v4727_v37  ;;  %v4734_v3 = vmul.f32 %v3201_v20, %v4656_v24  ;;  %v2399_v18 = vpack.c.bf16 %v2391_v55, %v2390_v63  ;;  %v2398_v20 = vpack.c.bf16 %v2389_v57, %v2388_v45  ;;  %v5140_v63 = vld [vmem:[#allocation22_spill] sm:$0xff] }
 0x1f7   : > { %v3205_v61 = vpop.eup %3204  ;;  %v4737_v11 = vmul.f32 %v3203_v4, %v4659_v35  ;;  %v2386_v4 = vld [vmem:[%s5010_s9 + $0x50] sm:$0xff] }
 0x1f8   : > { %v2176_v40 = vadd.f32 %v2175_v42, %v4730_v28  ;;  %v3207_v5 = vpop.eup %3206  ;;  %v4741_v59 = vmul.f32 %v3205_v61, %v4662_v19  ;;  %2902 = vmatprep.subr.bf16.mxu0 %v2399_v18  ;;  %v2387_v42 = vld [vmem:[%s5010_s9 + $0x58] sm:$0xff] }
 0x1f9   : > { %v3209_v1 = vpop.eup %3208  ;;  %v4745_v8 = vmul.f32 %v3207_v5, %v4665_v52  ;;  %2903 = vmatpush3.bf16.msra.mxu0 %v2399_v18  ;;  %v2397_v61 = vpack.c.bf16 %v2387_v42, %v2386_v4  ;;  %v2385_v5 = vld [vmem:[%s5010_s9 + $0x48] sm:$0xff] }
 0x1fa   : > { %v2177_v2 = vadd.f32 %v2176_v40, %v4734_v3  ;;  %v3211_v14 = vpop.eup %3210  ;;  %v4750_v35 = vmul.f32 %v3209_v1, %v4670_v43  ;;  %2904 = vmatprep.subr.bf16.mxu0 %v2398_v20  ;;  %v2384_v40 = vld [vmem:[%s5010_s9 + $0x40] sm:$0xff]  ;;  %v2382_v1 = vld [vmem:[%s5010_s9 + $0x30] sm:$0xff]  ;;  %v5142_v42 = vld [vmem:[#allocation12_spill] sm:$0xff] }
 0x1fb   : > { %v3213_v0 = vpop.eup %3212  ;;  %v4753_v12 = vmul.f32 %v3211_v14, %v4675_v50 }
 0x1fc   : > { %v2178_v51 = vadd.f32 %v2177_v2, %v4737_v11  ;;  %v3215_v34 = vpop.eup %3214  ;;  %v4757_v23 = vmul.f32 %v3213_v0, %v4685_v30  ;;  %v2396_v2 = vpack.c.bf16 %v2385_v5, %v2384_v40  ;;  %v2381_v0 = vld [vmem:[%s5010_s9 + $0x28] sm:$0xff]  ;;  %v5143_v40 = vld [vmem:[#allocation9_spill] sm:$0xff] }
 0x1fd   : > { %v4761_v47 = vmul.f32 %v3215_v34, %v4690_v22  ;;  %v2267_v22 = vld [vmem:[%s5008_s7] sm:$0xff]  ;;  %2905 = vmatpush3.bf16.msra.mxu0 %v2398_v20  ;;  %v2378_v34 = vld [vmem:[%s5010_s9 + $0x10] sm:$0xff] }
 0x1fe   : > { %v2179_v24 = vadd.f32 %v2178_v51, %v4741_v59  ;;  %v2268_v39 = vpack.c.bf16 %v2267_v22, %v2267_v22  ;;  %2906 = vmatprep.subr.bf16.mxu0 %v2397_v61  ;;  %v2383_v51 = vld [vmem:[%s5010_s9 + $0x38] sm:$0xff]  ;;  %v5141_v20 = vld [vmem:[#allocation7_spill] sm:$0xff] }
 0x1ff   : > { %v2395_v14 = vpack.c.bf16 %v2383_v51, %v2382_v1 }
 0x200   : > { %v2180_v19 = vadd.f32 %v2179_v24, %v4745_v8  ;;  %v2276_v17 = vsel %vm2274_vm2, %v2268_v39, 0  ;;  %v2380_v24 = vld [vmem:[%s5010_s9 + $0x20] sm:$0xff] }
 0x201   : > { %2907 = vmatpush3.bf16.msra.mxu0 %v2397_v61 }
 0x202   : > { %v2181_v52 = vadd.f32 %v2180_v19, %v4750_v35  ;;  %2908 = vmatprep.subr.bf16.mxu0 %v2396_v2  ;;  %v2394_v19 = vpack.c.bf16 %v2381_v0, %v2380_v24  ;;  %v5145_v24 = vld [vmem:[#allocation28_spill] sm:$0xff] }
 0x204   : > { %v2182_v44 = vadd.f32 %v2181_v52, %v4753_v12  ;;  %v2379_v52 = vld [vmem:[%s5010_s9 + $0x18] sm:$0xff] }
 0x205   : > { %2909 = vmatpush3.bf16.msra.mxu0 %v2396_v2  ;;  %v5144_v2 = vld [vmem:[#allocation14_spill] sm:$0xff] }
 0x206   : > { %v2183_v21 = vadd.f32 %v2182_v44, %v4757_v23  ;;  %2910 = vmatprep.subr.bf16.mxu0 %v2395_v14  ;;  %v2393_v44 = vpack.c.bf16 %v2379_v52, %v2378_v34  ;;  %v5147_v52 = vld [vmem:[#allocation19_spill] sm:$0xff] }
 0x208   : > { %v2184_v43 = vadd.f32 %v2183_v21, %v4761_v47  ;;  %v2376_v21 = vld [vmem:[%s5010_s9] sm:$0xff] }
 0x209   : > { %2911 = vmatpush3.bf16.msra.mxu0 %v2395_v14 }
 0x20a   : > { %v2185_v25 = vrot.slane %v2184_v43, 4  ;;  %2912 = vmatprep.subr.bf16.mxu0 %v2394_v19 }
 0x20c   : > { %v2186_v50 = vadd.f32 %v2185_v25, %v2184_v43  ;;  %v2377_v43 = vld [vmem:[%s5010_s9 + $0x8] sm:$0xff] }
 0x20d   : > { %2913 = vmatpush3.bf16.msra.mxu0 %v2394_v19  ;;  %v2392_v25 = vpack.c.bf16 %v2377_v43, %v2376_v21  ;;  %v5146_v19 = vld [vmem:[#allocation30_spill] sm:$0xff]  ;;  %v5148_v21 = vld [vmem:[#allocation21_spill] sm:$0xff] }
 0x20e   : > { %v2187_v31 = vrot.slane %v2186_v50, 2  ;;  %2914 = vmatprep.subr.bf16.mxu0 %v2393_v44 }
 0x210   : > { %v2188_v29 = vadd.f32 %v2187_v31, %v2186_v50  ;;  %v2269_v50 = vld [vmem:[%s5009_s8] sm:$0x1] }
 0x211   : > { %2915 = vmatpush3.bf16.msra.mxu0 %v2393_v44 }
 0x212   : > { %v2189_v9 = vrot.slane %v2188_v29, 1  ;;  %2916 = vmatprep.subr.bf16.mxu0 %v2392_v25 }
 0x214   : > { %v2190_v41 = vadd.f32 %v2189_v9, %v2188_v29 }
 0x215   : > { %2917 = vmatpush3.bf16.msra.mxu0 %v2392_v25 }
 0x216   : > { %v2192_v54 = vmul.f32 0.00390625, %v2190_v41 }
 0x218   : > { %v2193_v30 = vpack.c.bf16 %v2192_v54, %v2192_v54 }
 0x21a   : > { %2893 = vmatmul.mubr.bf16.vlgmr.msra.gmra.mxu1 %v2193_v30 }
 0x21b   : > { %2898 = vmatprep.mubr.msk.bf16.mxu1 %vm3270_vm1, %v3228_v16  ;;  %2897 = vmatpush3.bf16.msra.mxu1 %v2276_v17  ;;  %v5133_v17 = vld [vmem:[#allocation3_spill] sm:$0xff] }
 0x2da   : > { %v2253_v36 = vpop.f32.mrf.mxu1 }
 0x2db   : > { %v2254_v56 = vadd.f32 %v2253_v36, %v2218_v58  ;;  %v5134_v58 = vsub.s32 0, %v5133_v17 }
 0x2dc   : > { %v2894_v38 = vpop.f32.mrf.mxu1 }
 0x2dd   : > { %v2779_v53 = vmul.f32 -1.442695, %v2254_v56 }
 0x2de   : > { %v2256_v13 = vpop.f32.mrf.mxu1 }
 0x2df   : > { %3216 = vpow2.f32 %v2779_v53  ;;  %v5136_v53 = vld [vmem:[#allocation11_spill] sm:$0xff] }
 0x2e0   : > { %v2895_v10 = vpop.f32.mrf.mxu1 }
 0x2e1   : > { %v5137_v10 = vld [vmem:[#allocation16_spill] sm:$0xff] }
 0x2ec   : > { %v3217_v60 = vpop.eup %3216 }
 0x2ed   : > { %v2262_v62 = vadd.f32 1.0, %v3217_v60 }
 0x2ef   : > { %3218 = vrcp.f32 %v2262_v62  ;;  %v5138_v62 = vld [vmem:[#allocation17_spill] sm:$0xff] }
 0x2fc   : > { %v3219_v27 = vpop.eup %3218 }
 0x2fd   : > { %v2265_v49 = vmul.f32 %v3219_v27, %v2254_v56  ;;  %v5135_v56 = vld [vmem:[#allocation10_spill] sm:$0xff] }
 0x2ff   : > { %v2266_v33 = vpack.c.bf16 %v2265_v49, %v2265_v49  ;;  %v5139_v49 = vld [vmem:[#allocation18_spill] sm:$0xff] }
 0x301   : > { %2899 = vmatmul.mubr.msk.bf16.vlgmr.msra.gmra.mxu1 %vm2270_vm3, %v2266_v33 }
 0x3c1   : > { %v2312_v31 = vpop.f32.mrf.mxu1 }
 0x3c2   : > { %v2313_v29 = vadd.f32 %v2312_v31, %v2269_v50  ;;  %v5149_v31 = vld [vmem:[#allocation20_spill] sm:$0xff] }
 0x3c3   : > { %v2900_v9 = vpop.f32.mrf.mxu1 }
 0x3c4   : > { %v2781_v41 = vmul.f32 -1.442695, %v2313_v29 }
 0x3c5   : > { %v2315_v54 = vpop.f32.mrf.mxu1 }
 0x3c6   : > { %3220 = vpow2.f32 %v2781_v41 }
 0x3c7   : > { %v2901_v30 = vpop.f32.mrf.mxu1 }
 0x3d3   : > { %v3221_v16 = vpop.eup %3220 }
 0x3d4   : > { %v2321_v22 = vadd.f32 1.0, %v3221_v16 }
 0x3d6   : > { %3222 = vrcp.f32 %v2321_v22 }
 0x3e3   : > { %v3223_v39 = vpop.eup %3222 }
 0x3e4   : > { %v2327_v36 = vrot.slane %v3223_v39, %v5134_v58 }
 0x3e6   : > { %v2328_v38 = vmul.f32 %v2327_v36, %v5135_v56  ;;  %v2329_v13 = vmul.f32 %v2327_v36, %v5136_v53  ;;  %v2330_v60 = vmul.f32 %v2327_v36, %v5137_v10  ;;  %v2331_v27 = vmul.f32 %v2327_v36, %v5138_v62 }
 0x3e7   : > { %v2332_v33 = vmul.f32 %v2327_v36, %v5139_v49  ;;  %v2333_v55 = vmul.f32 %v2327_v36, %v5140_v63  ;;  %v2334_v4 = vmul.f32 %v2327_v36, %v5141_v20  ;;  %v2335_v61 = vmul.f32 %v2327_v36, %v5142_v42  ;;  %v3232_v20 = vld [vmem:[%s3359_s30 + $0x8] sm:$0xff] }
 0x3e8   : > { %v2360_v18 = vpack.c.bf16 %v2329_v13, %v2328_v38  ;;  %v2361_v45 = vpack.c.bf16 %v2331_v27, %v2330_v60  ;;  %v2336_v5 = vmul.f32 %v2327_v36, %v5143_v40  ;;  %v2337_v1 = vmul.f32 %v2327_v36, %v5144_v2  ;;  %v3230_v27 = vld [vmem:[%s3359_s30] sm:$0xff]  ;;  %v3233_v40 = vld [vmem:[%s3359_s30 + $0x30] sm:$0xff] }
 0x3e9   : > { %v2362_v57 = vpack.c.bf16 %v2333_v55, %v2332_v33  ;;  %v2363_v51 = vpack.c.bf16 %v2335_v61, %v2334_v4  ;;  %v2338_v0 = vmul.f32 %v2327_v36, %v5145_v24  ;;  %v2339_v34 = vmul.f32 %v2327_v36, %v5146_v19  ;;  %v3231_v55 = vld [vmem:[%s3359_s30 + $0x18] sm:$0xff] }
 0x3ea   : > { %2918 = vmatprep.mubr.bf16.mxu0 %v2360_v18  ;;  %v2364_v14 = vpack.c.bf16 %v2337_v1, %v2336_v5  ;;  %v2340_v44 = vmul.f32 %v2327_v36, %v5147_v52  ;;  %v2341_v43 = vmul.f32 %v2327_v36, %v5148_v21  ;;  %v2342_v29 = vmul.f32 %v2327_v36, %v5149_v31  ;;  %v3235_v19 = vld [vmem:[%s3359_s30 + $0x38] sm:$0xff]  ;;  %v3236_v21 = vld [vmem:[%s3359_s30 + $0x28] sm:$0xff]  ;;  %v3237_v31 = vld [vmem:[%s3359_s30 + $0x50] sm:$0xff] }
 0x3eb   : > { %2919 = vmatmul.mubr.bf16.vlgmr.msra.gmra.mxu0 %v2361_v45  ;;  %v2365_v25 = vpack.c.bf16 %v2339_v34, %v2338_v0  ;;  %v2343_v9 = vmul.f32 %v2327_v36, %v4682_v7  ;;  %v2344_v41 = vmul.f32 %v2327_v36, %v4699_v46  ;;  %v2345_v54 = vmul.f32 %v2327_v36, %v4705_v26 }
 0x3ec   : > { %2922 = vmatprep.mubr.bf16.mxu0 %v2362_v57  ;;  %v2366_v50 = vpack.c.bf16 %v2341_v43, %v2340_v44  ;;  %v2346_v22 = vmul.f32 %v2327_v36, %v4709_v48  ;;  %v2347_v39 = vmul.f32 %v2327_v36, %v4714_v32  ;;  %v2348_v17 = vmul.f32 %v2327_v36, %v4719_v15 }
 0x3ed   : > { %v2367_v30 = vpack.c.bf16 %v2343_v9, %v2342_v29  ;;  %v2368_v16 = vpack.c.bf16 %v2345_v54, %v2344_v41  ;;  %v2349_v58 = vmul.f32 %v2327_v36, %v4722_v6  ;;  %v2350_v7 = vmul.f32 %v2327_v36, %v4727_v37  ;;  %v3238_v54 = vld [vmem:[%s3359_s30 + $0x40] sm:$0xff] }
 0x3ee   : > { %v2369_v56 = vpack.c.bf16 %v2347_v39, %v2346_v22  ;;  %v2351_v46 = vmul.f32 %v2327_v36, %v4730_v28  ;;  %v2352_v26 = vmul.f32 %v2327_v36, %v4734_v3  ;;  %v2353_v53 = vmul.f32 %v2327_v36, %v4737_v11  ;;  %v3239_v39 = vld [vmem:[%s3359_s30 + $0x58] sm:$0xff] }
 0x3ef   : > { %v2370_v38 = vpack.c.bf16 %v2349_v58, %v2348_v17  ;;  %v2354_v32 = vmul.f32 %v2327_v36, %v4741_v59  ;;  %v2355_v15 = vmul.f32 %v2327_v36, %v4745_v8  ;;  %v2356_v6 = vmul.f32 %v2327_v36, %v4750_v35  ;;  %v4861_v59 = vld [vmem:[%s5011_s10] ss:$0 sm:$0xff] }
 0x3f0   : > { %v2371_v13 = vpack.c.bf16 %v2351_v46, %v2350_v7  ;;  %v2372_v48 = vpack.c.bf16 %v2353_v53, %v2352_v26  ;;  %v2357_v37 = vmul.f32 %v2327_v36, %v4753_v12  ;;  %v2358_v3 = vmul.f32 %v2327_v36, %v4757_v23  ;;  %v3229_v23 = vld [vmem:[%s3359_s30 + $0x10] sm:$0xff] }
 0x3f1   : > { %v2373_v10 = vpack.c.bf16 %v2355_v15, %v2354_v32  ;;  %v2359_v11 = vmul.f32 %v2327_v36, %v4761_v47  ;;  %v3241_v53 = vld [vmem:[%s3359_s30 + $0x70] sm:$0xff]  ;;  %v3242_v15 = vld [vmem:[%s3359_s30 + $0x60] sm:$0xff] }
 0x3f2   : > { %v2374_v28 = vpack.c.bf16 %v2357_v37, %v2356_v6 }
 0x3f3   : > { %2923 = vmatmul.mubr.bf16.gmra.mxu0 %v2363_v51  ;;  %v2375_v60 = vpack.c.bf16 %v2359_v11, %v2358_v3  ;;  %v3234_v51 = vld [vmem:[%s3359_s30 + $0x20] sm:$0xff] }
 0x3f4   : > { %2926 = vmatprep.mubr.bf16.mxu0 %v2364_v14 }
 0x3fb   : > { %2927 = vmatmul.mubr.bf16.gmra.mxu0 %v2365_v25 }
 0x3fc   : > { %2930 = vmatprep.mubr.bf16.mxu0 %v2366_v50 }
 0x403   : > { %2931 = vmatmul.mubr.bf16.gmra.mxu0 %v2367_v30 }
 0x404   : > { %2934 = vmatprep.mubr.bf16.mxu0 %v2368_v16 }
 0x40b   : > { %2935 = vmatmul.mubr.bf16.gmra.mxu0 %v2369_v56 }
 0x40c   : > { %2938 = vmatprep.mubr.bf16.mxu0 %v2370_v38  ;;  %v3240_v38 = vld [vmem:[%s3359_s30 + $0x48] sm:$0xff] }
 0x413   : > { %2939 = vmatmul.mubr.bf16.gmra.mxu0 %v2371_v13 }
 0x414   : > { %2942 = vmatprep.mubr.bf16.mxu0 %v2372_v48 }
 0x41b   : > { %2943 = vmatmul.mubr.bf16.gmra.mxu0 %v2373_v10 }
 0x41c   : > { %2946 = vmatprep.mubr.bf16.mxu0 %v2374_v28  ;;  %v3243_v28 = vld [vmem:[%s3359_s30 + $0x78] sm:$0xff] }
 0x423   : > { %2947 = vmatmul.mubr.bf16.gmra.mxu0 %v2375_v60 }
 0x4ab   : > { %v2920_v8 = vpop.f32.mrf.mxu0 }
 0x4ac   : > { %v2450_v35 = vadd.f32 %v2920_v8, %v4861_v59  ;;  %v3244_v8 = vld [vmem:[%s3359_s30 + $0x68] sm:$0xff] }
 0x4ad   : > { %v2441_v12 = vpop.f32.mrf.mxu0 }
 0x4ae   : > { %v2570_v47 = vadd.f32 %v3229_v23, %v2450_v35  ;;  %v2442_v36 = vadd.f32 %v4861_v59, %v2441_v12 }
 0x4af   : > { %v2921_v62 = vpop.f32.mrf.mxu0 }
 0x4b0   : > { %2602 = vst.msk [vmem:[%s4869_s28 + $0x10] sm:$0xff] %vm449_vm0, %v2570_v47  ;;  %v2568_v49 = vadd.f32 %v3230_v27, %v2442_v36  ;;  %v2453_v33 = vadd.f32 %v2921_v62, %v4861_v59  ;;  %v3245_v47 = vld [vmem:[%s3359_s30 + $0x90] sm:$0xff] }
 0x4b1   : > { %v2444_v63 = vpop.f32.mrf.mxu0 }
 0x4b2   : > { %2600 = vst.msk [vmem:[%s4869_s28] sm:$0xff] %vm449_vm0, %v2568_v49  ;;  %v2571_v18 = vadd.f32 %v3231_v55, %v2453_v33  ;;  %v2445_v45 = vadd.f32 %v4861_v59, %v2444_v63  ;;  %v3246_v49 = vld [vmem:[%s3359_s30 + $0x80] sm:$0xff] }
 0x4b3   : > { %v2924_v57 = vpop.f32.mrf.mxu0 }
 0x4b4   : > { %2603 = vst.msk [vmem:[%s4869_s28 + $0x18] sm:$0xff] %vm449_vm0, %v2571_v18  ;;  %v2569_v4 = vadd.f32 %v3232_v20, %v2445_v45  ;;  %v2466_v42 = vadd.f32 %v2924_v57, %v4861_v59  ;;  %v3247_v18 = vld [vmem:[%s3359_s30 + $0x98] sm:$0xff] }
 0x4b5   : > { %v2457_v61 = vpop.f32.mrf.mxu0 }
 0x4b6   : > { %2601 = vst.msk [vmem:[%s4869_s28 + $0x8] sm:$0xff] %vm449_vm0, %v2569_v4  ;;  %v2574_v5 = vadd.f32 %v3233_v40, %v2466_v42  ;;  %v2458_v2 = vadd.f32 %v4861_v59, %v2457_v61  ;;  %v3248_v4 = vld [vmem:[%s3359_s30 + $0x88] sm:$0xff] }
 0x4b7   : > { %v2925_v1 = vpop.f32.mrf.mxu0 }
 0x4b8   : > { %2606 = vst.msk [vmem:[%s4869_s28 + $0x30] sm:$0xff] %vm449_vm0, %v2574_v5  ;;  %v2572_v14 = vadd.f32 %v3234_v51, %v2458_v2  ;;  %v2469_v24 = vadd.f32 %v2925_v1, %v4861_v59  ;;  %v3249_v5 = vld [vmem:[%s3359_s30 + $0xb0] sm:$0xff] }
 0x4b9   : > { %v2460_v0 = vpop.f32.mrf.mxu0 }
 0x4ba   : > { %2604 = vst.msk [vmem:[%s4869_s28 + $0x20] sm:$0xff] %vm449_vm0, %v2572_v14  ;;  %v2575_v34 = vadd.f32 %v3235_v19, %v2469_v24  ;;  %v2461_v52 = vadd.f32 %v4861_v59, %v2460_v0  ;;  %v3250_v14 = vld [vmem:[%s3359_s30 + $0xa0] sm:$0xff] }
 0x4bb   : > { %v2928_v44 = vpop.f32.mrf.mxu0 }
 0x4bc   : > { %2607 = vst.msk [vmem:[%s4869_s28 + $0x38] sm:$0xff] %vm449_vm0, %v2575_v34  ;;  %v2573_v43 = vadd.f32 %v3236_v21, %v2461_v52  ;;  %v2482_v25 = vadd.f32 %v2928_v44, %v4861_v59  ;;  %v3251_v34 = vld [vmem:[%s3359_s30 + $0xb8] sm:$0xff] }
 0x4bd   : > { %v2473_v50 = vpop.f32.mrf.mxu0 }
 0x4be   : > { %2605 = vst.msk [vmem:[%s4869_s28 + $0x28] sm:$0xff] %vm449_vm0, %v2573_v43  ;;  %v2578_v29 = vadd.f32 %v3237_v31, %v2482_v25  ;;  %v2474_v9 = vadd.f32 %v4861_v59, %v2473_v50  ;;  %v3252_v43 = vld [vmem:[%s3359_s30 + $0xa8] sm:$0xff] }
 0x4bf   : > { %v2929_v41 = vpop.f32.mrf.mxu0 }
 0x4c0   : > { %2610 = vst.msk [vmem:[%s4869_s28 + $0x50] sm:$0xff] %vm449_vm0, %v2578_v29  ;;  %v2576_v30 = vadd.f32 %v3238_v54, %v2474_v9  ;;  %v2485_v16 = vadd.f32 %v2929_v41, %v4861_v59  ;;  %v3253_v29 = vld [vmem:[%s3359_s30 + $0xd0] sm:$0xff] }
 0x4c1   : > { %v2476_v22 = vpop.f32.mrf.mxu0 }
 0x4c2   : > { %2608 = vst.msk [vmem:[%s4869_s28 + $0x40] sm:$0xff] %vm449_vm0, %v2576_v30  ;;  %v2579_v17 = vadd.f32 %v3239_v39, %v2485_v16  ;;  %v2477_v58 = vadd.f32 %v4861_v59, %v2476_v22  ;;  %v3254_v30 = vld [vmem:[%s3359_s30 + $0xc0] sm:$0xff] }
 0x4c3   : > { %v2932_v56 = vpop.f32.mrf.mxu0 }
 0x4c4   : > { %2611 = vst.msk [vmem:[%s4869_s28 + $0x58] sm:$0xff] %vm449_vm0, %v2579_v17  ;;  %v2577_v7 = vadd.f32 %v3240_v38, %v2477_v58  ;;  %v2498_v46 = vadd.f32 %v2932_v56, %v4861_v59  ;;  %v3255_v17 = vld [vmem:[%s3359_s30 + $0xd8] sm:$0xff] }
 0x4c5   : > { %v2489_v26 = vpop.f32.mrf.mxu0 }
 0x4c6   : > { %2609 = vst.msk [vmem:[%s4869_s28 + $0x48] sm:$0xff] %vm449_vm0, %v2577_v7  ;;  %v2582_v13 = vadd.f32 %v3241_v53, %v2498_v46  ;;  %v2490_v48 = vadd.f32 %v4861_v59, %v2489_v26  ;;  %v3256_v7 = vld [vmem:[%s3359_s30 + $0xc8] sm:$0xff] }
 0x4c7   : > { %v2933_v32 = vpop.f32.mrf.mxu0 }
 0x4c8   : > { %2614 = vst.msk [vmem:[%s4869_s28 + $0x70] sm:$0xff] %vm449_vm0, %v2582_v13  ;;  %v2580_v6 = vadd.f32 %v3242_v15, %v2490_v48  ;;  %v2501_v37 = vadd.f32 %v2933_v32, %v4861_v59  ;;  %v3257_v13 = vld [vmem:[%s3359_s30 + $0xf0] sm:$0xff] }
 0x4c9   : > { %v2492_v10 = vpop.f32.mrf.mxu0 }
 0x4ca   : > { %2612 = vst.msk [vmem:[%s4869_s28 + $0x60] sm:$0xff] %vm449_vm0, %v2580_v6  ;;  %v2583_v3 = vadd.f32 %v3243_v28, %v2501_v37  ;;  %v2493_v11 = vadd.f32 %v4861_v59, %v2492_v10  ;;  %v3258_v6 = vld [vmem:[%s3359_s30 + $0xe0] sm:$0xff] }
 0x4cb   : > { %v2936_v60 = vpop.f32.mrf.mxu0 }
 0x4cc   : > { %2615 = vst.msk [vmem:[%s4869_s28 + $0x78] sm:$0xff] %vm449_vm0, %v2583_v3  ;;  %v2581_v35 = vadd.f32 %v3244_v8, %v2493_v11  ;;  %v2514_v12 = vadd.f32 %v2936_v60, %v4861_v59  ;;  %v3259_v3 = vld [vmem:[%s3359_s30 + $0xf8] sm:$0xff]  ;;  %v3260_v8 = vld [vmem:[%s3359_s30 + $0xe8] sm:$0xff] }
 0x4cd   : > { %v2505_v23 = vpop.f32.mrf.mxu0 }
 0x4ce   : > { %2613 = vst.msk [vmem:[%s4869_s28 + $0x68] sm:$0xff] %vm449_vm0, %v2581_v35  ;;  %v2586_v36 = vadd.f32 %v3245_v47, %v2514_v12  ;;  %v2506_v62 = vadd.f32 %v4861_v59, %v2505_v23 }
 0x4cf   : > { %v2937_v27 = vpop.f32.mrf.mxu0 }
 0x4d0   : > { %2618 = vst.msk [vmem:[%s4869_s28 + $0x90] sm:$0xff] %vm449_vm0, %v2586_v36  ;;  %v2584_v33 = vadd.f32 %v3246_v49, %v2506_v62  ;;  %v2517_v63 = vadd.f32 %v2937_v27, %v4861_v59 }
 0x4d1   : > { %v2508_v55 = vpop.f32.mrf.mxu0 }
 0x4d2   : > { %2616 = vst.msk [vmem:[%s4869_s28 + $0x80] sm:$0xff] %vm449_vm0, %v2584_v33  ;;  %v2587_v45 = vadd.f32 %v3247_v18, %v2517_v63  ;;  %v2509_v57 = vadd.f32 %v4861_v59, %v2508_v55 }
 0x4d3   : > { %v2940_v20 = vpop.f32.mrf.mxu0 }
 0x4d4   : > { %2619 = vst.msk [vmem:[%s4869_s28 + $0x98] sm:$0xff] %vm449_vm0, %v2587_v45  ;;  %v2585_v42 = vadd.f32 %v3248_v4, %v2509_v57  ;;  %v2530_v61 = vadd.f32 %v2940_v20, %v4861_v59 }
 0x4d5   : > { %v2521_v40 = vpop.f32.mrf.mxu0 }
 0x4d6   : > { %2617 = vst.msk [vmem:[%s4869_s28 + $0x88] sm:$0xff] %vm449_vm0, %v2585_v42  ;;  %v2590_v2 = vadd.f32 %v3249_v5, %v2530_v61  ;;  %v2522_v1 = vadd.f32 %v4861_v59, %v2521_v40 }
 0x4d7   : > { %v2941_v51 = vpop.f32.mrf.mxu0 }
 0x4d8   : > { %2622 = vst.msk [vmem:[%s4869_s28 + $0xb0] sm:$0xff] %vm449_vm0, %v2590_v2  ;;  %v2588_v24 = vadd.f32 %v3250_v14, %v2522_v1  ;;  %v2533_v0 = vadd.f32 %v2941_v51, %v4861_v59 }
 0x4d9   : > { %v2524_v19 = vpop.f32.mrf.mxu0 }
 0x4da   : > { %2620 = vst.msk [vmem:[%s4869_s28 + $0xa0] sm:$0xff] %vm449_vm0, %v2588_v24  ;;  %v2591_v52 = vadd.f32 %v3251_v34, %v2533_v0  ;;  %v2525_v44 = vadd.f32 %v4861_v59, %v2524_v19 }
 0x4db   : > { %v2944_v21 = vpop.f32.mrf.mxu0 }
 0x4dc   : > { %2623 = vst.msk [vmem:[%s4869_s28 + $0xb8] sm:$0xff] %vm449_vm0, %v2591_v52  ;;  %v2589_v25 = vadd.f32 %v3252_v43, %v2525_v44  ;;  %v2546_v50 = vadd.f32 %v2944_v21, %v4861_v59 }
 0x4dd   : > { %v2537_v31 = vpop.f32.mrf.mxu0 }
 0x4de   : > { %2621 = vst.msk [vmem:[%s4869_s28 + $0xa8] sm:$0xff] %vm449_vm0, %v2589_v25  ;;  %v2594_v9 = vadd.f32 %v3253_v29, %v2546_v50  ;;  %v2538_v41 = vadd.f32 %v4861_v59, %v2537_v31 }
 0x4df   : > { %v2945_v54 = vpop.f32.mrf.mxu0 }
 0x4e0   : > { %2626 = vst.msk [vmem:[%s4869_s28 + $0xd0] sm:$0xff] %vm449_vm0, %v2594_v9  ;;  %v2592_v16 = vadd.f32 %v3254_v30, %v2538_v41  ;;  %v2549_v22 = vadd.f32 %v2945_v54, %v4861_v59 }
 0x4e1   : > { %v2540_v39 = vpop.f32.mrf.mxu0 }
 0x4e2   : > { %2624 = vst.msk [vmem:[%s4869_s28 + $0xc0] sm:$0xff] %vm449_vm0, %v2592_v16  ;;  %v2595_v58 = vadd.f32 %v3255_v17, %v2549_v22  ;;  %v2541_v56 = vadd.f32 %v4861_v59, %v2540_v39 }
 0x4e3   : > { %v2948_v38 = vpop.f32.mrf.mxu0 }
 0x4e4   : > { %2627 = vst.msk [vmem:[%s4869_s28 + $0xd8] sm:$0xff] %vm449_vm0, %v2595_v58  ;;  %v2593_v46 = vadd.f32 %v3256_v7, %v2541_v56  ;;  %v2562_v26 = vadd.f32 %v2948_v38, %v4861_v59 }
 0x4e5   : > { %v2553_v53 = vpop.f32.mrf.mxu0 }
 0x4e6   : > { %2625 = vst.msk [vmem:[%s4869_s28 + $0xc8] sm:$0xff] %vm449_vm0, %v2593_v46  ;;  %v2598_v48 = vadd.f32 %v3257_v13, %v2562_v26  ;;  %v2554_v32 = vadd.f32 %v4861_v59, %v2553_v53 }
 0x4e7   : > { %v2949_v15 = vpop.f32.mrf.mxu0 }
 0x4e8   : > { %2630 = vst.msk [vmem:[%s4869_s28 + $0xf0] sm:$0xff] %vm449_vm0, %v2598_v48  ;;  %v2596_v37 = vadd.f32 %v3258_v6, %v2554_v32  ;;  %v2565_v10 = vadd.f32 %v2949_v15, %v4861_v59 }
 0x4e9   : > { %v2556_v28 = vpop.f32.mrf.mxu0 }
 0x4ea   : > { %2628 = vst.msk [vmem:[%s4869_s28 + $0xe0] sm:$0xff] %vm449_vm0, %v2596_v37  ;;  %v2599_v11 = vadd.f32 %v3259_v3, %v2565_v10  ;;  %v2557_v60 = vadd.f32 %v4861_v59, %v2556_v28 }
 0x4ec   : > { %2631 = vst.msk [vmem:[%s4869_s28 + $0xf8] sm:$0xff] %vm449_vm0, %v2599_v11  ;;  %v2597_v35 = vadd.f32 %v3260_v8, %v2557_v60 }
 0x4ee   : > { %2629 = vst.msk [vmem:[%s4869_s28 + $0xe8] sm:$0xff] %vm449_vm0, %v2597_v35 }
 0x4ef PF: > { %s21_s17 = sadd.s32 1, %s3267_s17  }
 0x4f0   : > { %p18_p4 = scmp.ge.s32.totalorder %s21_s17, 4  }
 0x4f2   :  { %20 = sbr.rel (!%p18_p4) target bundleno = 1 (0x1), region = 96 }

// kernel: efficientnet_forward.6
= control target key start
LH: loop header
LB: loop body
LE: loop exit
PB: predicated region body
PF: predicated region fallthrough
CT: control target
= control target key end

     0   :  { %s3268_s17 = smov 0   ;;  %s4906_s0 = inlined_call_operand.vmem [shape: f32[2,16,16,32], index: 0, kind: input, shape index: {}]   ;;  %s4907_s1 = inlined_call_operand.vmem [shape: f32[32,128], index: 1, kind: input, shape index: {}]   ;;  %s4908_s2 = inlined_call_operand.vmem [shape: f32[1,128], index: 2, kind: input, shape index: {}]   ;;  %s4909_s3 = inlined_call_operand.vmem [shape: f32[9,128], index: 3, kind: input, shape index: {}]   ;;  %s4910_s4 = inlined_call_operand.vmem [shape: f32[1,128], index: 4, kind: input, shape index: {}]   ;;  %s4911_s5 = inlined_call_operand.vmem [shape: f32[128,8], index: 5, kind: input, shape index: {}]   ;;  %s4912_s6 = inlined_call_operand.vmem [shape: f32[1,8], index: 6, kind: input, shape index: {}]   ;;  %s4913_s7 = inlined_call_operand.vmem [shape: f32[8,128], index: 7, kind: input, shape index: {}]   ;;  %s4914_s8 = inlined_call_operand.vmem [shape: f32[1,128], index: 8, kind: input, shape index: {}]   ;;  %s4915_s9 = inlined_call_operand.vmem [shape: f32[128,64], index: 9, kind: input, shape index: {}]   ;;  %s4916_s10 = inlined_call_operand.vmem [shape: f32[1,64], index: 10, kind: input, shape index: {}]   ;;  %s4917_s11 = inlined_call_operand.vmem [shape: f32[2,16,16,64], index: 11, kind: output, shape index: {}]  }
   0x1 LB: > { %s2656_s18 = sadd.s32 4294967295, %s3204_s17   ;;  %p2660_p0 = scmp.ge.s32.totalorder %s3204_s17, 1  ;;  %s3204_s17 = sphi %s3268_s17, %s21_s17  }
   0x2   : > { %p337_p1 = scmp.lt.s32.totalorder %s3204_s17, 3 }
   0x4   : > { %p338_p2 = pnand %p2660_p0, %p337_p1 }
   0x6   : > { %341 = sbr.rel (%p338_p2) target bundleno = 1261 (0x4ed), region = 64 }
   0xb   : > { %v438_v0 = vld [vmem:[%s4907_s1 + $0x10] sm:$0xff]  ;;  %v439_v1 = vld [vmem:[%s4907_s1 + $0x18] sm:$0xff]  ;;  %v436_v2 = vld [vmem:[%s4907_s1] sm:$0xff]  ;;  %p377_p3 = scmp.lt.s32.totalorder %s2656_s18, 1  ;;  %vm449_vm0 = vcmask 261120   ;;  %v3206_v54 = vmov 0.0  }
   0xc   : > { %v441_v3 = vpack.c.bf16 %v439_v1, %v438_v0  ;;  %v437_v4 = vld [vmem:[%s4907_s1 + $0x8] sm:$0xff]  ;;  %891 = vst [vmem:[#allocation2 + $0x40] sm:$0xff] %v3206_v54  ;;  %883 = vst [vmem:[#allocation2] sm:$0xff] %v3206_v54  ;;  %v3349_v55 = vld [vmem:[%s4908_s2] ss:$0 sm:$0xff]  ;;  %vm3207_vm1 = vmmov 0  }
   0xd   : > { %v440_v5 = vpack.c.bf16 %v437_v4, %v436_v2  ;;  %s5056_s18 = smov (!%p377_p3, %s2656_s18), 1  ;;  %884 = vst [vmem:[#allocation2 + $0x8] sm:$0xff] %v3206_v54  ;;  %885 = vst [vmem:[#allocation2 + $0x10] sm:$0xff] %v3206_v54  ;;  %vm2274_vm2 = vcmask 1043456   ;;  %vm2270_vm3 = vcmask 64512   ;;  %vm2568_vm4 = vcmask 523264  }
   0xe   : > { %2809 = vmatprep.subr.bf16.mxu1 %v441_v3  ;;  %s2754_s27 = sshll.u32 %s5056_s18, 8  ;;  %886 = vst [vmem:[#allocation2 + $0x18] sm:$0xff] %v3206_v54  ;;  %887 = vst [vmem:[#allocation2 + $0x20] sm:$0xff] %v3206_v54 }
   0xf   : > { %2810 = vmatpush3.bf16.msra.mxu1 %v441_v3  ;;  %s3296_s30 = scalar_lea.vmem %s4906_s0, %s2754_s27  ;;  %890 = vst [vmem:[#allocation2 + $0x38] sm:$0xff] %v3206_v54  ;;  %894 = vst [vmem:[#allocation2 + $0x58] sm:$0xff] %v3206_v54  ;;  %s4805_s22 = scalar_lea.vmem %s4917_s11, %s2754_s27 }
  0x10   : > { %2811 = vmatprep.subr.bf16.mxu1 %v440_v5  ;;  %v388_v6 = vld [vmem:[%s3296_s30] sm:$0xff]  ;;  %v389_v7 = vld [vmem:[%s3296_s30 + $0x8] sm:$0xff]  ;;  %v390_v8 = vld [vmem:[%s3296_s30 + $0x10] sm:$0xff]  ;;  %895 = vst [vmem:[#allocation2 + $0x60] sm:$0xff] %v3206_v54 }
  0x11   : > { %v420_v9 = vpack.c.bf16 %v389_v7, %v388_v6  ;;  %v391_v10 = vld [vmem:[%s3296_s30 + $0x18] sm:$0xff]  ;;  %v392_v11 = vld [vmem:[%s3296_s30 + $0x20] sm:$0xff]  ;;  %v393_v12 = vld [vmem:[%s3296_s30 + $0x28] sm:$0xff]  ;;  %898 = vst [vmem:[#allocation2 + $0x78] sm:$0xff] %v3206_v54 }
  0x12   : > { %v421_v13 = vpack.c.bf16 %v391_v10, %v390_v8  ;;  %v422_v14 = vpack.c.bf16 %v393_v12, %v392_v11  ;;  %v394_v15 = vld [vmem:[%s3296_s30 + $0x30] sm:$0xff]  ;;  %v395_v16 = vld [vmem:[%s3296_s30 + $0x38] sm:$0xff]  ;;  %v396_v17 = vld [vmem:[%s3296_s30 + $0x40] sm:$0xff]  ;;  %899 = vst [vmem:[#allocation2 + $0x80] sm:$0xff] %v3206_v54 }
  0x13   : > { %2812 = vmatpush3.bf16.msra.mxu1 %v440_v5  ;;  %2813 = vmatprep.mubr.msk.bf16.mxu1 %vm449_vm0, %v420_v9  ;;  %v397_v18 = vld [vmem:[%s3296_s30 + $0x48] sm:$0xff]  ;;  %v423_v19 = vpack.c.bf16 %v395_v16, %v394_v15  ;;  %v398_v21 = vld [vmem:[%s3296_s30 + $0x50] sm:$0xff]  ;;  %v399_v22 = vld [vmem:[%s3296_s30 + $0x58] sm:$0xff]  ;;  %902 = vst [vmem:[#allocation2 + $0x98] sm:$0xff] %v3206_v54 }
  0x14   : > { %v424_v20 = vpack.c.bf16 %v397_v18, %v396_v17  ;;  %v400_v23 = vld [vmem:[%s3296_s30 + $0x60] sm:$0xff]  ;;  %v401_v24 = vld [vmem:[%s3296_s30 + $0x68] sm:$0xff]  ;;  %v425_v25 = vpack.c.bf16 %v399_v22, %v398_v21  ;;  %v402_v27 = vld [vmem:[%s3296_s30 + $0x70] sm:$0xff]  ;;  %903 = vst [vmem:[#allocation2 + $0xa0] sm:$0xff] %v3206_v54  ;;  %2845 = vmatprep.subr.bf16.mxu1 %v3206_v54 }
  0x15   : > { %v426_v26 = vpack.c.bf16 %v401_v24, %v400_v23  ;;  %v403_v28 = vld [vmem:[%s3296_s30 + $0x78] sm:$0xff]  ;;  %v404_v29 = vld [vmem:[%s3296_s30 + $0x80] sm:$0xff]  ;;  %v405_v30 = vld [vmem:[%s3296_s30 + $0x88] sm:$0xff]  ;;  %906 = vst [vmem:[#allocation2 + $0xb8] sm:$0xff] %v3206_v54 }
  0x16   : > { %2814 = vmatmul.mubr.msk.bf16.vlgmr.msra.gmra.mxu1 %vm449_vm0, %v421_v13  ;;  %v427_v31 = vpack.c.bf16 %v403_v28, %v402_v27  ;;  %v428_v32 = vpack.c.bf16 %v405_v30, %v404_v29  ;;  %v406_v33 = vld [vmem:[%s3296_s30 + $0x90] sm:$0xff]  ;;  %v407_v34 = vld [vmem:[%s3296_s30 + $0x98] sm:$0xff]  ;;  %v408_v35 = vld [vmem:[%s3296_s30 + $0xa0] sm:$0xff]  ;;  %907 = vst [vmem:[#allocation2 + $0xc0] sm:$0xff] %v3206_v54  ;;  %v1022_v29 = vlaneseq }
  0x17   : > { %2817 = vmatprep.mubr.msk.bf16.mxu1 %vm449_vm0, %v422_v14  ;;  %v409_v36 = vld [vmem:[%s3296_s30 + $0xa8] sm:$0xff]  ;;  %v429_v37 = vpack.c.bf16 %v407_v34, %v406_v33  ;;  %v410_v39 = vld [vmem:[%s3296_s30 + $0xb0] sm:$0xff]  ;;  %v411_v40 = vld [vmem:[%s3296_s30 + $0xb8] sm:$0xff]  ;;  %910 = vst [vmem:[#allocation2 + $0xd8] sm:$0xff] %v3206_v54 }
  0x18   : > { %v430_v38 = vpack.c.bf16 %v409_v36, %v408_v35  ;;  %v412_v41 = vld [vmem:[%s3296_s30 + $0xc0] sm:$0xff]  ;;  %v413_v42 = vld [vmem:[%s3296_s30 + $0xc8] sm:$0xff]  ;;  %v431_v43 = vpack.c.bf16 %v411_v40, %v410_v39  ;;  %v414_v45 = vld [vmem:[%s3296_s30 + $0xd0] sm:$0xff]  ;;  %911 = vst [vmem:[#allocation2 + $0xe0] sm:$0xff] %v3206_v54 }
  0x19   : > { %v432_v44 = vpack.c.bf16 %v413_v42, %v412_v41  ;;  %v415_v46 = vld [vmem:[%s3296_s30 + $0xd8] sm:$0xff]  ;;  %v416_v47 = vld [vmem:[%s3296_s30 + $0xe0] sm:$0xff]  ;;  %v417_v48 = vld [vmem:[%s3296_s30 + $0xe8] sm:$0xff]  ;;  %914 = vst [vmem:[#allocation2 + $0xf8] sm:$0xff] %v3206_v54 }
  0x1a   : > { %v433_v49 = vpack.c.bf16 %v415_v46, %v414_v45  ;;  %v434_v50 = vpack.c.bf16 %v417_v48, %v416_v47  ;;  %v418_v51 = vld [vmem:[%s3296_s30 + $0xf0] sm:$0xff]  ;;  %v419_v52 = vld [vmem:[%s3296_s30 + $0xf8] sm:$0xff]  ;;  %915 = vst [vmem:[#allocation2 + $0x100] sm:$0xff] %v3206_v54  ;;  %918 = vst [vmem:[#allocation2 + $0x118] sm:$0xff] %v3206_v54 }
  0x1b   : > { %v435_v53 = vpack.c.bf16 %v419_v52, %v418_v51  ;;  %919 = vst [vmem:[#allocation2 + $0x120] sm:$0xff] %v3206_v54  ;;  %922 = vst [vmem:[#allocation2 + $0x138] sm:$0xff] %v3206_v54 }
  0x1c   : > { %923 = vst [vmem:[#allocation2 + $0x140] sm:$0xff] %v3206_v54  ;;  %926 = vst [vmem:[#allocation2 + $0x158] sm:$0xff] %v3206_v54 }
  0x1d   : > { %927 = vst [vmem:[#allocation2 + $0x160] sm:$0xff] %v3206_v54  ;;  %930 = vst [vmem:[#allocation2 + $0x178] sm:$0xff] %v3206_v54 }
  0x1e   : > { %2818 = vmatmul.mubr.msk.bf16.gmra.mxu1 %vm449_vm0, %v423_v19  ;;  %931 = vst [vmem:[#allocation2 + $0x180] sm:$0xff] %v3206_v54  ;;  %934 = vst [vmem:[#allocation2 + $0x198] sm:$0xff] %v3206_v54 }
  0x1f   : > { %2821 = vmatprep.mubr.msk.bf16.mxu1 %vm449_vm0, %v424_v20  ;;  %935 = vst [vmem:[#allocation2 + $0x1a0] sm:$0xff] %v3206_v54  ;;  %938 = vst [vmem:[#allocation2 + $0x1b8] sm:$0xff] %v3206_v54 }
  0x20   : > { %939 = vst [vmem:[#allocation2 + $0x1c0] sm:$0xff] %v3206_v54  ;;  %942 = vst [vmem:[#allocation2 + $0x1d8] sm:$0xff] %v3206_v54 }
  0x21   : > { %943 = vst [vmem:[#allocation2 + $0x1e0] sm:$0xff] %v3206_v54  ;;  %946 = vst [vmem:[#allocation2 + $0x1f8] sm:$0xff] %v3206_v54 }
  0x22   : > { %947 = vst [vmem:[#allocation2 + $0x200] sm:$0xff] %v3206_v54  ;;  %950 = vst [vmem:[#allocation2 + $0x218] sm:$0xff] %v3206_v54 }
  0x23   : > { %951 = vst [vmem:[#allocation2 + $0x220] sm:$0xff] %v3206_v54  ;;  %952 = vst [vmem:[#allocation2 + $0x228] sm:$0xff] %v3206_v54 }
  0x24   : > { %953 = vst [vmem:[#allocation2 + $0x230] sm:$0xff] %v3206_v54  ;;  %954 = vst [vmem:[#allocation2 + $0x238] sm:$0xff] %v3206_v54 }
  0x26   : > { %2822 = vmatmul.mubr.msk.bf16.gmra.mxu1 %vm449_vm0, %v425_v25 }
  0x27   : > { %2825 = vmatprep.mubr.msk.bf16.mxu1 %vm449_vm0, %v426_v26 }
  0x2e   : > { %2826 = vmatmul.mubr.msk.bf16.gmra.mxu1 %vm449_vm0, %v427_v31 }
  0x2f   : > { %2829 = vmatprep.mubr.msk.bf16.mxu1 %vm449_vm0, %v428_v32 }
  0x36   : > { %2830 = vmatmul.mubr.msk.bf16.gmra.mxu1 %vm449_vm0, %v429_v37 }
  0x37   : > { %2833 = vmatprep.mubr.msk.bf16.mxu1 %vm449_vm0, %v430_v38  ;;  %v3398_v38 = vshrl.u32 %v1022_v29, 7 }
  0x39   : > { %4960 = vst [vmem:[#allocation3_spill] sm:$0xff] %v3398_v38  ;;  %v1124_v46 = vsub.s32 1, %v3398_v38  ;;  %v1224_v51 = vsub.s32 2, %v3398_v38 }
  0x3e   : > { %2834 = vmatmul.mubr.msk.bf16.gmra.mxu1 %vm449_vm0, %v431_v43  ;;  %v4918_v43 = vsub.s32 0, %v3398_v38 }
  0x3f   : > { %2837 = vmatprep.mubr.msk.bf16.mxu1 %vm449_vm0, %v432_v44 }
  0x46   : > { %2838 = vmatmul.mubr.msk.bf16.gmra.mxu1 %vm449_vm0, %v433_v49  ;;  %v988_v49 = vld [vmem:[%s4909_s3] sm:$0xff] }
  0x47   : > { %2841 = vmatprep.mubr.msk.bf16.mxu1 %vm449_vm0, %v434_v50  ;;  %v3412_v50 = vrot.slane %v988_v49, %v4918_v43 }
  0x4e   : > { %2842 = vmatmul.mubr.msk.bf16.gmra.mxu1 %vm449_vm0, %v435_v53  ;;  %v990_v53 = vld [vmem:[#allocation2 + $0x7] sm:$0xff] }
  0xd6   : > { %v2815_v56 = vpop.f32.mrf.mxu1 }
  0xd7   : > { %v3352_v57 = vadd.f32 %v2815_v56, %v3349_v55  ;;  %v3418_v56 = vrot.slane %v988_v49, %v1124_v46 }
  0xd8   : > { %v532_v58 = vpop.f32.mrf.mxu1 }
  0xd9   : > { %v2684_v59 = vmul.f32 -1.442695, %v3352_v57  ;;  %v3356_v60 = vadd.f32 %v3349_v55, %v532_v58  ;;  %4961 = vst [vmem:[#allocation4_spill] sm:$0xff] %v3418_v56 }
  0xda   : > { %v2816_v61 = vpop.f32.mrf.mxu1 }
  0xdb   : > { %2929 = vpow2.f32 %v2684_v59  ;;  %v2682_v62 = vmul.f32 -1.442695, %v3356_v60  ;;  %v3360_v63 = vadd.f32 %v2816_v61, %v3349_v55  ;;  %v991_v61 = vld [vmem:[#allocation2 + $0xf] sm:$0xff] }
  0xdc   : > { %v535_v0 = vpop.f32.mrf.mxu1 }
  0xdd   : > { %2931 = vpow2.f32 %v2682_v62  ;;  %v2685_v1 = vmul.f32 -1.442695, %v3360_v63  ;;  %v3364_v2 = vadd.f32 %v3349_v55, %v535_v0 }
  0xde   : > { %v2819_v3 = vpop.f32.mrf.mxu1 }
  0xdf   : > { %2933 = vpow2.f32 %v2685_v1  ;;  %v2683_v4 = vmul.f32 -1.442695, %v3364_v2  ;;  %v3368_v5 = vadd.f32 %v2819_v3, %v3349_v55  ;;  %v1026_v1 = vmul.f32 %v3412_v50, %v990_v53 }
  0xe0   : > { %v548_v6 = vpop.f32.mrf.mxu1  ;;  %v1126_v3 = vmul.f32 0.0, %v3418_v56 }
  0xe1   : > { %2935 = vpow2.f32 %v2683_v4  ;;  %v2688_v7 = vmul.f32 -1.442695, %v3368_v5  ;;  %v3372_v8 = vadd.f32 %v3349_v55, %v548_v6  ;;  %v3426_v4 = vrot.slane %v988_v49, %v1224_v51  ;;  %v1190_v6 = vld [vmem:[#allocation2 + $0x9] sm:$0xff] }
  0xe2   : > { %v2820_v9 = vpop.f32.mrf.mxu1 }
  0xe3   : > { %2937 = vpow2.f32 %v2688_v7  ;;  %v2686_v10 = vmul.f32 -1.442695, %v3372_v8  ;;  %v3376_v11 = vadd.f32 %v2820_v9, %v3349_v55  ;;  %4962 = vst [vmem:[#allocation5_spill] sm:$0xff] %v3426_v4 }
  0xe4   : > { %v551_v12 = vpop.f32.mrf.mxu1 }
  0xe5   : > { %2939 = vpow2.f32 %v2686_v10  ;;  %v2689_v13 = vmul.f32 -1.442695, %v3376_v11  ;;  %v3380_v14 = vadd.f32 %v3349_v55, %v551_v12 }
  0xe6   : > { %v2823_v15 = vpop.f32.mrf.mxu1 }
  0xe7   : > { %2941 = vpow2.f32 %v2689_v13  ;;  %v3383_v17 = vadd.f32 %v2823_v15, %v3349_v55  ;;  %v2687_v21 = vmul.f32 -1.442695, %v3380_v14  ;;  %v1324_v13 = vsub.s32 3, %v3398_v38 }
  0xe8   : > { %v2930_v16 = vpop.eup %2929  ;;  %v564_v18 = vpop.f32.mrf.mxu1  ;;  %v1424_v15 = vsub.s32 4, %v3398_v38 }
  0xe9   : > { %v757_v19 = vadd.f32 1.0, %v2930_v16  ;;  %v3387_v22 = vadd.f32 %v3349_v55, %v564_v18  ;;  %v2692_v26 = vmul.f32 -1.442695, %v3383_v17  ;;  %v1725_v16 = vsub.s32 7, %v3398_v38  ;;  %v1191_v18 = vld [vmem:[#allocation2 + $0x11] sm:$0xff] }
  0xea   : > { %v2932_v20 = vpop.eup %2931  ;;  %v2824_v23 = vpop.f32.mrf.mxu1 }
  0xeb   : > { %2943 = vrcp.f32 %v757_v19  ;;  %v755_v24 = vadd.f32 1.0, %v2932_v20  ;;  %v3391_v27 = vadd.f32 %v2824_v23, %v3349_v55  ;;  %v2690_v32 = vmul.f32 -1.442695, %v3387_v22 }
  0xec   : > { %v2934_v25 = vpop.eup %2933  ;;  %v567_v28 = vpop.f32.mrf.mxu1  ;;  %v1625_v20 = vsub.s32 6, %v3398_v38  ;;  %v1226_v23 = vmul.f32 %v3426_v4, %v1190_v6 }
  0xed   : > { %2945 = vrcp.f32 %v755_v24  ;;  %v758_v30 = vadd.f32 1.0, %v2934_v25  ;;  %v3395_v33 = vadd.f32 %v3349_v55, %v567_v28  ;;  %v2693_v37 = vmul.f32 -1.442695, %v3391_v27 }
  0xee   : > { %v2936_v31 = vpop.eup %2935  ;;  %2947 = vpow2.f32 %v2687_v21  ;;  %v2827_v34 = vpop.f32.mrf.mxu1  ;;  %v1158_v21 = vadd.f32 %v1126_v3, %v1026_v1 }
  0xef   : > { %2949 = vrcp.f32 %v758_v30  ;;  %v756_v35 = vadd.f32 1.0, %v2936_v31  ;;  %v3401_v40 = vadd.f32 %v2827_v34, %v3349_v55  ;;  %v2691_v42 = vmul.f32 -1.442695, %v3395_v33 }
  0xf0   : > { %v2938_v36 = vpop.eup %2937  ;;  %2951 = vpow2.f32 %v2692_v26  ;;  %v580_v58 = vpop.f32.mrf.mxu1  ;;  %v1524_v26 = vsub.s32 5, %v3398_v38  ;;  %v1227_v31 = vmul.f32 %v3426_v4, %v1191_v18  ;;  %v2200_v38 = vld [vmem:[%s4911_s5 + $0x30] sm:$0xff] }
  0xf1   : > { %2953 = vrcp.f32 %v756_v35  ;;  %v761_v39 = vadd.f32 1.0, %v2938_v36  ;;  %v2696_v48 = vmul.f32 -1.442695, %v3401_v40  ;;  %v3429_v7 = vadd.f32 %v3349_v55, %v580_v58 }
  0xf2   : > { %v2940_v41 = vpop.eup %2939  ;;  %2955 = vpow2.f32 %v2690_v32  ;;  %v2828_v24 = vpop.f32.mrf.mxu1  ;;  %v3449_v36 = vrot.slane %v988_v49, %v1424_v15  ;;  %v3461_v51 = vrot.slane %v988_v49, %v1524_v26 }
  0xf3   : > { %2957 = vrcp.f32 %v761_v39  ;;  %v759_v44 = vadd.f32 1.0, %v2940_v41  ;;  %v2694_v28 = vmul.f32 -1.442695, %v3429_v7  ;;  %v3454_v39 = vadd.f32 %v2828_v24, %v3349_v55 }
  0xf4   : > { %v2942_v45 = vpop.eup %2941  ;;  %2959 = vpow2.f32 %v2693_v37  ;;  %v3451_v37 = vrot.slane %v988_v49, %v1725_v16  ;;  %v583_v46 = vpop.f32.mrf.mxu1 }
  0xf5   : > { %2961 = vrcp.f32 %v759_v44  ;;  %v762_v47 = vadd.f32 1.0, %v2942_v45  ;;  %v3458_v44 = vrot.slane %v988_v49, %v1625_v20  ;;  %v1258_v45 = vadd.f32 %v1226_v23, %v1158_v21 }
  0xf6   : > { %2963 = vpow2.f32 %v2691_v42  ;;  %v3456_v42 = vrot.slane %v988_v49, %v1324_v13  ;;  %v3473_v49 = vmul.f32 -1.442695, %v3454_v39 }
  0xf7   : > { %2965 = vrcp.f32 %v762_v47 }
  0xf8   : > { %v2944_v52 = vpop.eup %2943  ;;  %2967 = vpow2.f32 %v2696_v48 }
  0xf9   : > { %v3416_v54 = vmul.f32 %v2944_v52, %v3352_v57  ;;  %2969 = vpow2.f32 %v2694_v28 }
  0xfa   : > { %v2946_v59 = vpop.eup %2945 }
  0xfb   : > { %v2948_v62 = vpop.eup %2947  ;;  %958 = vst [vmem:[#allocation2 + $0x48] sm:$0xff] %v3416_v54  ;;  %v3422_v0 = vmul.f32 %v2946_v59, %v3356_v60  ;;  %v1027_v60 = vmul.f32 %v3412_v50, %v991_v61  ;;  %v1428_v18 = vmul.f32 %v3449_v36, %v3416_v54 }
  0xfc   : > { %v2950_v57 = vpop.eup %2949  ;;  %v760_v34 = vadd.f32 1.0, %v2948_v62 }
  0xfd   : > { %v2952_v9 = vpop.eup %2951  ;;  %956 = vst [vmem:[#allocation2 + $0x28] sm:$0xff] %v3422_v0  ;;  %v3433_v10 = vmul.f32 %v2950_v57, %v3360_v63  ;;  %v1159_v30 = vadd.f32 %v1126_v3, %v1027_v60  ;;  %v1426_v6 = vmul.f32 %v3449_v36, %v3422_v0  ;;  %v1128_v13 = vmul.f32 %v3418_v56, %v3422_v0 }
  0xfe   : > { %v2954_v12 = vpop.eup %2953  ;;  %2971 = vrcp.f32 %v760_v34 }
  0xff   : > { %v2956_v19 = vpop.eup %2955  ;;  %959 = vst [vmem:[#allocation2 + $0x50] sm:$0xff] %v3433_v10  ;;  %v852_v63 = vmul.f32 %v2954_v12, %v3364_v2  ;;  %v765_v2 = vadd.f32 1.0, %v2952_v9  ;;  %v1259_v61 = vadd.f32 %v1227_v31, %v1159_v30  ;;  %v1130_v12 = vmul.f32 %v3418_v56, %v3416_v54 }
 0x100   : > { %v2958_v25 = vpop.eup %2957 }
 0x101   : > { %v2960_v29 = vpop.eup %2959  ;;  %957 = vst [vmem:[#allocation2 + $0x30] sm:$0xff] %v852_v63  ;;  %v3447_v32 = vmul.f32 %v2958_v25, %v3368_v5  ;;  %v763_v5 = vadd.f32 1.0, %v2956_v19  ;;  %2973 = vrcp.f32 %v765_v2  ;;  %v1129_v20 = vmul.f32 %v3418_v56, %v852_v63 }
 0x102   : > { %v2962_v35 = vpop.eup %2961  ;;  %v766_v53 = vadd.f32 1.0, %v2960_v29  ;;  %v994_v58 = vld [vmem:[#allocation2 + $0x47] sm:$0xff]  ;;  %v1427_v29 = vmul.f32 %v3449_v36, %v852_v63 }
 0x103   : > { %v2964_v41 = vpop.eup %2963  ;;  %962 = vst [vmem:[#allocation2 + $0x88] sm:$0xff] %v3447_v32  ;;  %v3464_v52 = vmul.f32 %v2962_v35, %v3372_v8  ;;  %v3476_v8 = vadd.f32 %v3349_v55, %v583_v46  ;;  %2975 = vrcp.f32 %v763_v5  ;;  %v1030_v60 = vmul.f32 %v3412_v50, %v994_v58 }
 0x104   : > { %v2966_v47 = vpop.eup %2965  ;;  %v992_v48 = vld [vmem:[#allocation2 + $0x27] sm:$0xff]  ;;  %2977 = vrcp.f32 %v766_v53  ;;  %v1328_v34 = vmul.f32 %v3456_v42, %v994_v58 }
 0x105   : > { %v1326_v59 = vmul.f32 %v3456_v42, %v992_v48  ;;  %v3468_v62 = vmul.f32 %v2966_v47, %v3376_v11  ;;  %v2968_v1 = vpop.eup %2967  ;;  %v1028_v3 = vmul.f32 %v3412_v50, %v992_v48  ;;  %960 = vst [vmem:[#allocation2 + $0x68] sm:$0xff] %v3464_v52  ;;  %v764_v11 = vadd.f32 1.0, %v2964_v41  ;;  %v2831_v41 = vpop.f32.mrf.mxu1 }
 0x106   : > { %v3480_v9 = vld [vmem:[#allocation2 + $0x49] sm:$0xff]  ;;  %v769_v21 = vadd.f32 1.0, %v2968_v1  ;;  %v1162_v31 = vadd.f32 %v1130_v12, %v1030_v60  ;;  %v1727_v48 = vmul.f32 %v3451_v37, %v3416_v54  ;;  %v1430_v60 = vmul.f32 %v3449_v36, %v3464_v52 }
 0x107   : > { %v1358_v57 = vadd.f32 %v1326_v59, %v1258_v45  ;;  %963 = vst [vmem:[#allocation2 + $0x90] sm:$0xff] %v3468_v62  ;;  %v1160_v23 = vadd.f32 %v1128_v13, %v1028_v3  ;;  %v1230_v24 = vmul.f32 %v3426_v4, %v3480_v9  ;;  %2979 = vrcp.f32 %v764_v11  ;;  %v995_v63 = vld [vmem:[#allocation2 + $0x4f] sm:$0xff]  ;;  %v596_v12 = vpop.f32.mrf.mxu1  ;;  %v2970_v13 = vpop.eup %2969 }
 0x108   : > { %v993_v15 = vld [vmem:[#allocation2 + $0x2f] sm:$0xff]  ;;  %v1627_v45 = vmul.f32 %v3458_v44, %v994_v58  ;;  %2981 = vrcp.f32 %v769_v21 }
 0x109   : > { %v1192_v16 = vld [vmem:[#allocation2 + $0x29] sm:$0xff]  ;;  %v1458_v19 = vadd.f32 %v1426_v6, %v1358_v57  ;;  %v1029_v25 = vmul.f32 %v3412_v50, %v993_v15  ;;  %v1193_v28 = vld [vmem:[#allocation2 + $0x31] sm:$0xff]  ;;  %v1327_v0 = vmul.f32 %v3456_v42, %v993_v15  ;;  %v1262_v53 = vadd.f32 %v1230_v24, %v1162_v31 }
 0x10a   : > { %v1228_v26 = vmul.f32 %v3426_v4, %v1192_v16  ;;  %v1526_v30 = vmul.f32 %v3461_v51, %v1192_v16  ;;  %v1229_v59 = vmul.f32 %v3426_v4, %v1193_v28  ;;  %v1527_v57 = vmul.f32 %v3461_v51, %v1193_v28 }
 0x10b   : > { %v1161_v35 = vadd.f32 %v1129_v20, %v1029_v25  ;;  %v1359_v5 = vadd.f32 %v1327_v0, %v1259_v61  ;;  %v1528_v61 = vmul.f32 %v3461_v51, %v3480_v9  ;;  %v1628_v15 = vmul.f32 %v3458_v44, %v995_v63  ;;  %v2972_v21 = vpop.eup %2971 }
 0x10c   : > { %v1260_v2 = vadd.f32 %v1228_v26, %v1160_v23  ;;  %v1558_v46 = vadd.f32 %v1526_v30, %v1458_v19  ;;  %v3500_v47 = vld [vmem:[#allocation2 + $0x67] sm:$0xff]  ;;  %v1329_v23 = vmul.f32 %v3456_v42, %v995_v63  ;;  %v3519_v26 = vadd.f32 %v2831_v41, %v3349_v55 }
 0x10d   : > { %v1459_v3 = vadd.f32 %v1427_v29, %v1359_v5  ;;  %v1330_v58 = vmul.f32 %v3456_v42, %v3500_v47  ;;  %v1261_v11 = vadd.f32 %v1229_v59, %v1161_v35  ;;  %v1629_v25 = vmul.f32 %v3458_v44, %v3500_v47 }
 0x10e   : > { %v1360_v1 = vadd.f32 %v1328_v34, %v1260_v2  ;;  %v1659_v6 = vadd.f32 %v1627_v45, %v1558_v46  ;;  %v2974_v28 = vpop.eup %2973  ;;  %v3526_v30 = vadd.f32 %v3349_v55, %v596_v12  ;;  %v1729_v2 = vmul.f32 %v3451_v37, %v3464_v52 }
 0x10f   : > { %v1559_v16 = vadd.f32 %v1527_v57, %v1459_v3  ;;  %v1362_v20 = vadd.f32 %v1330_v58, %v1262_v53  ;;  %v1361_v34 = vadd.f32 %v1329_v23, %v1261_v11  ;;  %v2695_v41 = vmul.f32 -1.442695, %v3476_v8 }
 0x110   : > { %v1460_v54 = vadd.f32 %v1428_v18, %v1360_v1  ;;  %v3513_v19 = vadd.f32 %v1727_v48, %v1659_v6  ;;  %v1728_v18 = vmul.f32 %v3451_v37, %v3433_v10  ;;  %v2976_v31 = vpop.eup %2975  ;;  %v1429_v46 = vmul.f32 %v3449_v36, %v3433_v10  ;;  %v998_v6 = vld [vmem:[#allocation2 + $0x87] sm:$0xff] }
 0x111   : > { %v1660_v0 = vadd.f32 %v1628_v15, %v1559_v16  ;;  %v3523_v29 = vadd.f32 %v1430_v60, %v1362_v20  ;;  %v2978_v45 = vpop.eup %2977  ;;  %v2700_v53 = vmul.f32 -1.442695, %v3519_v26  ;;  %v1031_v59 = vmul.f32 %v3412_v50, %v995_v63  ;;  %v1195_v63 = vld [vmem:[#allocation2 + $0x51] sm:$0xff] }
 0x112   : > { %v1560_v24 = vadd.f32 %v1528_v61, %v1460_v54  ;;  %v3538_v1 = vmul.f32 %v2972_v21, %v3380_v14  ;;  %2983 = vpow2.f32 %v3473_v49  ;;  %v2698_v3 = vmul.f32 -1.442695, %v3526_v30  ;;  %v3578_v21 = vld [vmem:[#allocation2 + $0x8f] sm:$0xff] }
 0x113   : > { %v1760_v5 = vadd.f32 %v1728_v18, %v1660_v0  ;;  %v1461_v58 = vadd.f32 %v1429_v46, %v1361_v34  ;;  %v3543_v61 = vmul.f32 %v2974_v28, %v3383_v17  ;;  %v3546_v11 = vmul.f32 %v2976_v31, %v3387_v22  ;;  %v3560_v17 = vld [vmem:[%s4909_s3 + $0x8] ss:$0 sm:$0xff]  ;;  %v3590_v28 = vld [vmem:[#allocation2 + $0x89] sm:$0xff]  ;;  %v3594_v34 = vld [vmem:[#allocation2 + $0x91] sm:$0xff] }
 0x114   : > { %v1661_v35 = vadd.f32 %v1629_v25, %v1560_v24  ;;  %v2980_v57 = vpop.eup %2979  ;;  %v3549_v60 = vmul.f32 %v2978_v45, %v3391_v27  ;;  %v1131_v14 = vmul.f32 %v3418_v56, %v3433_v10  ;;  %961 = vst [vmem:[#allocation2 + $0x70] sm:$0xff] %v3538_v1  ;;  %2985 = vpow2.f32 %v2695_v41  ;;  %v3604_v41 = vld [vmem:[%s4910_s4] ss:$0 sm:$0xff] }
 0x115   : > { %v2982_v49 = vpop.eup %2981  ;;  %966 = vst [vmem:[#allocation2 + $0xc8] sm:$0xff] %v3543_v61  ;;  %964 = vst [vmem:[#allocation2 + $0xa8] sm:$0xff] %v3546_v11  ;;  %2987 = vpow2.f32 %v2700_v53  ;;  %v1034_v27 = vmul.f32 %v3412_v50, %v998_v6  ;;  %v1134_v10 = vmul.f32 %v3418_v56, %v3447_v32  ;;  %v3567_v54 = vmul.f32 %v3449_v36, %v3447_v32 }
 0x116   : > { %v3533_v48 = vadd.f32 %v1729_v2, %v1661_v35  ;;  %967 = vst [vmem:[#allocation2 + $0xd0] sm:$0xff] %v3549_v60  ;;  %v1163_v22 = vadd.f32 %v1131_v14, %v1031_v59  ;;  %2989 = vpow2.f32 %v2698_v3  ;;  %v3571_v12 = vmul.f32 %v3451_v37, %v3447_v32 }
 0x117   : > { %v1032_v15 = vmul.f32 %v3412_v50, %v3500_v47  ;;  %v1231_v16 = vmul.f32 %v3426_v4, %v1195_v63  ;;  %v1132_v20 = vmul.f32 %v3418_v56, %v3464_v52  ;;  %v3581_v23 = vmul.f32 %v2980_v57, %v3395_v33 }
 0x118   : > { %v3584_v24 = vmul.f32 %v2982_v49, %v3401_v40  ;;  %v1529_v25 = vmul.f32 %v3461_v51, %v1195_v63  ;;  %v1827_v32 = vmul.f32 %v3560_v17, %v3480_v9  ;;  %v1828_v47 = vmul.f32 %v3560_v17, %v1195_v63 }
 0x119   : > { %v767_v18 = vadd.f32 1.0, %v2970_v13  ;;  %v1263_v0 = vadd.f32 %v1231_v16, %v1163_v22  ;;  %v1166_v52 = vadd.f32 %v1134_v10, %v1034_v27  ;;  %v1332_v31 = vmul.f32 %v3456_v42, %v998_v6  ;;  %965 = vst [vmem:[#allocation2 + $0xb0] sm:$0xff] %v3581_v23 }
 0x11a   : > { %v1631_v33 = vmul.f32 %v3458_v44, %v998_v6  ;;  %970 = vst [vmem:[#allocation2 + $0x108] sm:$0xff] %v3584_v24  ;;  %v1859_v40 = vadd.f32 %v1827_v32, %v3513_v19  ;;  %v1164_v9 = vadd.f32 %v1132_v20, %v1032_v15  ;;  %v1035_v35 = vmul.f32 %v3412_v50, %v3578_v21 }
 0x11b   : > { %v997_v2 = vld [vmem:[#allocation2 + $0x6f] sm:$0xff]  ;;  %v1561_v45 = vadd.f32 %v1529_v25, %v1461_v58  ;;  %v1135_v46 = vmul.f32 %v3418_v56, %v3468_v62  ;;  %v1234_v53 = vmul.f32 %v3426_v4, %v3590_v28  ;;  %v1860_v3 = vadd.f32 %v1828_v47, %v1760_v5 }
 0x11c   : > { %v1196_v13 = vld [vmem:[#allocation2 + $0x69] sm:$0xff]  ;;  %v1331_v59 = vmul.f32 %v3456_v42, %v997_v2  ;;  %v1235_v57 = vmul.f32 %v3426_v4, %v3594_v34  ;;  %v1197_v6 = vld [vmem:[#allocation2 + $0x71] sm:$0xff]  ;;  %v1630_v14 = vmul.f32 %v3458_v44, %v997_v2  ;;  %v1033_v49 = vmul.f32 %v3412_v50, %v997_v2 }
 0x11d   : > { %v1232_v19 = vmul.f32 %v3426_v4, %v1196_v13  ;;  %v1530_v58 = vmul.f32 %v3461_v51, %v1196_v13  ;;  %v1431_v27 = vmul.f32 %v3449_v36, %v3538_v1  ;;  %v3620_v15 = vadd.f32 %v3604_v41, %v1859_v40  ;;  %v3703_v43 = vld [vmem:[#allocation2 + $0xcf] sm:$0xff] }
 0x11e   : > { %v1363_v22 = vadd.f32 %v1331_v59, %v1263_v0  ;;  %v1662_v16 = vadd.f32 %v1630_v14, %v1561_v45  ;;  %v1730_v20 = vmul.f32 %v3451_v37, %v3538_v1  ;;  %v1133_v25 = vmul.f32 %v3418_v56, %v3538_v1 }
 0x11f   : > { %v1264_v63 = vadd.f32 %v1232_v19, %v1164_v9  ;;  %v2984_v10 = vpop.eup %2983  ;;  %v1562_v5 = vadd.f32 %v1530_v58, %v3523_v29  ;;  %v1531_v0 = vmul.f32 %v3461_v51, %v1197_v6  ;;  %v3631_v2 = vadd.f32 %v3604_v41, %v1860_v3  ;;  %v1000_v29 = vld [vmem:[#allocation2 + $0xa7] sm:$0xff] }
 0x120   : > { %v1463_v47 = vadd.f32 %v1431_v27, %v1363_v22  ;;  %v1167_v40 = vadd.f32 %v1135_v46, %v1035_v35  ;;  %v1762_v59 = vadd.f32 %v1730_v20, %v1662_v16  ;;  %v1266_v58 = vadd.f32 %v1234_v53, %v1166_v52 }
 0x121   : > { %v1364_v32 = vadd.f32 %v1332_v31, %v1264_v63  ;;  %v3628_v9 = vpop.eup %2985  ;;  %v1663_v19 = vadd.f32 %v1631_v33, %v1562_v5  ;;  %v1632_v14 = vmul.f32 %v3458_v44, %v3578_v21  ;;  %v1165_v1 = vadd.f32 %v1133_v25, %v1033_v49 }
 0x122   : > { %v3633_v45 = vpop.eup %2987  ;;  %v1563_v31 = vadd.f32 %v1531_v0, %v1463_v47  ;;  %v2716_v22 = vmul.f32 -1.442695, %v3620_v15  ;;  %v1532_v3 = vmul.f32 %v3461_v51, %v3590_v28  ;;  %v1732_v33 = vmul.f32 %v3451_v37, %v3468_v62 }
 0x123   : > { %v3637_v63 = vpop.eup %2989  ;;  %v1763_v35 = vadd.f32 %v3571_v12, %v1663_v19  ;;  %v1233_v46 = vmul.f32 %v3426_v4, %v1197_v6  ;;  %v1334_v53 = vmul.f32 %v3456_v42, %v1000_v29  ;;  %v1464_v49 = vadd.f32 %v3567_v54, %v1364_v32 }
 0x124   : > { %v1664_v52 = vadd.f32 %v1632_v14, %v1563_v31  ;;  %v2717_v27 = vmul.f32 -1.442695, %v3631_v2  ;;  %v1333_v5 = vmul.f32 %v3456_v42, %v3578_v21  ;;  %v1434_v16 = vmul.f32 %v3449_v36, %v3546_v11 }
 0x125   : > { %2991 = vrcp.f32 %v767_v18  ;;  %v1265_v20 = vadd.f32 %v1233_v46, %v1165_v1  ;;  %v1366_v47 = vadd.f32 %v1334_v53, %v1266_v58  ;;  %v1564_v12 = vadd.f32 %v1532_v3, %v1464_v49 }
 0x126   : > { %v1764_v25 = vadd.f32 %v1732_v33, %v1664_v52  ;;  %v1433_v0 = vmul.f32 %v3449_v36, %v3468_v62  ;;  %v1829_v19 = vmul.f32 %v3560_v17, %v1196_v13  ;;  %v1633_v54 = vmul.f32 %v3458_v44, %v1000_v29  ;;  %v3669_v33 = vld [vmem:[#allocation2 + $0xc7] sm:$0xff] }
 0x127   : > { %v770_v32 = vadd.f32 1.0, %v2984_v10  ;;  %2993 = vpow2.f32 %v2716_v22  ;;  %v1267_v14 = vadd.f32 %v1235_v57, %v1167_v40  ;;  %v1466_v31 = vadd.f32 %v1434_v16, %v1366_v47  ;;  %v1001_v40 = vld [vmem:[#allocation2 + $0xaf] sm:$0xff] }
 0x128   : > { %v1733_v21 = vmul.f32 %v3451_v37, %v3546_v11  ;;  %2995 = vpow2.f32 %v2717_v27  ;;  %v1830_v18 = vmul.f32 %v3560_v17, %v1197_v6  ;;  %v1861_v58 = vadd.f32 %v1829_v19, %v3533_v48  ;;  %v3667_v22 = vld [vmem:[#allocation2 + $0xa9] sm:$0xff]  ;;  %v3692_v27 = vld [vmem:[#allocation2 + $0xb1] sm:$0xff] }
 0x129   : > { %v1665_v1 = vadd.f32 %v1633_v54, %v1564_v12  ;;  %v1533_v62 = vmul.f32 %v3461_v51, %v3594_v34  ;;  %v1831_v13 = vmul.f32 %v3560_v17, %v3590_v28  ;;  %v1832_v10 = vmul.f32 %v3560_v17, %v3594_v34 }
 0x12a   : > { %v1365_v57 = vadd.f32 %v1333_v5, %v1265_v20  ;;  %v1862_v3 = vadd.f32 %v1830_v18, %v1762_v59  ;;  %v1036_v6 = vmul.f32 %v3412_v50, %v1000_v29  ;;  %2997 = vrcp.f32 %v770_v32 }
 0x12b   : > { %v3672_v48 = vadd.f32 %v1733_v21, %v1665_v1  ;;  %v1735_v46 = vmul.f32 %v3451_v37, %v3543_v61  ;;  %v1136_v28 = vmul.f32 %v3418_v56, %v3546_v11  ;;  %v1137_v34 = vmul.f32 %v3418_v56, %v3581_v23 }
 0x12c   : > { %v1435_v52 = vmul.f32 %v3449_v36, %v3581_v23  ;;  %v3683_v59 = vadd.f32 %v3604_v41, %v1861_v58  ;;  %v1037_v29 = vmul.f32 %v3412_v50, %v1001_v40  ;;  %v1236_v53 = vmul.f32 %v3426_v4, %v3667_v22 }
 0x12d   : > { %v1734_v49 = vmul.f32 %v3451_v37, %v3581_v23  ;;  %v1635_v11 = vmul.f32 %v3458_v44, %v3669_v33  ;;  %v1335_v5 = vmul.f32 %v3456_v42, %v1001_v40  ;;  %v1465_v16 = vadd.f32 %v1433_v0, %v1365_v57 }
 0x12e   : > { %v1534_v20 = vmul.f32 %v3461_v51, %v3667_v22  ;;  %v1863_v47 = vadd.f32 %v1831_v13, %v1763_v35  ;;  %v3698_v12 = vadd.f32 %v3604_v41, %v1862_v3  ;;  %v1168_v19 = vadd.f32 %v1136_v28, %v1036_v6 }
 0x12f   : > { %v1169_v54 = vadd.f32 %v1137_v34, %v1037_v29  ;;  %v1367_v32 = vadd.f32 %v1335_v5, %v1267_v14  ;;  %v1565_v21 = vadd.f32 %v1533_v62, %v1465_v16  ;;  %v1634_v18 = vmul.f32 %v3458_v44, %v1001_v40  ;;  %v2832_v16 = vpop.f32.mrf.mxu1 }
 0x130   : > { %v1566_v23 = vadd.f32 %v1534_v20, %v1466_v31  ;;  %v1864_v58 = vadd.f32 %v1832_v10, %v1764_v25  ;;  %v1336_v1 = vmul.f32 %v3456_v42, %v3669_v33  ;;  %v1237_v0 = vmul.f32 %v3426_v4, %v3692_v27 }
 0x131   : > { %v1268_v35 = vadd.f32 %v1236_v53, %v1168_v19  ;;  %v1467_v57 = vadd.f32 %v1435_v52, %v1367_v32  ;;  %v1535_v3 = vmul.f32 %v3461_v51, %v3692_v27  ;;  %v1666_v14 = vadd.f32 %v1634_v18, %v1565_v21  ;;  %v1202_v32 = vld [vmem:[#allocation2 + $0xc9] sm:$0xff] }
 0x132   : > { %v2992_v13 = vpop.eup %2991  ;;  %v1667_v62 = vadd.f32 %v1635_v11, %v1566_v23  ;;  %v3710_v31 = vadd.f32 %v3604_v41, %v1863_v47  ;;  %v2718_v25 = vmul.f32 -1.442695, %v3683_v59  ;;  %v2719_v10 = vmul.f32 -1.442695, %v3698_v12 }
 0x133   : > { %v1269_v40 = vadd.f32 %v1237_v0, %v1169_v54  ;;  %v1636_v6 = vmul.f32 %v3458_v44, %v3703_v43  ;;  %v1567_v28 = vadd.f32 %v1535_v3, %v1467_v57  ;;  %v3716_v34 = vadd.f32 %v1734_v49, %v1666_v14  ;;  %v599_v57 = vpop.f32.mrf.mxu1 }
 0x134   : > { %v3718_v52 = vadd.f32 %v1735_v46, %v1667_v62  ;;  %v2994_v29 = vpop.eup %2993  ;;  %v1337_v53 = vmul.f32 %v3456_v42, %v3703_v43  ;;  %v1368_v11 = vadd.f32 %v1336_v1, %v1268_v35  ;;  %v3723_v5 = vmul.f32 %v2992_v13, %v3429_v7 }
 0x135   : > { %v2996_v20 = vpop.eup %2995  ;;  %v3726_v47 = vadd.f32 %v3604_v41, %v1864_v58  ;;  %v1736_v19 = vmul.f32 %v3451_v37, %v3549_v60  ;;  %v1668_v49 = vadd.f32 %v1636_v6, %v1567_v28  ;;  %2999 = vpow2.f32 %v2718_v25 }
 0x136   : > { %v2720_v46 = vmul.f32 -1.442695, %v3710_v31  ;;  %v1436_v54 = vmul.f32 %v3449_v36, %v3543_v61  ;;  %v1369_v21 = vadd.f32 %v1337_v53, %v1269_v40  ;;  %968 = vst [vmem:[#allocation2 + $0xe8] sm:$0xff] %v3723_v5  ;;  %v2026_v23 = vadd.f32 1.0, %v2994_v29 }
 0x137   : > { %v2998_v7 = vpop.eup %2997  ;;  %3001 = vpow2.f32 %v2719_v10  ;;  %v3734_v18 = vadd.f32 %v1736_v19, %v1668_v49  ;;  %v3737_v58 = vadd.f32 %v2832_v16, %v3349_v55  ;;  %v2027_v1 = vadd.f32 1.0, %v2996_v20  ;;  %v2835_v19 = vpop.f32.mrf.mxu1 }
 0x138   : > { %v1038_v0 = vmul.f32 %v3412_v50, %v3669_v33  ;;  %v1437_v35 = vmul.f32 %v3449_v36, %v3549_v60  ;;  %v1468_v13 = vadd.f32 %v1436_v54, %v1368_v11  ;;  %v2721_v3 = vmul.f32 -1.442695, %v3726_v47 }
 0x139   : > { %v1138_v14 = vmul.f32 %v3418_v56, %v3543_v61  ;;  %v1238_v62 = vmul.f32 %v3426_v4, %v1202_v32  ;;  %v768_v25 = vadd.f32 1.0, %v3628_v9  ;;  %3003 = vpow2.f32 %v2720_v46 }
 0x13a   : > { %v1536_v10 = vmul.f32 %v3461_v51, %v1202_v32  ;;  %v3750_v40 = vmul.f32 %v2998_v7, %v3454_v39  ;;  %v3752_v33 = vadd.f32 %v1437_v35, %v1369_v21  ;;  %3005 = vrcp.f32 %v2026_v23  ;;  %v612_v35 = vpop.f32.mrf.mxu1 }
 0x13b   : > { %v3755_v6 = vadd.f32 %v3349_v55, %v599_v57  ;;  %3007 = vrcp.f32 %v2027_v1  ;;  %v1170_v28 = vadd.f32 %v1138_v14, %v1038_v0  ;;  %v773_v61 = vadd.f32 1.0, %v3633_v45 }
 0x13c   : > { %v1568_v29 = vadd.f32 %v1536_v10, %v1468_v13  ;;  %971 = vst [vmem:[#allocation2 + $0x110] sm:$0xff] %v3750_v40  ;;  %3009 = vpow2.f32 %v2721_v3  ;;  %v771_v53 = vadd.f32 1.0, %v3637_v63  ;;  %v2701_v39 = vmul.f32 -1.442695, %v3737_v58 }
 0x13d   : > { %v3759_v9 = vld [vmem:[#allocation2 + $0xe7] sm:$0xff]  ;;  %v1270_v11 = vadd.f32 %v1238_v62, %v1170_v28  ;;  %3011 = vrcp.f32 %v768_v25  ;;  %v1833_v49 = vmul.f32 %v3560_v17, %v3667_v22  ;;  %v1438_v45 = vmul.f32 %v3449_v36, %v3723_v5 }
 0x13e   : > { %v1338_v16 = vmul.f32 %v3456_v42, %v3759_v9  ;;  %v1637_v20 = vmul.f32 %v3458_v44, %v3759_v9  ;;  %v2699_v46 = vmul.f32 -1.442695, %v3755_v6  ;;  %v1737_v21 = vmul.f32 %v3451_v37, %v3723_v5  ;;  %v1006_v28 = vld [vmem:[#allocation2 + $0x107] sm:$0xff] }
 0x13f   : > { %3013 = vrcp.f32 %v773_v61  ;;  %v1834_v7 = vmul.f32 %v3560_v17, %v3692_v27  ;;  %v1865_v23 = vadd.f32 %v1833_v49, %v3672_v48  ;;  %v1835_v1 = vmul.f32 %v3560_v17, %v1202_v32 }
 0x140   : > { %v1370_v63 = vadd.f32 %v1338_v16, %v1270_v11  ;;  %v1669_v54 = vadd.f32 %v1637_v20, %v1568_v29  ;;  %3015 = vrcp.f32 %v771_v53  ;;  %v1039_v57 = vmul.f32 %v3412_v50, %v3703_v43  ;;  %v1203_v43 = vld [vmem:[#allocation2 + $0xd1] sm:$0xff] }
 0x141   : > { %3017 = vpow2.f32 %v2701_v39  ;;  %v1866_v3 = vadd.f32 %v1834_v7, %v3716_v34  ;;  %v3786_v27 = vadd.f32 %v2835_v19, %v3349_v55  ;;  %v1867_v14 = vadd.f32 %v1835_v1, %v3718_v52 }
 0x142   : > { %v3778_v22 = vadd.f32 %v1438_v45, %v1370_v63  ;;  %v3780_v0 = vadd.f32 %v1737_v21, %v1669_v54  ;;  %v3000_v13 = vpop.eup %2999  ;;  %3019 = vpow2.f32 %v2699_v46  ;;  %v1139_v32 = vmul.f32 %v3418_v56, %v3549_v60  ;;  %v2836_v63 = vpop.f32.mrf.mxu1  ;;  %v2208_v54 = vld [vmem:[%s4911_s5 + $0x70] sm:$0xff] }
 0x143   : > { %v3792_v62 = vadd.f32 %v3604_v41, %v1865_v23  ;;  %v3795_v25 = vadd.f32 %v3349_v55, %v612_v35  ;;  %v2028_v10 = vadd.f32 1.0, %v3000_v13  ;;  %v3798_v53 = vadd.f32 %v3604_v41, %v1866_v3 }
 0x144   : > { %v3002_v48 = vpop.eup %3001  ;;  %v1171_v61 = vadd.f32 %v1139_v32, %v1039_v57  ;;  %v3801_v52 = vmul.f32 -1.442695, %v3786_v27  ;;  %v3804_v60 = vadd.f32 %v3604_v41, %v1867_v14  ;;  %v1142_v55 = vmul.f32 %v3418_v56, %v3584_v24 }
 0x145   : > { %4963 = vst [vmem:[#allocation6_spill] sm:$0xff] %v3792_v62  ;;  %4964 = vst [vmem:[#allocation7_spill] sm:$0xff] %v3795_v25  ;;  %v2029_v29 = vadd.f32 1.0, %v3002_v48  ;;  %v3810_v11 = vmul.f32 %v3449_v36, %v3584_v24  ;;  %v3814_v16 = vmul.f32 %v3451_v37, %v3584_v24  ;;  %v1239_v19 = vmul.f32 %v3426_v4, %v1203_v43  ;;  %v2209_v24 = vld [vmem:[%s4911_s5 + $0x78] sm:$0xff] }
 0x146   : > { %v3004_v34 = vpop.eup %3003  ;;  %4965 = vst [vmem:[#allocation8_spill] sm:$0xff] %v3798_v53  ;;  %4966 = vst [vmem:[#allocation9_spill] sm:$0xff] %v3804_v60  ;;  %v2722_v49 = vmul.f32 -1.442695, %v3792_v62  ;;  %v1042_v45 = vmul.f32 %v3412_v50, %v1006_v28  ;;  %v3820_v46 = vmul.f32 -1.442695, %v3795_v25  ;;  %3021 = vrcp.f32 %v2028_v10 }
 0x147   : > { %v3006_v39 = vpop.eup %3005  ;;  %v2030_v7 = vadd.f32 1.0, %v3004_v34  ;;  %v3829_v23 = vmul.f32 %v3461_v51, %v1203_v43  ;;  %v1836_v1 = vmul.f32 %v3560_v17, %v1203_v43  ;;  %3023 = vrcp.f32 %v2029_v29  ;;  %v2206_v43 = vld [vmem:[%s4911_s5 + $0x60] sm:$0xff] }
 0x148   : > { %v3008_v20 = vpop.eup %3007  ;;  %v3833_v13 = vmul.f32 %v3006_v39, %v3620_v15  ;;  %v3835_v57 = vadd.f32 %v1239_v19, %v1171_v61  ;;  %v2723_v3 = vmul.f32 -1.442695, %v3798_v53  ;;  %v2724_v14 = vmul.f32 -1.442695, %v3804_v60  ;;  %v2207_v15 = vld [vmem:[%s4911_s5 + $0x68] sm:$0xff]  ;;  %v615_v39 = vpop.f32.mrf.mxu1 }
 0x149   : > { %v3010_v21 = vpop.eup %3009  ;;  %v1868_v48 = vadd.f32 %v1836_v1, %v3734_v18  ;;  %v2217_v10 = vpack.c.bf16 %v2209_v24, %v2208_v54  ;;  %v3850_v61 = vmul.f32 %v3008_v20, %v3631_v2  ;;  %3025 = vpow2.f32 %v2722_v49  ;;  %v3870_v20 = vld [vmem:[%s4908_s2] ss:$0 sm:$0xff] }
 0x14a   : > { %v3012_v35 = vpop.eup %3011  ;;  %4967 = vst [vmem:[#allocation10_spill] sm:$0xff] %v3833_v13  ;;  %v2031_v29 = vadd.f32 1.0, %v3010_v21  ;;  %v3852_v18 = vadd.f32 %v1142_v55, %v1042_v45  ;;  %3027 = vrcp.f32 %v2030_v7  ;;  %v3855_v19 = vmul.f32 %v3456_v42, %v1006_v28  ;;  %v2204_v45 = vld [vmem:[%s4911_s5 + $0x50] sm:$0xff] }
 0x14b   : > { %v3841_v32 = vmul.f32 %v3012_v35, %v3476_v8  ;;  %4968 = vst [vmem:[#allocation11_spill] sm:$0xff] %v3850_v61  ;;  %v3858_v54 = vmul.f32 %v3458_v44, %v1006_v28  ;;  %2846 = vmatpush3.bf16.msra.mxu1 %v2217_v10  ;;  %3029 = vpow2.f32 %v2723_v3  ;;  %v3873_v49 = vadd.f32 %v3870_v20, %v2836_v63  ;;  %v3875_v28 = vld [vmem:[#allocation2 + $0x40] sm:$0xff] }
 0x14c   : > { %v3014_v34 = vpop.eup %3013  ;;  %4970 = vst [vmem:[#allocation13_spill] sm:$0xff] %v3875_v28  ;;  %2847 = vmatprep.subr.bf16.mxu1 %v3875_v28  ;;  %v3885_v7 = vadd.f32 %v3604_v41, %v1868_v48  ;;  %3031 = vpow2.f32 %v2724_v14  ;;  %v3889_v1 = vadd.f32 %v3870_v20, %v615_v39  ;;  %v3893_v35 = vadd.f32 %v3850_v61, %v3833_v13  ;;  %v2202_v39 = vld [vmem:[%s4911_s5 + $0x40] sm:$0xff] }
 0x14d   : > { %v3016_v8 = vpop.eup %3015  ;;  %969 = vst [vmem:[#allocation2 + $0xf0] sm:$0xff] %v3841_v32  ;;  %v3862_v24 = vmul.f32 %v3014_v34, %v3519_v26  ;;  %4969 = vst [vmem:[#allocation12_spill] sm:$0xff] %v3873_v49  ;;  %v2216_v26 = vpack.c.bf16 %v2207_v15, %v2206_v43  ;;  %3033 = vrcp.f32 %v2031_v29  ;;  %v1140_v3 = vmul.f32 %v3418_v56, %v3723_v5  ;;  %v2839_v43 = vpop.f32.mrf.mxu1 }
 0x14e   : > { %v3018_v2 = vpop.eup %3017  ;;  %v3865_v55 = vmul.f32 %v3016_v8, %v3526_v30  ;;  %v2205_v30 = vld [vmem:[%s4911_s5 + $0x58] sm:$0xff]  ;;  %4971 = vst [vmem:[#allocation14_spill] sm:$0xff] %v3885_v7  ;;  %4972 = vst [vmem:[#allocation15_spill] sm:$0xff] %v3889_v1  ;;  %v3900_v48 = vmul.f32 %v3418_v56, %v3750_v40  ;;  %v3904_v14 = vmul.f32 %v3449_v36, %v3750_v40  ;;  %3035 = vpow2.f32 %v3801_v52  ;;  %v2203_v52 = vld [vmem:[%s4911_s5 + $0x48] sm:$0xff] }
 0x14f   : > { %v3020_v21 = vpop.eup %3019  ;;  %974 = vst [vmem:[#allocation2 + $0x148] sm:$0xff] %v3862_v24  ;;  %v774_v63 = vadd.f32 1.0, %v3018_v2  ;;  %2848 = vmatpush3.bf16.msra.mxu1 %v2216_v26  ;;  %v2215_v15 = vpack.c.bf16 %v2205_v30, %v2204_v45  ;;  %v1040_v34 = vmul.f32 %v3412_v50, %v3759_v9  ;;  %v3911_v5 = vmul.f32 %v3451_v37, %v3750_v40 }
 0x150   : > { %972 = vst [vmem:[#allocation2 + $0x128] sm:$0xff] %v3865_v55  ;;  %v772_v10 = vadd.f32 1.0, %v3020_v21  ;;  %v2705_v29 = vmul.f32 -1.442695, %v3873_v49  ;;  %2849 = vmatprep.subr.bf16.mxu1 %v3875_v28  ;;  %v2725_v8 = vmul.f32 -1.442695, %v3885_v7  ;;  %v1141_v2 = vmul.f32 %v3418_v56, %v3841_v32  ;;  %2861 = vmatprep.mubr.msk.bf16.mxu1 %vm3207_vm1, %v3875_v28 }
 0x151   : > { %3037 = vrcp.f32 %v774_v63  ;;  %v2703_v9 = vmul.f32 -1.442695, %v3889_v1  ;;  %v1569_v45 = vadd.f32 %v3829_v23, %v3752_v33  ;;  %v3931_v30 = vadd.f32 %v3870_v20, %v2839_v43 }
 0x152   : > { %3039 = vrcp.f32 %v772_v10  ;;  %v2214_v61 = vpack.c.bf16 %v2203_v52, %v2202_v39  ;;  %v1172_v33 = vadd.f32 %v1140_v3, %v1040_v34  ;;  %v1007_v3 = vld [vmem:[#allocation2 + $0x10f] sm:$0xff]  ;;  %v1439_v7 = vmul.f32 %v3449_v36, %v3841_v32 }
 0x153   : > { %3041 = vpow2.f32 %v3820_v46  ;;  %2850 = vmatpush3.bf16.msra.mxu1 %v2215_v15  ;;  %v3022_v13 = vpop.eup %3021  ;;  %v2201_v15 = vld [vmem:[%s4911_s5 + $0x38] sm:$0xff]  ;;  %v1738_v62 = vmul.f32 %v3451_v37, %v3841_v32 }
 0x154   : > { %v1005_v40 = vld [vmem:[#allocation2 + $0xef] sm:$0xff]  ;;  %3043 = vpow2.f32 %v2705_v29  ;;  %2851 = vmatprep.subr.bf16.mxu1 %v3875_v28  ;;  %v3024_v39 = vpop.eup %3023 }
 0x155   : > { %v3925_v26 = vld [vmem:[#allocation2 + $0xe9] sm:$0xff]  ;;  %v1041_v21 = vmul.f32 %v3412_v50, %v1005_v40  ;;  %v1339_v10 = vmul.f32 %v3456_v42, %v1005_v40  ;;  %v3939_v23 = vld [vmem:[#allocation2 + $0xf1] sm:$0xff]  ;;  %v1638_v43 = vmul.f32 %v3458_v44, %v1005_v40  ;;  %3045 = vpow2.f32 %v2703_v9 }
 0x156   : > { %v1240_v63 = vmul.f32 %v3426_v4, %v3925_v26  ;;  %v1538_v46 = vmul.f32 %v3461_v51, %v3925_v26  ;;  %v3954_v29 = vld [vmem:[#allocation2 + $0x109] sm:$0xff]  ;;  %v3026_v1 = vpop.eup %3025  ;;  %v1241_v49 = vmul.f32 %v3426_v4, %v3939_v23  ;;  %v2213_v9 = vpack.c.bf16 %v2201_v15, %v2200_v38 }
 0x157   : > { %v1173_v34 = vadd.f32 %v1141_v2, %v1041_v21  ;;  %v1371_v52 = vadd.f32 %v1339_v10, %v3835_v57  ;;  %v1670_v53 = vadd.f32 %v1638_v43, %v1569_v45  ;;  %v1539_v57 = vmul.f32 %v3461_v51, %v3939_v23  ;;  %v628_v21 = vpop.f32.mrf.mxu1  ;;  %2852 = vmatpush3.bf16.msra.mxu1 %v2214_v61  ;;  %v3963_v10 = vpop.eup %3027  ;;  %v2199_v38 = vld [vmem:[%s4911_s5 + $0x28] sm:$0xff] }
 0x158   : > { %v1272_v40 = vadd.f32 %v1240_v63, %v1172_v33  ;;  %v1570_v60 = vadd.f32 %v1538_v46, %v3778_v22  ;;  %v3966_v63 = vmul.f32 %v3022_v13, %v3683_v59  ;;  %v1043_v22 = vmul.f32 %v3412_v50, %v1007_v3  ;;  %2853 = vmatprep.subr.bf16.mxu1 %v3875_v28  ;;  %v3030_v61 = vpop.eup %3029 }
 0x159   : > { %v1471_v2 = vadd.f32 %v1439_v7, %v1371_v52  ;;  %v1770_v45 = vadd.f32 %v1738_v62, %v1670_v53  ;;  %v2198_v7 = vld [vmem:[%s4911_s5 + $0x20] sm:$0xff]  ;;  %v1242_v59 = vmul.f32 %v3426_v4, %v3954_v29  ;;  %v1640_v13 = vmul.f32 %v3458_v44, %v1007_v3 }
 0x15a   : > { %4973 = vst [vmem:[#allocation16_spill] sm:$0xff] %v3966_v63  ;;  %v1671_v32 = vadd.f32 %v3858_v54, %v1570_v60  ;;  %v1273_v33 = vadd.f32 %v1241_v49, %v1173_v34  ;;  %v3980_v60 = vpop.eup %3031  ;;  %3047 = vpow2.f32 %v2725_v8  ;;  %v1372_v62 = vadd.f32 %v3855_v19, %v1272_v40  ;;  %v3984_v54 = vld [vmem:[#allocation2 + $0x127] sm:$0xff] }
 0x15b   : > { %v1571_v46 = vadd.f32 %v1539_v57, %v1471_v2  ;;  %v3987_v43 = vadd.f32 %v3870_v20, %v628_v21  ;;  %v3989_v15 = vpop.eup %3033  ;;  %v1341_v52 = vmul.f32 %v3456_v42, %v1007_v3  ;;  %v3993_v49 = vmul.f32 -1.442695, %v3931_v30  ;;  %2854 = vmatpush3.bf16.msra.mxu1 %v2213_v9  ;;  %v2196_v3 = vld [vmem:[%s4911_s5 + $0x10] sm:$0xff] }
 0x15c   : > { %v1771_v53 = vadd.f32 %v3814_v16, %v1671_v32  ;;  %v2212_v34 = vpack.c.bf16 %v2199_v38, %v2198_v7  ;;  %v3036_v8 = vpop.eup %3035  ;;  %v3996_v19 = vmul.f32 %v3024_v39, %v3698_v12  ;;  %v2155_v16 = vadd.f32 %v3893_v35, %v3966_v63  ;;  %2855 = vmatprep.subr.bf16.mxu1 %v3875_v28  ;;  %v2197_v12 = vld [vmem:[%s4911_s5 + $0x18] sm:$0xff] }
 0x15d   : > { %v1672_v25 = vadd.f32 %v1640_v13, %v1571_v46  ;;  %v4001_v40 = vadd.f32 %v3900_v48, %v1043_v22  ;;  %v1540_v2 = vmul.f32 %v3461_v51, %v3954_v29  ;;  %v1274_v57 = vadd.f32 %v1242_v59, %v3852_v18 }
 0x15e   : > { %4974 = vst [vmem:[#allocation17_spill] sm:$0xff] %v3996_v19  ;;  %v3038_v39 = vpop.eup %3037  ;;  %v1373_v35 = vadd.f32 %v1341_v52, %v1273_v33  ;;  %v1342_v21 = vmul.f32 %v3456_v42, %v3984_v54  ;;  %v2032_v22 = vadd.f32 1.0, %v3026_v1  ;;  %v1837_v32 = vmul.f32 %v3560_v17, %v3925_v26 }
 0x15f   : > { %v1772_v48 = vadd.f32 %v3911_v5, %v1672_v25  ;;  %v3040_v9 = vpop.eup %3039  ;;  %v1442_v7 = vmul.f32 %v3449_v36, %v3865_v55  ;;  %v1472_v38 = vadd.f32 %v3810_v11, %v1372_v62  ;;  %v1838_v18 = vmul.f32 %v3560_v17, %v3939_v23  ;;  %2856 = vmatpush3.bf16.msra.mxu1 %v2212_v34  ;;  %v1207_v5 = vld [vmem:[#allocation2 + $0x111] sm:$0xff]  ;;  %v2194_v11 = vld [vmem:[%s4911_s5] sm:$0xff]  ;;  %v2195_v23 = vld [vmem:[%s4911_s5 + $0x8] sm:$0xff] }
 0x160   : > { %v3042_v13 = vpop.eup %3041  ;;  %v1374_v59 = vadd.f32 %v1342_v21, %v1274_v57  ;;  %v777_v33 = vadd.f32 1.0, %v3036_v8  ;;  %v2211_v25 = vpack.c.bf16 %v2197_v12, %v2196_v3  ;;  %v1869_v46 = vadd.f32 %v1837_v32, %v3780_v0  ;;  %2857 = vmatprep.subr.bf16.mxu1 %v3875_v28  ;;  %v2840_v21 = vpop.f32.mrf.mxu1 }
 0x161   : > { %v1572_v1 = vadd.f32 %v1540_v2, %v1472_v38  ;;  %v1641_v26 = vmul.f32 %v3458_v44, %v3984_v54  ;;  %v4027_v52 = vmul.f32 %v3038_v39, %v3737_v58  ;;  %v3044_v62 = vpop.eup %3043  ;;  %v1870_v34 = vadd.f32 %v1838_v18, %v1770_v45 }
 0x162   : > { %v4036_v0 = vadd.f32 %v1442_v7, %v1374_v59  ;;  %v4039_v8 = vmul.f32 %v3040_v9, %v3755_v6  ;;  %v4042_v58 = vadd.f32 %v3904_v14, %v1373_v35  ;;  %v3046_v2 = vpop.eup %3045  ;;  %v2033_v3 = vadd.f32 1.0, %v3030_v61 }
 0x163   : > { %v1839_v12 = vmul.f32 %v3560_v17, %v3954_v29  ;;  %v1673_v39 = vadd.f32 %v1641_v26, %v1572_v1  ;;  %v1741_v57 = vmul.f32 %v3451_v37, %v3865_v55  ;;  %975 = vst [vmem:[#allocation2 + $0x150] sm:$0xff] %v4027_v52  ;;  %v2156_v45 = vadd.f32 %v2155_v16, %v3996_v19  ;;  %v4080_v1 = vpop.f32.mrf.mxu1 }
 0x164   : > { %3049 = vrcp.f32 %v2032_v22  ;;  %v1840_v6 = vmul.f32 %v3560_v17, %v1207_v5  ;;  %973 = vst [vmem:[#allocation2 + $0x130] sm:$0xff] %v4039_v8  ;;  %2858 = vmatpush3.bf16.msra.mxu1 %v2211_v25  ;;  %v2210_v14 = vpack.c.bf16 %v2195_v23, %v2194_v11  ;;  %v4053_v61 = vadd.f32 %v3604_v41, %v1869_v46  ;;  %v4078_v46 = vld [vmem:[#allocation2 + $0x147] sm:$0xff] }
 0x165   : > { %v1871_v35 = vadd.f32 %v1839_v12, %v1771_v53  ;;  %v4055_v29 = vadd.f32 %v1741_v57, %v1673_v39  ;;  %3051 = vrcp.f32 %v777_v33  ;;  %2859 = vmatprep.subr.bf16.mxu1 %v3875_v28  ;;  %v4059_v9 = vadd.f32 %v3604_v41, %v1870_v34  ;;  %v2843_v39 = vpop.f32.mrf.mxu1 }
 0x166   : > { %v775_v16 = vadd.f32 1.0, %v3042_v13  ;;  %v778_v22 = vadd.f32 1.0, %v3044_v62  ;;  %v776_v17 = vadd.f32 1.0, %v3046_v2  ;;  %3053 = vrcp.f32 %v2033_v3 }
 0x167   : > { %v1243_v32 = vmul.f32 %v3426_v4, %v1207_v5  ;;  %v1872_v7 = vadd.f32 %v1840_v6, %v1772_v48  ;;  %v2706_v53 = vmul.f32 -1.442695, %v3987_v43  ;;  %v4063_v38 = vpop.eup %3047  ;;  %v4067_v18 = vmul.f32 %v3963_v10, %v3710_v31 }
 0x168   : > { %v1541_v59 = vmul.f32 %v3461_v51, %v1207_v5  ;;  %3055 = vrcp.f32 %v775_v16  ;;  %v4071_v33 = vadd.f32 %v3870_v20, %v2840_v21  ;;  %2860 = vmatpush3.bf16.msra.mxu1 %v2210_v14  ;;  %v4075_v25 = vadd.f32 %v3604_v41, %v1871_v35 }
 0x169   : > { %4975 = vst [vmem:[#allocation18_spill] sm:$0xff] %v4067_v18  ;;  %v1275_v13 = vadd.f32 %v1243_v32, %v4001_v40  ;;  %v2726_v48 = vmul.f32 -1.442695, %v4053_v61  ;;  %3057 = vrcp.f32 %v778_v22  ;;  %2865 = vmatprep.subr.bf16.mxu1 %v3875_v28  ;;  %v4084_v31 = vadd.f32 %v2156_v45, %v4067_v18 }
 0x16a   : > { %4976 = vst [vmem:[#allocation19_spill] sm:$0xff] %v4075_v25  ;;  %v2727_v10 = vmul.f32 -1.442695, %v4059_v9  ;;  %v1044_v40 = vmul.f32 %v3412_v50, %v3984_v54  ;;  %3059 = vrcp.f32 %v776_v17  ;;  %v4090_v5 = vadd.f32 %v3604_v41, %v1872_v7  ;;  %v1011_v45 = vld [vmem:[#allocation2 + $0x14f] sm:$0xff] }
 0x16b   : > { %v1444_v26 = vmul.f32 %v3449_v36, %v3862_v24  ;;  %v1743_v11 = vmul.f32 %v3451_v37, %v3862_v24  ;;  %v1009_v23 = vld [vmem:[#allocation2 + $0x12f] sm:$0xff]  ;;  %3061 = vpow2.f32 %v3993_v49  ;;  %v1344_v34 = vmul.f32 %v3456_v42, %v4078_v46 }
 0x16c   : > { %4977 = vst [vmem:[#allocation20_spill] sm:$0xff] %v4090_v5  ;;  %v4096_v62 = vld [vmem:[#allocation2 + $0x129] sm:$0xff]  ;;  %v1643_v54 = vmul.f32 %v3458_v44, %v4078_v46  ;;  %v1144_v41 = vmul.f32 %v3418_v56, %v3865_v55  ;;  %v4105_v2 = vld [vmem:[#allocation2 + $0x131] sm:$0xff]  ;;  %3063 = vpow2.f32 %v2706_v53  ;;  %v2728_v3 = vmul.f32 -1.442695, %v4075_v25 }
 0x16d   : > { %3065 = vpow2.f32 %v2726_v48  ;;  %v1045_v12 = vmul.f32 %v3412_v50, %v1009_v23  ;;  %v1145_v49 = vmul.f32 %v3418_v56, %v4039_v8  ;;  %v1244_v6 = vmul.f32 %v3426_v4, %v4096_v62 }
 0x16e   : > { %3067 = vpow2.f32 %v2727_v10  ;;  %v1176_v57 = vadd.f32 %v1144_v41, %v1044_v40  ;;  %v1343_v55 = vmul.f32 %v3456_v42, %v1009_v23  ;;  %v2729_v14 = vmul.f32 -1.442695, %v4090_v5  ;;  %v644_v41 = vpop.f32.mrf.mxu1 }
 0x16f   : > { %v1177_v35 = vadd.f32 %v1145_v49, %v1045_v12  ;;  %v1245_v21 = vmul.f32 %v3426_v4, %v4105_v2  ;;  %v1542_v16 = vmul.f32 %v3461_v51, %v4096_v62  ;;  %v1443_v32 = vmul.f32 %v3449_v36, %v4039_v8 }
 0x170   : > { %v1276_v22 = vadd.f32 %v1244_v6, %v1176_v57  ;;  %v1375_v17 = vadd.f32 %v1343_v55, %v1275_v13  ;;  %v1573_v7 = vadd.f32 %v1541_v59, %v4042_v58  ;;  %3069 = vpow2.f32 %v2728_v3 }
 0x171   : > { %v3050_v53 = vpop.eup %3049  ;;  %v1345_v48 = vmul.f32 %v3456_v42, %v1011_v45  ;;  %v1277_v10 = vadd.f32 %v1245_v21, %v1177_v35  ;;  %v1574_v40 = vadd.f32 %v1542_v16, %v4036_v0  ;;  %v1543_v57 = vmul.f32 %v3461_v51, %v4105_v2 }
 0x172   : > { %v3052_v12 = vpop.eup %3051  ;;  %v1376_v49 = vadd.f32 %v1344_v34, %v1276_v22  ;;  %v1475_v18 = vadd.f32 %v1443_v32, %v1375_v17  ;;  %v1642_v13 = vmul.f32 %v3458_v44, %v1009_v23  ;;  %v1445_v6 = vmul.f32 %v3449_v36, %v4027_v52 }
 0x173   : > { %v1377_v58 = vadd.f32 %v1345_v48, %v1277_v10  ;;  %v1675_v59 = vadd.f32 %v1643_v54, %v1574_v40  ;;  %v1742_v3 = vmul.f32 %v3451_v37, %v4039_v8  ;;  %v3054_v55 = vpop.eup %3053  ;;  %3071 = vpow2.f32 %v2729_v14  ;;  %v2844_v54 = vpop.f32.mrf.mxu1  ;;  %v4980_v40 = vld [vmem:[#allocation7_spill] sm:$0xff] }
 0x174   : > { %v1644_v0 = vmul.f32 %v3458_v44, %v1011_v45  ;;  %v1575_v35 = vadd.f32 %v1543_v57, %v1475_v18  ;;  %v1674_v34 = vadd.f32 %v1642_v13, %v1573_v7  ;;  %v4135_v22 = vmul.f32 %v3052_v12, %v3786_v27  ;;  %v1210_v13 = vld [vmem:[#allocation2 + $0x149] sm:$0xff] }
 0x175   : > { %v3056_v21 = vpop.eup %3055  ;;  %v4132_v16 = vadd.f32 %v1743_v11, %v1675_v59  ;;  %v4137_v23 = vadd.f32 %v1444_v26, %v1376_v49  ;;  %v4139_v17 = vadd.f32 %v1445_v6, %v1377_v58  ;;  %v4143_v8 = vmul.f32 %v3989_v15, %v3726_v47  ;;  %v647_v59 = vpop.f32.mrf.mxu1 }
 0x176   : > { %4978 = vst [vmem:[#allocation21_spill] sm:$0xff] %v4135_v22  ;;  %v3058_v32 = vpop.eup %3057  ;;  %v1744_v18 = vmul.f32 %v3451_v37, %v4027_v52  ;;  %v1676_v14 = vadd.f32 %v1644_v0, %v1575_v35  ;;  %v4147_v7 = vadd.f32 %v1742_v3, %v1674_v34  ;;  %978 = vst [vmem:[#allocation2 + $0x188] sm:$0xff] %v4135_v22  ;;  %v2034_v47 = vadd.f32 1.0, %v3980_v60  ;;  %v4981_v60 = vld [vmem:[#allocation12_spill] sm:$0xff]  ;;  %v4983_v0 = vld [vmem:[#allocation6_spill] sm:$0xff] }
 0x177   : > { %4979 = vst [vmem:[#allocation22_spill] sm:$0xff] %v4143_v8  ;;  %v3060_v11 = vpop.eup %3059  ;;  %v4152_v27 = vadd.f32 %v3870_v20, %v4080_v1  ;;  %v4155_v26 = vadd.f32 %v3870_v20, %v2843_v39  ;;  %v2035_v15 = vadd.f32 1.0, %v4063_v38  ;;  %v4162_v12 = vmul.f32 %v3056_v21, %v4980_v40  ;;  %v4168_v1 = vld [vmem:[%s4909_s3 + $0x8] ss:$0 sm:$0xff]  ;;  %v4982_v38 = vld [vmem:[#allocation15_spill] sm:$0xff] }
 0x178   : > { %v3062_v48 = vpop.eup %3061  ;;  %v4159_v10 = vadd.f32 %v1744_v18, %v1676_v14  ;;  %v1047_v57 = vmul.f32 %v3412_v50, %v1011_v45  ;;  %v1841_v39 = vmul.f32 %v4168_v1, %v4096_v62  ;;  %v4173_v6 = vmul.f32 %v3058_v32, %v4981_v60  ;;  %v1211_v14 = vld [vmem:[#allocation2 + $0x151] sm:$0xff] }
 0x179   : > { %v3064_v49 = vpop.eup %3063  ;;  %v4176_v58 = vmul.f32 %v3060_v11, %v4982_v38  ;;  %v4179_v35 = vmul.f32 %v3050_v53, %v4983_v0  ;;  %v2158_v45 = vadd.f32 %v4084_v31, %v4143_v8  ;;  %v1046_v34 = vmul.f32 %v3412_v50, %v4078_v46  ;;  %976 = vst [vmem:[#allocation2 + $0x168] sm:$0xff] %v4162_v12 }
 0x17a   : > { %v3066_v3 = vpop.eup %3065  ;;  %v2709_v62 = vmul.f32 -1.442695, %v4071_v33  ;;  %v1147_v32 = vmul.f32 %v3418_v56, %v4027_v52  ;;  %v1873_v18 = vadd.f32 %v1841_v39, %v4055_v29  ;;  %979 = vst [vmem:[#allocation2 + $0x190] sm:$0xff] %v4173_v6  ;;  %v4193_v53 = vadd.f32 %v3870_v20, %v644_v41  ;;  %v4985_v29 = vld [vmem:[#allocation8_spill] sm:$0xff] }
 0x17b   : > { %4984 = vst [vmem:[#allocation7_spill] sm:$0xff] %v4179_v35  ;;  %v3068_v21 = vpop.eup %3067  ;;  %977 = vst [vmem:[#allocation2 + $0x170] sm:$0xff] %v4176_v58  ;;  %v4196_v31 = vadd.f32 %v3870_v20, %v2844_v54  ;;  %3073 = vrcp.f32 %v2034_v47  ;;  %v1146_v46 = vmul.f32 %v3418_v56, %v3862_v24  ;;  %v1246_v11 = vmul.f32 %v3426_v4, %v1210_v13 }
 0x17c   : > { %v4202_v52 = vadd.f32 %v3870_v20, %v647_v59  ;;  %3075 = vrcp.f32 %v2035_v15  ;;  %v4205_v40 = vmul.f32 %v3054_v55, %v4985_v29  ;;  %v1179_v39 = vadd.f32 %v1147_v32, %v1047_v57  ;;  %v4215_v20 = vld [vmem:[%s4910_s4] ss:$0 sm:$0xff] }
 0x17d   : > { %v781_v41 = vadd.f32 1.0, %v3062_v48  ;;  %v3070_v60 = vpop.eup %3069  ;;  %v4208_v54 = vadd.f32 %v2158_v45, %v4179_v35  ;;  %v2036_v47 = vadd.f32 1.0, %v3066_v3  ;;  %v1178_v38 = vadd.f32 %v1146_v46, %v1046_v34  ;;  %4987 = vst [vmem:[#allocation15_spill] sm:$0xff] %v4215_v20 }
 0x17e   : > { %4986 = vst [vmem:[#allocation12_spill] sm:$0xff] %v4205_v40  ;;  %3077 = vpow2.f32 %v2709_v62  ;;  %v2037_v24 = vadd.f32 1.0, %v3068_v21  ;;  %v1247_v0 = vmul.f32 %v3426_v4, %v1211_v14  ;;  %v1544_v8 = vmul.f32 %v3461_v51, %v1210_v13 }
 0x17f   : > { %v4218_v55 = vadd.f32 %v4215_v20, %v1873_v18  ;;  %v1278_v48 = vadd.f32 %v1246_v11, %v1178_v38  ;;  %v1545_v15 = vmul.f32 %v3461_v51, %v1211_v14  ;;  %v1843_v57 = vmul.f32 %v4168_v1, %v1210_v13 }
 0x180   : > { %v4222_v59 = vadd.f32 1.0, %v3064_v49  ;;  %v3072_v3 = vpop.eup %3071  ;;  %v1279_v45 = vadd.f32 %v1247_v0, %v1179_v39  ;;  %v1844_v34 = vmul.f32 %v4168_v1, %v1211_v14  ;;  %v1012_v62 = vld [vmem:[#allocation2 + $0x167] sm:$0xff]  ;;  %v1576_v21 = vadd.f32 %v1544_v8, %v4137_v23 }
 0x181   : > { %4988 = vst [vmem:[#allocation6_spill] sm:$0xff] %v4218_v55  ;;  %3079 = vrcp.f32 %v781_v41  ;;  %v4226_v32 = vadd.f32 1.0, %v3070_v60  ;;  %v1875_v18 = vadd.f32 %v1843_v57, %v4132_v16  ;;  %v1346_v46 = vmul.f32 %v3456_v42, %v1012_v62  ;;  %v4253_v57 = vld [vmem:[#allocation2 + $0x187] sm:$0xff] }
 0x182   : > { %3081 = vrcp.f32 %v2036_v47  ;;  %v1842_v49 = vmul.f32 %v4168_v1, %v4105_v2  ;;  %v2730_v13 = vmul.f32 -1.442695, %v4218_v55  ;;  %v1645_v11 = vmul.f32 %v3458_v44, %v1012_v62  ;;  %v1013_v60 = vld [vmem:[#allocation2 + $0x16f] sm:$0xff] }
 0x183   : > { %3083 = vrcp.f32 %v2037_v24  ;;  %v4234_v14 = vadd.f32 1.0, %v3072_v3  ;;  %v1048_v23 = vmul.f32 %v3412_v50, %v1012_v62  ;;  %v1378_v8 = vadd.f32 %v1346_v46, %v1278_v48  ;;  %v4245_v47 = vld [vmem:[#allocation2 + $0x169] sm:$0xff] }
 0x184   : > { %v1446_v29 = vmul.f32 %v3449_v36, %v4162_v12  ;;  %v1448_v16 = vmul.f32 %v3449_v36, %v4135_v22  ;;  %v1747_v39 = vmul.f32 %v3451_v37, %v4135_v22  ;;  %v1677_v41 = vadd.f32 %v1645_v11, %v1576_v21  ;;  %v1213_v21 = vld [vmem:[#allocation2 + $0x171] sm:$0xff] }
 0x185   : > { %v1745_v2 = vmul.f32 %v3451_v37, %v4162_v12  ;;  %v1874_v38 = vadd.f32 %v1842_v49, %v4147_v7  ;;  %v4249_v24 = vadd.f32 %v4215_v20, %v1875_v18  ;;  %v1148_v0 = vmul.f32 %v3418_v56, %v4162_v12 }
 0x186   : > { %v1478_v48 = vadd.f32 %v1446_v29, %v1378_v8  ;;  %3085 = vpow2.f32 %v2730_v13  ;;  %v1149_v62 = vmul.f32 %v3418_v56, %v4176_v58  ;;  %v1577_v46 = vadd.f32 %v1545_v15, %v4139_v17  ;;  %v4265_v13 = vld [vmem:[#allocation2 + $0x18f] sm:$0xff] }
 0x187   : > { %4989 = vst [vmem:[#allocation8_spill] sm:$0xff] %v4249_v24  ;;  %v4255_v3 = vadd.f32 %v1745_v2, %v1677_v41  ;;  %v1180_v11 = vadd.f32 %v1148_v0, %v1048_v23  ;;  %v1049_v7 = vmul.f32 %v3412_v50, %v1013_v60  ;;  %v1248_v18 = vmul.f32 %v3426_v4, %v4245_v47 }
 0x188   : > { %v1447_v12 = vmul.f32 %v3449_v36, %v4176_v58  ;;  %v3074_v49 = vpop.eup %3073  ;;  %v1347_v8 = vmul.f32 %v3456_v42, %v1013_v60  ;;  %v1546_v29 = vmul.f32 %v3461_v51, %v4245_v47  ;;  %v1646_v41 = vmul.f32 %v3458_v44, %v1013_v60 }
 0x189   : > { %v1746_v17 = vmul.f32 %v3451_v37, %v4176_v58  ;;  %v4273_v15 = vpop.eup %3075  ;;  %v1348_v23 = vmul.f32 %v3456_v42, %v4253_v57  ;;  %v1181_v2 = vadd.f32 %v1149_v62, %v1049_v7  ;;  %v1249_v0 = vmul.f32 %v3426_v4, %v1213_v21 }
 0x18a   : > { %v1280_v35 = vadd.f32 %v1248_v18, %v1180_v11  ;;  %v1647_v63 = vmul.f32 %v3458_v44, %v4253_v57  ;;  %v1379_v55 = vadd.f32 %v1347_v8, %v1279_v45  ;;  %v1578_v28 = vadd.f32 %v1546_v29, %v1478_v48 }
 0x18b   : > { %v3078_v19 = vpop.eup %3077  ;;  %v1678_v5 = vadd.f32 %v1646_v41, %v1577_v46  ;;  %v4281_v60 = vadd.f32 %v4215_v20, %v1874_v38  ;;  %v1349_v58 = vmul.f32 %v3456_v42, %v4265_v13  ;;  %v1281_v56 = vadd.f32 %v1249_v0, %v1181_v2 }
 0x18c   : > { %v1380_v22 = vadd.f32 %v1348_v23, %v1280_v35  ;;  %v1479_v25 = vadd.f32 %v1447_v12, %v1379_v55  ;;  %v1547_v62 = vmul.f32 %v3461_v51, %v1213_v21  ;;  %v1679_v7 = vadd.f32 %v1647_v63, %v1578_v28 }
 0x18d   : > { %4990 = vst [vmem:[#allocation23_spill] sm:$0xff] %v4281_v60  ;;  %v1778_v11 = vadd.f32 %v1746_v17, %v1678_v5  ;;  %v1876_v4 = vadd.f32 %v1844_v34, %v4159_v10  ;;  %v1449_v45 = vmul.f32 %v3449_v36, %v4173_v6  ;;  %v1381_v48 = vadd.f32 %v1349_v58, %v1281_v56  ;;  %v4311_v34 = vld [vmem:[#allocation2 + $0x189] sm:$0xff] }
 0x18e   : > { %v3080_v18 = vpop.eup %3079  ;;  %v782_v46 = vadd.f32 1.0, %v3078_v19  ;;  %v1648_v8 = vmul.f32 %v3458_v44, %v4265_v13  ;;  %v1579_v29 = vadd.f32 %v1547_v62, %v1479_v25  ;;  %v1779_v41 = vadd.f32 %v1747_v39, %v1679_v7  ;;  %v4994_v7 = vld [vmem:[#allocation14_spill] sm:$0xff] }
 0x18f   : > { %v3082_v38 = vpop.eup %3081  ;;  %v4292_v35 = vmul.f32 %v3080_v18, %v3931_v30  ;;  %3087 = vrcp.f32 %v4226_v32  ;;  %v2732_v28 = vmul.f32 -1.442695, %v4249_v24  ;;  %v4296_v63 = vadd.f32 %v1448_v16, %v1380_v22 }
 0x190   : > { %v3084_v55 = vpop.eup %3083  ;;  %v4298_v5 = vadd.f32 %v1449_v45, %v1381_v48  ;;  %3089 = vrcp.f32 %v4234_v14  ;;  %v2731_v56 = vmul.f32 -1.442695, %v4281_v60  ;;  %v1748_v19 = vmul.f32 %v3451_v37, %v4173_v6 }
 0x191   : > { %v1680_v25 = vadd.f32 %v1648_v8, %v1579_v29  ;;  %982 = vst [vmem:[#allocation2 + $0x1c8] sm:$0xff] %v4292_v35  ;;  %3091 = vrcp.f32 %v4222_v59  ;;  %v2707_v30 = vmul.f32 -1.442695, %v4152_v27  ;;  %v2712_v10 = vmul.f32 -1.442695, %v4155_v26  ;;  %v4317_v59 = vld [vmem:[#allocation2 + $0x191] sm:$0xff] }
 0x192   : > { %v4309_v22 = vadd.f32 %v4215_v20, %v1876_v4  ;;  %v1845_v14 = vmul.f32 %v4168_v1, %v4245_v47  ;;  %3093 = vrcp.f32 %v782_v46  ;;  %v2160_v39 = vadd.f32 %v4208_v54, %v4205_v40  ;;  %v4992_v47 = vld [vmem:[#allocation9_spill] sm:$0xff] }
 0x193   : > { %v1780_v32 = vadd.f32 %v1748_v19, %v1680_v25  ;;  %v3086_v16 = vpop.eup %3085  ;;  %3095 = vpow2.f32 %v2732_v28  ;;  %v1846_v12 = vmul.f32 %v4168_v1, %v1213_v21  ;;  %v2710_v17 = vmul.f32 -1.442695, %v4193_v53 }
 0x194   : > { %4991 = vst [vmem:[#allocation24_spill] sm:$0xff] %v4309_v22  ;;  %3097 = vpow2.f32 %v2731_v56  ;;  %v1877_v4 = vadd.f32 %v1845_v14, %v4255_v3  ;;  %v2713_v23 = vmul.f32 -1.442695, %v4196_v31  ;;  %v2711_v2 = vmul.f32 -1.442695, %v4202_v52 }
 0x195   : > { %v4325_v0 = vmul.f32 %v3074_v49, %v4992_v47  ;;  %v1847_v54 = vmul.f32 %v4168_v1, %v4311_v34  ;;  %v1878_v58 = vadd.f32 %v1846_v12, %v1778_v11  ;;  %3099 = vpow2.f32 %v2707_v30 }
 0x196   : > { %v2733_v62 = vmul.f32 -1.442695, %v4309_v22  ;;  %v1848_v21 = vmul.f32 %v4168_v1, %v4317_v59  ;;  %3101 = vpow2.f32 %v2712_v10  ;;  %v4335_v18 = vmul.f32 %v4273_v15, %v4994_v7  ;;  %v5004_v7 = vld [vmem:[#allocation21_spill] sm:$0xff] }
 0x197   : > { %4993 = vst [vmem:[#allocation9_spill] sm:$0xff] %v4325_v0  ;;  %v2161_v3 = vadd.f32 %v2160_v39, %v4325_v0  ;;  %v1879_v45 = vadd.f32 %v1847_v54, %v1779_v41  ;;  %3103 = vpow2.f32 %v2710_v17  ;;  %v2040_v49 = vadd.f32 1.0, %v3086_v16 }
 0x198   : > { %4995 = vst [vmem:[#allocation14_spill] sm:$0xff] %v4335_v18  ;;  %v4338_v48 = vadd.f32 %v4215_v20, %v1877_v4  ;;  %3105 = vpow2.f32 %v2713_v23  ;;  %v1880_v11 = vadd.f32 %v1848_v21, %v1780_v32  ;;  %v4341_v46 = vadd.f32 %v4215_v20, %v1878_v58  ;;  %v5002_v21 = vld [vmem:[#allocation19_spill] sm:$0xff] }
 0x199   : > { %3107 = vpow2.f32 %v2711_v2  ;;  %v2162_v8 = vadd.f32 %v2161_v3, %v4335_v18  ;;  %v4345_v29 = vadd.f32 %v4215_v20, %v1879_v45  ;;  %v4348_v41 = vmul.f32 %v3082_v38, %v4053_v61  ;;  %v5005_v45 = vld [vmem:[#allocation4_spill] sm:$0xff] }
 0x19a   : > { %4996 = vst [vmem:[#allocation25_spill] sm:$0xff] %v4338_v48  ;;  %4997 = vst [vmem:[#allocation26_spill] sm:$0xff] %v4341_v46  ;;  %3109 = vpow2.f32 %v2733_v62  ;;  %v2734_v28 = vmul.f32 -1.442695, %v4338_v48  ;;  %v4352_v56 = vadd.f32 %v4215_v20, %v1880_v11  ;;  %v2735_v25 = vmul.f32 -1.442695, %v4341_v46 }
 0x19b   : > { %4998 = vst [vmem:[#allocation27_spill] sm:$0xff] %v4345_v29  ;;  %4999 = vst [vmem:[#allocation28_spill] sm:$0xff] %v4348_v41  ;;  %3111 = vrcp.f32 %v2040_v49  ;;  %v4356_v32 = vmul.f32 %v3084_v55, %v4059_v9  ;;  %v2736_v61 = vmul.f32 -1.442695, %v4345_v29  ;;  %v2163_v16 = vadd.f32 %v2162_v8, %v4348_v41 }
 0x19c   : > { %v3088_v15 = vpop.eup %3087  ;;  %5000 = vst [vmem:[#allocation29_spill] sm:$0xff] %v4352_v56  ;;  %3113 = vpow2.f32 %v2734_v28  ;;  %v2737_v12 = vmul.f32 -1.442695, %v4352_v56  ;;  %v1051_v54 = vmul.f32 %v3412_v50, %v4265_v13  ;;  %v1150_v49 = vmul.f32 %v5005_v45, %v5004_v7 }
 0x19d   : > { %v3090_v19 = vpop.eup %3089  ;;  %5001 = vst [vmem:[#allocation30_spill] sm:$0xff] %v4356_v32  ;;  %3115 = vpow2.f32 %v2735_v25  ;;  %v2164_v23 = vadd.f32 %v2163_v16, %v4356_v32  ;;  %v4375_v3 = vmul.f32 %v3088_v15, %v5002_v21  ;;  %v1151_v28 = vmul.f32 %v5005_v45, %v4173_v6  ;;  %v5007_v16 = vld [vmem:[#allocation20_spill] sm:$0xff] }
 0x19e   : > { %v3092_v30 = vpop.eup %3091  ;;  %3117 = vpow2.f32 %v2736_v61 }
 0x19f   : > { %v3094_v10 = vpop.eup %3093  ;;  %v4359_v14 = vmul.f32 %v3092_v30, %v3987_v43  ;;  %3119 = vpow2.f32 %v2737_v12  ;;  %5003 = vst [vmem:[#allocation19_spill] sm:$0xff] %v4375_v3  ;;  %v1621_v30 = vld [vmem:[#allocation2 + $0x227] sm:$0xff]  ;;  %v2165_v61 = vadd.f32 %v2164_v23, %v4375_v3  ;;  %v4385_v12 = vmul.f32 %v3090_v19, %v5007_v16 }
 0x1a0   : > { %v3096_v38 = vpop.eup %3095  ;;  %v4364_v39 = vmul.f32 %v3094_v10, %v4071_v33  ;;  %v1050_v33 = vmul.f32 %v3412_v50, %v4253_v57  ;;  %v5006_v57 = vld [vmem:[#allocation5_spill] sm:$0xff]  ;;  %v1183_v6 = vadd.f32 %v1151_v28, %v1051_v54  ;;  %v5012_v54 = vld [vmem:[#allocation6_spill] sm:$0xff] }
 0x1a1   : > { %v3098_v17 = vpop.eup %3097  ;;  %980 = vst [vmem:[#allocation2 + $0x1a8] sm:$0xff] %v4359_v14  ;;  %v1250_v25 = vmul.f32 %v5006_v57, %v4311_v34  ;;  %v1622_v10 = vld [vmem:[#allocation2 + $0x22f] sm:$0xff]  ;;  %v2042_v15 = vadd.f32 1.0, %v3096_v38  ;;  %5008 = vst [vmem:[#allocation21_spill] sm:$0xff] %v4385_v12  ;;  %v1251_v23 = vmul.f32 %v5006_v57, %v4317_v59 }
 0x1a2   : > { %v3100_v9 = vpop.eup %3099  ;;  %983 = vst [vmem:[#allocation2 + $0x1d0] sm:$0xff] %v4364_v39  ;;  %v5009_v38 = vld [vmem:[#allocation13_spill] sm:$0xff]  ;;  %v4454_v3 = vmul.f32 %v3449_v36, %v4364_v39  ;;  %v4458_v32 = vmul.f32 %v3451_v37, %v4364_v39 }
 0x1a3   : > { %v3102_v43 = vpop.eup %3101  ;;  %v780_v55 = vadd.f32 1.0, %v3100_v9  ;;  %v1821_v9 = vld [vmem:[#allocation2 + $0x229] sm:$0xff]  ;;  %v4395_v19 = vmul.f32 %v5009_v38, %v3451_v37 }
 0x1a4   : > { %v3104_v4 = vpop.eup %3103  ;;  %v785_v2 = vadd.f32 1.0, %v3102_v43  ;;  %v1822_v43 = vld [vmem:[#allocation2 + $0x231] sm:$0xff] }
 0x1a5   : > { %v3106_v47 = vpop.eup %3105  ;;  %3121 = vrcp.f32 %v780_v55  ;;  %v783_v58 = vadd.f32 1.0, %v3104_v4  ;;  %v2041_v4 = vadd.f32 1.0, %v3098_v17  ;;  %v4400_v17 = vmul.f32 %v4168_v1, %v1821_v9 }
 0x1a6   : > { %v3108_v62 = vpop.eup %3107  ;;  %3123 = vrcp.f32 %v785_v2  ;;  %v786_v11 = vadd.f32 1.0, %v3106_v47  ;;  %v1182_v2 = vadd.f32 %v1150_v49, %v1050_v33  ;;  %v1018_v47 = vld [vmem:[#allocation2 + $0x1c7] sm:$0xff]  ;;  %v4403_v33 = vmul.f32 %v4168_v1, %v1822_v43 }
 0x1a7   : > { %v3110_v8 = vpop.eup %3109  ;;  %3125 = vrcp.f32 %v783_v58  ;;  %v784_v13 = vadd.f32 1.0, %v3108_v62  ;;  %v4388_v58 = vmul.f32 %v3458_v44, %v1621_v30  ;;  %v4391_v62 = vmul.f32 %v3458_v44, %v1622_v10  ;;  %5010 = vst [vmem:[#allocation4_spill] sm:$0xff] %v4400_v17 }
 0x1a8   : > { %3127 = vrcp.f32 %v786_v11  ;;  %v3112_v55 = vpop.eup %3111  ;;  %v2043_v21 = vadd.f32 1.0, %v3110_v8  ;;  %v1282_v7 = vadd.f32 %v1250_v25, %v1182_v2  ;;  %5011 = vst [vmem:[#allocation5_spill] sm:$0xff] %v4403_v33  ;;  %v2166_v11 = vadd.f32 %v2165_v61, %v4385_v12  ;;  %v1016_v10 = vld [vmem:[#allocation2 + $0x1a7] sm:$0xff] }
 0x1a9   : > { %3129 = vrcp.f32 %v784_v13  ;;  %v4406_v49 = vmul.f32 %v3112_v55, %v5012_v54  ;;  %v1054_v8 = vmul.f32 %v3412_v50, %v1018_v47  ;;  %v3114_v28 = vpop.eup %3113  ;;  %v4410_v13 = vadd.f32 %v1251_v23, %v1183_v6  ;;  %v1019_v43 = vld [vmem:[#allocation2 + $0x1cf] sm:$0xff] }
 0x1aa   : > { %3131 = vrcp.f32 %v2042_v15  ;;  %v1548_v25 = vmul.f32 %v3461_v51, %v4311_v34  ;;  %v1549_v30 = vmul.f32 %v3461_v51, %v4317_v59  ;;  %v3116_v16 = vpop.eup %3115  ;;  %v1154_v15 = vmul.f32 %v5005_v45, %v4292_v35  ;;  %v1218_v23 = vld [vmem:[#allocation2 + $0x1c9] sm:$0xff] }
 0x1ab   : > { %5013 = vst [vmem:[#allocation20_spill] sm:$0xff] %v4406_v49  ;;  %3133 = vrcp.f32 %v2041_v4  ;;  %v4420_v61 = vmul.f32 %v3449_v36, %v4292_v35  ;;  %v4424_v9 = vmul.f32 %v3451_v37, %v4292_v35  ;;  %v4427_v34 = vmul.f32 %v3456_v42, %v1018_v47  ;;  %v3118_v2 = vpop.eup %3117 }
 0x1ac   : > { %3135 = vrcp.f32 %v2043_v21  ;;  %v4430_v59 = vmul.f32 %v3458_v44, %v1018_v47  ;;  %v1580_v55 = vadd.f32 %v1548_v25, %v4296_v63  ;;  %v4434_v4 = vadd.f32 %v1549_v30, %v4298_v5  ;;  %v3120_v54 = vpop.eup %3119 }
 0x1ad   : > { %v4437_v6 = vadd.f32 %v2166_v11, %v4406_v49  ;;  %v2044_v21 = vadd.f32 1.0, %v3114_v28  ;;  %v1186_v38 = vadd.f32 %v1154_v15, %v1054_v8  ;;  %v1350_v35 = vmul.f32 %v3456_v42, %v1016_v10  ;;  %v1219_v15 = vld [vmem:[#allocation2 + $0x1d1] sm:$0xff] }
 0x1ae   : > { %v2045_v12 = vadd.f32 1.0, %v3116_v16  ;;  %v1152_v47 = vmul.f32 %v5005_v45, %v4359_v14  ;;  %v1450_v63 = vmul.f32 %v3449_v36, %v4359_v14  ;;  %v1055_v5 = vmul.f32 %v3412_v50, %v1019_v43 }
 0x1af   : > { %5014 = vst [vmem:[#allocation13_spill] sm:$0xff] %v4437_v6  ;;  %v1052_v30 = vmul.f32 %v3412_v50, %v1016_v10  ;;  %v1649_v11 = vmul.f32 %v3458_v44, %v1016_v10  ;;  %v1749_v8 = vmul.f32 %v3451_v37, %v4359_v14  ;;  %v1155_v28 = vmul.f32 %v5005_v45, %v4364_v39 }
 0x1b0   : > { %v1254_v49 = vmul.f32 %v5006_v57, %v1218_v23  ;;  %3137 = vrcp.f32 %v2044_v21  ;;  %v1382_v14 = vadd.f32 %v1350_v35, %v1282_v7  ;;  %v4463_v46 = vadd.f32 1.0, %v3118_v2 }
 0x1b1   : > { %v1681_v18 = vadd.f32 %v1649_v11, %v1580_v55  ;;  %3139 = vrcp.f32 %v2045_v12  ;;  %v1187_v56 = vadd.f32 %v1155_v28, %v1055_v5  ;;  %v1184_v22 = vadd.f32 %v1152_v47, %v1052_v30 }
 0x1b2   : > { %v3122_v25 = vpop.eup %3121  ;;  %5015 = vst [vmem:[#allocation6_spill] sm:$0xff] %v4463_v46  ;;  %v1255_v39 = vmul.f32 %v5006_v57, %v1219_v15  ;;  %v4470_v55 = vadd.f32 %v1254_v49, %v1186_v38  ;;  %v4476_v12 = vmul.f32 %v3461_v51, %v1219_v15  ;;  %v4480_v21 = vmul.f32 %v3458_v44, %v1019_v43 }
 0x1b3   : > { %v3124_v16 = vpop.eup %3123  ;;  %v876_v10 = vmul.f32 %v3122_v25, %v4152_v27  ;;  %v4467_v27 = vmul.f32 %v3456_v42, %v1019_v43  ;;  %v1781_v2 = vadd.f32 %v1749_v8, %v1681_v18  ;;  %v4483_v35 = vmul.f32 %v4168_v1, %v1218_v23 }
 0x1b4   : > { %v3126_v41 = vpop.eup %3125  ;;  %v881_v0 = vmul.f32 %v3124_v16, %v4155_v26  ;;  %v4473_v26 = vmul.f32 %v3461_v51, %v1218_v23  ;;  %v4490_v49 = vmul.f32 %v4168_v1, %v1219_v15 }
 0x1b5   : > { %v3128_v40 = vpop.eup %3127  ;;  %981 = vst [vmem:[#allocation2 + $0x1b0] sm:$0xff] %v876_v10  ;;  %v879_v29 = vmul.f32 %v3126_v41, %v4193_v53  ;;  %v1482_v41 = vadd.f32 %v1450_v63, %v1382_v14  ;;  %v1153_v38 = vmul.f32 %v5005_v45, %v876_v10  ;;  %v1750_v43 = vmul.f32 %v3451_v37, %v876_v10 }
 0x1b6   : > { %v3130_v48 = vpop.eup %3129  ;;  %986 = vst [vmem:[#allocation2 + $0x208] sm:$0xff] %v881_v0  ;;  %v882_v7 = vmul.f32 %v3128_v40, %v4196_v31  ;;  %v4487_v40 = vadd.f32 %v1255_v39, %v1187_v56  ;;  %5017 = vst [vmem:[#allocation32_spill] sm:$0xff] %v4490_v49  ;;  %v4500_v23 = vmul.f32 %v3449_v36, %v881_v0 }
 0x1b7   : > { %984 = vst [vmem:[#allocation2 + $0x1e8] sm:$0xff] %v879_v29  ;;  %v880_v53 = vmul.f32 %v3130_v48, %v4202_v52  ;;  %v4485_v31 = vpop.eup %3131  ;;  %v4493_v52 = vadd.f32 1.0, %v3120_v54  ;;  %v1451_v48 = vmul.f32 %v3449_v36, %v876_v10  ;;  %v4503_v56 = vmul.f32 %v3451_v37, %v881_v0 }
 0x1b8   : > { %987 = vst [vmem:[#allocation2 + $0x210] sm:$0xff] %v882_v7  ;;  %5016 = vst [vmem:[#allocation31_spill] sm:$0xff] %v4485_v31  ;;  %v4495_v18 = vpop.eup %3133  ;;  %v1156_v63 = vmul.f32 %v5005_v45, %v879_v29  ;;  %v1454_v5 = vmul.f32 %v3449_v36, %v879_v29  ;;  %v4510_v54 = vmul.f32 %v3451_v37, %v879_v29 }
 0x1b9   : > { %985 = vst [vmem:[#allocation2 + $0x1f0] sm:$0xff] %v880_v53  ;;  %5018 = vst [vmem:[#allocation33_spill] sm:$0xff] %v4493_v52  ;;  %v4505_v47 = vpop.eup %3135  ;;  %v4513_v25 = vmul.f32 %v3449_v36, %v882_v7  ;;  %v1157_v28 = vmul.f32 %v5005_v45, %v880_v53  ;;  %v1455_v0 = vmul.f32 %v3449_v36, %v880_v53 }
 0x1ba   : > { %5019 = vst [vmem:[#allocation34_spill] sm:$0xff] %v4495_v18  ;;  %5020 = vst [vmem:[#allocation35_spill] sm:$0xff] %v4505_v47  ;;  %v4518_v16 = vmul.f32 %v3451_v37, %v880_v53  ;;  %v4521_v15 = vmul.f32 %v3451_v37, %v882_v7 }
 0x1bc   : > { %v1017_v30 = vld [vmem:[#allocation2 + $0x1af] sm:$0xff] }
 0x1bd   : > { %v1216_v11 = vld [vmem:[#allocation2 + $0x1a9] sm:$0xff]  ;;  %v1217_v8 = vld [vmem:[#allocation2 + $0x1b1] sm:$0xff]  ;;  %v1053_v10 = vmul.f32 %v3412_v50, %v1017_v30  ;;  %v1351_v39 = vmul.f32 %v3456_v42, %v1017_v30  ;;  %v1650_v36 = vmul.f32 %v3458_v44, %v1017_v30  ;;  %v4537_v17 = vpop.eup %3137 }
 0x1be   : > { %v1252_v29 = vmul.f32 %v5006_v57, %v1216_v11  ;;  %v1253_v14 = vmul.f32 %v5006_v57, %v1217_v8  ;;  %v1320_v47 = vld [vmem:[#allocation2 + $0x207] sm:$0xff]  ;;  %v1550_v31 = vmul.f32 %v3461_v51, %v1216_v11  ;;  %v1551_v45 = vmul.f32 %v3461_v51, %v1217_v8 }
 0x1bf   : > { %v1849_v53 = vmul.f32 %v4168_v1, %v1216_v11  ;;  %v1020_v24 = vld [vmem:[#allocation2 + $0x1e7] sm:$0xff]  ;;  %v1185_v37 = vadd.f32 %v1153_v38, %v1053_v10  ;;  %v1383_v6 = vadd.f32 %v1351_v39, %v4410_v13  ;;  %v1850_v18 = vmul.f32 %v4168_v1, %v1217_v8  ;;  %v4541_v10 = vpop.eup %3139  ;;  %v1321_v39 = vld [vmem:[#allocation2 + $0x20f] sm:$0xff] }
 0x1c0   : > { %v1284_v7 = vadd.f32 %v1252_v29, %v1184_v22  ;;  %v1582_v60 = vadd.f32 %v1550_v31, %v1482_v41  ;;  %v1682_v52 = vadd.f32 %v1650_v36, %v4434_v4  ;;  %v1356_v46 = vmul.f32 %v3456_v42, %v1320_v47  ;;  %v1021_v20 = vld [vmem:[#allocation2 + $0x1ef] sm:$0xff] }
 0x1c1   : > { %v4534_v33 = vadd.f32 %v1849_v53, %v1781_v2  ;;  %v1285_v30 = vadd.f32 %v1253_v14, %v1185_v37  ;;  %v1483_v49 = vadd.f32 %v1451_v48, %v1383_v6  ;;  %v1056_v22 = vmul.f32 %v3412_v50, %v1020_v24  ;;  %v1220_v38 = vld [vmem:[#allocation2 + $0x1e9] sm:$0xff]  ;;  %v1221_v13 = vld [vmem:[#allocation2 + $0x1f1] sm:$0xff] }
 0x1c2   : > { %v1384_v11 = vadd.f32 %v4427_v34, %v1284_v7  ;;  %v1683_v41 = vadd.f32 %v4430_v59, %v1582_v60  ;;  %v1782_v4 = vadd.f32 %v1750_v43, %v1682_v52  ;;  %v1354_v2 = vmul.f32 %v3456_v42, %v1020_v24 }
 0x1c3   : > { %v1653_v31 = vmul.f32 %v3458_v44, %v1020_v24  ;;  %v1385_v8 = vadd.f32 %v4467_v27, %v1285_v30  ;;  %v1583_v29 = vadd.f32 %v1551_v45, %v1483_v49  ;;  %v1188_v14 = vadd.f32 %v1156_v63, %v1056_v22  ;;  %v1520_v27 = vld [vmem:[#allocation2 + $0x209] sm:$0xff]  ;;  %v1521_v49 = vld [vmem:[#allocation2 + $0x211] sm:$0xff] }
 0x1c4   : > { %v1057_v34 = vmul.f32 %v3412_v50, %v1021_v20  ;;  %v1882_v6 = vadd.f32 %v1850_v18, %v1782_v4  ;;  %v1386_v48 = vadd.f32 %v1354_v2, %v4470_v55  ;;  %v1256_v36 = vmul.f32 %v5006_v57, %v1220_v38 }
 0x1c5   : > { %v1257_v53 = vmul.f32 %v5006_v57, %v1221_v13  ;;  %v1355_v60 = vmul.f32 %v3456_v42, %v1021_v20  ;;  %v1554_v59 = vmul.f32 %v3461_v51, %v1220_v38  ;;  %v1654_v24 = vmul.f32 %v3458_v44, %v1021_v20 }
 0x1c6   : > { %v1189_v52 = vadd.f32 %v1157_v28, %v1057_v34  ;;  %v1288_v43 = vadd.f32 %v1256_v36, %v1188_v14  ;;  %v1357_v63 = vmul.f32 %v3456_v42, %v1321_v39  ;;  %v1484_v50 = vadd.f32 %v4420_v61, %v1384_v11 }
 0x1c7   : > { %v1485_v55 = vadd.f32 %v4454_v3, %v1385_v8  ;;  %v1387_v45 = vadd.f32 %v1355_v60, %v4487_v40  ;;  %v1486_v57 = vadd.f32 %v1454_v5, %v1386_v48  ;;  %v1555_v37 = vmul.f32 %v3461_v51, %v1221_v13  ;;  %v5022_v60 = vld [vmem:[#allocation4_spill] sm:$0xff] }
 0x1c8   : > { %v1289_v18 = vadd.f32 %v1257_v53, %v1189_v52  ;;  %v1388_v7 = vadd.f32 %v1356_v46, %v1288_v43  ;;  %v1556_v30 = vmul.f32 %v3461_v51, %v1520_v27  ;;  %v1557_v20 = vmul.f32 %v3461_v51, %v1521_v49 }
 0x1c9   : > { %v1584_v28 = vadd.f32 %v4473_v26, %v1484_v50  ;;  %v1487_v4 = vadd.f32 %v1455_v0, %v1387_v45  ;;  %v1585_v42 = vadd.f32 %v4476_v12, %v1485_v55  ;;  %v1586_v61 = vadd.f32 %v1554_v59, %v1486_v57  ;;  %v5027_v57 = vld [vmem:[#allocation23_spill] sm:$0xff] }
 0x1ca   : > { %v1389_v22 = vadd.f32 %v1357_v63, %v1289_v18  ;;  %v1488_v3 = vadd.f32 %v4500_v23, %v1388_v7  ;;  %v1655_v11 = vmul.f32 %v3458_v44, %v1320_v47  ;;  %v1656_v40 = vmul.f32 %v3458_v44, %v1321_v39  ;;  %v5021_v39 = vld [vmem:[#allocation32_spill] sm:$0xff]  ;;  %v5026_v63 = vld [vmem:[#allocation33_spill] sm:$0xff] }
 0x1cb   : > { %v1684_v5 = vadd.f32 %v4480_v21, %v1583_v29  ;;  %v1587_v2 = vadd.f32 %v1555_v37, %v1487_v4  ;;  %v1685_v8 = vadd.f32 %v1653_v31, %v1584_v28  ;;  %v1686_v51 = vadd.f32 %v1654_v24, %v1585_v42  ;;  %v5028_v37 = vld [vmem:[#allocation34_spill] sm:$0xff] }
 0x1cc   : > { %v1489_v46 = vadd.f32 %v4513_v25, %v1389_v22  ;;  %v1588_v14 = vadd.f32 %v1556_v30, %v1488_v3  ;;  %v1687_v26 = vadd.f32 %v1655_v11, %v1586_v61  ;;  %v1783_v0 = vadd.f32 %v4424_v9, %v1683_v41  ;;  %v5029_v61 = vld [vmem:[#allocation13_spill] sm:$0xff] }
 0x1cd   : > { %v1784_v12 = vadd.f32 %v4458_v32, %v1684_v5  ;;  %v1688_v48 = vadd.f32 %v1656_v40, %v1587_v2  ;;  %v1785_v23 = vadd.f32 %v4510_v54, %v1685_v8  ;;  %v1786_v47 = vadd.f32 %v4518_v16, %v1686_v51  ;;  %v5030_v40 = vld [vmem:[#allocation8_spill] sm:$0xff]  ;;  %v5031_v5 = vld [vmem:[#allocation31_spill] sm:$0xff] }
 0x1ce   : > { %v1589_v34 = vadd.f32 %v1557_v20, %v1489_v46  ;;  %v1689_v44 = vadd.f32 %v4388_v58, %v1588_v14  ;;  %v1787_v21 = vadd.f32 %v4503_v56, %v1687_v26  ;;  %v1853_v25 = vmul.f32 %v4168_v1, %v1220_v38  ;;  %v5032_v51 = vld [vmem:[#allocation24_spill] sm:$0xff]  ;;  %v5033_v14 = vld [vmem:[#allocation35_spill] sm:$0xff] }
 0x1cf   : > { %v1854_v31 = vmul.f32 %v4168_v1, %v1221_v13  ;;  %v1788_v9 = vadd.f32 %v4521_v15, %v1688_v48  ;;  %v1855_v32 = vmul.f32 %v4168_v1, %v1520_v27  ;;  %v1856_v41 = vmul.f32 %v4168_v1, %v1521_v49  ;;  %v5023_v15 = vld [vmem:[#allocation15_spill] sm:$0xff]  ;;  %v5024_v27 = vld [vmem:[#allocation6_spill] sm:$0xff]  ;;  %v5025_v49 = vld [vmem:[#allocation5_spill] sm:$0xff] }
 0x1d0   : > { %v1690_v29 = vadd.f32 %v4391_v62, %v1589_v34  ;;  %v1789_v54 = vadd.f32 %v4395_v19, %v1689_v44  ;;  %v1883_v16 = vadd.f32 %v4483_v35, %v1783_v0  ;;  %v1884_v58 = vadd.f32 %v5021_v39, %v1784_v12  ;;  %v5034_v34 = vld [vmem:[#allocation25_spill] sm:$0xff] }
 0x1d1   : > { %v1885_v36 = vadd.f32 %v1853_v25, %v1785_v23  ;;  %v1886_v38 = vadd.f32 %v1854_v31, %v1786_v47  ;;  %v1887_v53 = vadd.f32 %v1855_v32, %v1787_v21  ;;  %v1888_v13 = vadd.f32 %v1856_v41, %v1788_v9  ;;  %v5035_v9 = vld [vmem:[#allocation26_spill] sm:$0xff] }
 0x1d2   : > { %v1790_v56 = vadd.f32 %v4395_v19, %v1690_v29  ;;  %v1889_v62 = vadd.f32 %v5022_v60, %v1789_v54  ;;  %v4587_v59 = vadd.f32 %v5023_v15, %v4534_v33  ;;  %v4590_v1 = vadd.f32 %v5023_v15, %v1882_v6 }
 0x1d3   : > { %v4593_v24 = vadd.f32 %v5023_v15, %v1883_v16  ;;  %v4596_v35 = vadd.f32 %v5023_v15, %v1884_v58  ;;  %v4599_v19 = vadd.f32 %v5023_v15, %v1885_v36  ;;  %v4602_v52 = vadd.f32 %v5023_v15, %v1886_v38 }
 0x1d4   : > { %3141 = vrcp.f32 %v5024_v27  ;;  %v1890_v33 = vadd.f32 %v5025_v49, %v1790_v56  ;;  %v4607_v43 = vadd.f32 %v5023_v15, %v1887_v53  ;;  %v2738_v6 = vmul.f32 -1.442695, %v4587_v59 }
 0x1d5   : > { %3143 = vrcp.f32 %v5026_v63  ;;  %v4612_v50 = vadd.f32 %v5023_v15, %v1888_v13  ;;  %v2739_v55 = vmul.f32 -1.442695, %v4590_v1  ;;  %v2740_v18 = vmul.f32 -1.442695, %v4593_v24 }
 0x1d6   : > { %v2741_v45 = vmul.f32 -1.442695, %v4596_v35  ;;  %v4619_v7 = vmul.f32 %v5028_v37, %v5027_v57  ;;  %v4622_v30 = vadd.f32 %v5023_v15, %v1889_v62  ;;  %3145 = vpow2.f32 %v2738_v6  ;;  %v5036_v62 = vld [vmem:[#allocation27_spill] sm:$0xff] }
 0x1d7   : > { %v2742_v20 = vmul.f32 -1.442695, %v4599_v19  ;;  %3147 = vpow2.f32 %v2739_v55  ;;  %v2743_v28 = vmul.f32 -1.442695, %v4602_v52  ;;  %v4627_v22 = vadd.f32 %v5023_v15, %v1890_v33  ;;  %v5037_v33 = vld [vmem:[#allocation29_spill] sm:$0xff] }
 0x1d8   : > { %3149 = vpow2.f32 %v2740_v18  ;;  %v2744_v4 = vmul.f32 -1.442695, %v4607_v43  ;;  %v2745_v42 = vmul.f32 -1.442695, %v4612_v50  ;;  %v2168_v3 = vadd.f32 %v5029_v61, %v4619_v7 }
 0x1d9   : > { %3151 = vpow2.f32 %v2741_v45  ;;  %v2746_v11 = vmul.f32 -1.442695, %v4622_v30  ;;  %v4636_v46 = vmul.f32 %v5031_v5, %v5030_v40  ;;  %v2747_v2 = vmul.f32 -1.442695, %v4627_v22 }
 0x1da   : > { %3153 = vpow2.f32 %v2742_v20  ;;  %v4642_v26 = vmul.f32 %v5033_v14, %v5032_v51  ;;  %v4646_v48 = vmul.f32 %v4537_v17, %v5034_v34  ;;  %v4651_v32 = vmul.f32 %v4541_v10, %v5035_v9 }
 0x1db   : > { %3155 = vpow2.f32 %v2743_v28  ;;  %v2169_v8 = vadd.f32 %v2168_v3, %v4636_v46 }
 0x1dc   : > { %3157 = vpow2.f32 %v2744_v4 }
 0x1dd   : > { %3159 = vpow2.f32 %v2745_v42  ;;  %v2170_v23 = vadd.f32 %v2169_v8, %v4642_v26 }
 0x1de   : > { %3161 = vpow2.f32 %v2746_v11 }
 0x1df   : > { %3163 = vpow2.f32 %v2747_v2  ;;  %v2171_v54 = vadd.f32 %v2170_v23, %v4646_v48 }
 0x1e1   : > { %v3142_v0 = vpop.eup %3141  ;;  %v2172_v53 = vadd.f32 %v2171_v54, %v4651_v32 }
 0x1e2   : > { %v3144_v12 = vpop.eup %3143  ;;  %v4656_v15 = vmul.f32 %v3142_v0, %v5036_v62 }
 0x1e3   : > { %v3146_v47 = vpop.eup %3145  ;;  %v4659_v6 = vmul.f32 %v3144_v12, %v5037_v33 }
 0x1e4   : > { %v3148_v44 = vpop.eup %3147  ;;  %v2048_v21 = vadd.f32 1.0, %v3146_v47  ;;  %v2173_v63 = vadd.f32 %v2172_v53, %v4656_v15 }
 0x1e5   : > { %v3150_v25 = vpop.eup %3149  ;;  %v2049_v31 = vadd.f32 1.0, %v3148_v44 }
 0x1e6   : > { %v3152_v29 = vpop.eup %3151  ;;  %v2050_v41 = vadd.f32 1.0, %v3150_v25  ;;  %3165 = vrcp.f32 %v2048_v21  ;;  %v2174_v18 = vadd.f32 %v2173_v63, %v4659_v6  ;;  %v2390_v63 = vld [vmem:[%s4915_s9 + $0x70] sm:$0xff] }
 0x1e7   : > { %v3154_v16 = vpop.eup %3153  ;;  %v2051_v39 = vadd.f32 1.0, %v3152_v29  ;;  %3167 = vrcp.f32 %v2049_v31 }
 0x1e8   : > { %v3156_v17 = vpop.eup %3155  ;;  %v2052_v58 = vadd.f32 1.0, %v3154_v16  ;;  %3169 = vrcp.f32 %v2050_v41  ;;  %v3197_v16 = vld [vmem:[#allocation2 + $0x40] sm:$0xff] }
 0x1e9   : > { %v3158_v36 = vpop.eup %3157  ;;  %v2053_v56 = vadd.f32 1.0, %v3156_v17  ;;  %3171 = vrcp.f32 %v2051_v39 }
 0x1ea   : > { %v3160_v38 = vpop.eup %3159  ;;  %3173 = vrcp.f32 %v2052_v58  ;;  %v2054_v10 = vadd.f32 1.0, %v3158_v36  ;;  %v2218_v58 = vld [vmem:[%s4912_s6] sm:$0x1] }
 0x1eb   : > { %v3162_v13 = vpop.eup %3161  ;;  %v2055_v60 = vadd.f32 1.0, %v3160_v38  ;;  %3175 = vrcp.f32 %v2053_v56 }
 0x1ec   : > { %v3164_v27 = vpop.eup %3163  ;;  %v2056_v49 = vadd.f32 1.0, %v3162_v13  ;;  %3177 = vrcp.f32 %v2054_v10 }
 0x1ed   : > { %v2057_v55 = vadd.f32 1.0, %v3164_v27  ;;  %3179 = vrcp.f32 %v2055_v60 }
 0x1ee   : > { %3181 = vrcp.f32 %v2056_v49 }
 0x1ef   : > { %3183 = vrcp.f32 %v2057_v55  ;;  %v2391_v55 = vld [vmem:[%s4915_s9 + $0x78] sm:$0xff] }
 0x1f3   : > { %v3166_v45 = vpop.eup %3165 }
 0x1f4   : > { %v3168_v57 = vpop.eup %3167  ;;  %v4664_v37 = vmul.f32 %v3166_v45, %v4587_v59  ;;  %v2388_v45 = vld [vmem:[%s4915_s9 + $0x60] sm:$0xff] }
 0x1f5   : > { %v3170_v20 = vpop.eup %3169  ;;  %v4667_v28 = vmul.f32 %v3168_v57, %v4590_v1  ;;  %v2389_v57 = vld [vmem:[%s4915_s9 + $0x68] sm:$0xff] }
 0x1f6   : > { %v3172_v4 = vpop.eup %3171  ;;  %v2175_v42 = vadd.f32 %v2174_v18, %v4664_v37  ;;  %v4671_v3 = vmul.f32 %v3170_v20, %v4593_v24  ;;  %v2399_v18 = vpack.c.bf16 %v2391_v55, %v2390_v63  ;;  %v2398_v20 = vpack.c.bf16 %v2389_v57, %v2388_v45  ;;  %v5045_v63 = vld [vmem:[#allocation22_spill] sm:$0xff] }
 0x1f7   : > { %v3174_v61 = vpop.eup %3173  ;;  %v4674_v11 = vmul.f32 %v3172_v4, %v4596_v35  ;;  %v2386_v4 = vld [vmem:[%s4915_s9 + $0x50] sm:$0xff] }
 0x1f8   : > { %v2176_v40 = vadd.f32 %v2175_v42, %v4667_v28  ;;  %v3176_v5 = vpop.eup %3175  ;;  %v4678_v59 = vmul.f32 %v3174_v61, %v4599_v19  ;;  %2871 = vmatprep.subr.bf16.mxu0 %v2399_v18  ;;  %v2387_v42 = vld [vmem:[%s4915_s9 + $0x58] sm:$0xff] }
 0x1f9   : > { %v3178_v1 = vpop.eup %3177  ;;  %v4682_v8 = vmul.f32 %v3176_v5, %v4602_v52  ;;  %2872 = vmatpush3.bf16.msra.mxu0 %v2399_v18  ;;  %v2397_v61 = vpack.c.bf16 %v2387_v42, %v2386_v4  ;;  %v2385_v5 = vld [vmem:[%s4915_s9 + $0x48] sm:$0xff] }
 0x1fa   : > { %v2177_v2 = vadd.f32 %v2176_v40, %v4671_v3  ;;  %v3180_v14 = vpop.eup %3179  ;;  %v4687_v35 = vmul.f32 %v3178_v1, %v4607_v43  ;;  %2873 = vmatprep.subr.bf16.mxu0 %v2398_v20  ;;  %v2384_v40 = vld [vmem:[%s4915_s9 + $0x40] sm:$0xff]  ;;  %v2382_v1 = vld [vmem:[%s4915_s9 + $0x30] sm:$0xff]  ;;  %v5047_v42 = vld [vmem:[#allocation12_spill] sm:$0xff] }
 0x1fb   : > { %v3182_v0 = vpop.eup %3181  ;;  %v4690_v12 = vmul.f32 %v3180_v14, %v4612_v50 }
 0x1fc   : > { %v2178_v51 = vadd.f32 %v2177_v2, %v4674_v11  ;;  %v3184_v34 = vpop.eup %3183  ;;  %v4694_v23 = vmul.f32 %v3182_v0, %v4622_v30  ;;  %v2396_v2 = vpack.c.bf16 %v2385_v5, %v2384_v40  ;;  %v2381_v0 = vld [vmem:[%s4915_s9 + $0x28] sm:$0xff]  ;;  %v5048_v40 = vld [vmem:[#allocation9_spill] sm:$0xff] }
 0x1fd   : > { %v4698_v47 = vmul.f32 %v3184_v34, %v4627_v22  ;;  %v2267_v22 = vld [vmem:[%s4913_s7] sm:$0xff]  ;;  %2874 = vmatpush3.bf16.msra.mxu0 %v2398_v20  ;;  %v2378_v34 = vld [vmem:[%s4915_s9 + $0x10] sm:$0xff] }
 0x1fe   : > { %v2179_v24 = vadd.f32 %v2178_v51, %v4678_v59  ;;  %v2268_v39 = vpack.c.bf16 %v2267_v22, %v2267_v22  ;;  %2875 = vmatprep.subr.bf16.mxu0 %v2397_v61  ;;  %v2383_v51 = vld [vmem:[%s4915_s9 + $0x38] sm:$0xff]  ;;  %v5046_v20 = vld [vmem:[#allocation7_spill] sm:$0xff] }
 0x1ff   : > { %v2395_v14 = vpack.c.bf16 %v2383_v51, %v2382_v1 }
 0x200   : > { %v2180_v19 = vadd.f32 %v2179_v24, %v4682_v8  ;;  %v2276_v17 = vsel %vm2274_vm2, %v2268_v39, 0  ;;  %v2380_v24 = vld [vmem:[%s4915_s9 + $0x20] sm:$0xff] }
 0x201   : > { %2876 = vmatpush3.bf16.msra.mxu0 %v2397_v61 }
 0x202   : > { %v2181_v52 = vadd.f32 %v2180_v19, %v4687_v35  ;;  %2877 = vmatprep.subr.bf16.mxu0 %v2396_v2  ;;  %v2394_v19 = vpack.c.bf16 %v2381_v0, %v2380_v24  ;;  %v5050_v24 = vld [vmem:[#allocation28_spill] sm:$0xff] }
 0x204   : > { %v2182_v44 = vadd.f32 %v2181_v52, %v4690_v12  ;;  %v2379_v52 = vld [vmem:[%s4915_s9 + $0x18] sm:$0xff] }
 0x205   : > { %2878 = vmatpush3.bf16.msra.mxu0 %v2396_v2  ;;  %v5049_v2 = vld [vmem:[#allocation14_spill] sm:$0xff] }
 0x206   : > { %v2183_v21 = vadd.f32 %v2182_v44, %v4694_v23  ;;  %2879 = vmatprep.subr.bf16.mxu0 %v2395_v14  ;;  %v2393_v44 = vpack.c.bf16 %v2379_v52, %v2378_v34  ;;  %v5052_v52 = vld [vmem:[#allocation19_spill] sm:$0xff] }
 0x208   : > { %v2184_v43 = vadd.f32 %v2183_v21, %v4698_v47  ;;  %v2376_v21 = vld [vmem:[%s4915_s9] sm:$0xff] }
 0x209   : > { %2880 = vmatpush3.bf16.msra.mxu0 %v2395_v14 }
 0x20a   : > { %v2185_v25 = vrot.slane %v2184_v43, 4  ;;  %2881 = vmatprep.subr.bf16.mxu0 %v2394_v19 }
 0x20c   : > { %v2186_v50 = vadd.f32 %v2185_v25, %v2184_v43  ;;  %v2377_v43 = vld [vmem:[%s4915_s9 + $0x8] sm:$0xff] }
 0x20d   : > { %2882 = vmatpush3.bf16.msra.mxu0 %v2394_v19  ;;  %v2392_v25 = vpack.c.bf16 %v2377_v43, %v2376_v21  ;;  %v5051_v19 = vld [vmem:[#allocation30_spill] sm:$0xff]  ;;  %v5053_v21 = vld [vmem:[#allocation21_spill] sm:$0xff] }
 0x20e   : > { %v2187_v31 = vrot.slane %v2186_v50, 2  ;;  %2883 = vmatprep.subr.bf16.mxu0 %v2393_v44 }
 0x210   : > { %v2188_v29 = vadd.f32 %v2187_v31, %v2186_v50  ;;  %v2269_v50 = vld [vmem:[%s4914_s8] sm:$0x1] }
 0x211   : > { %2884 = vmatpush3.bf16.msra.mxu0 %v2393_v44 }
 0x212   : > { %v2189_v9 = vrot.slane %v2188_v29, 1  ;;  %2885 = vmatprep.subr.bf16.mxu0 %v2392_v25 }
 0x214   : > { %v2190_v41 = vadd.f32 %v2189_v9, %v2188_v29 }
 0x215   : > { %2886 = vmatpush3.bf16.msra.mxu0 %v2392_v25 }
 0x216   : > { %v2192_v54 = vmul.f32 0.00390625, %v2190_v41 }
 0x218   : > { %v2193_v30 = vpack.c.bf16 %v2192_v54, %v2192_v54 }
 0x21a   : > { %2862 = vmatmul.mubr.bf16.vlgmr.msra.gmra.mxu1 %v2193_v30 }
 0x21b   : > { %2867 = vmatprep.mubr.msk.bf16.mxu1 %vm3207_vm1, %v3197_v16  ;;  %2866 = vmatpush3.bf16.msra.mxu1 %v2276_v17  ;;  %v5038_v17 = vld [vmem:[#allocation3_spill] sm:$0xff] }
 0x2da   : > { %v2253_v36 = vpop.f32.mrf.mxu1 }
 0x2db   : > { %v2254_v56 = vadd.f32 %v2253_v36, %v2218_v58  ;;  %v5039_v58 = vsub.s32 0, %v5038_v17 }
 0x2dc   : > { %v2863_v38 = vpop.f32.mrf.mxu1 }
 0x2dd   : > { %v2748_v53 = vmul.f32 -1.442695, %v2254_v56 }
 0x2de   : > { %v2256_v13 = vpop.f32.mrf.mxu1 }
 0x2df   : > { %3185 = vpow2.f32 %v2748_v53  ;;  %v5041_v53 = vld [vmem:[#allocation11_spill] sm:$0xff] }
 0x2e0   : > { %v2864_v10 = vpop.f32.mrf.mxu1 }
 0x2e1   : > { %v5042_v10 = vld [vmem:[#allocation16_spill] sm:$0xff] }
 0x2ec   : > { %v3186_v60 = vpop.eup %3185 }
 0x2ed   : > { %v2262_v62 = vadd.f32 1.0, %v3186_v60 }
 0x2ef   : > { %3187 = vrcp.f32 %v2262_v62  ;;  %v5043_v62 = vld [vmem:[#allocation17_spill] sm:$0xff] }
 0x2fc   : > { %v3188_v27 = vpop.eup %3187 }
 0x2fd   : > { %v2265_v49 = vmul.f32 %v3188_v27, %v2254_v56  ;;  %v5040_v56 = vld [vmem:[#allocation10_spill] sm:$0xff] }
 0x2ff   : > { %v2266_v33 = vpack.c.bf16 %v2265_v49, %v2265_v49  ;;  %v5044_v49 = vld [vmem:[#allocation18_spill] sm:$0xff] }
 0x301   : > { %2868 = vmatmul.mubr.msk.bf16.vlgmr.msra.gmra.mxu1 %vm2270_vm3, %v2266_v33 }
 0x3c1   : > { %v2312_v31 = vpop.f32.mrf.mxu1 }
 0x3c2   : > { %v2313_v29 = vadd.f32 %v2312_v31, %v2269_v50  ;;  %v5054_v31 = vld [vmem:[#allocation20_spill] sm:$0xff] }
 0x3c3   : > { %v2869_v9 = vpop.f32.mrf.mxu1 }
 0x3c4   : > { %v2750_v41 = vmul.f32 -1.442695, %v2313_v29 }
 0x3c5   : > { %v2315_v54 = vpop.f32.mrf.mxu1 }
 0x3c6   : > { %3189 = vpow2.f32 %v2750_v41 }
 0x3c7   : > { %v2870_v30 = vpop.f32.mrf.mxu1 }
 0x3d3   : > { %v3190_v16 = vpop.eup %3189 }
 0x3d4   : > { %v2321_v22 = vadd.f32 1.0, %v3190_v16 }
 0x3d6   : > { %3191 = vrcp.f32 %v2321_v22 }
 0x3e3   : > { %v3192_v39 = vpop.eup %3191 }
 0x3e4   : > { %v2327_v36 = vrot.slane %v3192_v39, %v5039_v58 }
 0x3e6   : > { %v2328_v38 = vmul.f32 %v2327_v36, %v5040_v56  ;;  %v2329_v13 = vmul.f32 %v2327_v36, %v5041_v53  ;;  %v2330_v60 = vmul.f32 %v2327_v36, %v5042_v10  ;;  %v2331_v27 = vmul.f32 %v2327_v36, %v5043_v62 }
 0x3e7   : > { %v2332_v33 = vmul.f32 %v2327_v36, %v5044_v49  ;;  %v2333_v55 = vmul.f32 %v2327_v36, %v5045_v63  ;;  %v2334_v4 = vmul.f32 %v2327_v36, %v5046_v20  ;;  %v2335_v61 = vmul.f32 %v2327_v36, %v5047_v42 }
 0x3e8   : > { %v2360_v18 = vpack.c.bf16 %v2329_v13, %v2328_v38  ;;  %v2361_v45 = vpack.c.bf16 %v2331_v27, %v2330_v60  ;;  %v2336_v5 = vmul.f32 %v2327_v36, %v5048_v40  ;;  %v2337_v1 = vmul.f32 %v2327_v36, %v5049_v2 }
 0x3e9   : > { %v2362_v57 = vpack.c.bf16 %v2333_v55, %v2332_v33  ;;  %v2363_v51 = vpack.c.bf16 %v2335_v61, %v2334_v4  ;;  %v2338_v0 = vmul.f32 %v2327_v36, %v5050_v24  ;;  %v2339_v34 = vmul.f32 %v2327_v36, %v5051_v19 }
 0x3ea   : > { %2887 = vmatprep.mubr.bf16.mxu0 %v2360_v18  ;;  %v2364_v14 = vpack.c.bf16 %v2337_v1, %v2336_v5  ;;  %v2340_v44 = vmul.f32 %v2327_v36, %v5052_v52  ;;  %v2341_v43 = vmul.f32 %v2327_v36, %v5053_v21  ;;  %v2342_v29 = vmul.f32 %v2327_v36, %v5054_v31 }
 0x3eb   : > { %2888 = vmatmul.mubr.bf16.vlgmr.msra.gmra.mxu0 %v2361_v45  ;;  %v2365_v25 = vpack.c.bf16 %v2339_v34, %v2338_v0  ;;  %v2343_v9 = vmul.f32 %v2327_v36, %v4619_v7  ;;  %v2344_v41 = vmul.f32 %v2327_v36, %v4636_v46  ;;  %v2345_v54 = vmul.f32 %v2327_v36, %v4642_v26 }
 0x3ec   : > { %2891 = vmatprep.mubr.bf16.mxu0 %v2362_v57  ;;  %v2366_v50 = vpack.c.bf16 %v2341_v43, %v2340_v44  ;;  %v2346_v22 = vmul.f32 %v2327_v36, %v4646_v48  ;;  %v2347_v39 = vmul.f32 %v2327_v36, %v4651_v32  ;;  %v2348_v17 = vmul.f32 %v2327_v36, %v4656_v15 }
 0x3ed   : > { %v2367_v30 = vpack.c.bf16 %v2343_v9, %v2342_v29  ;;  %v2368_v16 = vpack.c.bf16 %v2345_v54, %v2344_v41  ;;  %v2349_v58 = vmul.f32 %v2327_v36, %v4659_v6  ;;  %v2350_v7 = vmul.f32 %v2327_v36, %v4664_v37 }
 0x3ee   : > { %v2369_v56 = vpack.c.bf16 %v2347_v39, %v2346_v22  ;;  %v2351_v46 = vmul.f32 %v2327_v36, %v4667_v28  ;;  %v2352_v26 = vmul.f32 %v2327_v36, %v4671_v3  ;;  %v2353_v53 = vmul.f32 %v2327_v36, %v4674_v11 }
 0x3ef   : > { %v2370_v38 = vpack.c.bf16 %v2349_v58, %v2348_v17  ;;  %v2354_v32 = vmul.f32 %v2327_v36, %v4678_v59  ;;  %v2355_v15 = vmul.f32 %v2327_v36, %v4682_v8  ;;  %v2356_v6 = vmul.f32 %v2327_v36, %v4687_v35  ;;  %v4798_v59 = vld [vmem:[%s4916_s10] ss:$0 sm:$0xff] }
 0x3f0   : > { %v2371_v13 = vpack.c.bf16 %v2351_v46, %v2350_v7  ;;  %v2372_v48 = vpack.c.bf16 %v2353_v53, %v2352_v26  ;;  %v2357_v10 = vmul.f32 %v2327_v36, %v4690_v12  ;;  %v2358_v28 = vmul.f32 %v2327_v36, %v4694_v23 }
 0x3f1   : > { %v2373_v37 = vpack.c.bf16 %v2355_v15, %v2354_v32  ;;  %v2359_v3 = vmul.f32 %v2327_v36, %v4698_v47 }
 0x3f2   : > { %v2374_v60 = vpack.c.bf16 %v2357_v10, %v2356_v6 }
 0x3f3   : > { %2892 = vmatmul.mubr.bf16.gmra.mxu0 %v2363_v51  ;;  %v2375_v11 = vpack.c.bf16 %v2359_v3, %v2358_v28 }
 0x3f4   : > { %2895 = vmatprep.mubr.bf16.mxu0 %v2364_v14 }
 0x3fb   : > { %2896 = vmatmul.mubr.bf16.gmra.mxu0 %v2365_v25 }
 0x3fc   : > { %2899 = vmatprep.mubr.bf16.mxu0 %v2366_v50 }
 0x403   : > { %2900 = vmatmul.mubr.bf16.gmra.mxu0 %v2367_v30 }
 0x404   : > { %2903 = vmatprep.mubr.bf16.mxu0 %v2368_v16 }
 0x40b   : > { %2904 = vmatmul.mubr.bf16.gmra.mxu0 %v2369_v56 }
 0x40c   : > { %2907 = vmatprep.mubr.bf16.mxu0 %v2370_v38 }
 0x413   : > { %2908 = vmatmul.mubr.bf16.gmra.mxu0 %v2371_v13 }
 0x414   : > { %2911 = vmatprep.mubr.bf16.mxu0 %v2372_v48 }
 0x41b   : > { %2912 = vmatmul.mubr.bf16.gmra.mxu0 %v2373_v37 }
 0x41c   : > { %2915 = vmatprep.mubr.bf16.mxu0 %v2374_v60 }
 0x423   : > { %2916 = vmatmul.mubr.bf16.gmra.mxu0 %v2375_v11 }
 0x4ab   : > { %v2889_v8 = vpop.f32.mrf.mxu0 }
 0x4ac   : > { %v2450_v35 = vadd.f32 %v2889_v8, %v4798_v59 }
 0x4ad   : > { %v2441_v12 = vpop.f32.mrf.mxu0 }
 0x4ae   : > { %2571 = vst.msk [vmem:[%s4805_s22 + $0x10] sm:$0xff] %vm2568_vm4, %v2450_v35  ;;  %v2442_v23 = vadd.f32 %v4798_v59, %v2441_v12 }
 0x4af   : > { %v2890_v47 = vpop.f32.mrf.mxu0 }
 0x4b0   : > { %2569 = vst.msk [vmem:[%s4805_s22] sm:$0xff] %vm2568_vm4, %v2442_v23  ;;  %v2453_v36 = vadd.f32 %v2890_v47, %v4798_v59 }
 0x4b1   : > { %v2444_v62 = vpop.f32.mrf.mxu0 }
 0x4b2   : > { %2572 = vst.msk [vmem:[%s4805_s22 + $0x18] sm:$0xff] %vm2568_vm4, %v2453_v36  ;;  %v2445_v27 = vadd.f32 %v4798_v59, %v2444_v62 }
 0x4b3   : > { %v2893_v49 = vpop.f32.mrf.mxu0 }
 0x4b4   : > { %2570 = vst.msk [vmem:[%s4805_s22 + $0x8] sm:$0xff] %vm2568_vm4, %v2445_v27  ;;  %v2466_v33 = vadd.f32 %v2893_v49, %v4798_v59 }
 0x4b5   : > { %v2457_v63 = vpop.f32.mrf.mxu0 }
 0x4b6   : > { %2575 = vst.msk [vmem:[%s4805_s22 + $0x30] sm:$0xff] %vm2568_vm4, %v2466_v33  ;;  %v2458_v55 = vadd.f32 %v4798_v59, %v2457_v63 }
 0x4b7   : > { %v2894_v18 = vpop.f32.mrf.mxu0 }
 0x4b8   : > { %2573 = vst.msk [vmem:[%s4805_s22 + $0x20] sm:$0xff] %vm2568_vm4, %v2458_v55  ;;  %v2469_v45 = vadd.f32 %v2894_v18, %v4798_v59 }
 0x4b9   : > { %v2460_v57 = vpop.f32.mrf.mxu0 }
 0x4ba   : > { %2576 = vst.msk [vmem:[%s4805_s22 + $0x38] sm:$0xff] %vm2568_vm4, %v2469_v45  ;;  %v2461_v20 = vadd.f32 %v4798_v59, %v2460_v57 }
 0x4bb   : > { %v2897_v4 = vpop.f32.mrf.mxu0 }
 0x4bc   : > { %2574 = vst.msk [vmem:[%s4805_s22 + $0x28] sm:$0xff] %vm2568_vm4, %v2461_v20  ;;  %v2482_v42 = vadd.f32 %v2897_v4, %v4798_v59 }
 0x4bd   : > { %v2473_v61 = vpop.f32.mrf.mxu0 }
 0x4be   : > { %2579 = vst.msk [vmem:[%s4805_s22 + $0x50] sm:$0xff] %vm2568_vm4, %v2482_v42  ;;  %v2474_v40 = vadd.f32 %v4798_v59, %v2473_v61 }
 0x4bf   : > { %v2898_v5 = vpop.f32.mrf.mxu0 }
 0x4c0   : > { %2577 = vst.msk [vmem:[%s4805_s22 + $0x40] sm:$0xff] %vm2568_vm4, %v2474_v40  ;;  %v2485_v2 = vadd.f32 %v2898_v5, %v4798_v59 }
 0x4c1   : > { %v2476_v1 = vpop.f32.mrf.mxu0 }
 0x4c2   : > { %2580 = vst.msk [vmem:[%s4805_s22 + $0x58] sm:$0xff] %vm2568_vm4, %v2485_v2  ;;  %v2477_v51 = vadd.f32 %v4798_v59, %v2476_v1 }
 0x4c3   : > { %v2901_v14 = vpop.f32.mrf.mxu0 }
 0x4c4   : > { %2578 = vst.msk [vmem:[%s4805_s22 + $0x48] sm:$0xff] %vm2568_vm4, %v2477_v51  ;;  %v2498_v24 = vadd.f32 %v2901_v14, %v4798_v59 }
 0x4c5   : > { %v2489_v0 = vpop.f32.mrf.mxu0 }
 0x4c6   : > { %2583 = vst.msk [vmem:[%s4805_s22 + $0x70] sm:$0xff] %vm2568_vm4, %v2498_v24  ;;  %v2490_v19 = vadd.f32 %v4798_v59, %v2489_v0 }
 0x4c7   : > { %v2902_v34 = vpop.f32.mrf.mxu0 }
 0x4c8   : > { %2581 = vst.msk [vmem:[%s4805_s22 + $0x60] sm:$0xff] %vm2568_vm4, %v2490_v19  ;;  %v2501_v52 = vadd.f32 %v2902_v34, %v4798_v59 }
 0x4c9   : > { %v2492_v44 = vpop.f32.mrf.mxu0 }
 0x4ca   : > { %2584 = vst.msk [vmem:[%s4805_s22 + $0x78] sm:$0xff] %vm2568_vm4, %v2501_v52  ;;  %v2493_v21 = vadd.f32 %v4798_v59, %v2492_v44 }
 0x4cb   : > { %v2905_v43 = vpop.f32.mrf.mxu0 }
 0x4cc   : > { %2582 = vst.msk [vmem:[%s4805_s22 + $0x68] sm:$0xff] %vm2568_vm4, %v2493_v21  ;;  %v2514_v25 = vadd.f32 %v2905_v43, %v4798_v59 }
 0x4cd   : > { %v2505_v50 = vpop.f32.mrf.mxu0 }
 0x4ce   : > { %2587 = vst.msk [vmem:[%s4805_s22 + $0x90] sm:$0xff] %vm2568_vm4, %v2514_v25  ;;  %v2506_v31 = vadd.f32 %v4798_v59, %v2505_v50 }
 0x4cf   : > { %v2906_v29 = vpop.f32.mrf.mxu0 }
 0x4d0   : > { %2585 = vst.msk [vmem:[%s4805_s22 + $0x80] sm:$0xff] %vm2568_vm4, %v2506_v31  ;;  %v2517_v9 = vadd.f32 %v2906_v29, %v4798_v59 }
 0x4d1   : > { %v2508_v41 = vpop.f32.mrf.mxu0 }
 0x4d2   : > { %2588 = vst.msk [vmem:[%s4805_s22 + $0x98] sm:$0xff] %vm2568_vm4, %v2517_v9  ;;  %v2509_v54 = vadd.f32 %v4798_v59, %v2508_v41 }
 0x4d3   : > { %v2909_v30 = vpop.f32.mrf.mxu0 }
 0x4d4   : > { %2586 = vst.msk [vmem:[%s4805_s22 + $0x88] sm:$0xff] %vm2568_vm4, %v2509_v54  ;;  %v2530_v16 = vadd.f32 %v2909_v30, %v4798_v59 }
 0x4d5   : > { %v2521_v22 = vpop.f32.mrf.mxu0 }
 0x4d6   : > { %2591 = vst.msk [vmem:[%s4805_s22 + $0xb0] sm:$0xff] %vm2568_vm4, %v2530_v16  ;;  %v2522_v39 = vadd.f32 %v4798_v59, %v2521_v22 }
 0x4d7   : > { %v2910_v17 = vpop.f32.mrf.mxu0 }
 0x4d8   : > { %2589 = vst.msk [vmem:[%s4805_s22 + $0xa0] sm:$0xff] %vm2568_vm4, %v2522_v39  ;;  %v2533_v58 = vadd.f32 %v2910_v17, %v4798_v59 }
 0x4d9   : > { %v2524_v56 = vpop.f32.mrf.mxu0 }
 0x4da   : > { %2592 = vst.msk [vmem:[%s4805_s22 + $0xb8] sm:$0xff] %vm2568_vm4, %v2533_v58  ;;  %v2525_v38 = vadd.f32 %v4798_v59, %v2524_v56 }
 0x4db   : > { %v2913_v7 = vpop.f32.mrf.mxu0 }
 0x4dc   : > { %2590 = vst.msk [vmem:[%s4805_s22 + $0xa8] sm:$0xff] %vm2568_vm4, %v2525_v38  ;;  %v2546_v46 = vadd.f32 %v2913_v7, %v4798_v59 }
 0x4dd   : > { %v2537_v26 = vpop.f32.mrf.mxu0 }
 0x4de   : > { %2595 = vst.msk [vmem:[%s4805_s22 + $0xd0] sm:$0xff] %vm2568_vm4, %v2546_v46  ;;  %v2538_v53 = vadd.f32 %v4798_v59, %v2537_v26 }
 0x4df   : > { %v2914_v13 = vpop.f32.mrf.mxu0 }
 0x4e0   : > { %2593 = vst.msk [vmem:[%s4805_s22 + $0xc0] sm:$0xff] %vm2568_vm4, %v2538_v53  ;;  %v2549_v48 = vadd.f32 %v2914_v13, %v4798_v59 }
 0x4e1   : > { %v2540_v32 = vpop.f32.mrf.mxu0 }
 0x4e2   : > { %2596 = vst.msk [vmem:[%s4805_s22 + $0xd8] sm:$0xff] %vm2568_vm4, %v2549_v48  ;;  %v2541_v15 = vadd.f32 %v4798_v59, %v2540_v32 }
 0x4e3   : > { %v2917_v6 = vpop.f32.mrf.mxu0 }
 0x4e4   : > { %2594 = vst.msk [vmem:[%s4805_s22 + $0xc8] sm:$0xff] %vm2568_vm4, %v2541_v15  ;;  %v2562_v10 = vadd.f32 %v2917_v6, %v4798_v59 }
 0x4e5   : > { %v2553_v37 = vpop.f32.mrf.mxu0 }
 0x4e6   : > { %2599 = vst.msk [vmem:[%s4805_s22 + $0xf0] sm:$0xff] %vm2568_vm4, %v2562_v10  ;;  %v2554_v60 = vadd.f32 %v4798_v59, %v2553_v37 }
 0x4e7   : > { %v2918_v28 = vpop.f32.mrf.mxu0 }
 0x4e8   : > { %2597 = vst.msk [vmem:[%s4805_s22 + $0xe0] sm:$0xff] %vm2568_vm4, %v2554_v60  ;;  %v2565_v3 = vadd.f32 %v2918_v28, %v4798_v59 }
 0x4e9   : > { %v2556_v11 = vpop.f32.mrf.mxu0 }
 0x4ea   : > { %2600 = vst.msk [vmem:[%s4805_s22 + $0xf8] sm:$0xff] %vm2568_vm4, %v2565_v3  ;;  %v2557_v8 = vadd.f32 %v4798_v59, %v2556_v11 }
 0x4ec   : > { %2598 = vst.msk [vmem:[%s4805_s22 + $0xe8] sm:$0xff] %vm2568_vm4, %v2557_v8 }
 0x4ed PF: > { %s21_s17 = sadd.s32 1, %s3204_s17  }
 0x4ee   : > { %p18_p4 = scmp.ge.s32.totalorder %s21_s17, 4  }
 0x4f0   :  { %20 = sbr.rel (!%p18_p4) target bundleno = 1 (0x1), region = 96 }

</bundles_post_ra>
